<compile_context>
chip_gen: v7x
topology: tpu7x:2x2x1
jax: 0.10.0
libtpu: 0.0.40
codegen_flags: <defaults>
</compile_context>

<pallas_src>
import functools
import math

import jax
import jax.numpy as jnp
import numpy as np
from jax.experimental import pallas as pl
from jax.experimental.pallas import tpu as pltpu


def _round_up(x, m):
    return (x + m - 1) // m * m


# ----------------------------- Pallas kernel --------------------------------

def _fused_conv_kernel(x_ref, w_ref, b_ref, o_ref, *, taps, relu):
    """Fused im2col + matmul + bias (+relu) for one image.

    x_ref: (n_phase, Lp, Cin_pad)   flattened, phase-decomposed, padded input
    w_ref: (K*K, Cin_pad, Cout_pad) per-tap weight slabs
    b_ref: (1, Cout_pad)
    o_ref: (n_rows, Cout_pad)       n_rows = Ho * Ws (junk cols cropped in glue)
    taps:  static tuple of (phase_idx, row_start, tap_idx)
    """
    n_rows, cout_p = o_ref.shape
    acc = jnp.zeros((n_rows, cout_p), jnp.float32)
    for p_idx, start, t in taps:
        lhs = x_ref[p_idx, pl.ds(start, n_rows), :]          # (n_rows, Cin_pad)
        acc = acc + jnp.dot(lhs, w_ref[t],
                            preferred_element_type=jnp.float32)
    acc = acc + b_ref[...]                                   # (1, Cout_pad) bcast
    if relu:
        acc = jnp.maximum(acc, 0.0)
    o_ref[...] = acc.astype(o_ref.dtype)


# ------------------------------- conv layer ----------------------------------

def _fused_conv(x_nhwc, w_oihw, bias, k, stride, pad, *, relu):
    """x_nhwc: (B, H, W, C) with C already a multiple of 128 (zero padded).

    Returns (B, Ho, Wo, Cout_pad) with channels >= Cout zeroed.
    """
    b, h, w, c = x_nhwc.shape
    cout, cin = int(w_oihw.shape[0]), int(w_oihw.shape[1])
    s = stride
    cin_pad = _round_up(max(c, cin), 128)
    cout_pad = _round_up(cout, 128)

    ho = (h + 2 * pad - k) // s + 1
    wo = (w + 2 * pad - k) // s + 1
    q = (k - 1) // s                       # max intra-phase tap offset
    hs, ws = ho + q, wo + q                # per-phase spatial extent needed

    # Spatial zero-pad (top/left = `pad`, bottom/right up to s*hs, s*ws) and
    # channel zero-pad to cin_pad.  |0| = 0 so the abs folded in the glue of
    # the first layer stays exact.
    bot, rgt = s * hs - h - pad, s * ws - w - pad
    assert bot >= 0 and rgt >= 0
    xp = jnp.pad(x_nhwc, ((0, 0), (pad, bot), (pad, rgt), (0, cin_pad - c)))

    # Phase decomposition: phases[b, ph*s+pw, r*ws+cc, :] = xp[b, s*r+ph, s*cc+pw, :]
    xr = xp.reshape(b, hs, s, ws, s, cin_pad)
    phases = xr.transpose(0, 2, 4, 1, 3, 5).reshape(b, s * s, hs * ws, cin_pad)
    lp = _round_up(hs * ws + q, 8)
    phases = jnp.pad(phases, ((0, 0), (0, 0), (0, lp - hs * ws), (0, 0)))

    # Weights: torch (Cout, Cin, kh, kw) -> (K*K, Cin_pad, Cout_pad), tap-major.
    wt = jnp.transpose(w_oihw, (2, 3, 1, 0)).reshape(k * k, cin, cout)
    wt = jnp.pad(wt, ((0, 0), (0, cin_pad - cin), (0, cout_pad - cout)))
    b2 = jnp.pad(bias.reshape(1, cout), ((0, 0), (0, cout_pad - cout)))

    n_rows = ho * ws
    # Static tap table: tap (kh, kw) reads phase (kh%s, kw%s) at flat row
    # offset (kh//s)*ws + (kw//s); rows with column index >= wo are junk and
    # cropped after the call.
    taps = tuple(((kh % s) * s + (kw % s), (kh // s) * ws + (kw // s), kh * k + kw)
                 for kh in range(k) for kw in range(k))

    kernel = functools.partial(_fused_conv_kernel, taps=taps, relu=relu)
    out = pl.pallas_call(
        kernel,
        out_shape=jax.ShapeDtypeStruct((b, n_rows, cout_pad), x_nhwc.dtype),
        grid=(b,),
        in_specs=[
            pl.BlockSpec((None, s * s, lp, cin_pad), lambda i: (i, 0, 0, 0)),
            pl.BlockSpec((k * k, cin_pad, cout_pad), lambda i: (0, 0, 0)),
            pl.BlockSpec((1, cout_pad), lambda i: (0, 0)),
        ],
        out_specs=pl.BlockSpec((None, n_rows, cout_pad), lambda i: (i, 0, 0)),
        compiler_params=pltpu.CompilerParams(
            dimension_semantics=("parallel",),
            vmem_limit_bytes=32 * 1024 * 1024),
    )(phases, wt, b2)

    # Crop junk columns; keep channels padded (lane-dense) for the next layer.
    return out.reshape(b, ho, ws, cout_pad)[:, :, :wo, :]


# ------------------------------- forward -------------------------------------

def hyper_analysis_forward(x_nchw, params):
    x = jnp.transpose(x_nchw, (0, 2, 3, 1))                 # NCHW -> NHWC
    x = jnp.abs(x)                                          # once, pre-padding (exact)
    y = _fused_conv(x, params["w1"], params["b1"], 3, 1, 1, relu=True)
    y = _fused_conv(y, params["w2"], params["b2"], 5, 2, 2, relu=True)
    y = _fused_conv(y, params["w3"], params["b3"], 5, 2, 2, relu=False)
    n_out = params["w3"].shape[0]
    y = y[..., :n_out]                                      # drop channel padding
    return jnp.transpose(y, (0, 3, 1, 2))                   # NHWC -> NCHW


# --------------------------- parameter init ----------------------------------

def _xavier_normal(key, c_out, c_in, k, gain):
    fan_in = c_in * k * k
    fan_out = c_out * k * k
    std = gain * math.sqrt(2.0 / (fan_in + fan_out))
    return std * jax.random.normal(key, (c_out, c_in, k, k), dtype=jnp.float32)


def init_params(key, out_channel_N, out_channel_M):
    k1, k2, k3 = jax.random.split(key, 3)
    g1 = math.sqrt(2 * (out_channel_M + out_channel_N) / (2 * out_channel_M))
    return {
        "w1": _xavier_normal(k1, out_channel_N, out_channel_M, 3, g1),
        "b1": jnp.full((out_channel_N,), 0.01, dtype=jnp.float32),
        "w2": _xavier_normal(k2, out_channel_N, out_channel_N, 5, math.sqrt(2)),
        "b2": jnp.full((out_channel_N,), 0.01, dtype=jnp.float32),
        "w3": _xavier_normal(k3, out_channel_N, out_channel_N, 5, math.sqrt(2)),
        "b3": jnp.full((out_channel_N,), 0.01, dtype=jnp.float32),
    }


# ------------------------------ reference ------------------------------------

def _ref_conv(x_nhwc, w_oihw, bias, stride, pad, relu):
    w_hwio = jnp.transpose(w_oihw, (2, 3, 1, 0))
    y = jax.lax.conv_general_dilated(
        x_nhwc, w_hwio, window_strides=(stride, stride),
        padding=((pad, pad), (pad, pad)),
        dimension_numbers=("NHWC", "HWIO", "NHWC"))
    y = y + bias.reshape(1, 1, 1, -1)
    return jnp.maximum(y, 0.0) if relu else y


def reference_forward(x_nchw, p):
    x = jnp.transpose(jnp.abs(x_nchw), (0, 2, 3, 1))
    y = _ref_conv(x, p["w1"], p["b1"], 1, 1, True)
    y = _ref_conv(y, p["w2"], p["b2"], 2, 2, True)
    y = _ref_conv(y, p["w3"], p["b3"], 2, 2, False)
    return jnp.transpose(y, (0, 3, 1, 2))


# -------------------------------- main ----------------------------------------

if __name__ == "__main__":
    # Module-consistent small shapes: N=32, M=4*N=128, batch=2, spatial 16x16.
    out_channel_N = 32
    out_channel_M = 4 * out_channel_N

    key = jax.random.PRNGKey(0)
    kx, kp = jax.random.split(key)
    x = jax.random.normal(kx, (2, out_channel_M, 16, 16), dtype=jnp.float32)
    params = init_params(kp, out_channel_N, out_channel_M)

    out = jax.jit(hyper_analysis_forward)(x, params)
    out = jax.block_until_ready(out)

    assert out.shape == (2, out_channel_N, 4, 4), out.shape

    ref = jax.block_until_ready(reference_forward(x, params))
    np.testing.assert_allclose(np.asarray(out), np.asarray(ref),
                               rtol=1e-4, atol=5e-4)

    print("KERNEL_OK")
</pallas_src>

<mosaic_0001>
module attributes {stable_mosaic.version = 11 : i64} {
  func.func @_fused_conv_kernel(%arg0: i32, %arg1: memref<1x1x328x128xf32, #tpu.memory_space<vmem>>, %arg2: memref<9x128x128xf32, #tpu.memory_space<vmem>>, %arg3: memref<1x128xf32, #tpu.memory_space<vmem>>, %arg4: memref<1x288x128xf32, #tpu.memory_space<vmem>>) attributes {dimension_semantics = [#tpu.dimension_semantics<parallel>], iteration_bounds = array<i64: 2>, scalar_prefetch = 0 : i64, scratch_operands = 0 : i64, tpu.core_type = #tpu.core_type<tc>, window_params = [{transform_indices = @transform_0, window_bounds = array<i64: 1, 1, 328, 128>}, {pipeline_mode = #tpu.pipeline_mode<synchronous>, transform_indices = @transform_1, window_bounds = array<i64: 9, 128, 128>}, {pipeline_mode = #tpu.pipeline_mode<synchronous>, transform_indices = @transform_2, window_bounds = array<i64: 1, 128>}, {transform_indices = @transform_3, window_bounds = array<i64: 1, 288, 128>}]} {
    %cst = arith.constant 0.000000e+00 : f32
    %0 = vector.broadcast %cst : f32 to vector<288x128xf32>
    %c0 = arith.constant 0 : index
    %c0_0 = arith.constant 0 : index
    %c0_1 = arith.constant 0 : index
    %c0_2 = arith.constant 0 : index
    %1 = vector.load %arg1[%c0, %c0_0, %c0_1, %c0_2] : memref<1x1x328x128xf32, #tpu.memory_space<vmem>>, vector<1x1x288x128xf32>
    %2 = vector.shape_cast %1 : vector<1x1x288x128xf32> to vector<288x128xf32>
    %c0_3 = arith.constant 0 : index
    %c0_4 = arith.constant 0 : index
    %c0_5 = arith.constant 0 : index
    %3 = vector.load %arg2[%c0_3, %c0_4, %c0_5] : memref<9x128x128xf32, #tpu.memory_space<vmem>>, vector<1x128x128xf32>
    %4 = vector.shape_cast %3 : vector<1x128x128xf32> to vector<128x128xf32>
    %cst_6 = arith.constant dense<0.000000e+00> : vector<288x128xf32>
    %5 = tpu.matmul %2, %4, %cst_6 {dimension_numbers = #tpu.dot_dimension_numbers<[1], [0], [0], [1], [0, 0, 1, 1], [], []>} : vector<288x128xf32>, vector<128x128xf32>, vector<288x128xf32> -> vector<288x128xf32>
    %6 = arith.addf %0, %5 : vector<288x128xf32>
    %c0_7 = arith.constant 0 : index
    %c0_8 = arith.constant 0 : index
    %c1 = arith.constant 1 : index
    %c0_9 = arith.constant 0 : index
    %7 = vector.load %arg1[%c0_7, %c0_8, %c1, %c0_9] : memref<1x1x328x128xf32, #tpu.memory_space<vmem>>, vector<1x1x288x128xf32>
    %8 = vector.shape_cast %7 : vector<1x1x288x128xf32> to vector<288x128xf32>
    %c1_10 = arith.constant 1 : index
    %c0_11 = arith.constant 0 : index
    %c0_12 = arith.constant 0 : index
    %9 = vector.load %arg2[%c1_10, %c0_11, %c0_12] : memref<9x128x128xf32, #tpu.memory_space<vmem>>, vector<1x128x128xf32>
    %10 = vector.shape_cast %9 : vector<1x128x128xf32> to vector<128x128xf32>
    %cst_13 = arith.constant dense<0.000000e+00> : vector<288x128xf32>
    %11 = tpu.matmul %8, %10, %cst_13 {dimension_numbers = #tpu.dot_dimension_numbers<[1], [0], [0], [1], [0, 0, 1, 1], [], []>} : vector<288x128xf32>, vector<128x128xf32>, vector<288x128xf32> -> vector<288x128xf32>
    %12 = arith.addf %6, %11 : vector<288x128xf32>
    %c0_14 = arith.constant 0 : index
    %c0_15 = arith.constant 0 : index
    %c2 = arith.constant 2 : index
    %c0_16 = arith.constant 0 : index
    %13 = vector.load %arg1[%c0_14, %c0_15, %c2, %c0_16] : memref<1x1x328x128xf32, #tpu.memory_space<vmem>>, vector<1x1x288x128xf32>
    %14 = vector.shape_cast %13 : vector<1x1x288x128xf32> to vector<288x128xf32>
    %c2_17 = arith.constant 2 : index
    %c0_18 = arith.constant 0 : index
    %c0_19 = arith.constant 0 : index
    %15 = vector.load %arg2[%c2_17, %c0_18, %c0_19] : memref<9x128x128xf32, #tpu.memory_space<vmem>>, vector<1x128x128xf32>
    %16 = vector.shape_cast %15 : vector<1x128x128xf32> to vector<128x128xf32>
    %cst_20 = arith.constant dense<0.000000e+00> : vector<288x128xf32>
    %17 = tpu.matmul %14, %16, %cst_20 {dimension_numbers = #tpu.dot_dimension_numbers<[1], [0], [0], [1], [0, 0, 1, 1], [], []>} : vector<288x128xf32>, vector<128x128xf32>, vector<288x128xf32> -> vector<288x128xf32>
    %18 = arith.addf %12, %17 : vector<288x128xf32>
    %c0_21 = arith.constant 0 : index
    %c0_22 = arith.constant 0 : index
    %c18 = arith.constant 18 : index
    %c0_23 = arith.constant 0 : index
    %19 = vector.load %arg1[%c0_21, %c0_22, %c18, %c0_23] : memref<1x1x328x128xf32, #tpu.memory_space<vmem>>, vector<1x1x288x128xf32>
    %20 = vector.shape_cast %19 : vector<1x1x288x128xf32> to vector<288x128xf32>
    %c3 = arith.constant 3 : index
    %c0_24 = arith.constant 0 : index
    %c0_25 = arith.constant 0 : index
    %21 = vector.load %arg2[%c3, %c0_24, %c0_25] : memref<9x128x128xf32, #tpu.memory_space<vmem>>, vector<1x128x128xf32>
    %22 = vector.shape_cast %21 : vector<1x128x128xf32> to vector<128x128xf32>
    %cst_26 = arith.constant dense<0.000000e+00> : vector<288x128xf32>
    %23 = tpu.matmul %20, %22, %cst_26 {dimension_numbers = #tpu.dot_dimension_numbers<[1], [0], [0], [1], [0, 0, 1, 1], [], []>} : vector<288x128xf32>, vector<128x128xf32>, vector<288x128xf32> -> vector<288x128xf32>
    %24 = arith.addf %18, %23 : vector<288x128xf32>
    %c0_27 = arith.constant 0 : index
    %c0_28 = arith.constant 0 : index
    %c19 = arith.constant 19 : index
    %c0_29 = arith.constant 0 : index
    %25 = vector.load %arg1[%c0_27, %c0_28, %c19, %c0_29] : memref<1x1x328x128xf32, #tpu.memory_space<vmem>>, vector<1x1x288x128xf32>
    %26 = vector.shape_cast %25 : vector<1x1x288x128xf32> to vector<288x128xf32>
    %c4 = arith.constant 4 : index
    %c0_30 = arith.constant 0 : index
    %c0_31 = arith.constant 0 : index
    %27 = vector.load %arg2[%c4, %c0_30, %c0_31] : memref<9x128x128xf32, #tpu.memory_space<vmem>>, vector<1x128x128xf32>
    %28 = vector.shape_cast %27 : vector<1x128x128xf32> to vector<128x128xf32>
    %cst_32 = arith.constant dense<0.000000e+00> : vector<288x128xf32>
    %29 = tpu.matmul %26, %28, %cst_32 {dimension_numbers = #tpu.dot_dimension_numbers<[1], [0], [0], [1], [0, 0, 1, 1], [], []>} : vector<288x128xf32>, vector<128x128xf32>, vector<288x128xf32> -> vector<288x128xf32>
    %30 = arith.addf %24, %29 : vector<288x128xf32>
    %c0_33 = arith.constant 0 : index
    %c0_34 = arith.constant 0 : index
    %c20 = arith.constant 20 : index
    %c0_35 = arith.constant 0 : index
    %31 = vector.load %arg1[%c0_33, %c0_34, %c20, %c0_35] : memref<1x1x328x128xf32, #tpu.memory_space<vmem>>, vector<1x1x288x128xf32>
    %32 = vector.shape_cast %31 : vector<1x1x288x128xf32> to vector<288x128xf32>
    %c5 = arith.constant 5 : index
    %c0_36 = arith.constant 0 : index
    %c0_37 = arith.constant 0 : index
    %33 = vector.load %arg2[%c5, %c0_36, %c0_37] : memref<9x128x128xf32, #tpu.memory_space<vmem>>, vector<1x128x128xf32>
    %34 = vector.shape_cast %33 : vector<1x128x128xf32> to vector<128x128xf32>
    %cst_38 = arith.constant dense<0.000000e+00> : vector<288x128xf32>
    %35 = tpu.matmul %32, %34, %cst_38 {dimension_numbers = #tpu.dot_dimension_numbers<[1], [0], [0], [1], [0, 0, 1, 1], [], []>} : vector<288x128xf32>, vector<128x128xf32>, vector<288x128xf32> -> vector<288x128xf32>
    %36 = arith.addf %30, %35 : vector<288x128xf32>
    %c0_39 = arith.constant 0 : index
    %c0_40 = arith.constant 0 : index
    %c36 = arith.constant 36 : index
    %c0_41 = arith.constant 0 : index
    %37 = vector.load %arg1[%c0_39, %c0_40, %c36, %c0_41] : memref<1x1x328x128xf32, #tpu.memory_space<vmem>>, vector<1x1x288x128xf32>
    %38 = vector.shape_cast %37 : vector<1x1x288x128xf32> to vector<288x128xf32>
    %c6 = arith.constant 6 : index
    %c0_42 = arith.constant 0 : index
    %c0_43 = arith.constant 0 : index
    %39 = vector.load %arg2[%c6, %c0_42, %c0_43] : memref<9x128x128xf32, #tpu.memory_space<vmem>>, vector<1x128x128xf32>
    %40 = vector.shape_cast %39 : vector<1x128x128xf32> to vector<128x128xf32>
    %cst_44 = arith.constant dense<0.000000e+00> : vector<288x128xf32>
    %41 = tpu.matmul %38, %40, %cst_44 {dimension_numbers = #tpu.dot_dimension_numbers<[1], [0], [0], [1], [0, 0, 1, 1], [], []>} : vector<288x128xf32>, vector<128x128xf32>, vector<288x128xf32> -> vector<288x128xf32>
    %42 = arith.addf %36, %41 : vector<288x128xf32>
    %c0_45 = arith.constant 0 : index
    %c0_46 = arith.constant 0 : index
    %c37 = arith.constant 37 : index
    %c0_47 = arith.constant 0 : index
    %43 = vector.load %arg1[%c0_45, %c0_46, %c37, %c0_47] : memref<1x1x328x128xf32, #tpu.memory_space<vmem>>, vector<1x1x288x128xf32>
    %44 = vector.shape_cast %43 : vector<1x1x288x128xf32> to vector<288x128xf32>
    %c7 = arith.constant 7 : index
    %c0_48 = arith.constant 0 : index
    %c0_49 = arith.constant 0 : index
    %45 = vector.load %arg2[%c7, %c0_48, %c0_49] : memref<9x128x128xf32, #tpu.memory_space<vmem>>, vector<1x128x128xf32>
    %46 = vector.shape_cast %45 : vector<1x128x128xf32> to vector<128x128xf32>
    %cst_50 = arith.constant dense<0.000000e+00> : vector<288x128xf32>
    %47 = tpu.matmul %44, %46, %cst_50 {dimension_numbers = #tpu.dot_dimension_numbers<[1], [0], [0], [1], [0, 0, 1, 1], [], []>} : vector<288x128xf32>, vector<128x128xf32>, vector<288x128xf32> -> vector<288x128xf32>
    %48 = arith.addf %42, %47 : vector<288x128xf32>
    %c0_51 = arith.constant 0 : index
    %c0_52 = arith.constant 0 : index
    %c38 = arith.constant 38 : index
    %c0_53 = arith.constant 0 : index
    %49 = vector.load %arg1[%c0_51, %c0_52, %c38, %c0_53] : memref<1x1x328x128xf32, #tpu.memory_space<vmem>>, vector<1x1x288x128xf32>
    %50 = vector.shape_cast %49 : vector<1x1x288x128xf32> to vector<288x128xf32>
    %c8 = arith.constant 8 : index
    %c0_54 = arith.constant 0 : index
    %c0_55 = arith.constant 0 : index
    %51 = vector.load %arg2[%c8, %c0_54, %c0_55] : memref<9x128x128xf32, #tpu.memory_space<vmem>>, vector<1x128x128xf32>
    %52 = vector.shape_cast %51 : vector<1x128x128xf32> to vector<128x128xf32>
    %cst_56 = arith.constant dense<0.000000e+00> : vector<288x128xf32>
    %53 = tpu.matmul %50, %52, %cst_56 {dimension_numbers = #tpu.dot_dimension_numbers<[1], [0], [0], [1], [0, 0, 1, 1], [], []>} : vector<288x128xf32>, vector<128x128xf32>, vector<288x128xf32> -> vector<288x128xf32>
    %54 = arith.addf %48, %53 : vector<288x128xf32>
    %c0_57 = arith.constant 0 : index
    %c0_58 = arith.constant 0 : index
    %55 = vector.load %arg3[%c0_57, %c0_58] : memref<1x128xf32, #tpu.memory_space<vmem>>, vector<1x128xf32>
    %56 = vector.broadcast %55 : vector<1x128xf32> to vector<288x128xf32>
    %57 = arith.addf %54, %56 : vector<288x128xf32>
    %cst_59 = arith.constant 0.000000e+00 : f32
    %58 = vector.broadcast %cst_59 : f32 to vector<288x128xf32>
    %59 = arith.maximumf %57, %58 : vector<288x128xf32>
    %c0_60 = arith.constant 0 : index
    %c0_61 = arith.constant 0 : index
    %c0_62 = arith.constant 0 : index
    %60 = vector.load %arg4[%c0_60, %c0_61, %c0_62] : memref<1x288x128xf32, #tpu.memory_space<vmem>>, vector<1x288x128xf32>
    %61 = vector.shape_cast %60 : vector<1x288x128xf32> to vector<288x128xf32>
    %62 = vector.shape_cast %59 : vector<288x128xf32> to vector<1x288x128xf32>
    tpu.vector_store %arg4[%c0_60, %c0_61, %c0_62], %62 {strides = array<i32>} : memref<1x288x128xf32, #tpu.memory_space<vmem>>, vector<1x288x128xf32>,
    return
  }
  func.func @transform_0(%arg0: i32) -> (i32, i32, i32, i32) {
    %c0_i32 = arith.constant 0 : i32
    %c0_i32_0 = arith.constant 0 : i32
    %c0_i32_1 = arith.constant 0 : i32
    %c0_i32_2 = arith.constant 0 : i32
    return %arg0, %c0_i32, %c0_i32_0, %c0_i32_1 : i32, i32, i32, i32
  }
  func.func @transform_1(%arg0: i32) -> (i32, i32, i32) {
    %c0_i32 = arith.constant 0 : i32
    %c0_i32_0 = arith.constant 0 : i32
    %c0_i32_1 = arith.constant 0 : i32
    %c0_i32_2 = arith.constant 0 : i32
    return %c0_i32, %c0_i32_0, %c0_i32_1 : i32, i32, i32
  }
  func.func @transform_2(%arg0: i32) -> (i32, i32) {
    %c0_i32 = arith.constant 0 : i32
    %c0_i32_0 = arith.constant 0 : i32
    %c0_i32_1 = arith.constant 0 : i32
    return %c0_i32, %c0_i32_0 : i32, i32
  }
  func.func @transform_3(%arg0: i32) -> (i32, i32, i32) {
    %c0_i32 = arith.constant 0 : i32
    %c0_i32_0 = arith.constant 0 : i32
    %c0_i32_1 = arith.constant 0 : i32
    return %arg0, %c0_i32, %c0_i32_0 : i32, i32, i32
  }
}

module attributes {stable_mosaic.version = 11 : i64} {
  func.func @_fused_conv_kernel(%arg0: i32, %arg1: memref<1x4x104x128xf32, #tpu.memory_space<vmem>>, %arg2: memref<25x128x128xf32, #tpu.memory_space<vmem>>, %arg3: memref<1x128xf32, #tpu.memory_space<vmem>>, %arg4: memref<1x80x128xf32, #tpu.memory_space<vmem>>) attributes {dimension_semantics = [#tpu.dimension_semantics<parallel>], iteration_bounds = array<i64: 2>, scalar_prefetch = 0 : i64, scratch_operands = 0 : i64, tpu.core_type = #tpu.core_type<tc>, window_params = [{transform_indices = @transform_0, window_bounds = array<i64: 1, 4, 104, 128>}, {pipeline_mode = #tpu.pipeline_mode<synchronous>, transform_indices = @transform_1, window_bounds = array<i64: 25, 128, 128>}, {pipeline_mode = #tpu.pipeline_mode<synchronous>, transform_indices = @transform_2, window_bounds = array<i64: 1, 128>}, {transform_indices = @transform_3, window_bounds = array<i64: 1, 80, 128>}]} {
    %cst = arith.constant 0.000000e+00 : f32
    %0 = vector.broadcast %cst : f32 to vector<80x128xf32>
    %c0 = arith.constant 0 : index
    %c0_0 = arith.constant 0 : index
    %c0_1 = arith.constant 0 : index
    %c0_2 = arith.constant 0 : index
    %1 = vector.load %arg1[%c0, %c0_0, %c0_1, %c0_2] : memref<1x4x104x128xf32, #tpu.memory_space<vmem>>, vector<1x1x80x128xf32>
    %2 = vector.shape_cast %1 : vector<1x1x80x128xf32> to vector<80x128xf32>
    %c0_3 = arith.constant 0 : index
    %c0_4 = arith.constant 0 : index
    %c0_5 = arith.constant 0 : index
    %3 = vector.load %arg2[%c0_3, %c0_4, %c0_5] : memref<25x128x128xf32, #tpu.memory_space<vmem>>, vector<1x128x128xf32>
    %4 = vector.shape_cast %3 : vector<1x128x128xf32> to vector<128x128xf32>
    %cst_6 = arith.constant dense<0.000000e+00> : vector<80x128xf32>
    %5 = tpu.matmul %2, %4, %cst_6 {dimension_numbers = #tpu.dot_dimension_numbers<[1], [0], [0], [1], [0, 0, 1, 1], [], []>} : vector<80x128xf32>, vector<128x128xf32>, vector<80x128xf32> -> vector<80x128xf32>
    %6 = arith.addf %0, %5 : vector<80x128xf32>
    %c0_7 = arith.constant 0 : index
    %c1 = arith.constant 1 : index
    %c0_8 = arith.constant 0 : index
    %c0_9 = arith.constant 0 : index
    %7 = vector.load %arg1[%c0_7, %c1, %c0_8, %c0_9] : memref<1x4x104x128xf32, #tpu.memory_space<vmem>>, vector<1x1x80x128xf32>
    %8 = vector.shape_cast %7 : vector<1x1x80x128xf32> to vector<80x128xf32>
    %c1_10 = arith.constant 1 : index
    %c0_11 = arith.constant 0 : index
    %c0_12 = arith.constant 0 : index
    %9 = vector.load %arg2[%c1_10, %c0_11, %c0_12] : memref<25x128x128xf32, #tpu.memory_space<vmem>>, vector<1x128x128xf32>
    %10 = vector.shape_cast %9 : vector<1x128x128xf32> to vector<128x128xf32>
    %cst_13 = arith.constant dense<0.000000e+00> : vector<80x128xf32>
    %11 = tpu.matmul %8, %10, %cst_13 {dimension_numbers = #tpu.dot_dimension_numbers<[1], [0], [0], [1], [0, 0, 1, 1], [], []>} : vector<80x128xf32>, vector<128x128xf32>, vector<80x128xf32> -> vector<80x128xf32>
    %12 = arith.addf %6, %11 : vector<80x128xf32>
    %c0_14 = arith.constant 0 : index
    %c0_15 = arith.constant 0 : index
    %c1_16 = arith.constant 1 : index
    %c0_17 = arith.constant 0 : index
    %13 = vector.load %arg1[%c0_14, %c0_15, %c1_16, %c0_17] : memref<1x4x104x128xf32, #tpu.memory_space<vmem>>, vector<1x1x80x128xf32>
    %14 = vector.shape_cast %13 : vector<1x1x80x128xf32> to vector<80x128xf32>
    %c2 = arith.constant 2 : index
    %c0_18 = arith.constant 0 : index
    %c0_19 = arith.constant 0 : index
    %15 = vector.load %arg2[%c2, %c0_18, %c0_19] : memref<25x128x128xf32, #tpu.memory_space<vmem>>, vector<1x128x128xf32>
    %16 = vector.shape_cast %15 : vector<1x128x128xf32> to vector<128x128xf32>
    %cst_20 = arith.constant dense<0.000000e+00> : vector<80x128xf32>
    %17 = tpu.matmul %14, %16, %cst_20 {dimension_numbers = #tpu.dot_dimension_numbers<[1], [0], [0], [1], [0, 0, 1, 1], [], []>} : vector<80x128xf32>, vector<128x128xf32>, vector<80x128xf32> -> vector<80x128xf32>
    %18 = arith.addf %12, %17 : vector<80x128xf32>
    %c0_21 = arith.constant 0 : index
    %c1_22 = arith.constant 1 : index
    %c1_23 = arith.constant 1 : index
    %c0_24 = arith.constant 0 : index
    %19 = vector.load %arg1[%c0_21, %c1_22, %c1_23, %c0_24] : memref<1x4x104x128xf32, #tpu.memory_space<vmem>>, vector<1x1x80x128xf32>
    %20 = vector.shape_cast %19 : vector<1x1x80x128xf32> to vector<80x128xf32>
    %c3 = arith.constant 3 : index
    %c0_25 = arith.constant 0 : index
    %c0_26 = arith.constant 0 : index
    %21 = vector.load %arg2[%c3, %c0_25, %c0_26] : memref<25x128x128xf32, #tpu.memory_space<vmem>>, vector<1x128x128xf32>
    %22 = vector.shape_cast %21 : vector<1x128x128xf32> to vector<128x128xf32>
    %cst_27 = arith.constant dense<0.000000e+00> : vector<80x128xf32>
    %23 = tpu.matmul %20, %22, %cst_27 {dimension_numbers = #tpu.dot_dimension_numbers<[1], [0], [0], [1], [0, 0, 1, 1], [], []>} : vector<80x128xf32>, vector<128x128xf32>, vector<80x128xf32> -> vector<80x128xf32>
    %24 = arith.addf %18, %23 : vector<80x128xf32>
    %c0_28 = arith.constant 0 : index
    %c0_29 = arith.constant 0 : index
    %c2_30 = arith.constant 2 : index
    %c0_31 = arith.constant 0 : index
    %25 = vector.load %arg1[%c0_28, %c0_29, %c2_30, %c0_31] : memref<1x4x104x128xf32, #tpu.memory_space<vmem>>, vector<1x1x80x128xf32>
    %26 = vector.shape_cast %25 : vector<1x1x80x128xf32> to vector<80x128xf32>
    %c4 = arith.constant 4 : index
    %c0_32 = arith.constant 0 : index
    %c0_33 = arith.constant 0 : index
    %27 = vector.load %arg2[%c4, %c0_32, %c0_33] : memref<25x128x128xf32, #tpu.memory_space<vmem>>, vector<1x128x128xf32>
    %28 = vector.shape_cast %27 : vector<1x128x128xf32> to vector<128x128xf32>
    %cst_34 = arith.constant dense<0.000000e+00> : vector<80x128xf32>
    %29 = tpu.matmul %26, %28, %cst_34 {dimension_numbers = #tpu.dot_dimension_numbers<[1], [0], [0], [1], [0, 0, 1, 1], [], []>} : vector<80x128xf32>, vector<128x128xf32>, vector<80x128xf32> -> vector<80x128xf32>
    %30 = arith.addf %24, %29 : vector<80x128xf32>
    %c0_35 = arith.constant 0 : index
    %c2_36 = arith.constant 2 : index
    %c0_37 = arith.constant 0 : index
    %c0_38 = arith.constant 0 : index
    %31 = vector.load %arg1[%c0_35, %c2_36, %c0_37, %c0_38] : memref<1x4x104x128xf32, #tpu.memory_space<vmem>>, vector<1x1x80x128xf32>
    %32 = vector.shape_cast %31 : vector<1x1x80x128xf32> to vector<80x128xf32>
    %c5 = arith.constant 5 : index
    %c0_39 = arith.constant 0 : index
    %c0_40 = arith.constant 0 : index
    %33 = vector.load %arg2[%c5, %c0_39, %c0_40] : memref<25x128x128xf32, #tpu.memory_space<vmem>>, vector<1x128x128xf32>
    %34 = vector.shape_cast %33 : vector<1x128x128xf32> to vector<128x128xf32>
    %cst_41 = arith.constant dense<0.000000e+00> : vector<80x128xf32>
    %35 = tpu.matmul %32, %34, %cst_41 {dimension_numbers = #tpu.dot_dimension_numbers<[1], [0], [0], [1], [0, 0, 1, 1], [], []>} : vector<80x128xf32>, vector<128x128xf32>, vector<80x128xf32> -> vector<80x128xf32>
    %36 = arith.addf %30, %35 : vector<80x128xf32>
    %c0_42 = arith.constant 0 : index
    %c3_43 = arith.constant 3 : index
    %c0_44 = arith.constant 0 : index
    %c0_45 = arith.constant 0 : index
    %37 = vector.load %arg1[%c0_42, %c3_43, %c0_44, %c0_45] : memref<1x4x104x128xf32, #tpu.memory_space<vmem>>, vector<1x1x80x128xf32>
    %38 = vector.shape_cast %37 : vector<1x1x80x128xf32> to vector<80x128xf32>
    %c6 = arith.constant 6 : index
    %c0_46 = arith.constant 0 : index
    %c0_47 = arith.constant 0 : index
    %39 = vector.load %arg2[%c6, %c0_46, %c0_47] : memref<25x128x128xf32, #tpu.memory_space<vmem>>, vector<1x128x128xf32>
    %40 = vector.shape_cast %39 : vector<1x128x128xf32> to vector<128x128xf32>
    %cst_48 = arith.constant dense<0.000000e+00> : vector<80x128xf32>
    %41 = tpu.matmul %38, %40, %cst_48 {dimension_numbers = #tpu.dot_dimension_numbers<[1], [0], [0], [1], [0, 0, 1, 1], [], []>} : vector<80x128xf32>, vector<128x128xf32>, vector<80x128xf32> -> vector<80x128xf32>
    %42 = arith.addf %36, %41 : vector<80x128xf32>
    %c0_49 = arith.constant 0 : index
    %c2_50 = arith.constant 2 : index
    %c1_51 = arith.constant 1 : index
    %c0_52 = arith.constant 0 : index
    %43 = vector.load %arg1[%c0_49, %c2_50, %c1_51, %c0_52] : memref<1x4x104x128xf32, #tpu.memory_space<vmem>>, vector<1x1x80x128xf32>
    %44 = vector.shape_cast %43 : vector<1x1x80x128xf32> to vector<80x128xf32>
    %c7 = arith.constant 7 : index
    %c0_53 = arith.constant 0 : index
    %c0_54 = arith.constant 0 : index
    %45 = vector.load %arg2[%c7, %c0_53, %c0_54] : memref<25x128x128xf32, #tpu.memory_space<vmem>>, vector<1x128x128xf32>
    %46 = vector.shape_cast %45 : vector<1x128x128xf32> to vector<128x128xf32>
    %cst_55 = arith.constant dense<0.000000e+00> : vector<80x128xf32>
    %47 = tpu.matmul %44, %46, %cst_55 {dimension_numbers = #tpu.dot_dimension_numbers<[1], [0], [0], [1], [0, 0, 1, 1], [], []>} : vector<80x128xf32>, vector<128x128xf32>, vector<80x128xf32> -> vector<80x128xf32>
    %48 = arith.addf %42, %47 : vector<80x128xf32>
    %c0_56 = arith.constant 0 : index
    %c3_57 = arith.constant 3 : index
    %c1_58 = arith.constant 1 : index
    %c0_59 = arith.constant 0 : index
    %49 = vector.load %arg1[%c0_56, %c3_57, %c1_58, %c0_59] : memref<1x4x104x128xf32, #tpu.memory_space<vmem>>, vector<1x1x80x128xf32>
    %50 = vector.shape_cast %49 : vector<1x1x80x128xf32> to vector<80x128xf32>
    %c8 = arith.constant 8 : index
    %c0_60 = arith.constant 0 : index
    %c0_61 = arith.constant 0 : index
    %51 = vector.load %arg2[%c8, %c0_60, %c0_61] : memref<25x128x128xf32, #tpu.memory_space<vmem>>, vector<1x128x128xf32>
    %52 = vector.shape_cast %51 : vector<1x128x128xf32> to vector<128x128xf32>
    %cst_62 = arith.constant dense<0.000000e+00> : vector<80x128xf32>
    %53 = tpu.matmul %50, %52, %cst_62 {dimension_numbers = #tpu.dot_dimension_numbers<[1], [0], [0], [1], [0, 0, 1, 1], [], []>} : vector<80x128xf32>, vector<128x128xf32>, vector<80x128xf32> -> vector<80x128xf32>
    %54 = arith.addf %48, %53 : vector<80x128xf32>
    %c0_63 = arith.constant 0 : index
    %c2_64 = arith.constant 2 : index
    %c2_65 = arith.constant 2 : index
    %c0_66 = arith.constant 0 : index
    %55 = vector.load %arg1[%c0_63, %c2_64, %c2_65, %c0_66] : memref<1x4x104x128xf32, #tpu.memory_space<vmem>>, vector<1x1x80x128xf32>
    %56 = vector.shape_cast %55 : vector<1x1x80x128xf32> to vector<80x128xf32>
    %c9 = arith.constant 9 : index
    %c0_67 = arith.constant 0 : index
    %c0_68 = arith.constant 0 : index
    %57 = vector.load %arg2[%c9, %c0_67, %c0_68] : memref<25x128x128xf32, #tpu.memory_space<vmem>>, vector<1x128x128xf32>
    %58 = vector.shape_cast %57 : vector<1x128x128xf32> to vector<128x128xf32>
    %cst_69 = arith.constant dense<0.000000e+00> : vector<80x128xf32>
    %59 = tpu.matmul %56, %58, %cst_69 {dimension_numbers = #tpu.dot_dimension_numbers<[1], [0], [0], [1], [0, 0, 1, 1], [], []>} : vector<80x128xf32>, vector<128x128xf32>, vector<80x128xf32> -> vector<80x128xf32>
    %60 = arith.addf %54, %59 : vector<80x128xf32>
    %c0_70 = arith.constant 0 : index
    %c0_71 = arith.constant 0 : index
    %c10 = arith.constant 10 : index
    %c0_72 = arith.constant 0 : index
    %61 = vector.load %arg1[%c0_70, %c0_71, %c10, %c0_72] : memref<1x4x104x128xf32, #tpu.memory_space<vmem>>, vector<1x1x80x128xf32>
    %62 = vector.shape_cast %61 : vector<1x1x80x128xf32> to vector<80x128xf32>
    %c10_73 = arith.constant 10 : index
    %c0_74 = arith.constant 0 : index
    %c0_75 = arith.constant 0 : index
    %63 = vector.load %arg2[%c10_73, %c0_74, %c0_75] : memref<25x128x128xf32, #tpu.memory_space<vmem>>, vector<1x128x128xf32>
    %64 = vector.shape_cast %63 : vector<1x128x128xf32> to vector<128x128xf32>
    %cst_76 = arith.constant dense<0.000000e+00> : vector<80x128xf32>
    %65 = tpu.matmul %62, %64, %cst_76 {dimension_numbers = #tpu.dot_dimension_numbers<[1], [0], [0], [1], [0, 0, 1, 1], [], []>} : vector<80x128xf32>, vector<128x128xf32>, vector<80x128xf32> -> vector<80x128xf32>
    %66 = arith.addf %60, %65 : vector<80x128xf32>
    %c0_77 = arith.constant 0 : index
    %c1_78 = arith.constant 1 : index
    %c10_79 = arith.constant 10 : index
    %c0_80 = arith.constant 0 : index
    %67 = vector.load %arg1[%c0_77, %c1_78, %c10_79, %c0_80] : memref<1x4x104x128xf32, #tpu.memory_space<vmem>>, vector<1x1x80x128xf32>
    %68 = vector.shape_cast %67 : vector<1x1x80x128xf32> to vector<80x128xf32>
    %c11 = arith.constant 11 : index
    %c0_81 = arith.constant 0 : index
    %c0_82 = arith.constant 0 : index
    %69 = vector.load %arg2[%c11, %c0_81, %c0_82] : memref<25x128x128xf32, #tpu.memory_space<vmem>>, vector<1x128x128xf32>
    %70 = vector.shape_cast %69 : vector<1x128x128xf32> to vector<128x128xf32>
    %cst_83 = arith.constant dense<0.000000e+00> : vector<80x128xf32>
    %71 = tpu.matmul %68, %70, %cst_83 {dimension_numbers = #tpu.dot_dimension_numbers<[1], [0], [0], [1], [0, 0, 1, 1], [], []>} : vector<80x128xf32>, vector<128x128xf32>, vector<80x128xf32> -> vector<80x128xf32>
    %72 = arith.addf %66, %71 : vector<80x128xf32>
    %c0_84 = arith.constant 0 : index
    %c0_85 = arith.constant 0 : index
    %c11_86 = arith.constant 11 : index
    %c0_87 = arith.constant 0 : index
    %73 = vector.load %arg1[%c0_84, %c0_85, %c11_86, %c0_87] : memref<1x4x104x128xf32, #tpu.memory_space<vmem>>, vector<1x1x80x128xf32>
    %74 = vector.shape_cast %73 : vector<1x1x80x128xf32> to vector<80x128xf32>
    %c12 = arith.constant 12 : index
    %c0_88 = arith.constant 0 : index
    %c0_89 = arith.constant 0 : index
    %75 = vector.load %arg2[%c12, %c0_88, %c0_89] : memref<25x128x128xf32, #tpu.memory_space<vmem>>, vector<1x128x128xf32>
    %76 = vector.shape_cast %75 : vector<1x128x128xf32> to vector<128x128xf32>
    %cst_90 = arith.constant dense<0.000000e+00> : vector<80x128xf32>
    %77 = tpu.matmul %74, %76, %cst_90 {dimension_numbers = #tpu.dot_dimension_numbers<[1], [0], [0], [1], [0, 0, 1, 1], [], []>} : vector<80x128xf32>, vector<128x128xf32>, vector<80x128xf32> -> vector<80x128xf32>
    %78 = arith.addf %72, %77 : vector<80x128xf32>
    %c0_91 = arith.constant 0 : index
    %c1_92 = arith.constant 1 : index
    %c11_93 = arith.constant 11 : index
    %c0_94 = arith.constant 0 : index
    %79 = vector.load %arg1[%c0_91, %c1_92, %c11_93, %c0_94] : memref<1x4x104x128xf32, #tpu.memory_space<vmem>>, vector<1x1x80x128xf32>
    %80 = vector.shape_cast %79 : vector<1x1x80x128xf32> to vector<80x128xf32>
    %c13 = arith.constant 13 : index
    %c0_95 = arith.constant 0 : index
    %c0_96 = arith.constant 0 : index
    %81 = vector.load %arg2[%c13, %c0_95, %c0_96] : memref<25x128x128xf32, #tpu.memory_space<vmem>>, vector<1x128x128xf32>
    %82 = vector.shape_cast %81 : vector<1x128x128xf32> to vector<128x128xf32>
    %cst_97 = arith.constant dense<0.000000e+00> : vector<80x128xf32>
    %83 = tpu.matmul %80, %82, %cst_97 {dimension_numbers = #tpu.dot_dimension_numbers<[1], [0], [0], [1], [0, 0, 1, 1], [], []>} : vector<80x128xf32>, vector<128x128xf32>, vector<80x128xf32> -> vector<80x128xf32>
    %84 = arith.addf %78, %83 : vector<80x128xf32>
    %c0_98 = arith.constant 0 : index
    %c0_99 = arith.constant 0 : index
    %c12_100 = arith.constant 12 : index
    %c0_101 = arith.constant 0 : index
    %85 = vector.load %arg1[%c0_98, %c0_99, %c12_100, %c0_101] : memref<1x4x104x128xf32, #tpu.memory_space<vmem>>, vector<1x1x80x128xf32>
    %86 = vector.shape_cast %85 : vector<1x1x80x128xf32> to vector<80x128xf32>
    %c14 = arith.constant 14 : index
    %c0_102 = arith.constant 0 : index
    %c0_103 = arith.constant 0 : index
    %87 = vector.load %arg2[%c14, %c0_102, %c0_103] : memref<25x128x128xf32, #tpu.memory_space<vmem>>, vector<1x128x128xf32>
    %88 = vector.shape_cast %87 : vector<1x128x128xf32> to vector<128x128xf32>
    %cst_104 = arith.constant dense<0.000000e+00> : vector<80x128xf32>
    %89 = tpu.matmul %86, %88, %cst_104 {dimension_numbers = #tpu.dot_dimension_numbers<[1], [0], [0], [1], [0, 0, 1, 1], [], []>} : vector<80x128xf32>, vector<128x128xf32>, vector<80x128xf32> -> vector<80x128xf32>
    %90 = arith.addf %84, %89 : vector<80x128xf32>
    %c0_105 = arith.constant 0 : index
    %c2_106 = arith.constant 2 : index
    %c10_107 = arith.constant 10 : index
    %c0_108 = arith.constant 0 : index
    %91 = vector.load %arg1[%c0_105, %c2_106, %c10_107, %c0_108] : memref<1x4x104x128xf32, #tpu.memory_space<vmem>>, vector<1x1x80x128xf32>
    %92 = vector.shape_cast %91 : vector<1x1x80x128xf32> to vector<80x128xf32>
    %c15 = arith.constant 15 : index
    %c0_109 = arith.constant 0 : index
    %c0_110 = arith.constant 0 : index
    %93 = vector.load %arg2[%c15, %c0_109, %c0_110] : memref<25x128x128xf32, #tpu.memory_space<vmem>>, vector<1x128x128xf32>
    %94 = vector.shape_cast %93 : vector<1x128x128xf32> to vector<128x128xf32>
    %cst_111 = arith.constant dense<0.000000e+00> : vector<80x128xf32>
    %95 = tpu.matmul %92, %94, %cst_111 {dimension_numbers = #tpu.dot_dimension_numbers<[1], [0], [0], [1], [0, 0, 1, 1], [], []>} : vector<80x128xf32>, vector<128x128xf32>, vector<80x128xf32> -> vector<80x128xf32>
    %96 = arith.addf %90, %95 : vector<80x128xf32>
    %c0_112 = arith.constant 0 : index
    %c3_113 = arith.constant 3 : index
    %c10_114 = arith.constant 10 : index
    %c0_115 = arith.constant 0 : index
    %97 = vector.load %arg1[%c0_112, %c3_113, %c10_114, %c0_115] : memref<1x4x104x128xf32, #tpu.memory_space<vmem>>, vector<1x1x80x128xf32>
    %98 = vector.shape_cast %97 : vector<1x1x80x128xf32> to vector<80x128xf32>
    %c16 = arith.constant 16 : index
    %c0_116 = arith.constant 0 : index
    %c0_117 = arith.constant 0 : index
    %99 = vector.load %arg2[%c16, %c0_116, %c0_117] : memref<25x128x128xf32, #tpu.memory_space<vmem>>, vector<1x128x128xf32>
    %100 = vector.shape_cast %99 : vector<1x128x128xf32> to vector<128x128xf32>
    %cst_118 = arith.constant dense<0.000000e+00> : vector<80x128xf32>
    %101 = tpu.matmul %98, %100, %cst_118 {dimension_numbers = #tpu.dot_dimension_numbers<[1], [0], [0], [1], [0, 0, 1, 1], [], []>} : vector<80x128xf32>, vector<128x128xf32>, vector<80x128xf32> -> vector<80x128xf32>
    %102 = arith.addf %96, %101 : vector<80x128xf32>
    %c0_119 = arith.constant 0 : index
    %c2_120 = arith.constant 2 : index
    %c11_121 = arith.constant 11 : index
    %c0_122 = arith.constant 0 : index
    %103 = vector.load %arg1[%c0_119, %c2_120, %c11_121, %c0_122] : memref<1x4x104x128xf32, #tpu.memory_space<vmem>>, vector<1x1x80x128xf32>
    %104 = vector.shape_cast %103 : vector<1x1x80x128xf32> to vector<80x128xf32>
    %c17 = arith.constant 17 : index
    %c0_123 = arith.constant 0 : index
    %c0_124 = arith.constant 0 : index
    %105 = vector.load %arg2[%c17, %c0_123, %c0_124] : memref<25x128x128xf32, #tpu.memory_space<vmem>>, vector<1x128x128xf32>
    %106 = vector.shape_cast %105 : vector<1x128x128xf32> to vector<128x128xf32>
    %cst_125 = arith.constant dense<0.000000e+00> : vector<80x128xf32>
    %107 = tpu.matmul %104, %106, %cst_125 {dimension_numbers = #tpu.dot_dimension_numbers<[1], [0], [0], [1], [0, 0, 1, 1], [], []>} : vector<80x128xf32>, vector<128x128xf32>, vector<80x128xf32> -> vector<80x128xf32>
    %108 = arith.addf %102, %107 : vector<80x128xf32>
    %c0_126 = arith.constant 0 : index
    %c3_127 = arith.constant 3 : index
    %c11_128 = arith.constant 11 : index
    %c0_129 = arith.constant 0 : index
    %109 = vector.load %arg1[%c0_126, %c3_127, %c11_128, %c0_129] : memref<1x4x104x128xf32, #tpu.memory_space<vmem>>, vector<1x1x80x128xf32>
    %110 = vector.shape_cast %109 : vector<1x1x80x128xf32> to vector<80x128xf32>
    %c18 = arith.constant 18 : index
    %c0_130 = arith.constant 0 : index
    %c0_131 = arith.constant 0 : index
    %111 = vector.load %arg2[%c18, %c0_130, %c0_131] : memref<25x128x128xf32, #tpu.memory_space<vmem>>, vector<1x128x128xf32>
    %112 = vector.shape_cast %111 : vector<1x128x128xf32> to vector<128x128xf32>
    %cst_132 = arith.constant dense<0.000000e+00> : vector<80x128xf32>
    %113 = tpu.matmul %110, %112, %cst_132 {dimension_numbers = #tpu.dot_dimension_numbers<[1], [0], [0], [1], [0, 0, 1, 1], [], []>} : vector<80x128xf32>, vector<128x128xf32>, vector<80x128xf32> -> vector<80x128xf32>
    %114 = arith.addf %108, %113 : vector<80x128xf32>
    %c0_133 = arith.constant 0 : index
    %c2_134 = arith.constant 2 : index
    %c12_135 = arith.constant 12 : index
    %c0_136 = arith.constant 0 : index
    %115 = vector.load %arg1[%c0_133, %c2_134, %c12_135, %c0_136] : memref<1x4x104x128xf32, #tpu.memory_space<vmem>>, vector<1x1x80x128xf32>
    %116 = vector.shape_cast %115 : vector<1x1x80x128xf32> to vector<80x128xf32>
    %c19 = arith.constant 19 : index
    %c0_137 = arith.constant 0 : index
    %c0_138 = arith.constant 0 : index
    %117 = vector.load %arg2[%c19, %c0_137, %c0_138] : memref<25x128x128xf32, #tpu.memory_space<vmem>>, vector<1x128x128xf32>
    %118 = vector.shape_cast %117 : vector<1x128x128xf32> to vector<128x128xf32>
    %cst_139 = arith.constant dense<0.000000e+00> : vector<80x128xf32>
    %119 = tpu.matmul %116, %118, %cst_139 {dimension_numbers = #tpu.dot_dimension_numbers<[1], [0], [0], [1], [0, 0, 1, 1], [], []>} : vector<80x128xf32>, vector<128x128xf32>, vector<80x128xf32> -> vector<80x128xf32>
    %120 = arith.addf %114, %119 : vector<80x128xf32>
    %c0_140 = arith.constant 0 : index
    %c0_141 = arith.constant 0 : index
    %c20 = arith.constant 20 : index
    %c0_142 = arith.constant 0 : index
    %121 = vector.load %arg1[%c0_140, %c0_141, %c20, %c0_142] : memref<1x4x104x128xf32, #tpu.memory_space<vmem>>, vector<1x1x80x128xf32>
    %122 = vector.shape_cast %121 : vector<1x1x80x128xf32> to vector<80x128xf32>
    %c20_143 = arith.constant 20 : index
    %c0_144 = arith.constant 0 : index
    %c0_145 = arith.constant 0 : index
    %123 = vector.load %arg2[%c20_143, %c0_144, %c0_145] : memref<25x128x128xf32, #tpu.memory_space<vmem>>, vector<1x128x128xf32>
    %124 = vector.shape_cast %123 : vector<1x128x128xf32> to vector<128x128xf32>
    %cst_146 = arith.constant dense<0.000000e+00> : vector<80x128xf32>
    %125 = tpu.matmul %122, %124, %cst_146 {dimension_numbers = #tpu.dot_dimension_numbers<[1], [0], [0], [1], [0, 0, 1, 1], [], []>} : vector<80x128xf32>, vector<128x128xf32>, vector<80x128xf32> -> vector<80x128xf32>
    %126 = arith.addf %120, %125 : vector<80x128xf32>
    %c0_147 = arith.constant 0 : index
    %c1_148 = arith.constant 1 : index
    %c20_149 = arith.constant 20 : index
    %c0_150 = arith.constant 0 : index
    %127 = vector.load %arg1[%c0_147, %c1_148, %c20_149, %c0_150] : memref<1x4x104x128xf32, #tpu.memory_space<vmem>>, vector<1x1x80x128xf32>
    %128 = vector.shape_cast %127 : vector<1x1x80x128xf32> to vector<80x128xf32>
    %c21 = arith.constant 21 : index
    %c0_151 = arith.constant 0 : index
    %c0_152 = arith.constant 0 : index
    %129 = vector.load %arg2[%c21, %c0_151, %c0_152] : memref<25x128x128xf32, #tpu.memory_space<vmem>>, vector<1x128x128xf32>
    %130 = vector.shape_cast %129 : vector<1x128x128xf32> to vector<128x128xf32>
    %cst_153 = arith.constant dense<0.000000e+00> : vector<80x128xf32>
    %131 = tpu.matmul %128, %130, %cst_153 {dimension_numbers = #tpu.dot_dimension_numbers<[1], [0], [0], [1], [0, 0, 1, 1], [], []>} : vector<80x128xf32>, vector<128x128xf32>, vector<80x128xf32> -> vector<80x128xf32>
    %132 = arith.addf %126, %131 : vector<80x128xf32>
    %c0_154 = arith.constant 0 : index
    %c0_155 = arith.constant 0 : index
    %c21_156 = arith.constant 21 : index
    %c0_157 = arith.constant 0 : index
    %133 = vector.load %arg1[%c0_154, %c0_155, %c21_156, %c0_157] : memref<1x4x104x128xf32, #tpu.memory_space<vmem>>, vector<1x1x80x128xf32>
    %134 = vector.shape_cast %133 : vector<1x1x80x128xf32> to vector<80x128xf32>
    %c22 = arith.constant 22 : index
    %c0_158 = arith.constant 0 : index
    %c0_159 = arith.constant 0 : index
    %135 = vector.load %arg2[%c22, %c0_158, %c0_159] : memref<25x128x128xf32, #tpu.memory_space<vmem>>, vector<1x128x128xf32>
    %136 = vector.shape_cast %135 : vector<1x128x128xf32> to vector<128x128xf32>
    %cst_160 = arith.constant dense<0.000000e+00> : vector<80x128xf32>
    %137 = tpu.matmul %134, %136, %cst_160 {dimension_numbers = #tpu.dot_dimension_numbers<[1], [0], [0], [1], [0, 0, 1, 1], [], []>} : vector<80x128xf32>, vector<128x128xf32>, vector<80x128xf32> -> vector<80x128xf32>
    %138 = arith.addf %132, %137 : vector<80x128xf32>
    %c0_161 = arith.constant 0 : index
    %c1_162 = arith.constant 1 : index
    %c21_163 = arith.constant 21 : index
    %c0_164 = arith.constant 0 : index
    %139 = vector.load %arg1[%c0_161, %c1_162, %c21_163, %c0_164] : memref<1x4x104x128xf32, #tpu.memory_space<vmem>>, vector<1x1x80x128xf32>
    %140 = vector.shape_cast %139 : vector<1x1x80x128xf32> to vector<80x128xf32>
    %c23 = arith.constant 23 : index
    %c0_165 = arith.constant 0 : index
    %c0_166 = arith.constant 0 : index
    %141 = vector.load %arg2[%c23, %c0_165, %c0_166] : memref<25x128x128xf32, #tpu.memory_space<vmem>>, vector<1x128x128xf32>
    %142 = vector.shape_cast %141 : vector<1x128x128xf32> to vector<128x128xf32>
    %cst_167 = arith.constant dense<0.000000e+00> : vector<80x128xf32>
    %143 = tpu.matmul %140, %142, %cst_167 {dimension_numbers = #tpu.dot_dimension_numbers<[1], [0], [0], [1], [0, 0, 1, 1], [], []>} : vector<80x128xf32>, vector<128x128xf32>, vector<80x128xf32> -> vector<80x128xf32>
    %144 = arith.addf %138, %143 : vector<80x128xf32>
    %c0_168 = arith.constant 0 : index
    %c0_169 = arith.constant 0 : index
    %c22_170 = arith.constant 22 : index
    %c0_171 = arith.constant 0 : index
    %145 = vector.load %arg1[%c0_168, %c0_169, %c22_170, %c0_171] : memref<1x4x104x128xf32, #tpu.memory_space<vmem>>, vector<1x1x80x128xf32>
    %146 = vector.shape_cast %145 : vector<1x1x80x128xf32> to vector<80x128xf32>
    %c24 = arith.constant 24 : index
    %c0_172 = arith.constant 0 : index
    %c0_173 = arith.constant 0 : index
    %147 = vector.load %arg2[%c24, %c0_172, %c0_173] : memref<25x128x128xf32, #tpu.memory_space<vmem>>, vector<1x128x128xf32>
    %148 = vector.shape_cast %147 : vector<1x128x128xf32> to vector<128x128xf32>
    %cst_174 = arith.constant dense<0.000000e+00> : vector<80x128xf32>
    %149 = tpu.matmul %146, %148, %cst_174 {dimension_numbers = #tpu.dot_dimension_numbers<[1], [0], [0], [1], [0, 0, 1, 1], [], []>} : vector<80x128xf32>, vector<128x128xf32>, vector<80x128xf32> -> vector<80x128xf32>
    %150 = arith.addf %144, %149 : vector<80x128xf32>
    %c0_175 = arith.constant 0 : index
    %c0_176 = arith.constant 0 : index
    %151 = vector.load %arg3[%c0_175, %c0_176] : memref<1x128xf32, #tpu.memory_space<vmem>>, vector<1x128xf32>
    %152 = vector.broadcast %151 : vector<1x128xf32> to vector<80x128xf32>
    %153 = arith.addf %150, %152 : vector<80x128xf32>
    %cst_177 = arith.constant 0.000000e+00 : f32
    %154 = vector.broadcast %cst_177 : f32 to vector<80x128xf32>
    %155 = arith.maximumf %153, %154 : vector<80x128xf32>
    %c0_178 = arith.constant 0 : index
    %c0_179 = arith.constant 0 : index
    %c0_180 = arith.constant 0 : index
    %156 = vector.load %arg4[%c0_178, %c0_179, %c0_180] : memref<1x80x128xf32, #tpu.memory_space<vmem>>, vector<1x80x128xf32>
    %157 = vector.shape_cast %156 : vector<1x80x128xf32> to vector<80x128xf32>
    %158 = vector.shape_cast %155 : vector<80x128xf32> to vector<1x80x128xf32>
    tpu.vector_store %arg4[%c0_178, %c0_179, %c0_180], %158 {strides = array<i32>} : memref<1x80x128xf32, #tpu.memory_space<vmem>>, vector<1x80x128xf32>,
    return
  }
  func.func @transform_0(%arg0: i32) -> (i32, i32, i32, i32) {
    %c0_i32 = arith.constant 0 : i32
    %c0_i32_0 = arith.constant 0 : i32
    %c0_i32_1 = arith.constant 0 : i32
    %c0_i32_2 = arith.constant 0 : i32
    return %arg0, %c0_i32, %c0_i32_0, %c0_i32_1 : i32, i32, i32, i32
  }
  func.func @transform_1(%arg0: i32) -> (i32, i32, i32) {
    %c0_i32 = arith.constant 0 : i32
    %c0_i32_0 = arith.constant 0 : i32
    %c0_i32_1 = arith.constant 0 : i32
    %c0_i32_2 = arith.constant 0 : i32
    return %c0_i32, %c0_i32_0, %c0_i32_1 : i32, i32, i32
  }
  func.func @transform_2(%arg0: i32) -> (i32, i32) {
    %c0_i32 = arith.constant 0 : i32
    %c0_i32_0 = arith.constant 0 : i32
    %c0_i32_1 = arith.constant 0 : i32
    return %c0_i32, %c0_i32_0 : i32, i32
  }
  func.func @transform_3(%arg0: i32) -> (i32, i32, i32) {
    %c0_i32 = arith.constant 0 : i32
    %c0_i32_0 = arith.constant 0 : i32
    %c0_i32_1 = arith.constant 0 : i32
    return %arg0, %c0_i32, %c0_i32_0 : i32, i32, i32
  }
}

module attributes {stable_mosaic.version = 11 : i64} {
  func.func @_fused_conv_kernel(%arg0: i32, %arg1: memref<1x4x40x128xf32, #tpu.memory_space<vmem>>, %arg2: memref<25x128x128xf32, #tpu.memory_space<vmem>>, %arg3: memref<1x128xf32, #tpu.memory_space<vmem>>, %arg4: memref<1x24x128xf32, #tpu.memory_space<vmem>>) attributes {dimension_semantics = [#tpu.dimension_semantics<parallel>], iteration_bounds = array<i64: 2>, scalar_prefetch = 0 : i64, scratch_operands = 0 : i64, tpu.core_type = #tpu.core_type<tc>, window_params = [{transform_indices = @transform_0, window_bounds = array<i64: 1, 4, 40, 128>}, {pipeline_mode = #tpu.pipeline_mode<synchronous>, transform_indices = @transform_1, window_bounds = array<i64: 25, 128, 128>}, {pipeline_mode = #tpu.pipeline_mode<synchronous>, transform_indices = @transform_2, window_bounds = array<i64: 1, 128>}, {transform_indices = @transform_3, window_bounds = array<i64: 1, 24, 128>}]} {
    %cst = arith.constant 0.000000e+00 : f32
    %0 = vector.broadcast %cst : f32 to vector<24x128xf32>
    %c0 = arith.constant 0 : index
    %c0_0 = arith.constant 0 : index
    %c0_1 = arith.constant 0 : index
    %c0_2 = arith.constant 0 : index
    %1 = vector.load %arg1[%c0, %c0_0, %c0_1, %c0_2] : memref<1x4x40x128xf32, #tpu.memory_space<vmem>>, vector<1x1x24x128xf32>
    %2 = vector.shape_cast %1 : vector<1x1x24x128xf32> to vector<24x128xf32>
    %c0_3 = arith.constant 0 : index
    %c0_4 = arith.constant 0 : index
    %c0_5 = arith.constant 0 : index
    %3 = vector.load %arg2[%c0_3, %c0_4, %c0_5] : memref<25x128x128xf32, #tpu.memory_space<vmem>>, vector<1x128x128xf32>
    %4 = vector.shape_cast %3 : vector<1x128x128xf32> to vector<128x128xf32>
    %cst_6 = arith.constant dense<0.000000e+00> : vector<24x128xf32>
    %5 = tpu.matmul %2, %4, %cst_6 {dimension_numbers = #tpu.dot_dimension_numbers<[1], [0], [0], [1], [0, 0, 1, 1], [], []>} : vector<24x128xf32>, vector<128x128xf32>, vector<24x128xf32> -> vector<24x128xf32>
    %6 = arith.addf %0, %5 : vector<24x128xf32>
    %c0_7 = arith.constant 0 : index
    %c1 = arith.constant 1 : index
    %c0_8 = arith.constant 0 : index
    %c0_9 = arith.constant 0 : index
    %7 = vector.load %arg1[%c0_7, %c1, %c0_8, %c0_9] : memref<1x4x40x128xf32, #tpu.memory_space<vmem>>, vector<1x1x24x128xf32>
    %8 = vector.shape_cast %7 : vector<1x1x24x128xf32> to vector<24x128xf32>
    %c1_10 = arith.constant 1 : index
    %c0_11 = arith.constant 0 : index
    %c0_12 = arith.constant 0 : index
    %9 = vector.load %arg2[%c1_10, %c0_11, %c0_12] : memref<25x128x128xf32, #tpu.memory_space<vmem>>, vector<1x128x128xf32>
    %10 = vector.shape_cast %9 : vector<1x128x128xf32> to vector<128x128xf32>
    %cst_13 = arith.constant dense<0.000000e+00> : vector<24x128xf32>
    %11 = tpu.matmul %8, %10, %cst_13 {dimension_numbers = #tpu.dot_dimension_numbers<[1], [0], [0], [1], [0, 0, 1, 1], [], []>} : vector<24x128xf32>, vector<128x128xf32>, vector<24x128xf32> -> vector<24x128xf32>
    %12 = arith.addf %6, %11 : vector<24x128xf32>
    %c0_14 = arith.constant 0 : index
    %c0_15 = arith.constant 0 : index
    %c1_16 = arith.constant 1 : index
    %c0_17 = arith.constant 0 : index
    %13 = vector.load %arg1[%c0_14, %c0_15, %c1_16, %c0_17] : memref<1x4x40x128xf32, #tpu.memory_space<vmem>>, vector<1x1x24x128xf32>
    %14 = vector.shape_cast %13 : vector<1x1x24x128xf32> to vector<24x128xf32>
    %c2 = arith.constant 2 : index
    %c0_18 = arith.constant 0 : index
    %c0_19 = arith.constant 0 : index
    %15 = vector.load %arg2[%c2, %c0_18, %c0_19] : memref<25x128x128xf32, #tpu.memory_space<vmem>>, vector<1x128x128xf32>
    %16 = vector.shape_cast %15 : vector<1x128x128xf32> to vector<128x128xf32>
    %cst_20 = arith.constant dense<0.000000e+00> : vector<24x128xf32>
    %17 = tpu.matmul %14, %16, %cst_20 {dimension_numbers = #tpu.dot_dimension_numbers<[1], [0], [0], [1], [0, 0, 1, 1], [], []>} : vector<24x128xf32>, vector<128x128xf32>, vector<24x128xf32> -> vector<24x128xf32>
    %18 = arith.addf %12, %17 : vector<24x128xf32>
    %c0_21 = arith.constant 0 : index
    %c1_22 = arith.constant 1 : index
    %c1_23 = arith.constant 1 : index
    %c0_24 = arith.constant 0 : index
    %19 = vector.load %arg1[%c0_21, %c1_22, %c1_23, %c0_24] : memref<1x4x40x128xf32, #tpu.memory_space<vmem>>, vector<1x1x24x128xf32>
    %20 = vector.shape_cast %19 : vector<1x1x24x128xf32> to vector<24x128xf32>
    %c3 = arith.constant 3 : index
    %c0_25 = arith.constant 0 : index
    %c0_26 = arith.constant 0 : index
    %21 = vector.load %arg2[%c3, %c0_25, %c0_26] : memref<25x128x128xf32, #tpu.memory_space<vmem>>, vector<1x128x128xf32>
    %22 = vector.shape_cast %21 : vector<1x128x128xf32> to vector<128x128xf32>
    %cst_27 = arith.constant dense<0.000000e+00> : vector<24x128xf32>
    %23 = tpu.matmul %20, %22, %cst_27 {dimension_numbers = #tpu.dot_dimension_numbers<[1], [0], [0], [1], [0, 0, 1, 1], [], []>} : vector<24x128xf32>, vector<128x128xf32>, vector<24x128xf32> -> vector<24x128xf32>
    %24 = arith.addf %18, %23 : vector<24x128xf32>
    %c0_28 = arith.constant 0 : index
    %c0_29 = arith.constant 0 : index
    %c2_30 = arith.constant 2 : index
    %c0_31 = arith.constant 0 : index
    %25 = vector.load %arg1[%c0_28, %c0_29, %c2_30, %c0_31] : memref<1x4x40x128xf32, #tpu.memory_space<vmem>>, vector<1x1x24x128xf32>
    %26 = vector.shape_cast %25 : vector<1x1x24x128xf32> to vector<24x128xf32>
    %c4 = arith.constant 4 : index
    %c0_32 = arith.constant 0 : index
    %c0_33 = arith.constant 0 : index
    %27 = vector.load %arg2[%c4, %c0_32, %c0_33] : memref<25x128x128xf32, #tpu.memory_space<vmem>>, vector<1x128x128xf32>
    %28 = vector.shape_cast %27 : vector<1x128x128xf32> to vector<128x128xf32>
    %cst_34 = arith.constant dense<0.000000e+00> : vector<24x128xf32>
    %29 = tpu.matmul %26, %28, %cst_34 {dimension_numbers = #tpu.dot_dimension_numbers<[1], [0], [0], [1], [0, 0, 1, 1], [], []>} : vector<24x128xf32>, vector<128x128xf32>, vector<24x128xf32> -> vector<24x128xf32>
    %30 = arith.addf %24, %29 : vector<24x128xf32>
    %c0_35 = arith.constant 0 : index
    %c2_36 = arith.constant 2 : index
    %c0_37 = arith.constant 0 : index
    %c0_38 = arith.constant 0 : index
    %31 = vector.load %arg1[%c0_35, %c2_36, %c0_37, %c0_38] : memref<1x4x40x128xf32, #tpu.memory_space<vmem>>, vector<1x1x24x128xf32>
    %32 = vector.shape_cast %31 : vector<1x1x24x128xf32> to vector<24x128xf32>
    %c5 = arith.constant 5 : index
    %c0_39 = arith.constant 0 : index
    %c0_40 = arith.constant 0 : index
    %33 = vector.load %arg2[%c5, %c0_39, %c0_40] : memref<25x128x128xf32, #tpu.memory_space<vmem>>, vector<1x128x128xf32>
    %34 = vector.shape_cast %33 : vector<1x128x128xf32> to vector<128x128xf32>
    %cst_41 = arith.constant dense<0.000000e+00> : vector<24x128xf32>
    %35 = tpu.matmul %32, %34, %cst_41 {dimension_numbers = #tpu.dot_dimension_numbers<[1], [0], [0], [1], [0, 0, 1, 1], [], []>} : vector<24x128xf32>, vector<128x128xf32>, vector<24x128xf32> -> vector<24x128xf32>
    %36 = arith.addf %30, %35 : vector<24x128xf32>
    %c0_42 = arith.constant 0 : index
    %c3_43 = arith.constant 3 : index
    %c0_44 = arith.constant 0 : index
    %c0_45 = arith.constant 0 : index
    %37 = vector.load %arg1[%c0_42, %c3_43, %c0_44, %c0_45] : memref<1x4x40x128xf32, #tpu.memory_space<vmem>>, vector<1x1x24x128xf32>
    %38 = vector.shape_cast %37 : vector<1x1x24x128xf32> to vector<24x128xf32>
    %c6 = arith.constant 6 : index
    %c0_46 = arith.constant 0 : index
    %c0_47 = arith.constant 0 : index
    %39 = vector.load %arg2[%c6, %c0_46, %c0_47] : memref<25x128x128xf32, #tpu.memory_space<vmem>>, vector<1x128x128xf32>
    %40 = vector.shape_cast %39 : vector<1x128x128xf32> to vector<128x128xf32>
    %cst_48 = arith.constant dense<0.000000e+00> : vector<24x128xf32>
    %41 = tpu.matmul %38, %40, %cst_48 {dimension_numbers = #tpu.dot_dimension_numbers<[1], [0], [0], [1], [0, 0, 1, 1], [], []>} : vector<24x128xf32>, vector<128x128xf32>, vector<24x128xf32> -> vector<24x128xf32>
    %42 = arith.addf %36, %41 : vector<24x128xf32>
    %c0_49 = arith.constant 0 : index
    %c2_50 = arith.constant 2 : index
    %c1_51 = arith.constant 1 : index
    %c0_52 = arith.constant 0 : index
    %43 = vector.load %arg1[%c0_49, %c2_50, %c1_51, %c0_52] : memref<1x4x40x128xf32, #tpu.memory_space<vmem>>, vector<1x1x24x128xf32>
    %44 = vector.shape_cast %43 : vector<1x1x24x128xf32> to vector<24x128xf32>
    %c7 = arith.constant 7 : index
    %c0_53 = arith.constant 0 : index
    %c0_54 = arith.constant 0 : index
    %45 = vector.load %arg2[%c7, %c0_53, %c0_54] : memref<25x128x128xf32, #tpu.memory_space<vmem>>, vector<1x128x128xf32>
    %46 = vector.shape_cast %45 : vector<1x128x128xf32> to vector<128x128xf32>
    %cst_55 = arith.constant dense<0.000000e+00> : vector<24x128xf32>
    %47 = tpu.matmul %44, %46, %cst_55 {dimension_numbers = #tpu.dot_dimension_numbers<[1], [0], [0], [1], [0, 0, 1, 1], [], []>} : vector<24x128xf32>, vector<128x128xf32>, vector<24x128xf32> -> vector<24x128xf32>
    %48 = arith.addf %42, %47 : vector<24x128xf32>
    %c0_56 = arith.constant 0 : index
    %c3_57 = arith.constant 3 : index
    %c1_58 = arith.constant 1 : index
    %c0_59 = arith.constant 0 : index
    %49 = vector.load %arg1[%c0_56, %c3_57, %c1_58, %c0_59] : memref<1x4x40x128xf32, #tpu.memory_space<vmem>>, vector<1x1x24x128xf32>
    %50 = vector.shape_cast %49 : vector<1x1x24x128xf32> to vector<24x128xf32>
    %c8 = arith.constant 8 : index
    %c0_60 = arith.constant 0 : index
    %c0_61 = arith.constant 0 : index
    %51 = vector.load %arg2[%c8, %c0_60, %c0_61] : memref<25x128x128xf32, #tpu.memory_space<vmem>>, vector<1x128x128xf32>
    %52 = vector.shape_cast %51 : vector<1x128x128xf32> to vector<128x128xf32>
    %cst_62 = arith.constant dense<0.000000e+00> : vector<24x128xf32>
    %53 = tpu.matmul %50, %52, %cst_62 {dimension_numbers = #tpu.dot_dimension_numbers<[1], [0], [0], [1], [0, 0, 1, 1], [], []>} : vector<24x128xf32>, vector<128x128xf32>, vector<24x128xf32> -> vector<24x128xf32>
    %54 = arith.addf %48, %53 : vector<24x128xf32>
    %c0_63 = arith.constant 0 : index
    %c2_64 = arith.constant 2 : index
    %c2_65 = arith.constant 2 : index
    %c0_66 = arith.constant 0 : index
    %55 = vector.load %arg1[%c0_63, %c2_64, %c2_65, %c0_66] : memref<1x4x40x128xf32, #tpu.memory_space<vmem>>, vector<1x1x24x128xf32>
    %56 = vector.shape_cast %55 : vector<1x1x24x128xf32> to vector<24x128xf32>
    %c9 = arith.constant 9 : index
    %c0_67 = arith.constant 0 : index
    %c0_68 = arith.constant 0 : index
    %57 = vector.load %arg2[%c9, %c0_67, %c0_68] : memref<25x128x128xf32, #tpu.memory_space<vmem>>, vector<1x128x128xf32>
    %58 = vector.shape_cast %57 : vector<1x128x128xf32> to vector<128x128xf32>
    %cst_69 = arith.constant dense<0.000000e+00> : vector<24x128xf32>
    %59 = tpu.matmul %56, %58, %cst_69 {dimension_numbers = #tpu.dot_dimension_numbers<[1], [0], [0], [1], [0, 0, 1, 1], [], []>} : vector<24x128xf32>, vector<128x128xf32>, vector<24x128xf32> -> vector<24x128xf32>
    %60 = arith.addf %54, %59 : vector<24x128xf32>
    %c0_70 = arith.constant 0 : index
    %c0_71 = arith.constant 0 : index
    %c6_72 = arith.constant 6 : index
    %c0_73 = arith.constant 0 : index
    %61 = vector.load %arg1[%c0_70, %c0_71, %c6_72, %c0_73] : memref<1x4x40x128xf32, #tpu.memory_space<vmem>>, vector<1x1x24x128xf32>
    %62 = vector.shape_cast %61 : vector<1x1x24x128xf32> to vector<24x128xf32>
    %c10 = arith.constant 10 : index
    %c0_74 = arith.constant 0 : index
    %c0_75 = arith.constant 0 : index
    %63 = vector.load %arg2[%c10, %c0_74, %c0_75] : memref<25x128x128xf32, #tpu.memory_space<vmem>>, vector<1x128x128xf32>
    %64 = vector.shape_cast %63 : vector<1x128x128xf32> to vector<128x128xf32>
    %cst_76 = arith.constant dense<0.000000e+00> : vector<24x128xf32>
    %65 = tpu.matmul %62, %64, %cst_76 {dimension_numbers = #tpu.dot_dimension_numbers<[1], [0], [0], [1], [0, 0, 1, 1], [], []>} : vector<24x128xf32>, vector<128x128xf32>, vector<24x128xf32> -> vector<24x128xf32>
    %66 = arith.addf %60, %65 : vector<24x128xf32>
    %c0_77 = arith.constant 0 : index
    %c1_78 = arith.constant 1 : index
    %c6_79 = arith.constant 6 : index
    %c0_80 = arith.constant 0 : index
    %67 = vector.load %arg1[%c0_77, %c1_78, %c6_79, %c0_80] : memref<1x4x40x128xf32, #tpu.memory_space<vmem>>, vector<1x1x24x128xf32>
    %68 = vector.shape_cast %67 : vector<1x1x24x128xf32> to vector<24x128xf32>
    %c11 = arith.constant 11 : index
    %c0_81 = arith.constant 0 : index
    %c0_82 = arith.constant 0 : index
    %69 = vector.load %arg2[%c11, %c0_81, %c0_82] : memref<25x128x128xf32, #tpu.memory_space<vmem>>, vector<1x128x128xf32>
    %70 = vector.shape_cast %69 : vector<1x128x128xf32> to vector<128x128xf32>
    %cst_83 = arith.constant dense<0.000000e+00> : vector<24x128xf32>
    %71 = tpu.matmul %68, %70, %cst_83 {dimension_numbers = #tpu.dot_dimension_numbers<[1], [0], [0], [1], [0, 0, 1, 1], [], []>} : vector<24x128xf32>, vector<128x128xf32>, vector<24x128xf32> -> vector<24x128xf32>
    %72 = arith.addf %66, %71 : vector<24x128xf32>
    %c0_84 = arith.constant 0 : index
    %c0_85 = arith.constant 0 : index
    %c7_86 = arith.constant 7 : index
    %c0_87 = arith.constant 0 : index
    %73 = vector.load %arg1[%c0_84, %c0_85, %c7_86, %c0_87] : memref<1x4x40x128xf32, #tpu.memory_space<vmem>>, vector<1x1x24x128xf32>
    %74 = vector.shape_cast %73 : vector<1x1x24x128xf32> to vector<24x128xf32>
    %c12 = arith.constant 12 : index
    %c0_88 = arith.constant 0 : index
    %c0_89 = arith.constant 0 : index
    %75 = vector.load %arg2[%c12, %c0_88, %c0_89] : memref<25x128x128xf32, #tpu.memory_space<vmem>>, vector<1x128x128xf32>
    %76 = vector.shape_cast %75 : vector<1x128x128xf32> to vector<128x128xf32>
    %cst_90 = arith.constant dense<0.000000e+00> : vector<24x128xf32>
    %77 = tpu.matmul %74, %76, %cst_90 {dimension_numbers = #tpu.dot_dimension_numbers<[1], [0], [0], [1], [0, 0, 1, 1], [], []>} : vector<24x128xf32>, vector<128x128xf32>, vector<24x128xf32> -> vector<24x128xf32>
    %78 = arith.addf %72, %77 : vector<24x128xf32>
    %c0_91 = arith.constant 0 : index
    %c1_92 = arith.constant 1 : index
    %c7_93 = arith.constant 7 : index
    %c0_94 = arith.constant 0 : index
    %79 = vector.load %arg1[%c0_91, %c1_92, %c7_93, %c0_94] : memref<1x4x40x128xf32, #tpu.memory_space<vmem>>, vector<1x1x24x128xf32>
    %80 = vector.shape_cast %79 : vector<1x1x24x128xf32> to vector<24x128xf32>
    %c13 = arith.constant 13 : index
    %c0_95 = arith.constant 0 : index
    %c0_96 = arith.constant 0 : index
    %81 = vector.load %arg2[%c13, %c0_95, %c0_96] : memref<25x128x128xf32, #tpu.memory_space<vmem>>, vector<1x128x128xf32>
    %82 = vector.shape_cast %81 : vector<1x128x128xf32> to vector<128x128xf32>
    %cst_97 = arith.constant dense<0.000000e+00> : vector<24x128xf32>
    %83 = tpu.matmul %80, %82, %cst_97 {dimension_numbers = #tpu.dot_dimension_numbers<[1], [0], [0], [1], [0, 0, 1, 1], [], []>} : vector<24x128xf32>, vector<128x128xf32>, vector<24x128xf32> -> vector<24x128xf32>
    %84 = arith.addf %78, %83 : vector<24x128xf32>
    %c0_98 = arith.constant 0 : index
    %c0_99 = arith.constant 0 : index
    %c8_100 = arith.constant 8 : index
    %c0_101 = arith.constant 0 : index
    %85 = vector.load %arg1[%c0_98, %c0_99, %c8_100, %c0_101] : memref<1x4x40x128xf32, #tpu.memory_space<vmem>>, vector<1x1x24x128xf32>
    %86 = vector.shape_cast %85 : vector<1x1x24x128xf32> to vector<24x128xf32>
    %c14 = arith.constant 14 : index
    %c0_102 = arith.constant 0 : index
    %c0_103 = arith.constant 0 : index
    %87 = vector.load %arg2[%c14, %c0_102, %c0_103] : memref<25x128x128xf32, #tpu.memory_space<vmem>>, vector<1x128x128xf32>
    %88 = vector.shape_cast %87 : vector<1x128x128xf32> to vector<128x128xf32>
    %cst_104 = arith.constant dense<0.000000e+00> : vector<24x128xf32>
    %89 = tpu.matmul %86, %88, %cst_104 {dimension_numbers = #tpu.dot_dimension_numbers<[1], [0], [0], [1], [0, 0, 1, 1], [], []>} : vector<24x128xf32>, vector<128x128xf32>, vector<24x128xf32> -> vector<24x128xf32>
    %90 = arith.addf %84, %89 : vector<24x128xf32>
    %c0_105 = arith.constant 0 : index
    %c2_106 = arith.constant 2 : index
    %c6_107 = arith.constant 6 : index
    %c0_108 = arith.constant 0 : index
    %91 = vector.load %arg1[%c0_105, %c2_106, %c6_107, %c0_108] : memref<1x4x40x128xf32, #tpu.memory_space<vmem>>, vector<1x1x24x128xf32>
    %92 = vector.shape_cast %91 : vector<1x1x24x128xf32> to vector<24x128xf32>
    %c15 = arith.constant 15 : index
    %c0_109 = arith.constant 0 : index
    %c0_110 = arith.constant 0 : index
    %93 = vector.load %arg2[%c15, %c0_109, %c0_110] : memref<25x128x128xf32, #tpu.memory_space<vmem>>, vector<1x128x128xf32>
    %94 = vector.shape_cast %93 : vector<1x128x128xf32> to vector<128x128xf32>
    %cst_111 = arith.constant dense<0.000000e+00> : vector<24x128xf32>
    %95 = tpu.matmul %92, %94, %cst_111 {dimension_numbers = #tpu.dot_dimension_numbers<[1], [0], [0], [1], [0, 0, 1, 1], [], []>} : vector<24x128xf32>, vector<128x128xf32>, vector<24x128xf32> -> vector<24x128xf32>
    %96 = arith.addf %90, %95 : vector<24x128xf32>
    %c0_112 = arith.constant 0 : index
    %c3_113 = arith.constant 3 : index
    %c6_114 = arith.constant 6 : index
    %c0_115 = arith.constant 0 : index
    %97 = vector.load %arg1[%c0_112, %c3_113, %c6_114, %c0_115] : memref<1x4x40x128xf32, #tpu.memory_space<vmem>>, vector<1x1x24x128xf32>
    %98 = vector.shape_cast %97 : vector<1x1x24x128xf32> to vector<24x128xf32>
    %c16 = arith.constant 16 : index
    %c0_116 = arith.constant 0 : index
    %c0_117 = arith.constant 0 : index
    %99 = vector.load %arg2[%c16, %c0_116, %c0_117] : memref<25x128x128xf32, #tpu.memory_space<vmem>>, vector<1x128x128xf32>
    %100 = vector.shape_cast %99 : vector<1x128x128xf32> to vector<128x128xf32>
    %cst_118 = arith.constant dense<0.000000e+00> : vector<24x128xf32>
    %101 = tpu.matmul %98, %100, %cst_118 {dimension_numbers = #tpu.dot_dimension_numbers<[1], [0], [0], [1], [0, 0, 1, 1], [], []>} : vector<24x128xf32>, vector<128x128xf32>, vector<24x128xf32> -> vector<24x128xf32>
    %102 = arith.addf %96, %101 : vector<24x128xf32>
    %c0_119 = arith.constant 0 : index
    %c2_120 = arith.constant 2 : index
    %c7_121 = arith.constant 7 : index
    %c0_122 = arith.constant 0 : index
    %103 = vector.load %arg1[%c0_119, %c2_120, %c7_121, %c0_122] : memref<1x4x40x128xf32, #tpu.memory_space<vmem>>, vector<1x1x24x128xf32>
    %104 = vector.shape_cast %103 : vector<1x1x24x128xf32> to vector<24x128xf32>
    %c17 = arith.constant 17 : index
    %c0_123 = arith.constant 0 : index
    %c0_124 = arith.constant 0 : index
    %105 = vector.load %arg2[%c17, %c0_123, %c0_124] : memref<25x128x128xf32, #tpu.memory_space<vmem>>, vector<1x128x128xf32>
    %106 = vector.shape_cast %105 : vector<1x128x128xf32> to vector<128x128xf32>
    %cst_125 = arith.constant dense<0.000000e+00> : vector<24x128xf32>
    %107 = tpu.matmul %104, %106, %cst_125 {dimension_numbers = #tpu.dot_dimension_numbers<[1], [0], [0], [1], [0, 0, 1, 1], [], []>} : vector<24x128xf32>, vector<128x128xf32>, vector<24x128xf32> -> vector<24x128xf32>
    %108 = arith.addf %102, %107 : vector<24x128xf32>
    %c0_126 = arith.constant 0 : index
    %c3_127 = arith.constant 3 : index
    %c7_128 = arith.constant 7 : index
    %c0_129 = arith.constant 0 : index
    %109 = vector.load %arg1[%c0_126, %c3_127, %c7_128, %c0_129] : memref<1x4x40x128xf32, #tpu.memory_space<vmem>>, vector<1x1x24x128xf32>
    %110 = vector.shape_cast %109 : vector<1x1x24x128xf32> to vector<24x128xf32>
    %c18 = arith.constant 18 : index
    %c0_130 = arith.constant 0 : index
    %c0_131 = arith.constant 0 : index
    %111 = vector.load %arg2[%c18, %c0_130, %c0_131] : memref<25x128x128xf32, #tpu.memory_space<vmem>>, vector<1x128x128xf32>
    %112 = vector.shape_cast %111 : vector<1x128x128xf32> to vector<128x128xf32>
    %cst_132 = arith.constant dense<0.000000e+00> : vector<24x128xf32>
    %113 = tpu.matmul %110, %112, %cst_132 {dimension_numbers = #tpu.dot_dimension_numbers<[1], [0], [0], [1], [0, 0, 1, 1], [], []>} : vector<24x128xf32>, vector<128x128xf32>, vector<24x128xf32> -> vector<24x128xf32>
    %114 = arith.addf %108, %113 : vector<24x128xf32>
    %c0_133 = arith.constant 0 : index
    %c2_134 = arith.constant 2 : index
    %c8_135 = arith.constant 8 : index
    %c0_136 = arith.constant 0 : index
    %115 = vector.load %arg1[%c0_133, %c2_134, %c8_135, %c0_136] : memref<1x4x40x128xf32, #tpu.memory_space<vmem>>, vector<1x1x24x128xf32>
    %116 = vector.shape_cast %115 : vector<1x1x24x128xf32> to vector<24x128xf32>
    %c19 = arith.constant 19 : index
    %c0_137 = arith.constant 0 : index
    %c0_138 = arith.constant 0 : index
    %117 = vector.load %arg2[%c19, %c0_137, %c0_138] : memref<25x128x128xf32, #tpu.memory_space<vmem>>, vector<1x128x128xf32>
    %118 = vector.shape_cast %117 : vector<1x128x128xf32> to vector<128x128xf32>
    %cst_139 = arith.constant dense<0.000000e+00> : vector<24x128xf32>
    %119 = tpu.matmul %116, %118, %cst_139 {dimension_numbers = #tpu.dot_dimension_numbers<[1], [0], [0], [1], [0, 0, 1, 1], [], []>} : vector<24x128xf32>, vector<128x128xf32>, vector<24x128xf32> -> vector<24x128xf32>
    %120 = arith.addf %114, %119 : vector<24x128xf32>
    %c0_140 = arith.constant 0 : index
    %c0_141 = arith.constant 0 : index
    %c12_142 = arith.constant 12 : index
    %c0_143 = arith.constant 0 : index
    %121 = vector.load %arg1[%c0_140, %c0_141, %c12_142, %c0_143] : memref<1x4x40x128xf32, #tpu.memory_space<vmem>>, vector<1x1x24x128xf32>
    %122 = vector.shape_cast %121 : vector<1x1x24x128xf32> to vector<24x128xf32>
    %c20 = arith.constant 20 : index
    %c0_144 = arith.constant 0 : index
    %c0_145 = arith.constant 0 : index
    %123 = vector.load %arg2[%c20, %c0_144, %c0_145] : memref<25x128x128xf32, #tpu.memory_space<vmem>>, vector<1x128x128xf32>
    %124 = vector.shape_cast %123 : vector<1x128x128xf32> to vector<128x128xf32>
    %cst_146 = arith.constant dense<0.000000e+00> : vector<24x128xf32>
    %125 = tpu.matmul %122, %124, %cst_146 {dimension_numbers = #tpu.dot_dimension_numbers<[1], [0], [0], [1], [0, 0, 1, 1], [], []>} : vector<24x128xf32>, vector<128x128xf32>, vector<24x128xf32> -> vector<24x128xf32>
    %126 = arith.addf %120, %125 : vector<24x128xf32>
    %c0_147 = arith.constant 0 : index
    %c1_148 = arith.constant 1 : index
    %c12_149 = arith.constant 12 : index
    %c0_150 = arith.constant 0 : index
    %127 = vector.load %arg1[%c0_147, %c1_148, %c12_149, %c0_150] : memref<1x4x40x128xf32, #tpu.memory_space<vmem>>, vector<1x1x24x128xf32>
    %128 = vector.shape_cast %127 : vector<1x1x24x128xf32> to vector<24x128xf32>
    %c21 = arith.constant 21 : index
    %c0_151 = arith.constant 0 : index
    %c0_152 = arith.constant 0 : index
    %129 = vector.load %arg2[%c21, %c0_151, %c0_152] : memref<25x128x128xf32, #tpu.memory_space<vmem>>, vector<1x128x128xf32>
    %130 = vector.shape_cast %129 : vector<1x128x128xf32> to vector<128x128xf32>
    %cst_153 = arith.constant dense<0.000000e+00> : vector<24x128xf32>
    %131 = tpu.matmul %128, %130, %cst_153 {dimension_numbers = #tpu.dot_dimension_numbers<[1], [0], [0], [1], [0, 0, 1, 1], [], []>} : vector<24x128xf32>, vector<128x128xf32>, vector<24x128xf32> -> vector<24x128xf32>
    %132 = arith.addf %126, %131 : vector<24x128xf32>
    %c0_154 = arith.constant 0 : index
    %c0_155 = arith.constant 0 : index
    %c13_156 = arith.constant 13 : index
    %c0_157 = arith.constant 0 : index
    %133 = vector.load %arg1[%c0_154, %c0_155, %c13_156, %c0_157] : memref<1x4x40x128xf32, #tpu.memory_space<vmem>>, vector<1x1x24x128xf32>
    %134 = vector.shape_cast %133 : vector<1x1x24x128xf32> to vector<24x128xf32>
    %c22 = arith.constant 22 : index
    %c0_158 = arith.constant 0 : index
    %c0_159 = arith.constant 0 : index
    %135 = vector.load %arg2[%c22, %c0_158, %c0_159] : memref<25x128x128xf32, #tpu.memory_space<vmem>>, vector<1x128x128xf32>
    %136 = vector.shape_cast %135 : vector<1x128x128xf32> to vector<128x128xf32>
    %cst_160 = arith.constant dense<0.000000e+00> : vector<24x128xf32>
    %137 = tpu.matmul %134, %136, %cst_160 {dimension_numbers = #tpu.dot_dimension_numbers<[1], [0], [0], [1], [0, 0, 1, 1], [], []>} : vector<24x128xf32>, vector<128x128xf32>, vector<24x128xf32> -> vector<24x128xf32>
    %138 = arith.addf %132, %137 : vector<24x128xf32>
    %c0_161 = arith.constant 0 : index
    %c1_162 = arith.constant 1 : index
    %c13_163 = arith.constant 13 : index
    %c0_164 = arith.constant 0 : index
    %139 = vector.load %arg1[%c0_161, %c1_162, %c13_163, %c0_164] : memref<1x4x40x128xf32, #tpu.memory_space<vmem>>, vector<1x1x24x128xf32>
    %140 = vector.shape_cast %139 : vector<1x1x24x128xf32> to vector<24x128xf32>
    %c23 = arith.constant 23 : index
    %c0_165 = arith.constant 0 : index
    %c0_166 = arith.constant 0 : index
    %141 = vector.load %arg2[%c23, %c0_165, %c0_166] : memref<25x128x128xf32, #tpu.memory_space<vmem>>, vector<1x128x128xf32>
    %142 = vector.shape_cast %141 : vector<1x128x128xf32> to vector<128x128xf32>
    %cst_167 = arith.constant dense<0.000000e+00> : vector<24x128xf32>
    %143 = tpu.matmul %140, %142, %cst_167 {dimension_numbers = #tpu.dot_dimension_numbers<[1], [0], [0], [1], [0, 0, 1, 1], [], []>} : vector<24x128xf32>, vector<128x128xf32>, vector<24x128xf32> -> vector<24x128xf32>
    %144 = arith.addf %138, %143 : vector<24x128xf32>
    %c0_168 = arith.constant 0 : index
    %c0_169 = arith.constant 0 : index
    %c14_170 = arith.constant 14 : index
    %c0_171 = arith.constant 0 : index
    %145 = vector.load %arg1[%c0_168, %c0_169, %c14_170, %c0_171] : memref<1x4x40x128xf32, #tpu.memory_space<vmem>>, vector<1x1x24x128xf32>
    %146 = vector.shape_cast %145 : vector<1x1x24x128xf32> to vector<24x128xf32>
    %c24 = arith.constant 24 : index
    %c0_172 = arith.constant 0 : index
    %c0_173 = arith.constant 0 : index
    %147 = vector.load %arg2[%c24, %c0_172, %c0_173] : memref<25x128x128xf32, #tpu.memory_space<vmem>>, vector<1x128x128xf32>
    %148 = vector.shape_cast %147 : vector<1x128x128xf32> to vector<128x128xf32>
    %cst_174 = arith.constant dense<0.000000e+00> : vector<24x128xf32>
    %149 = tpu.matmul %146, %148, %cst_174 {dimension_numbers = #tpu.dot_dimension_numbers<[1], [0], [0], [1], [0, 0, 1, 1], [], []>} : vector<24x128xf32>, vector<128x128xf32>, vector<24x128xf32> -> vector<24x128xf32>
    %150 = arith.addf %144, %149 : vector<24x128xf32>
    %c0_175 = arith.constant 0 : index
    %c0_176 = arith.constant 0 : index
    %151 = vector.load %arg3[%c0_175, %c0_176] : memref<1x128xf32, #tpu.memory_space<vmem>>, vector<1x128xf32>
    %152 = vector.broadcast %151 : vector<1x128xf32> to vector<24x128xf32>
    %153 = arith.addf %150, %152 : vector<24x128xf32>
    %c0_177 = arith.constant 0 : index
    %c0_178 = arith.constant 0 : index
    %c0_179 = arith.constant 0 : index
    %154 = vector.load %arg4[%c0_177, %c0_178, %c0_179] : memref<1x24x128xf32, #tpu.memory_space<vmem>>, vector<1x24x128xf32>
    %155 = vector.shape_cast %154 : vector<1x24x128xf32> to vector<24x128xf32>
    %156 = vector.shape_cast %153 : vector<24x128xf32> to vector<1x24x128xf32>
    tpu.vector_store %arg4[%c0_177, %c0_178, %c0_179], %156 {strides = array<i32>} : memref<1x24x128xf32, #tpu.memory_space<vmem>>, vector<1x24x128xf32>,
    return
  }
  func.func @transform_0(%arg0: i32) -> (i32, i32, i32, i32) {
    %c0_i32 = arith.constant 0 : i32
    %c0_i32_0 = arith.constant 0 : i32
    %c0_i32_1 = arith.constant 0 : i32
    %c0_i32_2 = arith.constant 0 : i32
    return %arg0, %c0_i32, %c0_i32_0, %c0_i32_1 : i32, i32, i32, i32
  }
  func.func @transform_1(%arg0: i32) -> (i32, i32, i32) {
    %c0_i32 = arith.constant 0 : i32
    %c0_i32_0 = arith.constant 0 : i32
    %c0_i32_1 = arith.constant 0 : i32
    %c0_i32_2 = arith.constant 0 : i32
    return %c0_i32, %c0_i32_0, %c0_i32_1 : i32, i32, i32
  }
  func.func @transform_2(%arg0: i32) -> (i32, i32) {
    %c0_i32 = arith.constant 0 : i32
    %c0_i32_0 = arith.constant 0 : i32
    %c0_i32_1 = arith.constant 0 : i32
    return %c0_i32, %c0_i32_0 : i32, i32
  }
  func.func @transform_3(%arg0: i32) -> (i32, i32, i32) {
    %c0_i32 = arith.constant 0 : i32
    %c0_i32_0 = arith.constant 0 : i32
    %c0_i32_1 = arith.constant 0 : i32
    return %arg0, %c0_i32, %c0_i32_0 : i32, i32, i32
  }
}

</mosaic_0001>

<bundles_post_ra>
// kernel: hyper_analysis_forward.3
= control target key start
LH: loop header
LB: loop body
LE: loop exit
PB: predicated region body
PF: predicated region fallthrough
CT: control target
= control target key end

     0   :  { %s5284_s12 = smov 0   ;;  %s6428_s0 = inlined_call_operand.vmem [shape: f32[2,1,328,128], index: 0, kind: input, shape index: {}]   ;;  %s6429_s1 = inlined_call_operand.vmem [shape: f32[9,128,128], index: 1, kind: input, shape index: {}]   ;;  %s6430_s2 = inlined_call_operand.vmem [shape: f32[1,128], index: 2, kind: input, shape index: {}]   ;;  %s6431_s3 = inlined_call_operand.vmem [shape: f32[2,288,128], index: 3, kind: output, shape index: {}]  }
   0x1 LB: > { %s3274_s13 = sadd.s32 4294967295, %s5262_s12   ;;  %p3278_p0 = scmp.ge.s32.totalorder %s5262_s12, 1  ;;  %s5262_s12 = sphi %s5284_s12, %s13_s12  }
   0x2   : > { %p137_p1 = scmp.lt.s32.totalorder %s5262_s12, 3 }
   0x4   : > { %p138_p2 = pnand %p3278_p0, %p137_p1 }
   0x5   : > { %v3281_v0 = vld [vmem:[%s6429_s1 + $0x80] sm:$0xff] (!%p138_p2)  ;;  %v3282_v1 = vld [vmem:[%s6429_s1 + $0x88] sm:$0xff] (!%p138_p2)  ;;  %p161_p3 = scmp.lt.s32.totalorder (!%p138_p2), %s3274_s13, 1  ;;  %v3283_v5 = vld [vmem:[%s6429_s1 + $0x90] sm:$0xff] (!%p138_p2) }
   0x6   : > { %141 = sbr.rel (%p138_p2) target bundleno = 582 (0x246), region = 32  ;;  %v3329_v2 = vld [vmem:[%s6429_s1 + $0x200] sm:$0xff] (!%p138_p2)  ;;  %v4654_v3 = vpack.c.bf16 (!%p138_p2), %v3282_v1, %v3281_v0  ;;  %v3330_v4 = vld [vmem:[%s6429_s1 + $0x208] sm:$0xff] (!%p138_p2)  ;;  %v3284_v6 = vld [vmem:[%s6429_s1 + $0x98] sm:$0xff] (!%p138_p2) }
   0x7   : > { %v5310_v7 = vpack.c.bf16 (!%p138_p2), %v3330_v4, %v3329_v2  ;;  %v4658_v8 = vpack.c.bf16 (!%p138_p2), %v3284_v6, %v3283_v5  ;;  %v3331_v9 = vld [vmem:[%s6429_s1 + $0x210] sm:$0xff] (!%p138_p2)  ;;  %v3332_v10 = vld [vmem:[%s6429_s1 + $0x218] sm:$0xff] (!%p138_p2)  ;;  %v3285_v11 = vld [vmem:[%s6429_s1 + $0xa0] sm:$0xff] (!%p138_p2) }
   0x8   : > { %4655 = vmatprep.subr.bf16.mxu1 (!%p138_p2), %v4654_v3  ;;  %v5323_v12 = vpack.c.bf16 (!%p138_p2), %v3332_v10, %v3331_v9  ;;  %v3286_v13 = vld [vmem:[%s6429_s1 + $0xa8] sm:$0xff] (!%p138_p2)  ;;  %v3333_v14 = vld [vmem:[%s6429_s1 + $0x220] sm:$0xff] (!%p138_p2)  ;;  %v3287_v18 = vld [vmem:[%s6429_s1 + $0xb0] sm:$0xff] (!%p138_p2) }
   0x9   : > { %v3334_v15 = vld [vmem:[%s6429_s1 + $0x228] sm:$0xff] (!%p138_p2)  ;;  %4783 = vmatprep.subr.bf16.mxu0 (!%p138_p2), %v5310_v7  ;;  %4657 = vmatpush3.bf16.msra.mxu1 (!%p138_p2), %v4654_v3  ;;  %v4662_v16 = vpack.c.bf16 (!%p138_p2), %v3286_v13, %v3285_v11  ;;  %v3288_v19 = vld [vmem:[%s6429_s1 + $0xb8] sm:$0xff] (!%p138_p2)  ;;  %v3335_v20 = vld [vmem:[%s6429_s1 + $0x230] sm:$0xff] (!%p138_p2) }
   0xa   : > { %4785 = vmatpush3.bf16.msra.mxu0 (!%p138_p2), %v5310_v7  ;;  %4659 = vmatprep.subr.bf16.mxu1 (!%p138_p2), %v4658_v8  ;;  %v5338_v17 = vpack.c.bf16 (!%p138_p2), %v3334_v15, %v3333_v14  ;;  %v3336_v21 = vld [vmem:[%s6429_s1 + $0x238] sm:$0xff] (!%p138_p2)  ;;  %v4666_v22 = vpack.c.bf16 (!%p138_p2), %v3288_v19, %v3287_v18  ;;  %v3289_v24 = vld [vmem:[%s6429_s1 + $0xc0] sm:$0xff] (!%p138_p2)  ;;  %v3290_v25 = vld [vmem:[%s6429_s1 + $0xc8] sm:$0xff] (!%p138_p2) }
   0xb   : > { %4787 = vmatprep.subr.bf16.mxu0 (!%p138_p2), %v5323_v12  ;;  %v5359_v23 = vpack.c.bf16 (!%p138_p2), %v3336_v21, %v3335_v20  ;;  %v3337_v27 = vld [vmem:[%s6429_s1 + $0x240] sm:$0xff] (!%p138_p2)  ;;  %v3338_v28 = vld [vmem:[%s6429_s1 + $0x248] sm:$0xff] (!%p138_p2)  ;;  %v4670_v30 = vpack.c.bf16 (!%p138_p2), %v3290_v25, %v3289_v24  ;;  %v3291_v32 = vld [vmem:[%s6429_s1 + $0xd0] sm:$0xff] (!%p138_p2) }
   0xc   : > { %v5377_v31 = vpack.c.bf16 (!%p138_p2), %v3338_v28, %v3337_v27  ;;  %v3292_v33 = vld [vmem:[%s6429_s1 + $0xd8] sm:$0xff] (!%p138_p2)  ;;  %v3339_v34 = vld [vmem:[%s6429_s1 + $0x250] sm:$0xff] (!%p138_p2)  ;;  %v3293_v38 = vld [vmem:[%s6429_s1 + $0xe0] sm:$0xff] (!%p138_p2) }
   0xd   : > { %s6433_s13 = smov (!%p161_p3, %s3274_s13), 1  ;;  %4661 = vmatpush3.bf16.msra.mxu1 %v4658_v8  ;;  %v3340_v35 = vld [vmem:[%s6429_s1 + $0x258] sm:$0xff]  ;;  %v4674_v36 = vpack.c.bf16 %v3292_v33, %v3291_v32  ;;  %v3294_v39 = vld [vmem:[%s6429_s1 + $0xe8] sm:$0xff]  ;;  %v3341_v40 = vld [vmem:[%s6429_s1 + $0x260] sm:$0xff] }
   0xe   : > { %s5246_s11 = smul.u32 328, %s6433_s13  ;;  %4789 = vmatpush3.bf16.msra.mxu0 %v5323_v12  ;;  %4663 = vmatprep.subr.bf16.mxu1 %v4662_v16  ;;  %v5393_v37 = vpack.c.bf16 %v3340_v35, %v3339_v34  ;;  %v3342_v41 = vld [vmem:[%s6429_s1 + $0x268] sm:$0xff]  ;;  %v4678_v42 = vpack.c.bf16 %v3294_v39, %v3293_v38  ;;  %v3295_v44 = vld [vmem:[%s6429_s1 + $0xf0] sm:$0xff]  ;;  %v3296_v45 = vld [vmem:[%s6429_s1 + $0xf8] sm:$0xff] }
   0xf   : > { %4791 = vmatprep.subr.bf16.mxu0 %v5338_v17  ;;  %v5409_v43 = vpack.c.bf16 %v3342_v41, %v3341_v40  ;;  %v3343_v46 = vld [vmem:[%s6429_s1 + $0x270] sm:$0xff]  ;;  %v3344_v47 = vld [vmem:[%s6429_s1 + $0x278] sm:$0xff]  ;;  %v4682_v48 = vpack.c.bf16 %v3296_v45, %v3295_v44  ;;  %v207_v50 = vld [vmem:[%s6429_s1] sm:$0xff] }
  0x10   : > { %s5355_s24 = scalar_lea.vmem %s6428_s0, %s5246_s11  ;;  %v5425_v49 = vpack.c.bf16 %v3344_v47, %v3343_v46  ;;  %v208_v51 = vld [vmem:[%s6429_s1 + $0x8] sm:$0xff]  ;;  %v3345_v52 = vld [vmem:[%s6429_s1 + $0x280] sm:$0xff]  ;;  %v3347_v56 = vld [vmem:[%s6429_s1 + $0x290] sm:$0xff] }
  0x11   : > { %v223_v26 = vld [vmem:[%s5355_s24 + $0x1] sm:$0xff]  ;;  %v1434_v29 = vld [vmem:[%s5355_s24 + $0x13] sm:$0xff]  ;;  %4665 = vmatpush3.bf16.msra.mxu1 %v4662_v16  ;;  %v4686_v54 = vpack.c.bf16 %v208_v51, %v207_v50  ;;  %v224_v58 = vld [vmem:[%s5355_s24 + $0x9] sm:$0xff] }
  0x12   : > { %3912 = vmatprep.mubr.f32.mxu1 %v223_v26  ;;  %4256 = vmatprep.mubr.f32.mxu0 %v1434_v29  ;;  %v3346_v53 = vld [vmem:[%s6429_s1 + $0x288] sm:$0xff]  ;;  %v3348_v57 = vld [vmem:[%s6429_s1 + $0x298] sm:$0xff]  ;;  %v209_v59 = vld [vmem:[%s6429_s1 + $0x10] sm:$0xff] }
  0x13   : > { %4793 = vmatpush3.bf16.msra.mxu0 %v5338_v17  ;;  %4667 = vmatprep.subr.bf16.mxu1 %v4666_v22  ;;  %v4814_v55 = vpack.c.bf16 %v3346_v53, %v3345_v52  ;;  %v210_v60 = vld [vmem:[%s6429_s1 + $0x18] sm:$0xff]  ;;  %v4818_v63 = vpack.c.bf16 %v3348_v57, %v3347_v56  ;;  %v1436_v0 = vld [vmem:[%s5355_s24 + $0x23] sm:$0xff]  ;;  %v1437_v8 = vld [vmem:[%s5355_s24 + $0x2b] sm:$0xff] }
  0x14   : > { %4795 = vmatprep.subr.bf16.mxu0 %v5359_v23  ;;  %v1435_v61 = vld [vmem:[%s5355_s24 + $0x1b] sm:$0xff]  ;;  %v225_v62 = vld [vmem:[%s5355_s24 + $0x11] sm:$0xff]  ;;  %v4690_v1 = vpack.c.bf16 %v210_v60, %v209_v59  ;;  %v3350_v3 = vld [vmem:[%s6429_s1 + $0x2a8] sm:$0xff] }
  0x15   : > { %4669 = vmatpush3.bf16.msra.mxu1 %v4666_v22  ;;  %v3349_v2 = vld [vmem:[%s6429_s1 + $0x2a0] sm:$0xff]  ;;  %v212_v6 = vld [vmem:[%s6429_s1 + $0x28] sm:$0xff]  ;;  %v1438_v10 = vld [vmem:[%s5355_s24 + $0x33] sm:$0xff] }
  0x16   : > { %4671 = vmatprep.subr.bf16.mxu1 %v4670_v30  ;;  %v226_v4 = vld [vmem:[%s5355_s24 + $0x19] sm:$0xff]  ;;  %v227_v9 = vld [vmem:[%s5355_s24 + $0x21] sm:$0xff]  ;;  %v4822_v11 = vpack.c.bf16 %v3350_v3, %v3349_v2  ;;  %v3351_v13 = vld [vmem:[%s6429_s1 + $0x2b0] sm:$0xff] }
  0x17   : > { %4797 = vmatpush3.bf16.msra.mxu0 %v5359_v23  ;;  %v211_v5 = vld [vmem:[%s6429_s1 + $0x20] sm:$0xff]  ;;  %v3352_v14 = vld [vmem:[%s6429_s1 + $0x2b8] sm:$0xff]  ;;  %v228_v16 = vld [vmem:[%s5355_s24 + $0x29] sm:$0xff] }
  0x18   : > { %4799 = vmatprep.subr.bf16.mxu0 %v5377_v31  ;;  %v4694_v15 = vpack.c.bf16 %v212_v6, %v211_v5  ;;  %v213_v18 = vld [vmem:[%s6429_s1 + $0x30] sm:$0xff]  ;;  %v214_v19 = vld [vmem:[%s6429_s1 + $0x38] sm:$0xff]  ;;  %v1440_v22 = vld [vmem:[%s5355_s24 + $0x43] sm:$0xff]  ;;  %v4826_v24 = vpack.c.bf16 %v3352_v14, %v3351_v13 }
  0x19   : > { %4673 = vmatpush3.bf16.msra.mxu1 %v4670_v30  ;;  %v1439_v20 = vld [vmem:[%s5355_s24 + $0x3b] sm:$0xff]  ;;  %v229_v21 = vld [vmem:[%s5355_s24 + $0x31] sm:$0xff]  ;;  %v3354_v26 = vld [vmem:[%s6429_s1 + $0x2c8] sm:$0xff]  ;;  %v4698_v27 = vpack.c.bf16 %v214_v19, %v213_v18 }
  0x1a   : > { %4675 = vmatprep.subr.bf16.mxu1 %v4674_v36  ;;  %v3353_v25 = vld [vmem:[%s6429_s1 + $0x2c0] sm:$0xff]  ;;  %v216_v30 = vld [vmem:[%s6429_s1 + $0x48] sm:$0xff]  ;;  %v1442_v34 = vld [vmem:[%s5355_s24 + $0x53] sm:$0xff] }
  0x1b   : > { %4801 = vmatpush3.bf16.msra.mxu0 %v5377_v31  ;;  %v230_v28 = vld [vmem:[%s5355_s24 + $0x39] sm:$0xff]  ;;  %v1441_v32 = vld [vmem:[%s5355_s24 + $0x4b] sm:$0xff]  ;;  %v231_v33 = vld [vmem:[%s5355_s24 + $0x41] sm:$0xff]  ;;  %v4830_v35 = vpack.c.bf16 %v3354_v26, %v3353_v25 }
  0x1c   : > { %4803 = vmatprep.subr.bf16.mxu0 %v5393_v37  ;;  %v215_v29 = vld [vmem:[%s6429_s1 + $0x40] sm:$0xff]  ;;  %v3356_v38 = vld [vmem:[%s6429_s1 + $0x2d8] sm:$0xff]  ;;  %v232_v40 = vld [vmem:[%s5355_s24 + $0x49] sm:$0xff] }
  0x1d   : > { %4677 = vmatpush3.bf16.msra.mxu1 %v4674_v36  ;;  %v3355_v36 = vld [vmem:[%s6429_s1 + $0x2d0] sm:$0xff]  ;;  %v4702_v39 = vpack.c.bf16 %v216_v30, %v215_v29  ;;  %v1443_v44 = vld [vmem:[%s5355_s24 + $0x5b] sm:$0xff]  ;;  %v1444_v46 = vld [vmem:[%s5355_s24 + $0x63] sm:$0xff] }
  0x1e   : > { %4679 = vmatprep.subr.bf16.mxu1 %v4678_v42  ;;  %v217_v41 = vld [vmem:[%s6429_s1 + $0x50] sm:$0xff]  ;;  %v4834_v47 = vpack.c.bf16 %v3356_v38, %v3355_v36  ;;  %v3358_v50 = vld [vmem:[%s6429_s1 + $0x2e8] sm:$0xff]  ;;  %v234_v52 = vld [vmem:[%s5355_s24 + $0x59] sm:$0xff] }
  0x1f   : > { %4805 = vmatpush3.bf16.msra.mxu0 %v5393_v37  ;;  %v233_v45 = vld [vmem:[%s5355_s24 + $0x51] sm:$0xff]  ;;  %v219_v53 = vld [vmem:[%s6429_s1 + $0x60] sm:$0xff]  ;;  %v3362_v6 = vld [vmem:[%s6429_s1 + $0x308] sm:$0xff] }
  0x20   : > { %4807 = vmatprep.subr.bf16.mxu0 %v5409_v43  ;;  %v235_v56 = vld [vmem:[%s5355_s24 + $0x61] sm:$0xff]  ;;  %v1446_v57 = vld [vmem:[%s5355_s24 + $0x73] sm:$0xff]  ;;  %v1449_v13 = vld [vmem:[%s5355_s24 + $0x8b] sm:$0xff] }
  0x21   : > { %4681 = vmatpush3.bf16.msra.mxu1 %v4678_v42  ;;  %v218_v42 = vld [vmem:[%s6429_s1 + $0x58] sm:$0xff]  ;;  %v3359_v59 = vld [vmem:[%s6429_s1 + $0x2f0] sm:$0xff]  ;;  %v1448_v3 = vld [vmem:[%s5355_s24 + $0x83] sm:$0xff] }
  0x22   : > { %4683 = vmatprep.subr.bf16.mxu1 %v4682_v48  ;;  %v4706_v51 = vpack.c.bf16 %v218_v42, %v217_v41  ;;  %v3360_v60 = vld [vmem:[%s6429_s1 + $0x2f8] sm:$0xff]  ;;  %v3361_v5 = vld [vmem:[%s6429_s1 + $0x300] sm:$0xff]  ;;  %v240_v19 = vld [vmem:[%s5355_s24 + $0x89] sm:$0xff] }
  0x23   : > { %4809 = vmatpush3.bf16.msra.mxu0 %v5409_v43  ;;  %v237_v2 = vld [vmem:[%s5355_s24 + $0x71] sm:$0xff]  ;;  %v239_v14 = vld [vmem:[%s5355_s24 + $0x81] sm:$0xff]  ;;  %v242_v26 = vld [vmem:[%s5355_s24 + $0x99] sm:$0xff] }
  0x24   : > { %4811 = vmatprep.subr.bf16.mxu0 %v5425_v49  ;;  %v3364_v25 = vld [vmem:[%s6429_s1 + $0x318] sm:$0xff]  ;;  %v5587_v29 = vld [vmem:[%s5355_s24 + $0x24] sm:$0xff] }
  0x25   : > { %4685 = vmatpush3.bf16.msra.mxu1 %v4682_v48  ;;  %v3357_v48 = vld [vmem:[%s6429_s1 + $0x2e0] sm:$0xff]  ;;  %v245_v36 = vld [vmem:[%s5355_s24 + $0xb1] sm:$0xff] }
  0x26   : > { %4687 = vmatprep.subr.bf16.mxu1 %v4686_v54  ;;  %v5602_v38 = vld [vmem:[%s5355_s24 + $0x34] sm:$0xff] }
  0x27   : > { %4813 = vmatpush3.bf16.msra.mxu0 %v5425_v49  ;;  %v3368_v41 = vld [vmem:[%s6429_s1 + $0x338] sm:$0xff] }
  0x28   : > { %4815 = vmatprep.subr.bf16.mxu0 %v4814_v55  ;;  %3913 = vmatmul.mubr.f32.vlgmr.msra.gmra.mrb[0].mxu1 %v224_v58  ;;  %v4838_v58 = vpack.c.bf16 %v3358_v50, %v3357_v48  ;;  %v246_v42 = vld [vmem:[%s5355_s24 + $0xb9] sm:$0xff]  ;;  %v3370_v50 = vld [vmem:[%s6429_s1 + $0x348] sm:$0xff] }
  0x29   : > { %4689 = vmatpush3.bf16.msra.mxu1 %v4686_v54  ;;  %3915 = vmatprep.mubr.f32.mxu1 %v225_v62  ;;  %v220_v54 = vld [vmem:[%s6429_s1 + $0x68] sm:$0xff]  ;;  %v3369_v48 = vld [vmem:[%s6429_s1 + $0x340] sm:$0xff] }
  0x2a   : > { %4257 = vmatmul.mubr.f32.vlgmr.msra.gmra.mrb[0].mxu0 %v1435_v61  ;;  %4691 = vmatprep.subr.bf16.mxu1 %v4690_v1  ;;  %v4710_v61 = vpack.c.bf16 %v220_v54, %v219_v53  ;;  %v236_v62 = vld [vmem:[%s5355_s24 + $0x69] sm:$0xff]  ;;  %v249_v53 = vld [vmem:[%s5355_s24 + $0xd1] sm:$0xff] }
  0x2b   : > { %4817 = vmatpush3.bf16.msra.mxu0 %v4814_v55  ;;  %4259 = vmatprep.mubr.f32.mxu0 %v1436_v0  ;;  %v1445_v55 = vld [vmem:[%s5355_s24 + $0x6b] sm:$0xff]  ;;  %v222_v0 = vld [vmem:[%s6429_s1 + $0x78] sm:$0xff] }
  0x2c   : > { %4819 = vmatprep.subr.bf16.mxu0 %v4818_v63  ;;  %3916 = vmatmul.mubr.f32.gmra.mrb[2].mxu1 %v226_v4  ;;  %v4842_v4 = vpack.c.bf16 %v3360_v60, %v3359_v59  ;;  %v5634_v54 = vld [vmem:[%s5355_s24 + $0x54] sm:$0xff]  ;;  %v5646_v59 = vld [vmem:[%s5355_s24 + $0x5c] sm:$0xff] }
  0x2d   : > { %3918 = vmatprep.mubr.f32.mxu1 %v227_v9  ;;  %4693 = vmatpush3.bf16.msra.mxu1 %v4690_v1  ;;  %v1447_v1 = vld [vmem:[%s5355_s24 + $0x7b] sm:$0xff] }
  0x2e   : > { %4260 = vmatmul.mubr.f32.gmra.mrb[2].mxu0 %v1437_v8  ;;  %4695 = vmatprep.subr.bf16.mxu1 %v4694_v15  ;;  %v238_v9 = vld [vmem:[%s5355_s24 + $0x79] sm:$0xff]  ;;  %v251_v60 = vld [vmem:[%s5355_s24 + $0xe1] sm:$0xff] }
  0x2f   : > { %4821 = vmatpush3.bf16.msra.mxu0 %v4818_v63  ;;  %4262 = vmatprep.mubr.f32.mxu0 %v1438_v10  ;;  %v221_v63 = vld [vmem:[%s6429_s1 + $0x70] sm:$0xff]  ;;  %v3297_v10 = vld [vmem:[%s6429_s1 + $0x100] sm:$0xff] }
  0x30   : > { %4823 = vmatprep.subr.bf16.mxu0 %v4822_v11  ;;  %3919 = vmatmul.mubr.f32.gmra.mrb[4].mxu1 %v228_v16  ;;  %v4714_v8 = vpack.c.bf16 %v222_v0, %v221_v63  ;;  %v4846_v16 = vpack.c.bf16 %v3362_v6, %v3361_v5  ;;  %v3373_v63 = vld [vmem:[%s6429_s1 + $0x360] sm:$0xff]  ;;  %v3374_v0 = vld [vmem:[%s6429_s1 + $0x368] sm:$0xff]  ;;  %v3375_v6 = vld [vmem:[%s6429_s1 + $0x370] sm:$0xff] }
  0x31   : > { %3921 = vmatprep.mubr.f32.mxu1 %v229_v21  ;;  %4697 = vmatpush3.bf16.msra.mxu1 %v4694_v15  ;;  %v1450_v15 = vld [vmem:[%s5355_s24 + $0x93] sm:$0xff]  ;;  %v4870_v5 = vpack.c.bf16 %v3374_v0, %v3373_v63  ;;  %v3306_v63 = vld [vmem:[%s6429_s1 + $0x148] sm:$0xff] }
  0x32   : > { %4263 = vmatmul.mubr.f32.gmra.mrb[4].mxu0 %v1439_v20  ;;  %4699 = vmatprep.subr.bf16.mxu1 %v4698_v27  ;;  %v1451_v20 = vld [vmem:[%s5355_s24 + $0x9b] sm:$0xff]  ;;  %v241_v21 = vld [vmem:[%s5355_s24 + $0x91] sm:$0xff] }
  0x33   : > { %4825 = vmatpush3.bf16.msra.mxu0 %v4822_v11  ;;  %4265 = vmatprep.mubr.f32.mxu0 %v1440_v22  ;;  %v3298_v11 = vld [vmem:[%s6429_s1 + $0x108] sm:$0xff]  ;;  %v1768_v22 = vld [vmem:[%s5355_s24 + $0x14] sm:$0xff] }
  0x34   : > { %4827 = vmatprep.subr.bf16.mxu0 %v4826_v24  ;;  %3922 = vmatmul.mubr.f32.gmra.mrb[6].mxu1 %v230_v28  ;;  %v5570_v18 = vpack.c.bf16 %v3298_v11, %v3297_v10  ;;  %v243_v28 = vld [vmem:[%s5355_s24 + $0xa1] sm:$0xff]  ;;  %v178_v0 = vld [vmem:[%s5355_s24 + $0x38] sm:$0xff] }
  0x35   : > { %3924 = vmatprep.mubr.f32.mxu1 %v231_v33  ;;  %4701 = vmatpush3.bf16.msra.mxu1 %v4698_v27  ;;  %v1769_v27 = vld [vmem:[%s5355_s24 + $0x1c] sm:$0xff]  ;;  %v3366_v33 = vld [vmem:[%s6429_s1 + $0x328] sm:$0xff] }
  0x36   : > { %4266 = vmatmul.mubr.f32.gmra.mrb[6].mxu0 %v1441_v32  ;;  %4703 = vmatprep.subr.bf16.mxu1 %v4702_v39  ;;  %v3365_v32 = vld [vmem:[%s6429_s1 + $0x320] sm:$0xff] }
  0x37   : > { %4268 = vmatprep.mubr.f32.mxu0 %v1442_v34  ;;  %4829 = vmatpush3.bf16.msra.mxu0 %v4826_v24  ;;  %v3363_v24 = vld [vmem:[%s6429_s1 + $0x310] sm:$0xff]  ;;  %v5678_v10 = vld [vmem:[%s5355_s24 + $0x7c] sm:$0xff] }
  0x38   : > { %4831 = vmatprep.subr.bf16.mxu0 %v4830_v35  ;;  %3925 = vmatmul.mubr.f32.gmra.mrb[8].mxu1 %v232_v40  ;;  %v4850_v30 = vpack.c.bf16 %v3364_v25, %v3363_v24  ;;  %v244_v34 = vld [vmem:[%s5355_s24 + $0xa9] sm:$0xff]  ;;  %v255_v11 = vld [vmem:[%s5355_s24 + $0x101] sm:$0xff]  ;;  %v258_v25 = vld [vmem:[%s5355_s24 + $0x119] sm:$0xff] }
  0x39   : > { %3927 = vmatprep.mubr.f32.mxu1 %v233_v45  ;;  %4705 = vmatpush3.bf16.msra.mxu1 %v4702_v39  ;;  %v4854_v39 = vpack.c.bf16 %v3366_v33, %v3365_v32  ;;  %v3367_v40 = vld [vmem:[%s6429_s1 + $0x330] sm:$0xff]  ;;  %v247_v45 = vld [vmem:[%s5355_s24 + $0xc1] sm:$0xff]  ;;  %v3300_v32 = vld [vmem:[%s6429_s1 + $0x118] sm:$0xff] }
  0x3a   : > { %4269 = vmatmul.mubr.f32.gmra.mrb[8].mxu0 %v1443_v44  ;;  %4707 = vmatprep.subr.bf16.mxu1 %v4706_v51  ;;  %v5614_v44 = vld [vmem:[%s5355_s24 + $0x3c] sm:$0xff]  ;;  %v172_v33 = vld [vmem:[%s5355_s24 + $0x8] sm:$0xff] }
  0x3b   : > { %4271 = vmatprep.mubr.f32.mxu0 %v1444_v46  ;;  %4833 = vmatpush3.bf16.msra.mxu0 %v4830_v35  ;;  %v5598_v35 = vld [vmem:[%s5355_s24 + $0x2c] sm:$0xff]  ;;  %v5618_v46 = vld [vmem:[%s5355_s24 + $0x44] sm:$0xff] }
  0x3c   : > { %4835 = vmatprep.subr.bf16.mxu0 %v4834_v47  ;;  %3928 = vmatmul.mubr.f32.gmra.mrb[10].mxu1 %v234_v52  ;;  %v5630_v52 = vld [vmem:[%s5355_s24 + $0x4c] sm:$0xff] }
  0x3d   : > { %3930 = vmatprep.mubr.f32.mxu1 %v235_v56  ;;  %4709 = vmatpush3.bf16.msra.mxu1 %v4706_v51  ;;  %v248_v51 = vld [vmem:[%s5355_s24 + $0xc9] sm:$0xff] }
  0x3e   : > { %4272 = vmatmul.mubr.f32.gmra.mrb[10].mxu0 %v1445_v55  ;;  %4711 = vmatprep.subr.bf16.mxu1 %v4710_v61  ;;  %v4862_v55 = vpack.c.bf16 %v3370_v50, %v3369_v48  ;;  %v3371_v56 = vld [vmem:[%s6429_s1 + $0x350] sm:$0xff]  ;;  %v175_v48 = vld [vmem:[%s5355_s24 + $0x20] sm:$0xff] }
  0x3f   : > { %4274 = vmatprep.mubr.f32.mxu0 %v1446_v57  ;;  %4837 = vmatpush3.bf16.msra.mxu0 %v4834_v47  ;;  %v4858_v47 = vpack.c.bf16 %v3368_v41, %v3367_v40  ;;  %v3372_v57 = vld [vmem:[%s6429_s1 + $0x358] sm:$0xff]  ;;  %v3301_v41 = vld [vmem:[%s6429_s1 + $0x120] sm:$0xff] }
  0x40   : > { %4839 = vmatprep.subr.bf16.mxu0 %v4838_v58  ;;  %3931 = vmatmul.mubr.f32.gmra.mrb[12].mxu1 %v236_v62  ;;  %v4866_v62 = vpack.c.bf16 %v3372_v57, %v3371_v56  ;;  %v5744_v50 = vld [vmem:[%s5355_s24 + $0xc4] sm:$0xff]  ;;  %v5756_v56 = vld [vmem:[%s5355_s24 + $0xcc] sm:$0xff] }
  0x41   : > { %3933 = vmatprep.mubr.f32.mxu1 %v237_v2  ;;  %4713 = vmatpush3.bf16.msra.mxu1 %v4710_v61  ;;  %v5650_v61 = vld [vmem:[%s5355_s24 + $0x64] sm:$0xff]  ;;  %v5662_v2 = vld [vmem:[%s5355_s24 + $0x6c] sm:$0xff] }
  0x42   : > { %4275 = vmatmul.mubr.f32.gmra.mrb[12].mxu0 %v1447_v1  ;;  %4715 = vmatprep.subr.bf16.mxu1 %v4714_v8  ;;  %v252_v1 = vld [vmem:[%s5355_s24 + $0xe9] sm:$0xff] }
  0x43   : > { %4277 = vmatprep.mubr.f32.mxu0 %v1448_v3  ;;  %4841 = vmatpush3.bf16.msra.mxu0 %v4838_v58  ;;  %v250_v58 = vld [vmem:[%s5355_s24 + $0xd9] sm:$0xff]  ;;  %v253_v3 = vld [vmem:[%s5355_s24 + $0xf1] sm:$0xff] }
  0x44   : > { %4843 = vmatprep.subr.bf16.mxu0 %v4842_v4  ;;  %3934 = vmatmul.mubr.f32.gmra.mrb[14].mxu1 %v238_v9  ;;  %v254_v9 = vld [vmem:[%s5355_s24 + $0xf9] sm:$0xff]  ;;  %v177_v57 = vld [vmem:[%s5355_s24 + $0x30] sm:$0xff] }
  0x45   : > { %3936 = vmatprep.mubr.f32.mxu1 %v239_v14  ;;  %4717 = vmatpush3.bf16.msra.mxu1 %v4714_v8  ;;  %v3376_v8 = vld [vmem:[%s6429_s1 + $0x378] sm:$0xff] }
  0x46   : > { %4278 = vmatmul.mubr.f32.gmra.mrb[14].mxu0 %v1449_v13  ;;  %4719 = vmatprep.subr.bf16.mxu1 %v5570_v18  ;;  %v5682_v13 = vld [vmem:[%s5355_s24 + $0x84] sm:$0xff]  ;;  %v4874_v14 = vpack.c.bf16 %v3376_v8, %v3375_v6  ;;  %v3307_v8 = vld [vmem:[%s6429_s1 + $0x150] sm:$0xff] }
  0x47   : > { %4280 = vmatprep.mubr.f32.mxu0 %v1450_v15  ;;  %4845 = vmatpush3.bf16.msra.mxu0 %v4842_v4  ;;  %v5666_v4 = vld [vmem:[%s5355_s24 + $0x74] sm:$0xff]  ;;  %v3377_v15 = vld [vmem:[%s6429_s1 + $0x380] sm:$0xff] }
  0x48   : > { %4847 = vmatprep.subr.bf16.mxu0 %v4846_v16  ;;  %3937 = vmatmul.mubr.f32.gmra.mrb[16].mxu1 %v240_v19  ;;  %v256_v19 = vld [vmem:[%s5355_s24 + $0x109] sm:$0xff] }
  0x49   : > { %3939 = vmatprep.mubr.f32.mxu1 %v241_v21  ;;  %v257_v21 = vld [vmem:[%s5355_s24 + $0x111] sm:$0xff] }
  0x4a   : > { %4281 = vmatmul.mubr.f32.gmra.mrb[16].mxu0 %v1451_v20  ;;  %v5694_v20 = vld [vmem:[%s5355_s24 + $0x8c] sm:$0xff] }
  0x4b   : > { %4342 = vmatprep.mubr.f32.mxu0 %v1768_v22  ;;  %v5698_v22 = vld [vmem:[%s5355_s24 + $0x94] sm:$0xff] }
  0x4c   : > { %3940 = vmatmul.mubr.f32.gmra.mrb[18].mxu1 %v242_v26  ;;  %v5706_v26 = vld [vmem:[%s5355_s24 + $0x9c] sm:$0xff] }
  0x4d   : > { %3942 = vmatprep.mubr.f32.mxu1 %v243_v28  ;;  %v5710_v28 = vld [vmem:[%s5355_s24 + $0xa4] sm:$0xff] }
  0x4e   : > { %4343 = vmatmul.mubr.f32.vlgmr.msra.gmra.mrb[0].mxu0 %v1769_v27  ;;  %v171_v27 = vld [vmem:[%s5355_s24] sm:$0xff] }
  0x4f   : > { %4849 = vmatpush3.bf16.msra.mxu0 %v4846_v16  ;;  %4345 = vmatprep.mubr.f32.mxu0 %v5587_v29  ;;  %v3378_v16 = vld [vmem:[%s6429_s1 + $0x388] sm:$0xff] }
  0x50   : > { %4851 = vmatprep.subr.bf16.mxu0 %v4850_v30  ;;  %3943 = vmatmul.mubr.f32.gmra.mrb[20].mxu1 %v244_v34  ;;  %v5700_v24 = vpack.c.bf16 %v3378_v16, %v3377_v15  ;;  %v5723_v34 = vld [vmem:[%s5355_s24 + $0xac] sm:$0xff]  ;;  %v5792_v16 = vld [vmem:[%s5355_s24 + $0xf4] sm:$0xff] }
  0x51   : > { %3945 = vmatprep.mubr.f32.mxu1 %v245_v36  ;;  %v173_v36 = vld [vmem:[%s5355_s24 + $0x10] sm:$0xff] }
  0x52   : > { %4346 = vmatmul.mubr.f32.gmra.mrb[2].mxu0 %v5598_v35  ;;  %v181_v15 = vld [vmem:[%s5355_s24 + $0x50] sm:$0xff] }
  0x53   : > { %4348 = vmatprep.mubr.f32.mxu0 %v5602_v38  ;;  %4853 = vmatpush3.bf16.msra.mxu0 %v4850_v30  ;;  %v3299_v30 = vld [vmem:[%s6429_s1 + $0x110] sm:$0xff] }
  0x54   : > { %4855 = vmatprep.subr.bf16.mxu0 %v4854_v39  ;;  %3946 = vmatmul.mubr.f32.gmra.mrb[22].mxu1 %v246_v42  ;;  %v4722_v40 = vpack.c.bf16 %v3300_v32, %v3299_v30  ;;  %v3302_v42 = vld [vmem:[%s6429_s1 + $0x128] sm:$0xff]  ;;  %v5804_v30 = vld [vmem:[%s5355_s24 + $0xfc] sm:$0xff] }
  0x55   : > { %3948 = vmatprep.mubr.f32.mxu1 %v247_v45  ;;  %v174_v45 = vld [vmem:[%s5355_s24 + $0x18] sm:$0xff]  ;;  %v183_v32 = vld [vmem:[%s5355_s24 + $0x60] sm:$0xff] }
  0x56   : > { %4349 = vmatmul.mubr.f32.gmra.mrb[4].mxu0 %v5614_v44 }
  0x57   : > { %4351 = vmatprep.mubr.f32.mxu0 %v5618_v46  ;;  %4857 = vmatpush3.bf16.msra.mxu0 %v4854_v39  ;;  %v5727_v39 = vld [vmem:[%s5355_s24 + $0xb4] sm:$0xff] }
  0x58   : > { %4859 = vmatprep.subr.bf16.mxu0 %v4858_v47  ;;  %3949 = vmatmul.mubr.f32.gmra.mrb[24].mxu1 %v248_v51  ;;  %v4726_v51 = vpack.c.bf16 %v3302_v42, %v3301_v41  ;;  %v3312_v41 = vld [vmem:[%s6429_s1 + $0x178] sm:$0xff]  ;;  %v184_v42 = vld [vmem:[%s5355_s24 + $0x68] sm:$0xff] }
  0x59   : > { %3951 = vmatprep.mubr.f32.mxu1 %v249_v53  ;;  %v3303_v53 = vld [vmem:[%s6429_s1 + $0x130] sm:$0xff] }
  0x5a   : > { %4352 = vmatmul.mubr.f32.gmra.mrb[6].mxu0 %v5630_v52 }
  0x5b   : > { %4354 = vmatprep.mubr.f32.mxu0 %v5634_v54  ;;  %4861 = vmatpush3.bf16.msra.mxu0 %v4858_v47  ;;  %v5740_v47 = vld [vmem:[%s5355_s24 + $0xbc] sm:$0xff] }
  0x5c   : > { %4863 = vmatprep.subr.bf16.mxu0 %v4862_v55  ;;  %3952 = vmatmul.mubr.f32.gmra.mrb[26].mxu1 %v250_v58  ;;  %v5760_v58 = vld [vmem:[%s5355_s24 + $0xd4] sm:$0xff] }
  0x5d   : > { %3954 = vmatprep.mubr.f32.mxu1 %v251_v60 }
  0x5e   : > { %4355 = vmatmul.mubr.f32.gmra.mrb[8].mxu0 %v5646_v59 }
  0x5f   : > { %4357 = vmatprep.mubr.f32.mxu0 %v5650_v61  ;;  %4865 = vmatpush3.bf16.msra.mxu0 %v4862_v55  ;;  %v176_v55 = vld [vmem:[%s5355_s24 + $0x28] sm:$0xff] }
  0x60   : > { %4867 = vmatprep.subr.bf16.mxu0 %v4866_v62  ;;  %3955 = vmatmul.mubr.f32.gmra.mrb[28].mxu1 %v252_v1  ;;  %v5772_v1 = vld [vmem:[%s5355_s24 + $0xdc] sm:$0xff] }
  0x61   : > { %3957 = vmatprep.mubr.f32.mxu1 %v253_v3  ;;  %v179_v3 = vld [vmem:[%s5355_s24 + $0x40] sm:$0xff] }
  0x62   : > { %4358 = vmatmul.mubr.f32.gmra.mrb[10].mxu0 %v5662_v2 }
  0x63   : > { %4360 = vmatprep.mubr.f32.mxu0 %v5666_v4  ;;  %4869 = vmatpush3.bf16.msra.mxu0 %v4866_v62  ;;  %v3305_v62 = vld [vmem:[%s6429_s1 + $0x140] sm:$0xff] }
  0x64   : > { %4871 = vmatprep.subr.bf16.mxu0 %v4870_v5  ;;  %3958 = vmatmul.mubr.f32.gmra.mrb[30].mxu1 %v254_v9  ;;  %v4734_v6 = vpack.c.bf16 %v3306_v63, %v3305_v62  ;;  %v3308_v9 = vld [vmem:[%s6429_s1 + $0x158] sm:$0xff]  ;;  %v187_v62 = vld [vmem:[%s5355_s24 + $0x80] sm:$0xff] }
  0x65   : > { %3960 = vmatprep.mubr.f32.mxu1 %v255_v11  ;;  %v180_v11 = vld [vmem:[%s5355_s24 + $0x48] sm:$0xff] }
  0x66   : > { %4361 = vmatmul.mubr.f32.gmra.mrb[12].mxu0 %v5678_v10  ;;  %v5840_v63 = vld [vmem:[%s5355_s24 + $0x124] sm:$0xff] }
  0x67   : > { %4363 = vmatprep.mubr.f32.mxu0 %v5682_v13  ;;  %4873 = vmatpush3.bf16.msra.mxu0 %v4870_v5  ;;  %v5776_v5 = vld [vmem:[%s5355_s24 + $0xe4] sm:$0xff] }
  0x68   : > { %4875 = vmatprep.subr.bf16.mxu0 %v4874_v14  ;;  %3961 = vmatmul.mubr.f32.gmra.mrb[32].mxu1 %v256_v19  ;;  %v4738_v19 = vpack.c.bf16 %v3308_v9, %v3307_v8  ;;  %v189_v8 = vld [vmem:[%s5355_s24 + $0x90] sm:$0xff] }
  0x69   : > { %3963 = vmatprep.mubr.f32.mxu1 %v257_v21  ;;  %v3309_v21 = vld [vmem:[%s6429_s1 + $0x160] sm:$0xff]  ;;  %v3379_v9 = vld [vmem:[%s6429_s1 + $0x390] sm:$0xff] }
  0x6a   : > { %4364 = vmatmul.mubr.f32.gmra.mrb[14].mxu0 %v5694_v20 }
  0x6b   : > { %4366 = vmatprep.mubr.f32.mxu0 %v5698_v22  ;;  %4877 = vmatpush3.bf16.msra.mxu0 %v4874_v14  ;;  %v5788_v14 = vld [vmem:[%s5355_s24 + $0xec] sm:$0xff] }
  0x6c   : > { %4879 = vmatprep.subr.bf16.mxu0 %v5700_v24  ;;  %3964 = vmatmul.mubr.f32.gmra.mrb[34].mxu1 %v258_v25  ;;  %v3310_v25 = vld [vmem:[%s6429_s1 + $0x168] sm:$0xff] }
  0x6d   : > { %3998 = vmatprep.mubr.f32.mxu1 %v171_v27  ;;  %v182_v27 = vld [vmem:[%s5355_s24 + $0x58] sm:$0xff] }
  0x6e   : > { %4367 = vmatmul.mubr.f32.gmra.mrb[16].mxu0 %v5706_v26 }
  0x6f   : > { %4369 = vmatprep.mubr.f32.mxu0 %v5710_v28 }
  0x70   : > { %3999 = vmatmul.mubr.f32.vlgmr.msra.gmra.mrb[0].mxu1 %v172_v33  ;;  %v5808_v33 = vld [vmem:[%s5355_s24 + $0x104] sm:$0xff] }
  0x71   : > { %4721 = vmatpush3.bf16.msra.mxu1 %v5570_v18  ;;  %4001 = vmatprep.mubr.f32.mxu1 %v173_v36  ;;  %v3304_v18 = vld [vmem:[%s6429_s1 + $0x138] sm:$0xff]  ;;  %v4742_v36 = vpack.c.bf16 %v3310_v25, %v3309_v21  ;;  %v3381_v25 = vld [vmem:[%s6429_s1 + $0x3a0] sm:$0xff] }
  0x72   : > { %4370 = vmatmul.mubr.f32.gmra.mrb[18].mxu0 %v5723_v34  ;;  %4723 = vmatprep.subr.bf16.mxu1 %v4722_v40  ;;  %v4730_v60 = vpack.c.bf16 %v3304_v18, %v3303_v53  ;;  %v3313_v18 = vld [vmem:[%s6429_s1 + $0x180] sm:$0xff] }
  0x73   : > { %4372 = vmatprep.mubr.f32.mxu0 %v5727_v39 }
  0x74   : > { %4002 = vmatmul.mubr.f32.gmra.mrb[2].mxu1 %v174_v45  ;;  %v5820_v45 = vld [vmem:[%s5355_s24 + $0x10c] sm:$0xff] }
  0x75   : > { %4004 = vmatprep.mubr.f32.mxu1 %v175_v48  ;;  %4725 = vmatpush3.bf16.msra.mxu1 %v4722_v40  ;;  %v3311_v40 = vld [vmem:[%s6429_s1 + $0x170] sm:$0xff] }
  0x76   : > { %4373 = vmatmul.mubr.f32.gmra.mrb[20].mxu0 %v5740_v47  ;;  %4727 = vmatprep.subr.bf16.mxu1 %v4726_v51  ;;  %v185_v48 = vld [vmem:[%s5355_s24 + $0x70] sm:$0xff]  ;;  %v4746_v53 = vpack.c.bf16 %v3312_v41, %v3311_v40 }
  0x77   : > { %4375 = vmatprep.mubr.f32.mxu0 %v5744_v50  ;;  %v3383_v40 = vld [vmem:[%s6429_s1 + $0x3b0] sm:$0xff] }
  0x78   : > { %4005 = vmatmul.mubr.f32.gmra.mrb[4].mxu1 %v176_v55  ;;  %v3314_v55 = vld [vmem:[%s6429_s1 + $0x188] sm:$0xff] }
  0x79   : > { %4007 = vmatprep.mubr.f32.mxu1 %v177_v57  ;;  %4729 = vmatpush3.bf16.msra.mxu1 %v4726_v51  ;;  %v5824_v51 = vld [vmem:[%s5355_s24 + $0x114] sm:$0xff] }
  0x7a   : > { %4376 = vmatmul.mubr.f32.gmra.mrb[22].mxu0 %v5756_v56  ;;  %4731 = vmatprep.subr.bf16.mxu1 %v4730_v60  ;;  %v186_v57 = vld [vmem:[%s5355_s24 + $0x78] sm:$0xff] }
  0x7b   : > { %4378 = vmatprep.mubr.f32.mxu0 %v5760_v58 }
  0x7c   : > { %4008 = vmatmul.mubr.f32.gmra.mrb[6].mxu1 %v178_v0  ;;  %v5842_v0 = vpack.c.bf16 %v3314_v55, %v3313_v18  ;;  %v3387_v18 = vld [vmem:[%s6429_s1 + $0x3d0] sm:$0xff]  ;;  %v3388_v55 = vld [vmem:[%s6429_s1 + $0x3d8] sm:$0xff] }
  0x7d   : > { %4010 = vmatprep.mubr.f32.mxu1 %v179_v3  ;;  %4733 = vmatpush3.bf16.msra.mxu1 %v4730_v60  ;;  %v5836_v60 = vld [vmem:[%s5355_s24 + $0x11c] sm:$0xff]  ;;  %v188_v3 = vld [vmem:[%s5355_s24 + $0x88] sm:$0xff] }
  0x7e   : > { %4379 = vmatmul.mubr.f32.gmra.mrb[24].mxu0 %v5772_v1  ;;  %4735 = vmatprep.subr.bf16.mxu1 %v4734_v6 }
  0x7f   : > { %4381 = vmatprep.mubr.f32.mxu0 %v5776_v5 }
  0x80   : > { %4011 = vmatmul.mubr.f32.gmra.mrb[8].mxu1 %v180_v11  ;;  %v3380_v11 = vld [vmem:[%s6429_s1 + $0x398] sm:$0xff] }
  0x81   : > { %4013 = vmatprep.mubr.f32.mxu1 %v181_v15  ;;  %4737 = vmatpush3.bf16.msra.mxu1 %v4734_v6  ;;  %v5848_v6 = vld [vmem:[%s5355_s24 + $0x12c] sm:$0xff]  ;;  %v190_v15 = vld [vmem:[%s5355_s24 + $0x98] sm:$0xff]  ;;  %v4882_v21 = vpack.c.bf16 %v3380_v11, %v3379_v9 }
  0x82   : > { %4382 = vmatmul.mubr.f32.gmra.mrb[26].mxu0 %v5788_v14  ;;  %4739 = vmatprep.subr.bf16.mxu1 %v4738_v19  ;;  %v3391_v9 = vld [vmem:[%s6429_s1 + $0x3f0] sm:$0xff]  ;;  %v3392_v11 = vld [vmem:[%s6429_s1 + $0x3f8] sm:$0xff] }
  0x83   : > { %4384 = vmatprep.mubr.f32.mxu0 %v5792_v16 }
  0x84   : > { %4014 = vmatmul.mubr.f32.gmra.mrb[10].mxu1 %v182_v27  ;;  %v3382_v27 = vld [vmem:[%s6429_s1 + $0x3a8] sm:$0xff] }
  0x85   : > { %4016 = vmatprep.mubr.f32.mxu1 %v183_v32  ;;  %4741 = vmatpush3.bf16.msra.mxu1 %v4738_v19  ;;  %v191_v19 = vld [vmem:[%s5355_s24 + $0xa0] sm:$0xff]  ;;  %v192_v32 = vld [vmem:[%s5355_s24 + $0xa8] sm:$0xff] }
  0x86   : > { %4385 = vmatmul.mubr.f32.gmra.mrb[28].mxu0 %v5804_v30  ;;  %4743 = vmatprep.subr.bf16.mxu1 %v4742_v36 }
  0x87   : > { %4387 = vmatprep.mubr.f32.mxu0 %v5808_v33 }
  0x88   : > { %4017 = vmatmul.mubr.f32.gmra.mrb[12].mxu1 %v184_v42  ;;  %v3385_v42 = vld [vmem:[%s6429_s1 + $0x3c0] sm:$0xff] }
  0x89   : > { %4019 = vmatprep.mubr.f32.mxu1 %v185_v48  ;;  %4745 = vmatpush3.bf16.msra.mxu1 %v4742_v36  ;;  %v4886_v36 = vpack.c.bf16 %v3382_v27, %v3381_v25  ;;  %v3386_v48 = vld [vmem:[%s6429_s1 + $0x3c8] sm:$0xff]  ;;  %v206_v27 = vld [vmem:[%s5355_s24 + $0x118] sm:$0xff] }
  0x8a   : > { %4388 = vmatmul.mubr.f32.gmra.mrb[30].mxu0 %v5820_v45  ;;  %4747 = vmatprep.subr.bf16.mxu1 %v4746_v53 }
  0x8b   : > { %4390 = vmatprep.mubr.f32.mxu0 %v5824_v51 }
  0x8c   : > { %4020 = vmatmul.mubr.f32.gmra.mrb[14].mxu1 %v186_v57  ;;  %v4898_v57 = vpack.c.bf16 %v3388_v55, %v3387_v18  ;;  %v3325_v18 = vld [vmem:[%s6429_s1 + $0x1e0] sm:$0xff] }
  0x8d   : > { %4022 = vmatprep.mubr.f32.mxu1 %v187_v62  ;;  %4749 = vmatpush3.bf16.msra.mxu1 %v4746_v53  ;;  %v4894_v53 = vpack.c.bf16 %v3386_v48, %v3385_v42  ;;  %v3389_v62 = vld [vmem:[%s6429_s1 + $0x3e0] sm:$0xff] }
  0x8e   : > { %4391 = vmatmul.mubr.f32.gmra.mrb[32].mxu0 %v5836_v60  ;;  %4751 = vmatprep.subr.bf16.mxu1 %v5842_v0  ;;  %v5998_v42 = vld [vmem:[%s5355_s24 + $0x42] sm:$0xff] }
  0x8f   : > { %4393 = vmatprep.mubr.f32.mxu0 %v5840_v63  ;;  %v6030_v55 = vld [vmem:[%s5355_s24 + $0x62] sm:$0xff] }
  0x90   : > { %4023 = vmatmul.mubr.f32.gmra.mrb[16].mxu1 %v188_v3  ;;  %v3390_v3 = vld [vmem:[%s6429_s1 + $0x3e8] sm:$0xff] }
  0x91   : > { %4025 = vmatprep.mubr.f32.mxu1 %v189_v8  ;;  %v4902_v8 = vpack.c.bf16 %v3390_v3, %v3389_v62  ;;  %v2136_v3 = vld [vmem:[%s5355_s24 + $0x134] sm:$0xff] }
  0x92   : > { %4394 = vmatmul.mubr.f32.gmra.mrb[34].mxu0 %v5848_v6 }
  0x93   : > { %4428 = vmatprep.mubr.f32.mxu0 %v5587_v29  ;;  %v193_v29 = vld [vmem:[%s5355_s24 + $0xb0] sm:$0xff] }
  0x94   : > { %4026 = vmatmul.mubr.f32.gmra.mrb[18].mxu1 %v190_v15  ;;  %v4906_v15 = vpack.c.bf16 %v3392_v11, %v3391_v9  ;;  %v6080_v9 = vld [vmem:[%s5355_s24 + $0x9a] sm:$0xff]  ;;  %v2437_v11 = vld [vmem:[%s5355_s24 + $0x2d] sm:$0xff] }
  0x95   : > { %4028 = vmatprep.mubr.f32.mxu1 %v191_v19  ;;  %v3393_v19 = vld [vmem:[%s6429_s1 + $0x400] sm:$0xff] }
  0x96   : > { %4429 = vmatmul.mubr.f32.vlgmr.msra.gmra.mrb[0].mxu0 %v5598_v35  ;;  %v3384_v35 = vld [vmem:[%s6429_s1 + $0x3b8] sm:$0xff] }
  0x97   : > { %4881 = vmatpush3.bf16.msra.mxu0 %v5700_v24  ;;  %4431 = vmatprep.mubr.f32.mxu0 %v5602_v38  ;;  %v194_v24 = vld [vmem:[%s5355_s24 + $0xb8] sm:$0xff]  ;;  %v195_v38 = vld [vmem:[%s5355_s24 + $0xc0] sm:$0xff]  ;;  %v4890_v41 = vpack.c.bf16 %v3384_v35, %v3383_v40  ;;  %v3318_v40 = vld [vmem:[%s6429_s1 + $0x1a8] sm:$0xff] }
  0x98   : > { %4883 = vmatprep.subr.bf16.mxu0 %v4882_v21  ;;  %4029 = vmatmul.mubr.f32.gmra.mrb[20].mxu1 %v192_v32  ;;  %v766_v32 = vld [vmem:[%s5355_s24 + $0x2] sm:$0xff] }
  0x99   : > { %4031 = vmatprep.mubr.f32.mxu1 %v193_v29 }
  0x9a   : > { %4432 = vmatmul.mubr.f32.gmra.mrb[2].mxu0 %v5614_v44  ;;  %v196_v44 = vld [vmem:[%s5355_s24 + $0xc8] sm:$0xff] }
  0x9b   : > { %4434 = vmatprep.mubr.f32.mxu0 %v5618_v46  ;;  %4885 = vmatpush3.bf16.msra.mxu0 %v4882_v21  ;;  %v197_v46 = vld [vmem:[%s5355_s24 + $0xd0] sm:$0xff]  ;;  %v3394_v21 = vld [vmem:[%s6429_s1 + $0x408] sm:$0xff] }
  0x9c   : > { %4887 = vmatprep.subr.bf16.mxu0 %v4886_v36  ;;  %4032 = vmatmul.mubr.f32.gmra.mrb[22].mxu1 %v194_v24  ;;  %v5933_v25 = vpack.c.bf16 %v3394_v21, %v3393_v19  ;;  %v5982_v24 = vld [vmem:[%s5355_s24 + $0x32] sm:$0xff]  ;;  %v3397_v19 = vld [vmem:[%s6429_s1 + $0x420] sm:$0xff]  ;;  %v3398_v21 = vld [vmem:[%s6429_s1 + $0x428] sm:$0xff] }
  0x9d   : > { %4034 = vmatprep.mubr.f32.mxu1 %v195_v38 }
  0x9e   : > { %4435 = vmatmul.mubr.f32.gmra.mrb[4].mxu0 %v5630_v52  ;;  %v198_v52 = vld [vmem:[%s5355_s24 + $0xd8] sm:$0xff] }
  0x9f   : > { %4437 = vmatprep.mubr.f32.mxu0 %v5634_v54  ;;  %4889 = vmatpush3.bf16.msra.mxu0 %v4886_v36  ;;  %v199_v54 = vld [vmem:[%s5355_s24 + $0xe0] sm:$0xff] }
  0xa0   : > { %4891 = vmatprep.subr.bf16.mxu0 %v4890_v41  ;;  %4035 = vmatmul.mubr.f32.gmra.mrb[24].mxu1 %v196_v44  ;;  %v3317_v36 = vld [vmem:[%s6429_s1 + $0x1a0] sm:$0xff]  ;;  %v3323_v44 = vld [vmem:[%s6429_s1 + $0x1d0] sm:$0xff] }
  0xa1   : > { %4037 = vmatprep.mubr.f32.mxu1 %v197_v46  ;;  %v4758_v35 = vpack.c.bf16 %v3318_v40, %v3317_v36  ;;  %v6014_v46 = vld [vmem:[%s5355_s24 + $0x52] sm:$0xff]  ;;  %v6117_v36 = vld [vmem:[%s5355_s24 + $0xc2] sm:$0xff] }
  0xa2   : > { %4438 = vmatmul.mubr.f32.gmra.mrb[6].mxu0 %v5646_v59  ;;  %v200_v59 = vld [vmem:[%s5355_s24 + $0xe8] sm:$0xff]  ;;  %v2442_v40 = vld [vmem:[%s5355_s24 + $0x55] sm:$0xff] }
  0xa3   : > { %4440 = vmatprep.mubr.f32.mxu0 %v5650_v61  ;;  %4893 = vmatpush3.bf16.msra.mxu0 %v4890_v41  ;;  %v201_v61 = vld [vmem:[%s5355_s24 + $0xf0] sm:$0xff]  ;;  %v3321_v41 = vld [vmem:[%s6429_s1 + $0x1c0] sm:$0xff] }
  0xa4   : > { %4895 = vmatprep.subr.bf16.mxu0 %v4894_v53  ;;  %4038 = vmatmul.mubr.f32.gmra.mrb[26].mxu1 %v198_v52 }
  0xa5   : > { %4040 = vmatprep.mubr.f32.mxu1 %v199_v54  ;;  %v3327_v54 = vld [vmem:[%s6429_s1 + $0x1f0] sm:$0xff] }
  0xa6   : > { %4441 = vmatmul.mubr.f32.gmra.mrb[8].mxu0 %v5662_v2  ;;  %v202_v2 = vld [vmem:[%s5355_s24 + $0xf8] sm:$0xff] }
  0xa7   : > { %4443 = vmatprep.mubr.f32.mxu0 %v5666_v4  ;;  %4897 = vmatpush3.bf16.msra.mxu0 %v4894_v53  ;;  %v203_v4 = vld [vmem:[%s5355_s24 + $0x100] sm:$0xff] }
  0xa8   : > { %4899 = vmatprep.subr.bf16.mxu0 %v4898_v57  ;;  %4041 = vmatmul.mubr.f32.gmra.mrb[28].mxu1 %v200_v59  ;;  %v2137_v59 = vld [vmem:[%s5355_s24 + $0x13c] sm:$0xff] }
  0xa9   : > { %4043 = vmatprep.mubr.f32.mxu1 %v201_v61  ;;  %v2436_v61 = vld [vmem:[%s5355_s24 + $0x25] sm:$0xff] }
  0xaa   : > { %4444 = vmatmul.mubr.f32.gmra.mrb[10].mxu0 %v5678_v10  ;;  %v204_v10 = vld [vmem:[%s5355_s24 + $0x108] sm:$0xff] }
  0xab   : > { %4446 = vmatprep.mubr.f32.mxu0 %v5682_v13  ;;  %4901 = vmatpush3.bf16.msra.mxu0 %v4898_v57  ;;  %v205_v13 = vld [vmem:[%s5355_s24 + $0x110] sm:$0xff] }
  0xac   : > { %4903 = vmatprep.subr.bf16.mxu0 %v4902_v8  ;;  %4044 = vmatmul.mubr.f32.gmra.mrb[30].mxu1 %v202_v2  ;;  %v6046_v57 = vld [vmem:[%s5355_s24 + $0x72] sm:$0xff]  ;;  %v6084_v2 = vld [vmem:[%s5355_s24 + $0xa2] sm:$0xff] }
  0xad   : > { %4046 = vmatprep.mubr.f32.mxu1 %v203_v4  ;;  %v2438_v4 = vld [vmem:[%s5355_s24 + $0x35] sm:$0xff] }
  0xae   : > { %4447 = vmatmul.mubr.f32.gmra.mrb[12].mxu0 %v5694_v20  ;;  %v3315_v20 = vld [vmem:[%s6429_s1 + $0x190] sm:$0xff] }
  0xaf   : > { %4449 = vmatprep.mubr.f32.mxu0 %v5698_v22  ;;  %4905 = vmatpush3.bf16.msra.mxu0 %v4902_v8  ;;  %v3316_v22 = vld [vmem:[%s6429_s1 + $0x198] sm:$0xff] }
  0xb0   : > { %4907 = vmatprep.subr.bf16.mxu0 %v4906_v15  ;;  %4047 = vmatmul.mubr.f32.gmra.mrb[32].mxu1 %v204_v10  ;;  %v4754_v29 = vpack.c.bf16 %v3316_v22, %v3315_v20  ;;  %v3396_v8 = vld [vmem:[%s6429_s1 + $0x418] sm:$0xff]  ;;  %v6096_v10 = vld [vmem:[%s5355_s24 + $0xaa] sm:$0xff]  ;;  %v4918_v20 = vpack.c.bf16 %v3398_v21, %v3397_v19 }
  0xb1   : > { %4049 = vmatprep.mubr.f32.mxu1 %v205_v13  ;;  %v2439_v13 = vld [vmem:[%s5355_s24 + $0x3d] sm:$0xff]  ;;  %v3399_v22 = vld [vmem:[%s6429_s1 + $0x430] sm:$0xff] }
  0xb2   : > { %4450 = vmatmul.mubr.f32.gmra.mrb[14].mxu0 %v5706_v26  ;;  %v767_v26 = vld [vmem:[%s5355_s24 + $0xa] sm:$0xff]  ;;  %v6177_v19 = vld [vmem:[%s5355_s24 + $0xfa] sm:$0xff] }
  0xb3   : > { %4452 = vmatprep.mubr.f32.mxu0 %v5710_v28  ;;  %4909 = vmatpush3.bf16.msra.mxu0 %v4906_v15  ;;  %v5950_v28 = vld [vmem:[%s5355_s24 + $0x12] sm:$0xff] }
  0xb4   : > { %4911 = vmatprep.subr.bf16.mxu0 %v5933_v25  ;;  %4050 = vmatmul.mubr.f32.gmra.mrb[34].mxu1 %v206_v27  ;;  %v6101_v27 = vld [vmem:[%s5355_s24 + $0xb2] sm:$0xff] }
  0xb5   : > { %4084 = vmatprep.mubr.f32.mxu1 %v766_v32  ;;  %v2440_v32 = vld [vmem:[%s5355_s24 + $0x45] sm:$0xff]  ;;  %v2449_v21 = vld [vmem:[%s5355_s24 + $0x8d] sm:$0xff] }
  0xb6   : > { %4453 = vmatmul.mubr.f32.gmra.mrb[16].mxu0 %v5723_v34  ;;  %v5961_v34 = vld [vmem:[%s5355_s24 + $0x1a] sm:$0xff] }
  0xb7   : > { %4455 = vmatprep.mubr.f32.mxu0 %v5727_v39  ;;  %v5966_v39 = vld [vmem:[%s5355_s24 + $0x22] sm:$0xff] }
  0xb8   : > { %4085 = vmatmul.mubr.f32.vlgmr.msra.gmra.mrb[0].mxu1 %v767_v26  ;;  %v3400_v26 = vld [vmem:[%s6429_s1 + $0x438] sm:$0xff] }
  0xb9   : > { %4753 = vmatpush3.bf16.msra.mxu1 %v5842_v0  ;;  %4087 = vmatprep.mubr.f32.mxu1 %v5950_v28  ;;  %v3320_v0 = vld [vmem:[%s6429_s1 + $0x1b8] sm:$0xff] }
  0xba   : > { %4456 = vmatmul.mubr.f32.gmra.mrb[18].mxu0 %v5740_v47  ;;  %4755 = vmatprep.subr.bf16.mxu1 %v4754_v29  ;;  %v3319_v47 = vld [vmem:[%s6429_s1 + $0x1b0] sm:$0xff] }
  0xbb   : > { %4458 = vmatprep.mubr.f32.mxu0 %v5744_v50  ;;  %v5978_v50 = vld [vmem:[%s5355_s24 + $0x2a] sm:$0xff]  ;;  %v4762_v38 = vpack.c.bf16 %v3320_v0, %v3319_v47  ;;  %v3401_v47 = vld [vmem:[%s6429_s1 + $0x440] sm:$0xff] }
  0xbc   : > { %4088 = vmatmul.mubr.f32.gmra.mrb[2].mxu1 %v5961_v34  ;;  %v3402_v0 = vld [vmem:[%s6429_s1 + $0x448] sm:$0xff] }
  0xbd   : > { %4090 = vmatprep.mubr.f32.mxu1 %v5966_v39  ;;  %4757 = vmatpush3.bf16.msra.mxu1 %v4754_v29  ;;  %v2441_v29 = vld [vmem:[%s5355_s24 + $0x4d] sm:$0xff] }
  0xbe   : > { %4459 = vmatmul.mubr.f32.gmra.mrb[20].mxu0 %v5756_v56  ;;  %4759 = vmatprep.subr.bf16.mxu1 %v4758_v35  ;;  %v3322_v56 = vld [vmem:[%s6429_s1 + $0x1c8] sm:$0xff] }
  0xbf   : > { %4461 = vmatprep.mubr.f32.mxu0 %v5760_v58  ;;  %v5994_v58 = vld [vmem:[%s5355_s24 + $0x3a] sm:$0xff]  ;;  %v4766_v48 = vpack.c.bf16 %v3322_v56, %v3321_v41  ;;  %v6133_v56 = vld [vmem:[%s5355_s24 + $0xd2] sm:$0xff] }
  0xc0   : > { %4091 = vmatmul.mubr.f32.gmra.mrb[4].mxu1 %v5978_v50  ;;  %v2443_v41 = vld [vmem:[%s5355_s24 + $0x5d] sm:$0xff] }
  0xc1   : > { %4093 = vmatprep.mubr.f32.mxu1 %v5982_v24  ;;  %4761 = vmatpush3.bf16.msra.mxu1 %v4758_v35  ;;  %v4922_v35 = vpack.c.bf16 %v3400_v26, %v3399_v22  ;;  %v6187_v22 = vld [vmem:[%s5355_s24 + $0x10a] sm:$0xff]  ;;  %v2451_v26 = vld [vmem:[%s5355_s24 + $0x9d] sm:$0xff] }
  0xc2   : > { %4462 = vmatmul.mubr.f32.gmra.mrb[22].mxu0 %v5772_v1  ;;  %4763 = vmatprep.subr.bf16.mxu1 %v4762_v38  ;;  %v3324_v1 = vld [vmem:[%s6429_s1 + $0x1d8] sm:$0xff] }
  0xc3   : > { %4464 = vmatprep.mubr.f32.mxu0 %v5776_v5  ;;  %v6010_v5 = vld [vmem:[%s5355_s24 + $0x4a] sm:$0xff]  ;;  %v4770_v53 = vpack.c.bf16 %v3324_v1, %v3323_v44  ;;  %v4926_v44 = vpack.c.bf16 %v3402_v0, %v3401_v47  ;;  %v2454_v0 = vld [vmem:[%s5355_s24 + $0xb5] sm:$0xff] }
  0xc4   : > { %4094 = vmatmul.mubr.f32.gmra.mrb[6].mxu1 %v5994_v58  ;;  %v3403_v1 = vld [vmem:[%s6429_s1 + $0x450] sm:$0xff] }
  0xc5   : > { %4096 = vmatprep.mubr.f32.mxu1 %v5998_v42  ;;  %4765 = vmatpush3.bf16.msra.mxu1 %v4762_v38  ;;  %v6129_v38 = vld [vmem:[%s5355_s24 + $0xca] sm:$0xff] }
  0xc6   : > { %4465 = vmatmul.mubr.f32.gmra.mrb[24].mxu0 %v5788_v14  ;;  %4767 = vmatprep.subr.bf16.mxu1 %v4766_v48  ;;  %v3326_v14 = vld [vmem:[%s6429_s1 + $0x1e8] sm:$0xff] }
  0xc7   : > { %4467 = vmatprep.mubr.f32.mxu0 %v5792_v16  ;;  %v6026_v16 = vld [vmem:[%s5355_s24 + $0x5a] sm:$0xff]  ;;  %v4774_v52 = vpack.c.bf16 %v3326_v14, %v3325_v18  ;;  %v2445_v14 = vld [vmem:[%s5355_s24 + $0x6d] sm:$0xff] }
  0xc8   : > { %4097 = vmatmul.mubr.f32.gmra.mrb[8].mxu1 %v6010_v5  ;;  %v6145_v18 = vld [vmem:[%s5355_s24 + $0xda] sm:$0xff]  ;;  %v2453_v47 = vld [vmem:[%s5355_s24 + $0xad] sm:$0xff] }
  0xc9   : > { %4099 = vmatprep.mubr.f32.mxu1 %v6014_v46  ;;  %4769 = vmatpush3.bf16.msra.mxu1 %v4766_v48  ;;  %v2444_v48 = vld [vmem:[%s5355_s24 + $0x65] sm:$0xff] }
  0xca   : > { %4468 = vmatmul.mubr.f32.gmra.mrb[26].mxu0 %v5804_v30  ;;  %4771 = vmatprep.subr.bf16.mxu1 %v4770_v53  ;;  %v3328_v30 = vld [vmem:[%s6429_s1 + $0x1f8] sm:$0xff] }
  0xcb   : > { %4470 = vmatprep.mubr.f32.mxu0 %v5808_v33  ;;  %v6042_v33 = vld [vmem:[%s5355_s24 + $0x6a] sm:$0xff]  ;;  %v4778_v62 = vpack.c.bf16 %v3328_v30, %v3327_v54  ;;  %v2446_v54 = vld [vmem:[%s5355_s24 + $0x75] sm:$0xff] }
  0xcc   : > { %4100 = vmatmul.mubr.f32.gmra.mrb[10].mxu1 %v6026_v16 }
  0xcd   : > { %4102 = vmatprep.mubr.f32.mxu1 %v6030_v55  ;;  %4773 = vmatpush3.bf16.msra.mxu1 %v4770_v53  ;;  %v3404_v53 = vld [vmem:[%s6429_s1 + $0x458] sm:$0xff] }
  0xce   : > { %4471 = vmatmul.mubr.f32.gmra.mrb[28].mxu0 %v5820_v45  ;;  %4775 = vmatprep.subr.bf16.mxu1 %v4774_v52  ;;  %v6052_v45 = vld [vmem:[%s5355_s24 + $0x7a] sm:$0xff]  ;;  %v4930_v30 = vpack.c.bf16 %v3404_v53, %v3403_v1  ;;  %v1452_v53 = vld [vmem:[%s5355_s24 + $0xa3] sm:$0xff] }
  0xcf   : > { %4473 = vmatprep.mubr.f32.mxu0 %v5824_v51  ;;  %v6056_v51 = vld [vmem:[%s5355_s24 + $0x82] sm:$0xff]  ;;  %v2458_v1 = vld [vmem:[%s5355_s24 + $0xd5] sm:$0xff] }
  0xd0   : > { %4103 = vmatmul.mubr.f32.gmra.mrb[12].mxu1 %v6042_v33 }
  0xd1   : > { %4105 = vmatprep.mubr.f32.mxu1 %v6046_v57  ;;  %4777 = vmatpush3.bf16.msra.mxu1 %v4774_v52  ;;  %v6149_v52 = vld [vmem:[%s5355_s24 + $0xe2] sm:$0xff] }
  0xd2   : > { %4474 = vmatmul.mubr.f32.gmra.mrb[30].mxu0 %v5836_v60  ;;  %4779 = vmatprep.subr.bf16.mxu1 %v4778_v62  ;;  %v6063_v60 = vld [vmem:[%s5355_s24 + $0x8a] sm:$0xff] }
  0xd3   : > { %4476 = vmatprep.mubr.f32.mxu0 %v5840_v63  ;;  %v6067_v63 = vld [vmem:[%s5355_s24 + $0x92] sm:$0xff] }
  0xd4   : > { %4106 = vmatmul.mubr.f32.gmra.mrb[14].mxu1 %v6052_v45 }
  0xd5   : > { %4108 = vmatprep.mubr.f32.mxu1 %v6056_v51  ;;  %4781 = vmatpush3.bf16.msra.mxu1 %v4778_v62  ;;  %v3405_v62 = vld [vmem:[%s6429_s1 + $0x460] sm:$0xff] }
  0xd6   : > { %4477 = vmatmul.mubr.f32.gmra.mrb[32].mxu0 %v5848_v6  ;;  %4942 = vmatprep.subr.bf16.mxu1 %v5310_v7  ;;  %v3395_v6 = vld [vmem:[%s6429_s1 + $0x410] sm:$0xff] }
  0xd7   : > { %4479 = vmatprep.mubr.f32.mxu0 %v2136_v3  ;;  %v4914_v15 = vpack.c.bf16 %v3396_v8, %v3395_v6  ;;  %v3406_v3 = vld [vmem:[%s6429_s1 + $0x468] sm:$0xff]  ;;  %v6165_v6 = vld [vmem:[%s5355_s24 + $0xf2] sm:$0xff] }
  0xd8   : > { %4109 = vmatmul.mubr.f32.gmra.mrb[16].mxu1 %v6063_v60  ;;  %v2448_v8 = vld [vmem:[%s5355_s24 + $0x85] sm:$0xff] }
  0xd9   : > { %4111 = vmatprep.mubr.f32.mxu1 %v6067_v63 }
  0xda   : > { %4480 = vmatmul.mubr.f32.gmra.mrb[34].mxu0 %v2137_v59  ;;  %v6161_v59 = vld [vmem:[%s5355_s24 + $0xea] sm:$0xff] }
  0xdb   : > { %4514 = vmatprep.mubr.f32.mxu0 %v2436_v61  ;;  %v2447_v61 = vld [vmem:[%s5355_s24 + $0x7d] sm:$0xff] }
  0xdc   : > { %4112 = vmatmul.mubr.f32.gmra.mrb[18].mxu1 %v6080_v9 }
  0xdd   : > { %4114 = vmatprep.mubr.f32.mxu1 %v6084_v2 }
  0xde   : > { %4515 = vmatmul.mubr.f32.vlgmr.msra.gmra.mrb[0].mxu0 %v2437_v11  ;;  %v4934_v11 = vpack.c.bf16 %v3406_v3, %v3405_v62  ;;  %v1455_v62 = vld [vmem:[%s5355_s24 + $0xbb] sm:$0xff]  ;;  %v2791_v3 = vld [vmem:[%s5355_s24 + $0xce] sm:$0xff] }
  0xdf   : > { %4913 = vmatpush3.bf16.msra.mxu0 %v5933_v25  ;;  %4517 = vmatprep.mubr.f32.mxu0 %v2438_v4  ;;  %v6113_v25 = vld [vmem:[%s5355_s24 + $0xba] sm:$0xff]  ;;  %v3407_v4 = vld [vmem:[%s6429_s1 + $0x470] sm:$0xff] }
  0xe0   : > { %4915 = vmatprep.subr.bf16.mxu0 %v4914_v15  ;;  %4115 = vmatmul.mubr.f32.gmra.mrb[20].mxu1 %v6096_v10 }
  0xe1   : > { %4117 = vmatprep.mubr.f32.mxu1 %v6101_v27 }
  0xe2   : > { %4518 = vmatmul.mubr.f32.gmra.mrb[2].mxu0 %v2439_v13  ;;  %v6181_v13 = vld [vmem:[%s5355_s24 + $0x102] sm:$0xff] }
  0xe3   : > { %4520 = vmatprep.mubr.f32.mxu0 %v2440_v32  ;;  %4917 = vmatpush3.bf16.msra.mxu0 %v4914_v15  ;;  %v3408_v15 = vld [vmem:[%s6429_s1 + $0x478] sm:$0xff] }
  0xe4   : > { %4919 = vmatprep.subr.bf16.mxu0 %v4918_v20  ;;  %4118 = vmatmul.mubr.f32.gmra.mrb[22].mxu1 %v6113_v25  ;;  %v2450_v32 = vld [vmem:[%s5355_s24 + $0x95] sm:$0xff] }
  0xe5   : > { %4120 = vmatprep.mubr.f32.mxu1 %v6117_v36 }
  0xe6   : > { %4521 = vmatmul.mubr.f32.gmra.mrb[4].mxu0 %v2441_v29  ;;  %v6191_v29 = vld [vmem:[%s5355_s24 + $0x112] sm:$0xff] }
  0xe7   : > { %4523 = vmatprep.mubr.f32.mxu0 %v2442_v40  ;;  %4921 = vmatpush3.bf16.msra.mxu0 %v4918_v20  ;;  %v4938_v20 = vpack.c.bf16 %v3408_v15, %v3407_v4  ;;  %v2452_v40 = vld [vmem:[%s5355_s24 + $0xa5] sm:$0xff]  ;;  %v1459_v15 = vld [vmem:[%s5355_s24 + $0xdb] sm:$0xff] }
  0xe8   : > { %4923 = vmatprep.subr.bf16.mxu0 %v4922_v35  ;;  %4121 = vmatmul.mubr.f32.gmra.mrb[24].mxu1 %v6129_v38  ;;  %v2794_v4 = vld [vmem:[%s5355_s24 + $0xe6] sm:$0xff] }
  0xe9   : > { %4123 = vmatprep.mubr.f32.mxu1 %v6133_v56 }
  0xea   : > { %4524 = vmatmul.mubr.f32.gmra.mrb[6].mxu0 %v2443_v41  ;;  %v2455_v41 = vld [vmem:[%s5355_s24 + $0xbd] sm:$0xff] }
  0xeb   : > { %4526 = vmatprep.mubr.f32.mxu0 %v2444_v48  ;;  %4925 = vmatpush3.bf16.msra.mxu0 %v4922_v35  ;;  %v6197_v35 = vld [vmem:[%s5355_s24 + $0x11a] sm:$0xff]  ;;  %v2456_v48 = vld [vmem:[%s5355_s24 + $0xc5] sm:$0xff] }
  0xec   : > { %4927 = vmatprep.subr.bf16.mxu0 %v4926_v44  ;;  %4124 = vmatmul.mubr.f32.gmra.mrb[26].mxu1 %v6145_v18 }
  0xed   : > { %4126 = vmatprep.mubr.f32.mxu1 %v6149_v52 }
  0xee   : > { %4527 = vmatmul.mubr.f32.gmra.mrb[8].mxu0 %v2445_v14  ;;  %v1453_v14 = vld [vmem:[%s5355_s24 + $0xab] sm:$0xff] }
  0xef   : > { %4529 = vmatprep.mubr.f32.mxu0 %v2446_v54  ;;  %4929 = vmatpush3.bf16.msra.mxu0 %v4926_v44  ;;  %v2457_v44 = vld [vmem:[%s5355_s24 + $0xcd] sm:$0xff] }
  0xf0   : > { %4931 = vmatprep.subr.bf16.mxu0 %v4930_v30  ;;  %4127 = vmatmul.mubr.f32.gmra.mrb[28].mxu1 %v6161_v59  ;;  %v1454_v54 = vld [vmem:[%s5355_s24 + $0xb3] sm:$0xff] }
  0xf1   : > { %4129 = vmatprep.mubr.f32.mxu1 %v6165_v6 }
  0xf2   : > { %4530 = vmatmul.mubr.f32.gmra.mrb[10].mxu0 %v2447_v61  ;;  %v2792_v61 = vld [vmem:[%s5355_s24 + $0xd6] sm:$0xff] }
  0xf3   : > { %4532 = vmatprep.mubr.f32.mxu0 %v2448_v8  ;;  %4933 = vmatpush3.bf16.msra.mxu0 %v4930_v30  ;;  %v2790_v30 = vld [vmem:[%s5355_s24 + $0xc6] sm:$0xff]  ;;  %v2793_v8 = vld [vmem:[%s5355_s24 + $0xde] sm:$0xff] }
  0xf4   : > { %4935 = vmatprep.subr.bf16.mxu0 %v4934_v11  ;;  %4130 = vmatmul.mubr.f32.gmra.mrb[30].mxu1 %v6177_v19 }
  0xf5   : > { %4132 = vmatprep.mubr.f32.mxu1 %v6181_v13 }
  0xf6   : > { %4533 = vmatmul.mubr.f32.gmra.mrb[12].mxu0 %v2449_v21  ;;  %v1460_v21 = vld [vmem:[%s5355_s24 + $0xe3] sm:$0xff] }
  0xf7   : > { %4535 = vmatprep.mubr.f32.mxu0 %v2450_v32  ;;  %4937 = vmatpush3.bf16.msra.mxu0 %v4934_v11  ;;  %v1458_v11 = vld [vmem:[%s5355_s24 + $0xd3] sm:$0xff]  ;;  %v1461_v32 = vld [vmem:[%s5355_s24 + $0xeb] sm:$0xff] }
  0xf8   : > { %4939 = vmatprep.subr.bf16.mxu0 %v4938_v20  ;;  %4133 = vmatmul.mubr.f32.gmra.mrb[32].mxu1 %v6187_v22 }
  0xf9   : > { %4135 = vmatprep.mubr.f32.mxu1 %v6191_v29 }
  0xfa   : > { %4536 = vmatmul.mubr.f32.gmra.mrb[14].mxu0 %v2451_v26  ;;  %v2798_v26 = vld [vmem:[%s5355_s24 + $0x106] sm:$0xff] }
  0xfb   : > { %4538 = vmatprep.mubr.f32.mxu0 %v2452_v40  ;;  %4941 = vmatpush3.bf16.msra.mxu0 %v4938_v20  ;;  %v2797_v20 = vld [vmem:[%s5355_s24 + $0xfe] sm:$0xff]  ;;  %v2799_v40 = vld [vmem:[%s5355_s24 + $0x10e] sm:$0xff] }
  0xfc   : > { %4136 = vmatmul.mubr.f32.gmra.mrb[34].mxu1 %v6197_v35 }
  0xfd   : > { %4170 = vmatprep.mubr.f32.mxu1 %v5950_v28  ;;  %v2459_v28 = vld [vmem:[%s5355_s24 + $0xdd] sm:$0xff] }
  0xfe   : > { %4539 = vmatmul.mubr.f32.gmra.mrb[16].mxu0 %v2453_v47  ;;  %v2800_v47 = vld [vmem:[%s5355_s24 + $0x116] sm:$0xff] }
  0xff   : > { %4541 = vmatprep.mubr.f32.mxu0 %v2454_v0  ;;  %v1465_v0 = vld [vmem:[%s5355_s24 + $0x10b] sm:$0xff] }
 0x100   : > { %4171 = vmatmul.mubr.f32.vlgmr.msra.gmra.mrb[0].mxu1 %v5961_v34  ;;  %v2461_v34 = vld [vmem:[%s5355_s24 + $0xed] sm:$0xff] }
 0x101   : > { %4950 = vmatpush3.bf16.msra.mxu1 %v5310_v7  ;;  %4173 = vmatprep.mubr.f32.mxu1 %v5966_v39  ;;  %v2460_v7 = vld [vmem:[%s5355_s24 + $0xe5] sm:$0xff]  ;;  %v2462_v39 = vld [vmem:[%s5355_s24 + $0xf5] sm:$0xff] }
 0x102   : > { %4542 = vmatmul.mubr.f32.gmra.mrb[18].mxu0 %v2455_v41  ;;  %4943 = vmatprep.subr.bf16.mxu1 %v5323_v12  ;;  %v2801_v41 = vld [vmem:[%s5355_s24 + $0x11e] sm:$0xff] }
 0x103   : > { %4544 = vmatprep.mubr.f32.mxu0 %v2456_v48  ;;  %v1466_v48 = vld [vmem:[%s5355_s24 + $0x113] sm:$0xff] }
 0x104   : > { %4174 = vmatmul.mubr.f32.gmra.mrb[2].mxu1 %v5978_v50  ;;  %v2464_v50 = vld [vmem:[%s5355_s24 + $0x105] sm:$0xff] }
 0x105   : > { %4176 = vmatprep.mubr.f32.mxu1 %v5982_v24  ;;  %4951 = vmatpush3.bf16.msra.mxu1 %v5323_v12  ;;  %v2463_v12 = vld [vmem:[%s5355_s24 + $0xfd] sm:$0xff]  ;;  %v2466_v24 = vld [vmem:[%s5355_s24 + $0x115] sm:$0xff] }
 0x106   : > { %4545 = vmatmul.mubr.f32.gmra.mrb[20].mxu0 %v2457_v44  ;;  %4944 = vmatprep.subr.bf16.mxu1 %v5338_v17  ;;  %v2802_v44 = vld [vmem:[%s5355_s24 + $0x126] sm:$0xff] }
 0x107   : > { %4547 = vmatprep.mubr.f32.mxu0 %v2458_v1  ;;  %v1467_v1 = vld [vmem:[%s5355_s24 + $0x11b] sm:$0xff] }
 0x108   : > { %4177 = vmatmul.mubr.f32.gmra.mrb[4].mxu1 %v5994_v58  ;;  %v2468_v58 = vld [vmem:[%s5355_s24 + $0x125] sm:$0xff] }
 0x109   : > { %4179 = vmatprep.mubr.f32.mxu1 %v5998_v42  ;;  %4952 = vmatpush3.bf16.msra.mxu1 %v5338_v17  ;;  %v2465_v17 = vld [vmem:[%s5355_s24 + $0x10d] sm:$0xff]  ;;  %v2470_v42 = vld [vmem:[%s5355_s24 + $0x135] sm:$0xff] }
 0x10a   : > { %4548 = vmatmul.mubr.f32.gmra.mrb[22].mxu0 %v2459_v28  ;;  %4945 = vmatprep.subr.bf16.mxu1 %v5359_v23  ;;  %v2803_v28 = vld [vmem:[%s5355_s24 + $0x12e] sm:$0xff] }
 0x10b   : > { %4550 = vmatprep.mubr.f32.mxu0 %v2460_v7  ;;  %v1468_v7 = vld [vmem:[%s5355_s24 + $0x123] sm:$0xff] }
 0x10c   : > { %4180 = vmatmul.mubr.f32.gmra.mrb[6].mxu1 %v6010_v5  ;;  %v2770_v5 = vld [vmem:[%s5355_s24 + $0x26] sm:$0xff] }
 0x10d   : > { %4182 = vmatprep.mubr.f32.mxu1 %v6014_v46  ;;  %4953 = vmatpush3.bf16.msra.mxu1 %v5359_v23  ;;  %v2467_v23 = vld [vmem:[%s5355_s24 + $0x11d] sm:$0xff] }
 0x10e   : > { %4551 = vmatmul.mubr.f32.gmra.mrb[24].mxu0 %v2461_v34  ;;  %4946 = vmatprep.subr.bf16.mxu1 %v5377_v31  ;;  %v2772_v46 = vld [vmem:[%s5355_s24 + $0x36] sm:$0xff] }
 0x10f   : > { %4553 = vmatprep.mubr.f32.mxu0 %v2462_v39  ;;  %v2804_v34 = vld [vmem:[%s5355_s24 + $0x136] sm:$0xff]  ;;  %v1469_v39 = vld [vmem:[%s5355_s24 + $0x12b] sm:$0xff] }
 0x110   : > { %4183 = vmatmul.mubr.f32.gmra.mrb[8].mxu1 %v6026_v16  ;;  %v2774_v16 = vld [vmem:[%s5355_s24 + $0x46] sm:$0xff] }
 0x111   : > { %4185 = vmatprep.mubr.f32.mxu1 %v6030_v55  ;;  %4954 = vmatpush3.bf16.msra.mxu1 %v5377_v31  ;;  %v2469_v31 = vld [vmem:[%s5355_s24 + $0x12d] sm:$0xff] }
 0x112   : > { %4554 = vmatmul.mubr.f32.gmra.mrb[26].mxu0 %v2463_v12  ;;  %4947 = vmatprep.subr.bf16.mxu1 %v5393_v37  ;;  %v2775_v55 = vld [vmem:[%s5355_s24 + $0x4e] sm:$0xff]  ;;  %v2805_v12 = vld [vmem:[%s5355_s24 + $0x13e] sm:$0xff] }
 0x113   : > { %4556 = vmatprep.mubr.f32.mxu0 %v2464_v50 }
 0x114   : > { %4186 = vmatmul.mubr.f32.gmra.mrb[10].mxu1 %v6042_v33  ;;  %v2776_v33 = vld [vmem:[%s5355_s24 + $0x56] sm:$0xff] }
 0x115   : > { %4188 = vmatprep.mubr.f32.mxu1 %v6046_v57  ;;  %4955 = vmatpush3.bf16.msra.mxu1 %v5393_v37  ;;  %v2471_v37 = vld [vmem:[%s5355_s24 + $0x13d] sm:$0xff] }
 0x116   : > { %4557 = vmatmul.mubr.f32.gmra.mrb[28].mxu0 %v2465_v17  ;;  %4948 = vmatprep.subr.bf16.mxu1 %v5409_v43  ;;  %v2777_v57 = vld [vmem:[%s5355_s24 + $0x5e] sm:$0xff] }
 0x117   : > { %4559 = vmatprep.mubr.f32.mxu0 %v2466_v24 }
 0x118   : > { %4189 = vmatmul.mubr.f32.gmra.mrb[12].mxu1 %v6052_v45  ;;  %v2778_v45 = vld [vmem:[%s5355_s24 + $0x66] sm:$0xff] }
 0x119   : > { %4191 = vmatprep.mubr.f32.mxu1 %v6056_v51  ;;  %4956 = vmatpush3.bf16.msra.mxu1 %v5409_v43  ;;  %v2771_v43 = vld [vmem:[%s5355_s24 + $0x2e] sm:$0xff] }
 0x11a   : > { %4560 = vmatmul.mubr.f32.gmra.mrb[30].mxu0 %v2467_v23  ;;  %4949 = vmatprep.subr.bf16.mxu1 %v5425_v49  ;;  %v2779_v51 = vld [vmem:[%s5355_s24 + $0x6e] sm:$0xff] }
 0x11b   : > { %4562 = vmatprep.mubr.f32.mxu0 %v2468_v58 }
 0x11c   : > { %4192 = vmatmul.mubr.f32.gmra.mrb[14].mxu1 %v6063_v60  ;;  %v2780_v60 = vld [vmem:[%s5355_s24 + $0x76] sm:$0xff] }
 0x11d   : > { %4194 = vmatprep.mubr.f32.mxu1 %v6067_v63  ;;  %4957 = vmatpush3.bf16.msra.mxu1 %v5425_v49  ;;  %v2773_v49 = vld [vmem:[%s5355_s24 + $0x3e] sm:$0xff] }
 0x11e   : > { %4563 = vmatmul.mubr.f32.gmra.mrb[32].mxu0 %v2469_v31  ;;  %v2781_v63 = vld [vmem:[%s5355_s24 + $0x7e] sm:$0xff] }
 0x11f   : > { %4565 = vmatprep.mubr.f32.mxu0 %v2470_v42 }
 0x120   : > { %4195 = vmatmul.mubr.f32.gmra.mrb[16].mxu1 %v6080_v9  ;;  %v2782_v9 = vld [vmem:[%s5355_s24 + $0x86] sm:$0xff] }
 0x121   : > { %4197 = vmatprep.mubr.f32.mxu1 %v6084_v2  ;;  %v2783_v2 = vld [vmem:[%s5355_s24 + $0x8e] sm:$0xff] }
 0x122   : > { %4566 = vmatmul.mubr.f32.gmra.mrb[34].mxu0 %v2471_v37 }
 0x123   : > { %4600 = vmatprep.mubr.f32.mxu0 %v2770_v5 }
 0x124   : > { %4198 = vmatmul.mubr.f32.gmra.mrb[18].mxu1 %v6096_v10  ;;  %v2784_v10 = vld [vmem:[%s5355_s24 + $0x96] sm:$0xff] }
 0x125   : > { %4200 = vmatprep.mubr.f32.mxu1 %v6101_v27  ;;  %v2785_v27 = vld [vmem:[%s5355_s24 + $0x9e] sm:$0xff] }
 0x126   : > { %4601 = vmatmul.mubr.f32.vlgmr.msra.gmra.mrb[0].mxu0 %v2771_v43 }
 0x127   : > { %4603 = vmatprep.mubr.f32.mxu0 %v2772_v46 }
 0x128   : > { %4201 = vmatmul.mubr.f32.gmra.mrb[20].mxu1 %v6113_v25  ;;  %v1134_v25 = vld [vmem:[%s5355_s24 + $0x122] sm:$0xff] }
 0x129   : > { %4203 = vmatprep.mubr.f32.mxu1 %v6117_v36  ;;  %v2786_v36 = vld [vmem:[%s5355_s24 + $0xa6] sm:$0xff] }
 0x12a   : > { %4604 = vmatmul.mubr.f32.gmra.mrb[2].mxu0 %v2773_v49 }
 0x12b   : > { %4606 = vmatprep.mubr.f32.mxu0 %v2774_v16 }
 0x12c   : > { %4204 = vmatmul.mubr.f32.gmra.mrb[22].mxu1 %v6129_v38  ;;  %v1135_v38 = vld [vmem:[%s5355_s24 + $0x12a] sm:$0xff] }
 0x12d   : > { %4206 = vmatprep.mubr.f32.mxu1 %v6133_v56  ;;  %v2787_v56 = vld [vmem:[%s5355_s24 + $0xae] sm:$0xff] }
 0x12e   : > { %4607 = vmatmul.mubr.f32.gmra.mrb[4].mxu0 %v2775_v55 }
 0x12f   : > { %4609 = vmatprep.mubr.f32.mxu0 %v2776_v33 }
 0x130   : > { %4207 = vmatmul.mubr.f32.gmra.mrb[24].mxu1 %v6145_v18  ;;  %v2788_v18 = vld [vmem:[%s5355_s24 + $0xb6] sm:$0xff] }
 0x131   : > { %4209 = vmatprep.mubr.f32.mxu1 %v6149_v52  ;;  %v2789_v52 = vld [vmem:[%s5355_s24 + $0xbe] sm:$0xff] }
 0x132   : > { %4610 = vmatmul.mubr.f32.gmra.mrb[6].mxu0 %v2777_v57 }
 0x133   : > { %4612 = vmatprep.mubr.f32.mxu0 %v2778_v45 }
 0x134   : > { %4210 = vmatmul.mubr.f32.gmra.mrb[26].mxu1 %v6161_v59  ;;  %v1456_v59 = vld [vmem:[%s5355_s24 + $0xc3] sm:$0xff] }
 0x135   : > { %4212 = vmatprep.mubr.f32.mxu1 %v6165_v6  ;;  %v1457_v6 = vld [vmem:[%s5355_s24 + $0xcb] sm:$0xff] }
 0x136   : > { %4613 = vmatmul.mubr.f32.gmra.mrb[8].mxu0 %v2779_v51 }
 0x137   : > { %4615 = vmatprep.mubr.f32.mxu0 %v2780_v60 }
 0x138   : > { %4213 = vmatmul.mubr.f32.gmra.mrb[28].mxu1 %v6177_v19  ;;  %v2795_v19 = vld [vmem:[%s5355_s24 + $0xee] sm:$0xff] }
 0x139   : > { %4215 = vmatprep.mubr.f32.mxu1 %v6181_v13  ;;  %v2796_v13 = vld [vmem:[%s5355_s24 + $0xf6] sm:$0xff] }
 0x13a   : > { %4616 = vmatmul.mubr.f32.gmra.mrb[10].mxu0 %v2781_v63  ;;  %v6340_v63 = vld [vmem:[%s6430_s2] ss:$0 sm:$0xff] }
 0x13b   : > { %4618 = vmatprep.mubr.f32.mxu0 %v2782_v9 }
 0x13c   : > { %4216 = vmatmul.mubr.f32.gmra.mrb[30].mxu1 %v6187_v22  ;;  %v1462_v22 = vld [vmem:[%s5355_s24 + $0xf3] sm:$0xff] }
 0x13d   : > { %4218 = vmatprep.mubr.f32.mxu1 %v6191_v29  ;;  %v1463_v29 = vld [vmem:[%s5355_s24 + $0xfb] sm:$0xff] }
 0x13e   : > { %4619 = vmatmul.mubr.f32.gmra.mrb[12].mxu0 %v2783_v2 }
 0x13f   : > { %4621 = vmatprep.mubr.f32.mxu0 %v2784_v10 }
 0x140   : > { %4219 = vmatmul.mubr.f32.gmra.mrb[32].mxu1 %v6197_v35  ;;  %v1464_v35 = vld [vmem:[%s5355_s24 + $0x103] sm:$0xff]  ;;  %s5247_s24 = smul.u32 288, %s6433_s13 }
 0x141   : > { %4221 = vmatprep.mubr.f32.mxu1 %v1134_v25 }
 0x142   : > { %4622 = vmatmul.mubr.f32.gmra.mrb[14].mxu0 %v2785_v27  ;;  %s6346_s20 = scalar_lea.vmem %s6431_s3, %s5247_s24 }
 0x143   : > { %4624 = vmatprep.mubr.f32.mxu0 %v2786_v36 }
 0x144   : > { %4222 = vmatmul.mubr.f32.gmra.mrb[34].mxu1 %v1135_v38 }
 0x145   : > { %4283 = vmatprep.mubr.f32.mxu1 %v1452_v53 }
 0x146   : > { %4625 = vmatmul.mubr.f32.gmra.mrb[16].mxu0 %v2787_v56 }
 0x147   : > { %4627 = vmatprep.mubr.f32.mxu0 %v2788_v18 }
 0x148   : > { %4284 = vmatmul.mubr.f32.vlgmr.msra.gmra.mrb[18].mxu1 %v1453_v14 }
 0x149   : > { %4286 = vmatprep.mubr.f32.mxu1 %v1454_v54 }
 0x14a   : > { %4628 = vmatmul.mubr.f32.gmra.mrb[18].mxu0 %v2789_v52 }
 0x14b   : > { %4630 = vmatprep.mubr.f32.mxu0 %v2790_v30 }
 0x14c   : > { %4287 = vmatmul.mubr.f32.gmra.mrb[20].mxu1 %v1455_v62 }
 0x14d   : > { %4289 = vmatprep.mubr.f32.mxu1 %v1456_v59 }
 0x14e   : > { %4631 = vmatmul.mubr.f32.gmra.mrb[20].mxu0 %v2791_v3 }
 0x14f   : > { %4633 = vmatprep.mubr.f32.mxu0 %v2792_v61 }
 0x150   : > { %4290 = vmatmul.mubr.f32.gmra.mrb[22].mxu1 %v1457_v6 }
 0x151   : > { %4292 = vmatprep.mubr.f32.mxu1 %v1458_v11 }
 0x152   : > { %4634 = vmatmul.mubr.f32.gmra.mrb[22].mxu0 %v2793_v8 }
 0x153   : > { %4636 = vmatprep.mubr.f32.mxu0 %v2794_v4 }
 0x154   : > { %4293 = vmatmul.mubr.f32.gmra.mrb[24].mxu1 %v1459_v15 }
 0x155   : > { %4295 = vmatprep.mubr.f32.mxu1 %v1460_v21 }
 0x156   : > { %4637 = vmatmul.mubr.f32.gmra.mrb[24].mxu0 %v2795_v19 }
 0x157   : > { %4639 = vmatprep.mubr.f32.mxu0 %v2796_v13 }
 0x158   : > { %4296 = vmatmul.mubr.f32.gmra.mrb[26].mxu1 %v1461_v32 }
 0x159   : > { %4298 = vmatprep.mubr.f32.mxu1 %v1462_v22 }
 0x15a   : > { %4640 = vmatmul.mubr.f32.gmra.mrb[26].mxu0 %v2797_v20 }
 0x15b   : > { %4642 = vmatprep.mubr.f32.mxu0 %v2798_v26 }
 0x15c   : > { %4299 = vmatmul.mubr.f32.gmra.mrb[28].mxu1 %v1463_v29 }
 0x15d   : > { %4301 = vmatprep.mubr.f32.mxu1 %v1464_v35 }
 0x15e   : > { %4643 = vmatmul.mubr.f32.gmra.mrb[28].mxu0 %v2799_v40 }
 0x15f   : > { %4645 = vmatprep.mubr.f32.mxu0 %v2800_v47 }
 0x160   : > { %4302 = vmatmul.mubr.f32.gmra.mrb[30].mxu1 %v1465_v0 }
 0x161   : > { %4304 = vmatprep.mubr.f32.mxu1 %v1466_v48 }
 0x162   : > { %4646 = vmatmul.mubr.f32.gmra.mrb[30].mxu0 %v2801_v41 }
 0x163   : > { %4648 = vmatprep.mubr.f32.mxu0 %v2802_v44 }
 0x164   : > { %4305 = vmatmul.mubr.f32.gmra.mrb[32].mxu1 %v1467_v1 }
 0x165   : > { %4307 = vmatprep.mubr.f32.mxu1 %v1468_v7 }
 0x166   : > { %4649 = vmatmul.mubr.f32.gmra.mrb[32].mxu0 %v2803_v28 }
 0x167   : > { %4651 = vmatprep.mubr.f32.mxu0 %v2804_v34 }
 0x168   : > { %4308 = vmatmul.mubr.f32.gmra.mrb[34].mxu1 %v1469_v39 }
 0x16a   : > { %4652 = vmatmul.mubr.f32.gmra.mrb[34].mxu0 %v2805_v12 }
 0x1d3   : > { %v4172_v50 = vpop.f32.mrb[0].mxu1 }
 0x1d4   : > { %v1219_v17 = vpop.f32.mrb[1].mxu1 }
 0x1d7   : > { %v4175_v24 = vpop.f32.mrb[2].mxu1 }
 0x1d8   : > { %v1229_v23 = vpop.f32.mrb[3].mxu1 }
 0x1db   : > { %v4178_v58 = vpop.f32.mrb[4].mxu1 }
 0x1dc   : > { %v1239_v31 = vpop.f32.mrb[5].mxu1 }
 0x1df   : > { %v4181_v42 = vpop.f32.mrb[6].mxu1 }
 0x1e0   : > { %v1249_v37 = vpop.f32.mrb[7].mxu1 }
 0x1e3   : > { %v4184_v5 = vpop.f32.mrb[8].mxu1 }
 0x1e4   : > { %v1259_v43 = vpop.f32.mrb[9].mxu1 }
 0x1e7   : > { %v4187_v46 = vpop.f32.mrb[10].mxu1 }
 0x1e8   : > { %v1269_v49 = vpop.f32.mrb[11].mxu1 }
 0x1eb   : > { %v6324_v16 = vpop.f32.mrb[12].mxu1 }
 0x1ec   : > { %v6326_v55 = vpop.f32.mrb[13].mxu1 }
 0x1ef   : > { %v6328_v33 = vpop.f32.mrb[14].mxu1 }
 0x1f0   : > { %v6330_v57 = vpop.f32.mrb[15].mxu1 }
 0x1f3   : > { %v6332_v45 = vpop.f32.mrb[16].mxu1 }
 0x1f4   : > { %v6334_v51 = vpop.f32.mrb[17].mxu1 }
 0x1f9   : > { %v4602_v60 = vpop.f32.mrb[0].mxu0 }
 0x1fa   : > { %v4958_v9 = vadd.f32 %v4602_v60, %v4172_v50  ;;  %v2889_v2 = vpop.f32.mrb[1].mxu0 }
 0x1fb   : > { %v4959_v10 = vadd.f32 %v2889_v2, %v1219_v17 }
 0x1fc   : > { %v3112_v27 = vadd.f32 %v4958_v9, %v6340_v63 }
 0x1fd   : > { %v3111_v25 = vadd.f32 %v4959_v10, %v6340_v63  ;;  %v4605_v36 = vpop.f32.mrb[2].mxu0 }
 0x1fe   : > { %v3148_v38 = vmax.f32 %v3112_v27, 0.0  ;;  %v4960_v56 = vadd.f32 %v4605_v36, %v4175_v24  ;;  %v2899_v53 = vpop.f32.mrb[3].mxu0 }
 0x1ff   : > { %v3147_v18 = vmax.f32 %v3111_v25, 0.0  ;;  %v4961_v14 = vadd.f32 %v2899_v53, %v1229_v23 }
 0x200   : > { %3184 = vst [vmem:[%s6346_s20 + $0x8] sm:$0xff] %v3148_v38  ;;  %v3114_v52 = vadd.f32 %v4960_v56, %v6340_v63 }
 0x201   : > { %3183 = vst [vmem:[%s6346_s20] sm:$0xff] %v3147_v18  ;;  %v3113_v54 = vadd.f32 %v4961_v14, %v6340_v63  ;;  %v4608_v30 = vpop.f32.mrb[4].mxu0 }
 0x202   : > { %v3150_v62 = vmax.f32 %v3114_v52, 0.0  ;;  %v4962_v3 = vadd.f32 %v4608_v30, %v4178_v58  ;;  %v2909_v59 = vpop.f32.mrb[5].mxu0 }
 0x203   : > { %v3149_v61 = vmax.f32 %v3113_v54, 0.0  ;;  %v4963_v6 = vadd.f32 %v2909_v59, %v1239_v31 }
 0x204   : > { %3186 = vst [vmem:[%s6346_s20 + $0x18] sm:$0xff] %v3150_v62  ;;  %v3116_v8 = vadd.f32 %v4962_v3, %v6340_v63 }
 0x205   : > { %3185 = vst [vmem:[%s6346_s20 + $0x10] sm:$0xff] %v3149_v61  ;;  %v3115_v11 = vadd.f32 %v4963_v6, %v6340_v63  ;;  %v4611_v4 = vpop.f32.mrb[6].mxu0 }
 0x206   : > { %v3152_v15 = vmax.f32 %v3116_v8, 0.0  ;;  %v4964_v19 = vadd.f32 %v4611_v4, %v4181_v42  ;;  %v2919_v21 = vpop.f32.mrb[7].mxu0 }
 0x207   : > { %v3151_v13 = vmax.f32 %v3115_v11, 0.0  ;;  %v4965_v32 = vadd.f32 %v2919_v21, %v1249_v37 }
 0x208   : > { %3188 = vst [vmem:[%s6346_s20 + $0x28] sm:$0xff] %v3152_v15  ;;  %v3118_v20 = vadd.f32 %v4964_v19, %v6340_v63 }
 0x209   : > { %3187 = vst [vmem:[%s6346_s20 + $0x20] sm:$0xff] %v3151_v13  ;;  %v3117_v22 = vadd.f32 %v4965_v32, %v6340_v63  ;;  %v4614_v26 = vpop.f32.mrb[8].mxu0 }
 0x20a   : > { %v3154_v29 = vmax.f32 %v3118_v20, 0.0  ;;  %v4966_v40 = vadd.f32 %v4614_v26, %v4184_v5  ;;  %v2929_v35 = vpop.f32.mrb[9].mxu0 }
 0x20b   : > { %v3153_v47 = vmax.f32 %v3117_v22, 0.0  ;;  %v4967_v0 = vadd.f32 %v2929_v35, %v1259_v43 }
 0x20c   : > { %3190 = vst [vmem:[%s6346_s20 + $0x38] sm:$0xff] %v3154_v29  ;;  %v3120_v41 = vadd.f32 %v4966_v40, %v6340_v63 }
 0x20d   : > { %3189 = vst [vmem:[%s6346_s20 + $0x30] sm:$0xff] %v3153_v47  ;;  %v3119_v48 = vadd.f32 %v4967_v0, %v6340_v63  ;;  %v4617_v44 = vpop.f32.mrb[10].mxu0 }
 0x20e   : > { %v3156_v1 = vmax.f32 %v3120_v41, 0.0  ;;  %v4968_v28 = vadd.f32 %v4617_v44, %v4187_v46  ;;  %v2939_v7 = vpop.f32.mrb[11].mxu0 }
 0x20f   : > { %v3155_v34 = vmax.f32 %v3119_v48, 0.0  ;;  %v4969_v39 = vadd.f32 %v2939_v7, %v1269_v49 }
 0x210   : > { %3192 = vst [vmem:[%s6346_s20 + $0x48] sm:$0xff] %v3156_v1  ;;  %v3122_v12 = vadd.f32 %v4968_v28, %v6340_v63 }
 0x211   : > { %3191 = vst [vmem:[%s6346_s20 + $0x40] sm:$0xff] %v3155_v34  ;;  %v3121_v50 = vadd.f32 %v4969_v39, %v6340_v63  ;;  %v4620_v17 = vpop.f32.mrb[12].mxu0 }
 0x212   : > { %v3158_v24 = vmax.f32 %v3122_v12, 0.0  ;;  %v4970_v23 = vadd.f32 %v4620_v17, %v6324_v16  ;;  %v2949_v58 = vpop.f32.mrb[13].mxu0 }
 0x213   : > { %v3157_v31 = vmax.f32 %v3121_v50, 0.0  ;;  %v4971_v42 = vadd.f32 %v2949_v58, %v6326_v55 }
 0x214   : > { %3194 = vst [vmem:[%s6346_s20 + $0x58] sm:$0xff] %v3158_v24  ;;  %v3124_v37 = vadd.f32 %v4970_v23, %v6340_v63 }
 0x215   : > { %3193 = vst [vmem:[%s6346_s20 + $0x50] sm:$0xff] %v3157_v31  ;;  %v3123_v5 = vadd.f32 %v4971_v42, %v6340_v63  ;;  %v4623_v43 = vpop.f32.mrb[14].mxu0 }
 0x216   : > { %v3160_v46 = vmax.f32 %v3124_v37, 0.0  ;;  %v4972_v49 = vadd.f32 %v4623_v43, %v6328_v33  ;;  %v2959_v60 = vpop.f32.mrb[15].mxu0 }
 0x217   : > { %v3159_v9 = vmax.f32 %v3123_v5, 0.0  ;;  %v4973_v16 = vadd.f32 %v2959_v60, %v6330_v57 }
 0x218   : > { %3196 = vst [vmem:[%s6346_s20 + $0x68] sm:$0xff] %v3160_v46  ;;  %v3126_v2 = vadd.f32 %v4972_v49, %v6340_v63 }
 0x219   : > { %3195 = vst [vmem:[%s6346_s20 + $0x60] sm:$0xff] %v3159_v9  ;;  %v3125_v55 = vadd.f32 %v4973_v16, %v6340_v63  ;;  %v4626_v10 = vpop.f32.mrb[16].mxu0 }
 0x21a   : > { %v3162_v27 = vmax.f32 %v3126_v2, 0.0  ;;  %v4974_v25 = vadd.f32 %v4626_v10, %v6332_v45  ;;  %v2969_v36 = vpop.f32.mrb[17].mxu0 }
 0x21b   : > { %v3161_v38 = vmax.f32 %v3125_v55, 0.0  ;;  %v4975_v33 = vadd.f32 %v2969_v36, %v6334_v51  ;;  %v4285_v57 = vpop.f32.mrb[18].mxu1 }
 0x21c   : > { %3198 = vst [vmem:[%s6346_s20 + $0x78] sm:$0xff] %v3162_v27  ;;  %v3128_v56 = vadd.f32 %v4974_v25, %v6340_v63  ;;  %v1643_v14 = vpop.f32.mrb[19].mxu1 }
 0x21d   : > { %3197 = vst [vmem:[%s6346_s20 + $0x70] sm:$0xff] %v3161_v38  ;;  %v3127_v53 = vadd.f32 %v4975_v33, %v6340_v63  ;;  %v4629_v18 = vpop.f32.mrb[18].mxu0 }
 0x21e   : > { %v3164_v52 = vmax.f32 %v3128_v56, 0.0  ;;  %v4976_v54 = vadd.f32 %v4629_v18, %v4285_v57  ;;  %v2979_v30 = vpop.f32.mrb[19].mxu0 }
 0x21f   : > { %v3163_v45 = vmax.f32 %v3127_v53, 0.0  ;;  %v4977_v62 = vadd.f32 %v2979_v30, %v1643_v14  ;;  %v4288_v3 = vpop.f32.mrb[20].mxu1 }
 0x220   : > { %3200 = vst [vmem:[%s6346_s20 + $0x88] sm:$0xff] %v3164_v52  ;;  %v3130_v51 = vadd.f32 %v4976_v54, %v6340_v63  ;;  %v1653_v6 = vpop.f32.mrb[21].mxu1 }
 0x221   : > { %3199 = vst [vmem:[%s6346_s20 + $0x80] sm:$0xff] %v3163_v45  ;;  %v3129_v59 = vadd.f32 %v4977_v62, %v6340_v63  ;;  %v4632_v61 = vpop.f32.mrb[20].mxu0 }
 0x222   : > { %v3166_v8 = vmax.f32 %v3130_v51, 0.0  ;;  %v4978_v11 = vadd.f32 %v4632_v61, %v4288_v3  ;;  %v2989_v4 = vpop.f32.mrb[21].mxu0 }
 0x223   : > { %v3165_v15 = vmax.f32 %v3129_v59, 0.0  ;;  %v4979_v19 = vadd.f32 %v2989_v4, %v1653_v6  ;;  %v4291_v13 = vpop.f32.mrb[22].mxu1 }
 0x224   : > { %3202 = vst [vmem:[%s6346_s20 + $0x98] sm:$0xff] %v3166_v8  ;;  %v3132_v21 = vadd.f32 %v4978_v11, %v6340_v63  ;;  %v1663_v22 = vpop.f32.mrb[23].mxu1 }
 0x225   : > { %3201 = vst [vmem:[%s6346_s20 + $0x90] sm:$0xff] %v3165_v15  ;;  %v3131_v32 = vadd.f32 %v4979_v19, %v6340_v63  ;;  %v4635_v20 = vpop.f32.mrb[22].mxu0 }
 0x226   : > { %v3168_v26 = vmax.f32 %v3132_v21, 0.0  ;;  %v4980_v29 = vadd.f32 %v4635_v20, %v4291_v13  ;;  %v2999_v40 = vpop.f32.mrb[23].mxu0 }
 0x227   : > { %v3167_v35 = vmax.f32 %v3131_v32, 0.0  ;;  %v4981_v47 = vadd.f32 %v2999_v40, %v1663_v22  ;;  %v4294_v41 = vpop.f32.mrb[24].mxu1 }
 0x228   : > { %3204 = vst [vmem:[%s6346_s20 + $0xa8] sm:$0xff] %v3168_v26  ;;  %v3134_v0 = vadd.f32 %v4980_v29, %v6340_v63  ;;  %v1673_v1 = vpop.f32.mrb[25].mxu1 }
 0x229   : > { %3203 = vst [vmem:[%s6346_s20 + $0xa0] sm:$0xff] %v3167_v35  ;;  %v3133_v48 = vadd.f32 %v4981_v47, %v6340_v63  ;;  %v4638_v44 = vpop.f32.mrb[24].mxu0 }
 0x22a   : > { %v3170_v28 = vmax.f32 %v3134_v0, 0.0  ;;  %v4982_v7 = vadd.f32 %v4638_v44, %v4294_v41  ;;  %v3009_v34 = vpop.f32.mrb[25].mxu0 }
 0x22b   : > { %v3169_v39 = vmax.f32 %v3133_v48, 0.0  ;;  %v4983_v12 = vadd.f32 %v3009_v34, %v1673_v1  ;;  %v4297_v17 = vpop.f32.mrb[26].mxu1 }
 0x22c   : > { %3206 = vst [vmem:[%s6346_s20 + $0xb8] sm:$0xff] %v3170_v28  ;;  %v3136_v50 = vadd.f32 %v4982_v7, %v6340_v63  ;;  %v1683_v58 = vpop.f32.mrb[27].mxu1 }
 0x22d   : > { %3205 = vst [vmem:[%s6346_s20 + $0xb0] sm:$0xff] %v3169_v39  ;;  %v3135_v24 = vadd.f32 %v4983_v12, %v6340_v63  ;;  %v4641_v23 = vpop.f32.mrb[26].mxu0 }
 0x22e   : > { %v3172_v31 = vmax.f32 %v3136_v50, 0.0  ;;  %v4984_v42 = vadd.f32 %v4641_v23, %v4297_v17  ;;  %v3019_v37 = vpop.f32.mrb[27].mxu0 }
 0x22f   : > { %v3171_v5 = vmax.f32 %v3135_v24, 0.0  ;;  %v4985_v43 = vadd.f32 %v3019_v37, %v1683_v58  ;;  %v4300_v49 = vpop.f32.mrb[28].mxu1 }
 0x230   : > { %3208 = vst [vmem:[%s6346_s20 + $0xc8] sm:$0xff] %v3172_v31  ;;  %v3138_v46 = vadd.f32 %v4984_v42, %v6340_v63  ;;  %v1693_v16 = vpop.f32.mrb[29].mxu1 }
 0x231   : > { %3207 = vst [vmem:[%s6346_s20 + $0xc0] sm:$0xff] %v3171_v5  ;;  %v3137_v60 = vadd.f32 %v4985_v43, %v6340_v63  ;;  %v4644_v9 = vpop.f32.mrb[28].mxu0 }
 0x232   : > { %v3174_v2 = vmax.f32 %v3138_v46, 0.0  ;;  %v4986_v55 = vadd.f32 %v4644_v9, %v4300_v49  ;;  %v3029_v10 = vpop.f32.mrb[29].mxu0 }
 0x233   : > { %v3173_v27 = vmax.f32 %v3137_v60, 0.0  ;;  %v4987_v25 = vadd.f32 %v3029_v10, %v1693_v16  ;;  %v4303_v38 = vpop.f32.mrb[30].mxu1 }
 0x234   : > { %3210 = vst [vmem:[%s6346_s20 + $0xd8] sm:$0xff] %v3174_v2  ;;  %v3140_v36 = vadd.f32 %v4986_v55, %v6340_v63  ;;  %v1703_v57 = vpop.f32.mrb[31].mxu1 }
 0x235   : > { %3209 = vst [vmem:[%s6346_s20 + $0xd0] sm:$0xff] %v3173_v27  ;;  %v3139_v33 = vadd.f32 %v4987_v25, %v6340_v63  ;;  %v4647_v56 = vpop.f32.mrb[30].mxu0 }
 0x236   : > { %v3176_v53 = vmax.f32 %v3140_v36, 0.0  ;;  %v4988_v18 = vadd.f32 %v4647_v56, %v4303_v38  ;;  %v3039_v14 = vpop.f32.mrb[31].mxu0 }
 0x237   : > { %v3175_v52 = vmax.f32 %v3139_v33, 0.0  ;;  %v4989_v54 = vadd.f32 %v3039_v14, %v1703_v57  ;;  %v4306_v45 = vpop.f32.mrb[32].mxu1 }
 0x238   : > { %3212 = vst [vmem:[%s6346_s20 + $0xe8] sm:$0xff] %v3176_v53  ;;  %v3142_v30 = vadd.f32 %v4988_v18, %v6340_v63  ;;  %v1713_v3 = vpop.f32.mrb[33].mxu1 }
 0x239   : > { %3211 = vst [vmem:[%s6346_s20 + $0xe0] sm:$0xff] %v3175_v52  ;;  %v3141_v62 = vadd.f32 %v4989_v54, %v6340_v63  ;;  %v4650_v51 = vpop.f32.mrb[32].mxu0 }
 0x23a   : > { %v3178_v59 = vmax.f32 %v3142_v30, 0.0  ;;  %v4990_v61 = vadd.f32 %v4650_v51, %v4306_v45  ;;  %v3049_v6 = vpop.f32.mrb[33].mxu0 }
 0x23b   : > { %v3177_v8 = vmax.f32 %v3141_v62, 0.0  ;;  %v4991_v11 = vadd.f32 %v3049_v6, %v1713_v3  ;;  %v4309_v15 = vpop.f32.mrb[34].mxu1 }
 0x23c   : > { %3214 = vst [vmem:[%s6346_s20 + $0xf8] sm:$0xff] %v3178_v59  ;;  %v3144_v4 = vadd.f32 %v4990_v61, %v6340_v63  ;;  %v1723_v13 = vpop.f32.mrb[35].mxu1 }
 0x23d   : > { %3213 = vst [vmem:[%s6346_s20 + $0xf0] sm:$0xff] %v3177_v8  ;;  %v3143_v19 = vadd.f32 %v4991_v11, %v6340_v63  ;;  %v4653_v21 = vpop.f32.mrb[34].mxu0 }
 0x23e   : > { %v3180_v32 = vmax.f32 %v3144_v4, 0.0  ;;  %v4992_v20 = vadd.f32 %v4653_v21, %v4309_v15  ;;  %v3059_v22 = vpop.f32.mrb[35].mxu0 }
 0x23f   : > { %v3179_v26 = vmax.f32 %v3143_v19, 0.0  ;;  %v4993_v29 = vadd.f32 %v3059_v22, %v1723_v13 }
 0x240   : > { %3216 = vst [vmem:[%s6346_s20 + $0x108] sm:$0xff] %v3180_v32  ;;  %v3146_v40 = vadd.f32 %v4992_v20, %v6340_v63 }
 0x241   : > { %3215 = vst [vmem:[%s6346_s20 + $0x100] sm:$0xff] %v3179_v26  ;;  %v3145_v35 = vadd.f32 %v4993_v29, %v6340_v63 }
 0x242   : > { %v3182_v47 = vmax.f32 %v3146_v40, 0.0 }
 0x243   : > { %v3181_v0 = vmax.f32 %v3145_v35, 0.0 }
 0x244   : > { %3218 = vst [vmem:[%s6346_s20 + $0x118] sm:$0xff] %v3182_v47 }
 0x245   : > { %3217 = vst [vmem:[%s6346_s20 + $0x110] sm:$0xff] %v3181_v0 }
 0x246 PF: > { %s13_s12 = sadd.s32 1, %s5262_s12  }
 0x247   : > { %p10_p4 = scmp.ge.s32.totalorder %s13_s12, 4  }
 0x249   :  { %12 = sbr.rel (!%p10_p4) target bundleno = 1 (0x1), region = 70 }

// kernel: hyper_analysis_forward.4
= control target key start
LH: loop header
LB: loop body
LE: loop exit
PB: predicated region body
PF: predicated region fallthrough
CT: control target
= control target key end

     0   :  { %s7518_s12 = smov 0   ;;  %s9006_s0 = inlined_call_operand.vmem [shape: f32[2,4,104,128], index: 0, kind: input, shape index: {}]   ;;  %s9007_s1 = inlined_call_operand.vmem [shape: f32[25,128,128], index: 1, kind: input, shape index: {}]   ;;  %s9008_s2 = inlined_call_operand.vmem [shape: f32[1,128], index: 2, kind: input, shape index: {}]   ;;  %s9009_s3 = inlined_call_operand.vmem [shape: f32[2,80,128], index: 3, kind: output, shape index: {}]  }
   0x1 LB: > { %s4045_s13 = sadd.s32 4294967295, %s7496_s12   ;;  %p4049_p0 = scmp.ge.s32.totalorder %s7496_s12, 1  ;;  %s7496_s12 = sphi %s7518_s12, %s13_s12  }
   0x2   : > { %p137_p1 = scmp.lt.s32.totalorder %s7496_s12, 3 }
   0x4   : > { %p138_p2 = pnand %p4049_p0, %p137_p1 }
   0x5   : > { %v4062_v0 = vld [vmem:[%s9007_s1 + $0x80] sm:$0xff] (!%p138_p2)  ;;  %v4063_v1 = vld [vmem:[%s9007_s1 + $0x88] sm:$0xff] (!%p138_p2)  ;;  %p161_p3 = scmp.lt.s32.totalorder (!%p138_p2), %s4045_s13, 1  ;;  %v4064_v5 = vld [vmem:[%s9007_s1 + $0x90] sm:$0xff] (!%p138_p2) }
   0x6   : > { %141 = sbr.rel (%p138_p2) target bundleno = 653 (0x28d), region = 32  ;;  %v4308_v2 = vld [vmem:[%s9007_s1 + $0x600] sm:$0xff] (!%p138_p2)  ;;  %v6424_v3 = vpack.c.bf16 (!%p138_p2), %v4063_v1, %v4062_v0  ;;  %v4309_v4 = vld [vmem:[%s9007_s1 + $0x608] sm:$0xff] (!%p138_p2)  ;;  %v4065_v6 = vld [vmem:[%s9007_s1 + $0x98] sm:$0xff] (!%p138_p2) }
   0x7   : > { %v6808_v7 = vpack.c.bf16 (!%p138_p2), %v4309_v4, %v4308_v2  ;;  %v6428_v8 = vpack.c.bf16 (!%p138_p2), %v4065_v6, %v4064_v5  ;;  %v4310_v9 = vld [vmem:[%s9007_s1 + $0x610] sm:$0xff] (!%p138_p2)  ;;  %v4311_v10 = vld [vmem:[%s9007_s1 + $0x618] sm:$0xff] (!%p138_p2)  ;;  %v4066_v11 = vld [vmem:[%s9007_s1 + $0xa0] sm:$0xff] (!%p138_p2) }
   0x8   : > { %6425 = vmatprep.subr.bf16.mxu1 (!%p138_p2), %v6424_v3  ;;  %v6812_v12 = vpack.c.bf16 (!%p138_p2), %v4311_v10, %v4310_v9  ;;  %v4067_v13 = vld [vmem:[%s9007_s1 + $0xa8] sm:$0xff] (!%p138_p2)  ;;  %v4312_v14 = vld [vmem:[%s9007_s1 + $0x620] sm:$0xff] (!%p138_p2)  ;;  %v4068_v18 = vld [vmem:[%s9007_s1 + $0xb0] sm:$0xff] (!%p138_p2) }
   0x9   : > { %v4313_v15 = vld [vmem:[%s9007_s1 + $0x628] sm:$0xff] (!%p138_p2)  ;;  %6809 = vmatprep.subr.bf16.mxu0 (!%p138_p2), %v6808_v7  ;;  %6427 = vmatpush3.bf16.msra.mxu1 (!%p138_p2), %v6424_v3  ;;  %v6432_v16 = vpack.c.bf16 (!%p138_p2), %v4067_v13, %v4066_v11  ;;  %v4069_v19 = vld [vmem:[%s9007_s1 + $0xb8] sm:$0xff] (!%p138_p2)  ;;  %v4314_v20 = vld [vmem:[%s9007_s1 + $0x630] sm:$0xff] (!%p138_p2) }
   0xa   : > { %6811 = vmatpush3.bf16.msra.mxu0 (!%p138_p2), %v6808_v7  ;;  %6429 = vmatprep.subr.bf16.mxu1 (!%p138_p2), %v6428_v8  ;;  %v6816_v17 = vpack.c.bf16 (!%p138_p2), %v4313_v15, %v4312_v14  ;;  %v4315_v21 = vld [vmem:[%s9007_s1 + $0x638] sm:$0xff] (!%p138_p2)  ;;  %v6436_v22 = vpack.c.bf16 (!%p138_p2), %v4069_v19, %v4068_v18  ;;  %v4070_v24 = vld [vmem:[%s9007_s1 + $0xc0] sm:$0xff] (!%p138_p2)  ;;  %v4071_v25 = vld [vmem:[%s9007_s1 + $0xc8] sm:$0xff] (!%p138_p2) }
   0xb   : > { %6813 = vmatprep.subr.bf16.mxu0 (!%p138_p2), %v6812_v12  ;;  %v6820_v23 = vpack.c.bf16 (!%p138_p2), %v4315_v21, %v4314_v20  ;;  %v4316_v27 = vld [vmem:[%s9007_s1 + $0x640] sm:$0xff] (!%p138_p2)  ;;  %v4317_v28 = vld [vmem:[%s9007_s1 + $0x648] sm:$0xff] (!%p138_p2)  ;;  %v6440_v30 = vpack.c.bf16 (!%p138_p2), %v4071_v25, %v4070_v24  ;;  %v4072_v32 = vld [vmem:[%s9007_s1 + $0xd0] sm:$0xff] (!%p138_p2) }
   0xc   : > { %v6824_v31 = vpack.c.bf16 (!%p138_p2), %v4317_v28, %v4316_v27  ;;  %v4073_v33 = vld [vmem:[%s9007_s1 + $0xd8] sm:$0xff] (!%p138_p2)  ;;  %v4318_v34 = vld [vmem:[%s9007_s1 + $0x650] sm:$0xff] (!%p138_p2)  ;;  %v4074_v38 = vld [vmem:[%s9007_s1 + $0xe0] sm:$0xff] (!%p138_p2) }
   0xd   : > { %s9011_s13 = smov (!%p161_p3, %s4045_s13), 1  ;;  %6431 = vmatpush3.bf16.msra.mxu1 %v6428_v8  ;;  %v4319_v35 = vld [vmem:[%s9007_s1 + $0x658] sm:$0xff]  ;;  %v6444_v36 = vpack.c.bf16 %v4073_v33, %v4072_v32  ;;  %v4075_v39 = vld [vmem:[%s9007_s1 + $0xe8] sm:$0xff]  ;;  %v4320_v40 = vld [vmem:[%s9007_s1 + $0x660] sm:$0xff] }
   0xe   : > { %s7480_s11 = smul.u32 416, %s9011_s13  ;;  %6815 = vmatpush3.bf16.msra.mxu0 %v6812_v12  ;;  %6433 = vmatprep.subr.bf16.mxu1 %v6432_v16  ;;  %v6828_v37 = vpack.c.bf16 %v4319_v35, %v4318_v34  ;;  %v4321_v41 = vld [vmem:[%s9007_s1 + $0x668] sm:$0xff]  ;;  %v6448_v42 = vpack.c.bf16 %v4075_v39, %v4074_v38  ;;  %v4076_v44 = vld [vmem:[%s9007_s1 + $0xf0] sm:$0xff]  ;;  %v4077_v45 = vld [vmem:[%s9007_s1 + $0xf8] sm:$0xff] }
   0xf   : > { %6817 = vmatprep.subr.bf16.mxu0 %v6816_v17  ;;  %v6832_v43 = vpack.c.bf16 %v4321_v41, %v4320_v40  ;;  %v4322_v46 = vld [vmem:[%s9007_s1 + $0x670] sm:$0xff]  ;;  %v4323_v47 = vld [vmem:[%s9007_s1 + $0x678] sm:$0xff]  ;;  %v6452_v48 = vpack.c.bf16 %v4077_v45, %v4076_v44  ;;  %v181_v50 = vld [vmem:[%s9007_s1] sm:$0xff] }
  0x10   : > { %s7580_s24 = scalar_lea.vmem %s9006_s0, %s7480_s11  ;;  %v6836_v49 = vpack.c.bf16 %v4323_v47, %v4322_v46  ;;  %v182_v51 = vld [vmem:[%s9007_s1 + $0x8] sm:$0xff]  ;;  %v4334_v52 = vld [vmem:[%s9007_s1 + $0x680] sm:$0xff]  ;;  %v183_v56 = vld [vmem:[%s9007_s1 + $0x10] sm:$0xff] }
  0x11   : > { %v4052_v26 = vld [vmem:[%s7580_s24 + $0x68] sm:$0xff]  ;;  %6435 = vmatpush3.bf16.msra.mxu1 %v6432_v16  ;;  %v6456_v54 = vpack.c.bf16 %v182_v51, %v181_v50  ;;  %v184_v57 = vld [vmem:[%s9007_s1 + $0x18] sm:$0xff]  ;;  %v4336_v58 = vld [vmem:[%s9007_s1 + $0x690] sm:$0xff] }
  0x12   : > { %5281 = vmatprep.mubr.f32.mxu1 %v4052_v26  ;;  %v1977_v29 = vld [vmem:[%s7580_s24 + $0xb] sm:$0xff]  ;;  %6819 = vmatpush3.bf16.msra.mxu0 %v6816_v17  ;;  %v4337_v59 = vld [vmem:[%s9007_s1 + $0x698] sm:$0xff]  ;;  %v6460_v62 = vpack.c.bf16 %v184_v57, %v183_v56  ;;  %v185_v0 = vld [vmem:[%s9007_s1 + $0x20] sm:$0xff] }
  0x13   : > { %5845 = vmatprep.mubr.f32.mxu0 %v1977_v29  ;;  %6437 = vmatprep.subr.bf16.mxu1 %v6436_v22  ;;  %v4335_v53 = vld [vmem:[%s9007_s1 + $0x688] sm:$0xff]  ;;  %v4053_v60 = vld [vmem:[%s7580_s24 + $0x70] sm:$0xff]  ;;  %v6844_v63 = vpack.c.bf16 %v4337_v59, %v4336_v58  ;;  %v4338_v2 = vld [vmem:[%s9007_s1 + $0x6a0] sm:$0xff] }
  0x14   : > { %6821 = vmatprep.subr.bf16.mxu0 %v6820_v23  ;;  %v6840_v55 = vpack.c.bf16 %v4335_v53, %v4334_v52  ;;  %v1978_v61 = vld [vmem:[%s7580_s24 + $0x13] sm:$0xff]  ;;  %v186_v1 = vld [vmem:[%s9007_s1 + $0x28] sm:$0xff]  ;;  %v1979_v5 = vld [vmem:[%s7580_s24 + $0x1b] sm:$0xff] }
  0x15   : > { %6439 = vmatpush3.bf16.msra.mxu1 %v6436_v22  ;;  %v4339_v3 = vld [vmem:[%s9007_s1 + $0x6a8] sm:$0xff]  ;;  %v4054_v4 = vld [vmem:[%s7580_s24 + $0x78] sm:$0xff]  ;;  %v4055_v6 = vld [vmem:[%s7580_s24 + $0x80] sm:$0xff]  ;;  %v6464_v7 = vpack.c.bf16 %v186_v1, %v185_v0 }
  0x16   : > { %6823 = vmatpush3.bf16.msra.mxu0 %v6820_v23  ;;  %6441 = vmatprep.subr.bf16.mxu1 %v6440_v30  ;;  %v1980_v8 = vld [vmem:[%s7580_s24 + $0x23] sm:$0xff]  ;;  %v6848_v9 = vpack.c.bf16 %v4339_v3, %v4338_v2  ;;  %v187_v10 = vld [vmem:[%s9007_s1 + $0x30] sm:$0xff]  ;;  %v188_v11 = vld [vmem:[%s9007_s1 + $0x38] sm:$0xff] }
  0x17   : > { %6825 = vmatprep.subr.bf16.mxu0 %v6824_v31  ;;  %v4340_v12 = vld [vmem:[%s9007_s1 + $0x6b0] sm:$0xff]  ;;  %v4341_v13 = vld [vmem:[%s9007_s1 + $0x6b8] sm:$0xff]  ;;  %v4056_v14 = vld [vmem:[%s7580_s24 + $0x88] sm:$0xff]  ;;  %v6468_v17 = vpack.c.bf16 %v188_v11, %v187_v10 }
  0x18   : > { %v1981_v15 = vld [vmem:[%s7580_s24 + $0x2b] sm:$0xff]  ;;  %v1982_v18 = vld [vmem:[%s7580_s24 + $0x33] sm:$0xff]  ;;  %v6852_v19 = vpack.c.bf16 %v4341_v13, %v4340_v12  ;;  %v189_v20 = vld [vmem:[%s9007_s1 + $0x40] sm:$0xff] }
  0x19   : > { %6443 = vmatpush3.bf16.msra.mxu1 %v6440_v30  ;;  %v4057_v16 = vld [vmem:[%s7580_s24 + $0x90] sm:$0xff]  ;;  %v190_v21 = vld [vmem:[%s9007_s1 + $0x48] sm:$0xff]  ;;  %v4342_v22 = vld [vmem:[%s9007_s1 + $0x6c0] sm:$0xff] }
  0x1a   : > { %6827 = vmatpush3.bf16.msra.mxu0 %v6824_v31  ;;  %6445 = vmatprep.subr.bf16.mxu1 %v6444_v36  ;;  %v4343_v23 = vld [vmem:[%s9007_s1 + $0x6c8] sm:$0xff]  ;;  %v4058_v24 = vld [vmem:[%s7580_s24 + $0x98] sm:$0xff]  ;;  %v4059_v26 = vld [vmem:[%s7580_s24 + $0xa0] sm:$0xff]  ;;  %v6472_v27 = vpack.c.bf16 %v190_v21, %v189_v20 }
  0x1b   : > { %6829 = vmatprep.subr.bf16.mxu0 %v6828_v37  ;;  %v1983_v25 = vld [vmem:[%s7580_s24 + $0x3b] sm:$0xff]  ;;  %v1984_v28 = vld [vmem:[%s7580_s24 + $0x43] sm:$0xff]  ;;  %v6856_v29 = vpack.c.bf16 %v4343_v23, %v4342_v22  ;;  %v191_v30 = vld [vmem:[%s9007_s1 + $0x50] sm:$0xff] }
  0x1c   : > { %v192_v31 = vld [vmem:[%s9007_s1 + $0x58] sm:$0xff]  ;;  %v4344_v32 = vld [vmem:[%s9007_s1 + $0x6d0] sm:$0xff]  ;;  %v4060_v34 = vld [vmem:[%s7580_s24 + $0xa8] sm:$0xff] }
  0x1d   : > { %6447 = vmatpush3.bf16.msra.mxu1 %v6444_v36  ;;  %v4345_v33 = vld [vmem:[%s9007_s1 + $0x6d8] sm:$0xff]  ;;  %v1985_v35 = vld [vmem:[%s7580_s24 + $0x4b] sm:$0xff]  ;;  %v193_v40 = vld [vmem:[%s9007_s1 + $0x60] sm:$0xff] }
  0x1e   : > { %6831 = vmatpush3.bf16.msra.mxu0 %v6828_v37  ;;  %6449 = vmatprep.subr.bf16.mxu1 %v6448_v42  ;;  %v4061_v36 = vld [vmem:[%s7580_s24 + $0xb0] sm:$0xff]  ;;  %v6476_v37 = vpack.c.bf16 %v192_v31, %v191_v30  ;;  %v6860_v39 = vpack.c.bf16 %v4345_v33, %v4344_v32  ;;  %v194_v41 = vld [vmem:[%s9007_s1 + $0x68] sm:$0xff]  ;;  %v171_v44 = vld [vmem:[%s7580_s24] sm:$0xff] }
  0x1f   : > { %6833 = vmatprep.subr.bf16.mxu0 %v6832_v43  ;;  %v1986_v38 = vld [vmem:[%s7580_s24 + $0x53] sm:$0xff]  ;;  %v6480_v46 = vpack.c.bf16 %v194_v41, %v193_v40  ;;  %v4350_v56 = vld [vmem:[%s9007_s1 + $0x700] sm:$0xff]  ;;  %v4351_v57 = vld [vmem:[%s9007_s1 + $0x708] sm:$0xff] }
  0x20   : > { %v4324_v45 = vld [vmem:[%s7580_s24 + $0x73] sm:$0xff]  ;;  %v6872_v59 = vpack.c.bf16 %v4351_v57, %v4350_v56  ;;  %v172_v0 = vld [vmem:[%s7580_s24 + $0x8] sm:$0xff]  ;;  %v4325_v1 = vld [vmem:[%s7580_s24 + $0x7b] sm:$0xff] }
  0x21   : > { %6451 = vmatpush3.bf16.msra.mxu1 %v6448_v42  ;;  %v4346_v42 = vld [vmem:[%s9007_s1 + $0x6e0] sm:$0xff]  ;;  %v4348_v50 = vld [vmem:[%s9007_s1 + $0x6f0] sm:$0xff]  ;;  %v4349_v51 = vld [vmem:[%s9007_s1 + $0x6f8] sm:$0xff] }
  0x22   : > { %6835 = vmatpush3.bf16.msra.mxu0 %v6832_v43  ;;  %6453 = vmatprep.subr.bf16.mxu1 %v6452_v48  ;;  %v4347_v43 = vld [vmem:[%s9007_s1 + $0x6e8] sm:$0xff]  ;;  %v6868_v53 = vpack.c.bf16 %v4349_v51, %v4348_v50  ;;  %v174_v10 = vld [vmem:[%s7580_s24 + $0x18] sm:$0xff] }
  0x23   : > { %6837 = vmatprep.subr.bf16.mxu0 %v6836_v49  ;;  %v6864_v47 = vpack.c.bf16 %v4347_v43, %v4346_v42  ;;  %v4327_v12 = vld [vmem:[%s7580_s24 + $0x8b] sm:$0xff]  ;;  %v4329_v22 = vld [vmem:[%s7580_s24 + $0x9b] sm:$0xff] }
  0x24   : > { %v176_v20 = vld [vmem:[%s7580_s24 + $0x28] sm:$0xff]  ;;  %v178_v30 = vld [vmem:[%s7580_s24 + $0x38] sm:$0xff] }
  0x25   : > { %6455 = vmatpush3.bf16.msra.mxu1 %v6452_v48  ;;  %v195_v48 = vld [vmem:[%s9007_s1 + $0x70] sm:$0xff]  ;;  %v180_v40 = vld [vmem:[%s7580_s24 + $0x48] sm:$0xff]  ;;  %v4333_v42 = vld [vmem:[%s7580_s24 + $0xbb] sm:$0xff] }
  0x26   : > { %6839 = vmatpush3.bf16.msra.mxu0 %v6836_v49  ;;  %6457 = vmatprep.subr.bf16.mxu1 %v6456_v54  ;;  %v196_v49 = vld [vmem:[%s9007_s1 + $0x78] sm:$0xff]  ;;  %v4331_v32 = vld [vmem:[%s7580_s24 + $0xab] sm:$0xff] }
  0x27   : > { %6841 = vmatprep.subr.bf16.mxu0 %v6840_v55  ;;  %v6484_v52 = vpack.c.bf16 %v196_v49, %v195_v48  ;;  %v455_v48 = vld [vmem:[%s7580_s24 + $0x1] sm:$0xff]  ;;  %v2281_v49 = vld [vmem:[%s7580_s24 + $0xc] sm:$0xff] }
  0x28   : > { %5282 = vmatmul.mubr.f32.vlgmr.msra.gmra.mrb[0].mxu1 %v4053_v60  ;;  %v4080_v60 = vld [vmem:[%s9007_s1 + $0x110] sm:$0xff] }
  0x29   : > { %6459 = vmatpush3.bf16.msra.mxu1 %v6456_v54  ;;  %5846 = vmatmul.mubr.f32.vlgmr.msra.gmra.mrb[0].mxu0 %v1978_v61  ;;  %v4078_v54 = vld [vmem:[%s9007_s1 + $0x100] sm:$0xff]  ;;  %v4081_v61 = vld [vmem:[%s9007_s1 + $0x118] sm:$0xff] }
  0x2a   : > { %6843 = vmatpush3.bf16.msra.mxu0 %v6840_v55  ;;  %6461 = vmatprep.subr.bf16.mxu1 %v6460_v62  ;;  %v4079_v55 = vld [vmem:[%s9007_s1 + $0x108] sm:$0xff]  ;;  %v6492_v2 = vpack.c.bf16 %v4081_v61, %v4080_v60  ;;  %v4376_v60 = vld [vmem:[%s9007_s1 + $0x780] sm:$0xff] }
  0x2b   : > { %6845 = vmatprep.subr.bf16.mxu0 %v6844_v63  ;;  %5284 = vmatprep.mubr.f32.mxu1 %v4054_v4  ;;  %v6488_v58 = vpack.c.bf16 %v4079_v55, %v4078_v54  ;;  %v4082_v4 = vld [vmem:[%s9007_s1 + $0x120] sm:$0xff]  ;;  %v4364_v54 = vld [vmem:[%s9007_s1 + $0x770] sm:$0xff]  ;;  %v4365_v55 = vld [vmem:[%s9007_s1 + $0x778] sm:$0xff] }
  0x2c   : > { %5848 = vmatprep.mubr.f32.mxu0 %v1979_v5  ;;  %5285 = vmatmul.mubr.f32.gmra.mrb[2].mxu1 %v4055_v6  ;;  %v4083_v5 = vld [vmem:[%s9007_s1 + $0x128] sm:$0xff]  ;;  %v4354_v6 = vld [vmem:[%s9007_s1 + $0x720] sm:$0xff]  ;;  %v6900_v57 = vpack.c.bf16 %v4365_v55, %v4364_v54 }
  0x2d   : > { %6463 = vmatpush3.bf16.msra.mxu1 %v6460_v62  ;;  %5849 = vmatmul.mubr.f32.gmra.mrb[2].mxu0 %v1980_v8  ;;  %v4352_v62 = vld [vmem:[%s9007_s1 + $0x710] sm:$0xff]  ;;  %v6496_v11 = vpack.c.bf16 %v4083_v5, %v4082_v4  ;;  %v4377_v61 = vld [vmem:[%s9007_s1 + $0x788] sm:$0xff] }
  0x2e   : > { %6847 = vmatpush3.bf16.msra.mxu0 %v6844_v63  ;;  %6465 = vmatprep.subr.bf16.mxu1 %v6464_v7  ;;  %v4353_v63 = vld [vmem:[%s9007_s1 + $0x718] sm:$0xff]  ;;  %v173_v8 = vld [vmem:[%s7580_s24 + $0x10] sm:$0xff] }
  0x2f   : > { %6849 = vmatprep.subr.bf16.mxu0 %v6848_v9  ;;  %5287 = vmatprep.mubr.f32.mxu1 %v4056_v14  ;;  %v6876_v3 = vpack.c.bf16 %v4353_v63, %v4352_v62  ;;  %v4084_v14 = vld [vmem:[%s9007_s1 + $0x130] sm:$0xff]  ;;  %v6904_v63 = vpack.c.bf16 %v4377_v61, %v4376_v60 }
  0x30   : > { %5851 = vmatprep.mubr.f32.mxu0 %v1981_v15  ;;  %5288 = vmatmul.mubr.f32.gmra.mrb[4].mxu1 %v4057_v16  ;;  %v4085_v15 = vld [vmem:[%s9007_s1 + $0x138] sm:$0xff]  ;;  %v4356_v16 = vld [vmem:[%s9007_s1 + $0x730] sm:$0xff] }
  0x31   : > { %6467 = vmatpush3.bf16.msra.mxu1 %v6464_v7  ;;  %5852 = vmatmul.mubr.f32.gmra.mrb[4].mxu0 %v1982_v18  ;;  %v4355_v7 = vld [vmem:[%s9007_s1 + $0x728] sm:$0xff]  ;;  %v175_v18 = vld [vmem:[%s7580_s24 + $0x20] sm:$0xff]  ;;  %v6500_v21 = vpack.c.bf16 %v4085_v15, %v4084_v14  ;;  %v2282_v5 = vld [vmem:[%s7580_s24 + $0x14] sm:$0xff] }
  0x32   : > { %6851 = vmatpush3.bf16.msra.mxu0 %v6848_v9  ;;  %6469 = vmatprep.subr.bf16.mxu1 %v6468_v17  ;;  %v4326_v9 = vld [vmem:[%s7580_s24 + $0x83] sm:$0xff]  ;;  %v6880_v13 = vpack.c.bf16 %v4355_v7, %v4354_v6  ;;  %v458_v14 = vld [vmem:[%s7580_s24 + $0x19] sm:$0xff] }
  0x33   : > { %6853 = vmatprep.subr.bf16.mxu0 %v6852_v19  ;;  %5290 = vmatprep.mubr.f32.mxu1 %v4058_v24  ;;  %v4086_v24 = vld [vmem:[%s9007_s1 + $0x140] sm:$0xff]  ;;  %v456_v4 = vld [vmem:[%s7580_s24 + $0x9] sm:$0xff] }
  0x34   : > { %5854 = vmatprep.mubr.f32.mxu0 %v1983_v25  ;;  %5291 = vmatmul.mubr.f32.gmra.mrb[6].mxu1 %v4059_v26  ;;  %v4087_v25 = vld [vmem:[%s9007_s1 + $0x148] sm:$0xff]  ;;  %v4358_v26 = vld [vmem:[%s9007_s1 + $0x740] sm:$0xff] }
  0x35   : > { %6471 = vmatpush3.bf16.msra.mxu1 %v6468_v17  ;;  %5855 = vmatmul.mubr.f32.gmra.mrb[6].mxu0 %v1984_v28  ;;  %v4357_v17 = vld [vmem:[%s9007_s1 + $0x738] sm:$0xff]  ;;  %v177_v28 = vld [vmem:[%s7580_s24 + $0x30] sm:$0xff]  ;;  %v6504_v31 = vpack.c.bf16 %v4087_v25, %v4086_v24 }
  0x36   : > { %6855 = vmatpush3.bf16.msra.mxu0 %v6852_v19  ;;  %6473 = vmatprep.subr.bf16.mxu1 %v6472_v27  ;;  %v4328_v19 = vld [vmem:[%s7580_s24 + $0x93] sm:$0xff]  ;;  %v6884_v23 = vpack.c.bf16 %v4357_v17, %v4356_v16  ;;  %v2284_v16 = vld [vmem:[%s7580_s24 + $0x24] sm:$0xff] }
  0x37   : > { %6857 = vmatprep.subr.bf16.mxu0 %v6856_v29  ;;  %5293 = vmatprep.mubr.f32.mxu1 %v4060_v34  ;;  %v4088_v34 = vld [vmem:[%s9007_s1 + $0x150] sm:$0xff] }
  0x38   : > { %5857 = vmatprep.mubr.f32.mxu0 %v1985_v35  ;;  %5294 = vmatmul.mubr.f32.gmra.mrb[8].mxu1 %v4061_v36  ;;  %v4089_v35 = vld [vmem:[%s9007_s1 + $0x158] sm:$0xff]  ;;  %v4360_v36 = vld [vmem:[%s9007_s1 + $0x750] sm:$0xff] }
  0x39   : > { %6475 = vmatpush3.bf16.msra.mxu1 %v6472_v27  ;;  %5858 = vmatmul.mubr.f32.gmra.mrb[8].mxu0 %v1986_v38  ;;  %v4359_v27 = vld [vmem:[%s9007_s1 + $0x748] sm:$0xff]  ;;  %v179_v38 = vld [vmem:[%s7580_s24 + $0x40] sm:$0xff]  ;;  %v6508_v41 = vpack.c.bf16 %v4089_v35, %v4088_v34 }
  0x3a   : > { %6859 = vmatpush3.bf16.msra.mxu0 %v6856_v29  ;;  %6477 = vmatprep.subr.bf16.mxu1 %v6476_v37  ;;  %v4330_v29 = vld [vmem:[%s7580_s24 + $0xa3] sm:$0xff]  ;;  %v6888_v33 = vpack.c.bf16 %v4359_v27, %v4358_v26  ;;  %v2286_v26 = vld [vmem:[%s7580_s24 + $0x34] sm:$0xff] }
  0x3b   : > { %6861 = vmatprep.subr.bf16.mxu0 %v6860_v39  ;;  %5328 = vmatprep.mubr.f32.mxu1 %v171_v44  ;;  %v4090_v44 = vld [vmem:[%s9007_s1 + $0x160] sm:$0xff]  ;;  %v460_v24 = vld [vmem:[%s7580_s24 + $0x29] sm:$0xff] }
  0x3c   : > { %5892 = vmatprep.mubr.f32.mxu0 %v4324_v45  ;;  %v4091_v45 = vld [vmem:[%s9007_s1 + $0x168] sm:$0xff]  ;;  %v462_v34 = vld [vmem:[%s7580_s24 + $0x39] sm:$0xff] }
  0x3d   : > { %6479 = vmatpush3.bf16.msra.mxu1 %v6476_v37  ;;  %v4361_v37 = vld [vmem:[%s9007_s1 + $0x758] sm:$0xff]  ;;  %v6512_v50 = vpack.c.bf16 %v4091_v45, %v4090_v44  ;;  %v464_v44 = vld [vmem:[%s7580_s24 + $0x49] sm:$0xff] }
  0x3e   : > { %6863 = vmatpush3.bf16.msra.mxu0 %v6860_v39  ;;  %6481 = vmatprep.subr.bf16.mxu1 %v6480_v46  ;;  %v4332_v39 = vld [vmem:[%s7580_s24 + $0xb3] sm:$0xff]  ;;  %v6892_v43 = vpack.c.bf16 %v4361_v37, %v4360_v36  ;;  %v2288_v36 = vld [vmem:[%s7580_s24 + $0x44] sm:$0xff] }
  0x3f   : > { %6865 = vmatprep.subr.bf16.mxu0 %v6864_v47 }
  0x41   : > { %6483 = vmatpush3.bf16.msra.mxu1 %v6480_v46  ;;  %v4362_v46 = vld [vmem:[%s9007_s1 + $0x760] sm:$0xff] }
  0x42   : > { %6867 = vmatpush3.bf16.msra.mxu0 %v6864_v47  ;;  %6485 = vmatprep.subr.bf16.mxu1 %v6484_v52  ;;  %v4363_v47 = vld [vmem:[%s9007_s1 + $0x768] sm:$0xff] }
  0x43   : > { %6869 = vmatprep.subr.bf16.mxu0 %v6868_v53  ;;  %v6896_v51 = vpack.c.bf16 %v4363_v47, %v4362_v46  ;;  %v2290_v46 = vld [vmem:[%s7580_s24 + $0x54] sm:$0xff] }
  0x45   : > { %6487 = vmatpush3.bf16.msra.mxu1 %v6484_v52  ;;  %v4092_v52 = vld [vmem:[%s9007_s1 + $0x170] sm:$0xff] }
  0x46   : > { %6871 = vmatpush3.bf16.msra.mxu0 %v6868_v53  ;;  %6489 = vmatprep.subr.bf16.mxu1 %v6488_v58  ;;  %v4093_v53 = vld [vmem:[%s9007_s1 + $0x178] sm:$0xff] }
  0x47   : > { %6873 = vmatprep.subr.bf16.mxu0 %v6872_v59  ;;  %v6516_v56 = vpack.c.bf16 %v4093_v53, %v4092_v52  ;;  %v4094_v52 = vld [vmem:[%s7580_s24 + $0x69] sm:$0xff]  ;;  %v4366_v53 = vld [vmem:[%s7580_s24 + $0xda] sm:$0xff] }
  0x48   : > { %5329 = vmatmul.mubr.f32.vlgmr.msra.gmra.mrb[0].mxu1 %v172_v0  ;;  %v4106_v0 = vld [vmem:[%s9007_s1 + $0x190] sm:$0xff] }
  0x49   : > { %6491 = vmatpush3.bf16.msra.mxu1 %v6488_v58  ;;  %5893 = vmatmul.mubr.f32.vlgmr.msra.gmra.mrb[0].mxu0 %v4325_v1  ;;  %v4104_v58 = vld [vmem:[%s9007_s1 + $0x180] sm:$0xff]  ;;  %v4107_v1 = vld [vmem:[%s9007_s1 + $0x198] sm:$0xff] }
  0x4a   : > { %6875 = vmatpush3.bf16.msra.mxu0 %v6872_v59  ;;  %6493 = vmatprep.subr.bf16.mxu1 %v6492_v2  ;;  %v4105_v59 = vld [vmem:[%s9007_s1 + $0x188] sm:$0xff]  ;;  %v6524_v6 = vpack.c.bf16 %v4107_v1, %v4106_v0  ;;  %v4402_v0 = vld [vmem:[%s9007_s1 + $0x800] sm:$0xff] }
  0x4b   : > { %6877 = vmatprep.subr.bf16.mxu0 %v6876_v3  ;;  %5331 = vmatprep.mubr.f32.mxu1 %v173_v8  ;;  %v6520_v62 = vpack.c.bf16 %v4105_v59, %v4104_v58  ;;  %v4108_v8 = vld [vmem:[%s9007_s1 + $0x1a0] sm:$0xff]  ;;  %v4390_v58 = vld [vmem:[%s9007_s1 + $0x7f0] sm:$0xff]  ;;  %v4391_v59 = vld [vmem:[%s9007_s1 + $0x7f8] sm:$0xff] }
  0x4c   : > { %5895 = vmatprep.mubr.f32.mxu0 %v4326_v9  ;;  %5332 = vmatmul.mubr.f32.gmra.mrb[2].mxu1 %v174_v10  ;;  %v4109_v9 = vld [vmem:[%s9007_s1 + $0x1a8] sm:$0xff]  ;;  %v4380_v10 = vld [vmem:[%s9007_s1 + $0x7a0] sm:$0xff]  ;;  %v6932_v61 = vpack.c.bf16 %v4391_v59, %v4390_v58 }
  0x4d   : > { %6495 = vmatpush3.bf16.msra.mxu1 %v6492_v2  ;;  %5896 = vmatmul.mubr.f32.gmra.mrb[2].mxu0 %v4327_v12  ;;  %v4378_v2 = vld [vmem:[%s9007_s1 + $0x790] sm:$0xff]  ;;  %v6528_v15 = vpack.c.bf16 %v4109_v9, %v4108_v8  ;;  %v4403_v1 = vld [vmem:[%s9007_s1 + $0x808] sm:$0xff] }
  0x4e   : > { %6879 = vmatpush3.bf16.msra.mxu0 %v6876_v3  ;;  %6497 = vmatprep.subr.bf16.mxu1 %v6496_v11  ;;  %v4379_v3 = vld [vmem:[%s9007_s1 + $0x798] sm:$0xff]  ;;  %v4367_v9 = vld [vmem:[%s7580_s24 + $0xe2] sm:$0xff] }
  0x4f   : > { %6881 = vmatprep.subr.bf16.mxu0 %v6880_v13  ;;  %5334 = vmatprep.mubr.f32.mxu1 %v175_v18  ;;  %v6908_v7 = vpack.c.bf16 %v4379_v3, %v4378_v2  ;;  %v457_v12 = vld [vmem:[%s7580_s24 + $0x11] sm:$0xff]  ;;  %v6936_v3 = vpack.c.bf16 %v4403_v1, %v4402_v0 }
  0x50   : > { %5898 = vmatprep.mubr.f32.mxu0 %v4328_v19  ;;  %5335 = vmatmul.mubr.f32.gmra.mrb[4].mxu1 %v176_v20  ;;  %v4110_v18 = vld [vmem:[%s9007_s1 + $0x1b0] sm:$0xff]  ;;  %v4111_v19 = vld [vmem:[%s9007_s1 + $0x1b8] sm:$0xff] }
  0x51   : > { %6499 = vmatpush3.bf16.msra.mxu1 %v6496_v11  ;;  %5899 = vmatmul.mubr.f32.gmra.mrb[4].mxu0 %v4329_v22  ;;  %v4381_v11 = vld [vmem:[%s9007_s1 + $0x7a8] sm:$0xff]  ;;  %v4382_v20 = vld [vmem:[%s9007_s1 + $0x7b0] sm:$0xff]  ;;  %v6532_v25 = vpack.c.bf16 %v4111_v19, %v4110_v18 }
  0x52   : > { %6883 = vmatpush3.bf16.msra.mxu0 %v6880_v13  ;;  %6501 = vmatprep.subr.bf16.mxu1 %v6500_v21  ;;  %v2283_v13 = vld [vmem:[%s7580_s24 + $0x1c] sm:$0xff]  ;;  %v6912_v17 = vpack.c.bf16 %v4381_v11, %v4380_v10  ;;  %v4095_v8 = vld [vmem:[%s7580_s24 + $0x71] sm:$0xff] }
  0x53   : > { %6885 = vmatprep.subr.bf16.mxu0 %v6884_v23  ;;  %5337 = vmatprep.mubr.f32.mxu1 %v177_v28  ;;  %v459_v22 = vld [vmem:[%s7580_s24 + $0x21] sm:$0xff] }
  0x54   : > { %5901 = vmatprep.mubr.f32.mxu0 %v4330_v29  ;;  %5338 = vmatmul.mubr.f32.gmra.mrb[6].mxu1 %v178_v30  ;;  %v4112_v28 = vld [vmem:[%s9007_s1 + $0x1c0] sm:$0xff]  ;;  %v4113_v29 = vld [vmem:[%s9007_s1 + $0x1c8] sm:$0xff] }
  0x55   : > { %6503 = vmatpush3.bf16.msra.mxu1 %v6500_v21  ;;  %5902 = vmatmul.mubr.f32.gmra.mrb[6].mxu0 %v4331_v32  ;;  %v4383_v21 = vld [vmem:[%s9007_s1 + $0x7b8] sm:$0xff]  ;;  %v4384_v30 = vld [vmem:[%s9007_s1 + $0x7c0] sm:$0xff]  ;;  %v6536_v35 = vpack.c.bf16 %v4113_v29, %v4112_v28 }
  0x56   : > { %6887 = vmatpush3.bf16.msra.mxu0 %v6884_v23  ;;  %6505 = vmatprep.subr.bf16.mxu1 %v6504_v31  ;;  %v2285_v23 = vld [vmem:[%s7580_s24 + $0x2c] sm:$0xff]  ;;  %v6916_v27 = vpack.c.bf16 %v4383_v21, %v4382_v20  ;;  %v4097_v18 = vld [vmem:[%s7580_s24 + $0x81] sm:$0xff] }
  0x57   : > { %6889 = vmatprep.subr.bf16.mxu0 %v6888_v33  ;;  %5340 = vmatprep.mubr.f32.mxu1 %v179_v38  ;;  %v461_v32 = vld [vmem:[%s7580_s24 + $0x31] sm:$0xff] }
  0x58   : > { %5904 = vmatprep.mubr.f32.mxu0 %v4332_v39  ;;  %5341 = vmatmul.mubr.f32.gmra.mrb[8].mxu1 %v180_v40  ;;  %v4114_v38 = vld [vmem:[%s9007_s1 + $0x1d0] sm:$0xff]  ;;  %v4115_v39 = vld [vmem:[%s9007_s1 + $0x1d8] sm:$0xff] }
  0x59   : > { %6507 = vmatpush3.bf16.msra.mxu1 %v6504_v31  ;;  %5905 = vmatmul.mubr.f32.gmra.mrb[8].mxu0 %v4333_v42  ;;  %v4385_v31 = vld [vmem:[%s9007_s1 + $0x7c8] sm:$0xff]  ;;  %v4386_v40 = vld [vmem:[%s9007_s1 + $0x7d0] sm:$0xff]  ;;  %v6540_v45 = vpack.c.bf16 %v4115_v39, %v4114_v38 }
  0x5a   : > { %6891 = vmatpush3.bf16.msra.mxu0 %v6888_v33  ;;  %6509 = vmatprep.subr.bf16.mxu1 %v6508_v41  ;;  %v2287_v33 = vld [vmem:[%s7580_s24 + $0x3c] sm:$0xff]  ;;  %v6920_v37 = vpack.c.bf16 %v4385_v31, %v4384_v30  ;;  %v4369_v20 = vld [vmem:[%s7580_s24 + $0xf2] sm:$0xff] }
  0x5b   : > { %6893 = vmatprep.subr.bf16.mxu0 %v6892_v43  ;;  %5375 = vmatprep.mubr.f32.mxu1 %v455_v48  ;;  %v463_v42 = vld [vmem:[%s7580_s24 + $0x41] sm:$0xff]  ;;  %v4099_v28 = vld [vmem:[%s7580_s24 + $0x91] sm:$0xff] }
  0x5c   : > { %5939 = vmatprep.mubr.f32.mxu0 %v2281_v49  ;;  %v4116_v48 = vld [vmem:[%s9007_s1 + $0x1e0] sm:$0xff]  ;;  %v4117_v49 = vld [vmem:[%s9007_s1 + $0x1e8] sm:$0xff] }
  0x5d   : > { %6511 = vmatpush3.bf16.msra.mxu1 %v6508_v41  ;;  %v4387_v41 = vld [vmem:[%s9007_s1 + $0x7d8] sm:$0xff]  ;;  %v6544_v54 = vpack.c.bf16 %v4117_v49, %v4116_v48  ;;  %v4371_v30 = vld [vmem:[%s7580_s24 + $0x102] sm:$0xff] }
  0x5e   : > { %6895 = vmatpush3.bf16.msra.mxu0 %v6892_v43  ;;  %6513 = vmatprep.subr.bf16.mxu1 %v6512_v50  ;;  %v2289_v43 = vld [vmem:[%s7580_s24 + $0x4c] sm:$0xff]  ;;  %v6924_v47 = vpack.c.bf16 %v4387_v41, %v4386_v40  ;;  %v4101_v38 = vld [vmem:[%s7580_s24 + $0xa1] sm:$0xff] }
  0x5f   : > { %6897 = vmatprep.subr.bf16.mxu0 %v6896_v51  ;;  %v4373_v40 = vld [vmem:[%s7580_s24 + $0x112] sm:$0xff] }
  0x60   : > { %v4103_v48 = vld [vmem:[%s7580_s24 + $0xb1] sm:$0xff] }
  0x61   : > { %6515 = vmatpush3.bf16.msra.mxu1 %v6512_v50  ;;  %v4388_v50 = vld [vmem:[%s9007_s1 + $0x7e0] sm:$0xff] }
  0x62   : > { %6899 = vmatpush3.bf16.msra.mxu0 %v6896_v51  ;;  %6517 = vmatprep.subr.bf16.mxu1 %v6516_v56  ;;  %v4389_v51 = vld [vmem:[%s9007_s1 + $0x7e8] sm:$0xff] }
  0x63   : > { %6901 = vmatprep.subr.bf16.mxu0 %v6900_v57  ;;  %v6928_v55 = vpack.c.bf16 %v4389_v51, %v4388_v50  ;;  %v4375_v50 = vld [vmem:[%s7580_s24 + $0x122] sm:$0xff] }
  0x65   : > { %6519 = vmatpush3.bf16.msra.mxu1 %v6516_v56  ;;  %v4118_v56 = vld [vmem:[%s9007_s1 + $0x1f0] sm:$0xff] }
  0x66   : > { %6903 = vmatpush3.bf16.msra.mxu0 %v6900_v57  ;;  %6521 = vmatprep.subr.bf16.mxu1 %v6520_v62  ;;  %v4119_v57 = vld [vmem:[%s9007_s1 + $0x1f8] sm:$0xff] }
  0x67   : > { %6905 = vmatprep.subr.bf16.mxu0 %v6904_v63  ;;  %v6548_v60 = vpack.c.bf16 %v4119_v57, %v4118_v56  ;;  %v759_v56 = vld [vmem:[%s7580_s24 + $0x2] sm:$0xff] }
  0x68   : > { %5376 = vmatmul.mubr.f32.vlgmr.msra.gmra.mrb[0].mxu1 %v456_v4  ;;  %v4122_v4 = vld [vmem:[%s9007_s1 + $0x210] sm:$0xff]  ;;  %v4392_v57 = vld [vmem:[%s7580_s24 + $0x142] sm:$0xff] }
  0x69   : > { %6523 = vmatpush3.bf16.msra.mxu1 %v6520_v62  ;;  %5940 = vmatmul.mubr.f32.vlgmr.msra.gmra.mrb[0].mxu0 %v2282_v5  ;;  %v4120_v62 = vld [vmem:[%s9007_s1 + $0x200] sm:$0xff]  ;;  %v4123_v5 = vld [vmem:[%s9007_s1 + $0x218] sm:$0xff] }
  0x6a   : > { %6907 = vmatpush3.bf16.msra.mxu0 %v6904_v63  ;;  %6525 = vmatprep.subr.bf16.mxu1 %v6524_v6  ;;  %v4121_v63 = vld [vmem:[%s9007_s1 + $0x208] sm:$0xff]  ;;  %v6556_v10 = vpack.c.bf16 %v4123_v5, %v4122_v4  ;;  %v4428_v4 = vld [vmem:[%s9007_s1 + $0x880] sm:$0xff] }
  0x6b   : > { %6909 = vmatprep.subr.bf16.mxu0 %v6908_v7  ;;  %5378 = vmatprep.mubr.f32.mxu1 %v457_v12  ;;  %v6552_v2 = vpack.c.bf16 %v4121_v63, %v4120_v62  ;;  %v4124_v12 = vld [vmem:[%s9007_s1 + $0x220] sm:$0xff]  ;;  %v4416_v62 = vld [vmem:[%s9007_s1 + $0x870] sm:$0xff]  ;;  %v4417_v63 = vld [vmem:[%s9007_s1 + $0x878] sm:$0xff] }
  0x6c   : > { %5942 = vmatprep.mubr.f32.mxu0 %v2283_v13  ;;  %5379 = vmatmul.mubr.f32.gmra.mrb[2].mxu1 %v458_v14  ;;  %v4125_v13 = vld [vmem:[%s9007_s1 + $0x228] sm:$0xff]  ;;  %v4406_v14 = vld [vmem:[%s9007_s1 + $0x820] sm:$0xff]  ;;  %v6964_v1 = vpack.c.bf16 %v4417_v63, %v4416_v62 }
  0x6d   : > { %6527 = vmatpush3.bf16.msra.mxu1 %v6524_v6  ;;  %5943 = vmatmul.mubr.f32.gmra.mrb[2].mxu0 %v2284_v16  ;;  %v4404_v6 = vld [vmem:[%s9007_s1 + $0x810] sm:$0xff]  ;;  %v4096_v16 = vld [vmem:[%s7580_s24 + $0x79] sm:$0xff]  ;;  %v6560_v19 = vpack.c.bf16 %v4125_v13, %v4124_v12  ;;  %v4429_v5 = vld [vmem:[%s9007_s1 + $0x888] sm:$0xff] }
  0x6e   : > { %6911 = vmatpush3.bf16.msra.mxu0 %v6908_v7  ;;  %6529 = vmatprep.subr.bf16.mxu1 %v6528_v15  ;;  %v4405_v7 = vld [vmem:[%s9007_s1 + $0x818] sm:$0xff]  ;;  %v760_v12 = vld [vmem:[%s7580_s24 + $0xa] sm:$0xff] }
  0x6f   : > { %6913 = vmatprep.subr.bf16.mxu0 %v6912_v17  ;;  %5381 = vmatprep.mubr.f32.mxu1 %v459_v22  ;;  %v6940_v11 = vpack.c.bf16 %v4405_v7, %v4404_v6  ;;  %v4126_v22 = vld [vmem:[%s9007_s1 + $0x230] sm:$0xff]  ;;  %v6968_v7 = vpack.c.bf16 %v4429_v5, %v4428_v4 }
  0x70   : > { %5945 = vmatprep.mubr.f32.mxu0 %v2285_v23  ;;  %5382 = vmatmul.mubr.f32.gmra.mrb[4].mxu1 %v460_v24  ;;  %v4127_v23 = vld [vmem:[%s9007_s1 + $0x238] sm:$0xff]  ;;  %v4408_v24 = vld [vmem:[%s9007_s1 + $0x830] sm:$0xff] }
  0x71   : > { %6531 = vmatpush3.bf16.msra.mxu1 %v6528_v15  ;;  %5946 = vmatmul.mubr.f32.gmra.mrb[4].mxu0 %v2286_v26  ;;  %v4407_v15 = vld [vmem:[%s9007_s1 + $0x828] sm:$0xff]  ;;  %v6564_v29 = vpack.c.bf16 %v4127_v23, %v4126_v22  ;;  %v762_v22 = vld [vmem:[%s7580_s24 + $0x1a] sm:$0xff] }
  0x72   : > { %6915 = vmatpush3.bf16.msra.mxu0 %v6912_v17  ;;  %6533 = vmatprep.subr.bf16.mxu1 %v6532_v25  ;;  %v4368_v17 = vld [vmem:[%s7580_s24 + $0xea] sm:$0xff]  ;;  %v6944_v21 = vpack.c.bf16 %v4407_v15, %v4406_v14 }
  0x73   : > { %6917 = vmatprep.subr.bf16.mxu0 %v6916_v27  ;;  %5384 = vmatprep.mubr.f32.mxu1 %v461_v32  ;;  %v4098_v26 = vld [vmem:[%s7580_s24 + $0x89] sm:$0xff]  ;;  %v4128_v32 = vld [vmem:[%s9007_s1 + $0x240] sm:$0xff] }
  0x74   : > { %5948 = vmatprep.mubr.f32.mxu0 %v2287_v33  ;;  %5385 = vmatmul.mubr.f32.gmra.mrb[6].mxu1 %v462_v34  ;;  %v4129_v33 = vld [vmem:[%s9007_s1 + $0x248] sm:$0xff]  ;;  %v4410_v34 = vld [vmem:[%s9007_s1 + $0x840] sm:$0xff] }
  0x75   : > { %6535 = vmatpush3.bf16.msra.mxu1 %v6532_v25  ;;  %5949 = vmatmul.mubr.f32.gmra.mrb[6].mxu0 %v2288_v36  ;;  %v4409_v25 = vld [vmem:[%s9007_s1 + $0x838] sm:$0xff]  ;;  %v6568_v39 = vpack.c.bf16 %v4129_v33, %v4128_v32  ;;  %v4393_v13 = vld [vmem:[%s7580_s24 + $0x14a] sm:$0xff] }
  0x76   : > { %6919 = vmatpush3.bf16.msra.mxu0 %v6916_v27  ;;  %6537 = vmatprep.subr.bf16.mxu1 %v6536_v35  ;;  %v4370_v27 = vld [vmem:[%s7580_s24 + $0xfa] sm:$0xff]  ;;  %v6948_v31 = vpack.c.bf16 %v4409_v25, %v4408_v24  ;;  %v764_v32 = vld [vmem:[%s7580_s24 + $0x2a] sm:$0xff] }
  0x77   : > { %6921 = vmatprep.subr.bf16.mxu0 %v6920_v37  ;;  %5387 = vmatprep.mubr.f32.mxu1 %v463_v42  ;;  %v4100_v36 = vld [vmem:[%s7580_s24 + $0x99] sm:$0xff]  ;;  %v4130_v42 = vld [vmem:[%s9007_s1 + $0x250] sm:$0xff] }
  0x78   : > { %5951 = vmatprep.mubr.f32.mxu0 %v2289_v43  ;;  %5388 = vmatmul.mubr.f32.gmra.mrb[8].mxu1 %v464_v44  ;;  %v4131_v43 = vld [vmem:[%s9007_s1 + $0x258] sm:$0xff]  ;;  %v4412_v44 = vld [vmem:[%s9007_s1 + $0x850] sm:$0xff] }
  0x79   : > { %6539 = vmatpush3.bf16.msra.mxu1 %v6536_v35  ;;  %5952 = vmatmul.mubr.f32.gmra.mrb[8].mxu0 %v2290_v46  ;;  %v4411_v35 = vld [vmem:[%s9007_s1 + $0x848] sm:$0xff]  ;;  %v6572_v49 = vpack.c.bf16 %v4131_v43, %v4130_v42  ;;  %v4395_v24 = vld [vmem:[%s7580_s24 + $0x15a] sm:$0xff] }
  0x7a   : > { %6923 = vmatpush3.bf16.msra.mxu0 %v6920_v37  ;;  %6541 = vmatprep.subr.bf16.mxu1 %v6540_v45  ;;  %v4372_v37 = vld [vmem:[%s7580_s24 + $0x10a] sm:$0xff]  ;;  %v6952_v41 = vpack.c.bf16 %v4411_v35, %v4410_v34  ;;  %v766_v42 = vld [vmem:[%s7580_s24 + $0x3a] sm:$0xff] }
  0x7b   : > { %6925 = vmatprep.subr.bf16.mxu0 %v6924_v47  ;;  %5422 = vmatprep.mubr.f32.mxu1 %v4094_v52  ;;  %v4102_v46 = vld [vmem:[%s7580_s24 + $0xa9] sm:$0xff]  ;;  %v4132_v52 = vld [vmem:[%s9007_s1 + $0x260] sm:$0xff] }
  0x7c   : > { %5986 = vmatprep.mubr.f32.mxu0 %v4366_v53  ;;  %v4133_v53 = vld [vmem:[%s9007_s1 + $0x268] sm:$0xff] }
  0x7d   : > { %6543 = vmatpush3.bf16.msra.mxu1 %v6540_v45  ;;  %v4413_v45 = vld [vmem:[%s9007_s1 + $0x858] sm:$0xff]  ;;  %v6576_v58 = vpack.c.bf16 %v4133_v53, %v4132_v52  ;;  %v4397_v34 = vld [vmem:[%s7580_s24 + $0x16a] sm:$0xff] }
  0x7e   : > { %6927 = vmatpush3.bf16.msra.mxu0 %v6924_v47  ;;  %6545 = vmatprep.subr.bf16.mxu1 %v6544_v54  ;;  %v4374_v47 = vld [vmem:[%s7580_s24 + $0x11a] sm:$0xff]  ;;  %v6956_v51 = vpack.c.bf16 %v4413_v45, %v4412_v44  ;;  %v768_v52 = vld [vmem:[%s7580_s24 + $0x4a] sm:$0xff] }
  0x7f   : > { %6929 = vmatprep.subr.bf16.mxu0 %v6928_v55  ;;  %v4399_v44 = vld [vmem:[%s7580_s24 + $0x17a] sm:$0xff] }
  0x81   : > { %6547 = vmatpush3.bf16.msra.mxu1 %v6544_v54  ;;  %v4414_v54 = vld [vmem:[%s9007_s1 + $0x860] sm:$0xff] }
  0x82   : > { %6931 = vmatpush3.bf16.msra.mxu0 %v6928_v55  ;;  %6549 = vmatprep.subr.bf16.mxu1 %v6548_v60  ;;  %v4415_v55 = vld [vmem:[%s9007_s1 + $0x868] sm:$0xff] }
  0x83   : > { %6933 = vmatprep.subr.bf16.mxu0 %v6932_v61  ;;  %v6960_v59 = vpack.c.bf16 %v4415_v55, %v4414_v54  ;;  %v4401_v54 = vld [vmem:[%s7580_s24 + $0x18a] sm:$0xff] }
  0x85   : > { %6551 = vmatpush3.bf16.msra.mxu1 %v6548_v60  ;;  %v4134_v60 = vld [vmem:[%s9007_s1 + $0x270] sm:$0xff] }
  0x86   : > { %6935 = vmatpush3.bf16.msra.mxu0 %v6932_v61  ;;  %6553 = vmatprep.subr.bf16.mxu1 %v6552_v2  ;;  %v4135_v61 = vld [vmem:[%s9007_s1 + $0x278] sm:$0xff] }
  0x87   : > { %6937 = vmatprep.subr.bf16.mxu0 %v6936_v3  ;;  %v6580_v0 = vpack.c.bf16 %v4135_v61, %v4134_v60  ;;  %v4136_v60 = vld [vmem:[%s7580_s24 + $0xd0] sm:$0xff]  ;;  %v4418_v61 = vld [vmem:[%s7580_s24 + $0xdb] sm:$0xff] }
  0x88   : > { %5423 = vmatmul.mubr.f32.vlgmr.msra.gmra.mrb[0].mxu1 %v4095_v8  ;;  %v4148_v8 = vld [vmem:[%s9007_s1 + $0x290] sm:$0xff] }
  0x89   : > { %6555 = vmatpush3.bf16.msra.mxu1 %v6552_v2  ;;  %5987 = vmatmul.mubr.f32.vlgmr.msra.gmra.mrb[0].mxu0 %v4367_v9  ;;  %v4146_v2 = vld [vmem:[%s9007_s1 + $0x280] sm:$0xff]  ;;  %v4149_v9 = vld [vmem:[%s9007_s1 + $0x298] sm:$0xff] }
  0x8a   : > { %6939 = vmatpush3.bf16.msra.mxu0 %v6936_v3  ;;  %6557 = vmatprep.subr.bf16.mxu1 %v6556_v10  ;;  %v4147_v3 = vld [vmem:[%s9007_s1 + $0x288] sm:$0xff]  ;;  %v6588_v14 = vpack.c.bf16 %v4149_v9, %v4148_v8  ;;  %v4454_v8 = vld [vmem:[%s9007_s1 + $0x900] sm:$0xff] }
  0x8b   : > { %6941 = vmatprep.subr.bf16.mxu0 %v6940_v11  ;;  %5425 = vmatprep.mubr.f32.mxu1 %v4096_v16  ;;  %v6584_v6 = vpack.c.bf16 %v4147_v3, %v4146_v2  ;;  %v4150_v16 = vld [vmem:[%s9007_s1 + $0x2a0] sm:$0xff]  ;;  %v4442_v2 = vld [vmem:[%s9007_s1 + $0x8f0] sm:$0xff]  ;;  %v4443_v3 = vld [vmem:[%s9007_s1 + $0x8f8] sm:$0xff] }
  0x8c   : > { %5989 = vmatprep.mubr.f32.mxu0 %v4368_v17  ;;  %5426 = vmatmul.mubr.f32.gmra.mrb[2].mxu1 %v4097_v18  ;;  %v4151_v17 = vld [vmem:[%s9007_s1 + $0x2a8] sm:$0xff]  ;;  %v4432_v18 = vld [vmem:[%s9007_s1 + $0x8a0] sm:$0xff]  ;;  %v6996_v5 = vpack.c.bf16 %v4443_v3, %v4442_v2 }
  0x8d   : > { %6559 = vmatpush3.bf16.msra.mxu1 %v6556_v10  ;;  %5990 = vmatmul.mubr.f32.gmra.mrb[2].mxu0 %v4369_v20  ;;  %v4430_v10 = vld [vmem:[%s9007_s1 + $0x890] sm:$0xff]  ;;  %v6592_v23 = vpack.c.bf16 %v4151_v17, %v4150_v16  ;;  %v4455_v9 = vld [vmem:[%s9007_s1 + $0x908] sm:$0xff]  ;;  %v4137_v16 = vld [vmem:[%s7580_s24 + $0xd8] sm:$0xff] }
  0x8e   : > { %6943 = vmatpush3.bf16.msra.mxu0 %v6940_v11  ;;  %6561 = vmatprep.subr.bf16.mxu1 %v6560_v19  ;;  %v4431_v11 = vld [vmem:[%s9007_s1 + $0x898] sm:$0xff]  ;;  %v4419_v17 = vld [vmem:[%s7580_s24 + $0xe3] sm:$0xff] }
  0x8f   : > { %6945 = vmatprep.subr.bf16.mxu0 %v6944_v21  ;;  %5428 = vmatprep.mubr.f32.mxu1 %v4098_v26  ;;  %v6972_v15 = vpack.c.bf16 %v4431_v11, %v4430_v10  ;;  %v761_v20 = vld [vmem:[%s7580_s24 + $0x12] sm:$0xff]  ;;  %v7000_v11 = vpack.c.bf16 %v4455_v9, %v4454_v8 }
  0x90   : > { %5992 = vmatprep.mubr.f32.mxu0 %v4370_v27  ;;  %5429 = vmatmul.mubr.f32.gmra.mrb[4].mxu1 %v4099_v28  ;;  %v4152_v26 = vld [vmem:[%s9007_s1 + $0x2b0] sm:$0xff]  ;;  %v4153_v27 = vld [vmem:[%s9007_s1 + $0x2b8] sm:$0xff] }
  0x91   : > { %6563 = vmatpush3.bf16.msra.mxu1 %v6560_v19  ;;  %5993 = vmatmul.mubr.f32.gmra.mrb[4].mxu0 %v4371_v30  ;;  %v4433_v19 = vld [vmem:[%s9007_s1 + $0x8a8] sm:$0xff]  ;;  %v4434_v28 = vld [vmem:[%s9007_s1 + $0x8b0] sm:$0xff]  ;;  %v6596_v33 = vpack.c.bf16 %v4153_v27, %v4152_v26 }
  0x92   : > { %6947 = vmatpush3.bf16.msra.mxu0 %v6944_v21  ;;  %6565 = vmatprep.subr.bf16.mxu1 %v6564_v29  ;;  %v4394_v21 = vld [vmem:[%s7580_s24 + $0x152] sm:$0xff]  ;;  %v6976_v25 = vpack.c.bf16 %v4433_v19, %v4432_v18  ;;  %v763_v30 = vld [vmem:[%s7580_s24 + $0x22] sm:$0xff] }
  0x93   : > { %6949 = vmatprep.subr.bf16.mxu0 %v6948_v31  ;;  %5431 = vmatprep.mubr.f32.mxu1 %v4100_v36  ;;  %v4154_v36 = vld [vmem:[%s9007_s1 + $0x2c0] sm:$0xff]  ;;  %v4139_v26 = vld [vmem:[%s7580_s24 + $0xe8] sm:$0xff] }
  0x94   : > { %5995 = vmatprep.mubr.f32.mxu0 %v4372_v37  ;;  %5432 = vmatmul.mubr.f32.gmra.mrb[6].mxu1 %v4101_v38  ;;  %v4155_v37 = vld [vmem:[%s9007_s1 + $0x2c8] sm:$0xff]  ;;  %v4436_v38 = vld [vmem:[%s9007_s1 + $0x8c0] sm:$0xff] }
  0x95   : > { %6567 = vmatpush3.bf16.msra.mxu1 %v6564_v29  ;;  %5996 = vmatmul.mubr.f32.gmra.mrb[6].mxu0 %v4373_v40  ;;  %v4435_v29 = vld [vmem:[%s9007_s1 + $0x8b8] sm:$0xff]  ;;  %v6600_v43 = vpack.c.bf16 %v4155_v37, %v4154_v36 }
  0x96   : > { %6951 = vmatpush3.bf16.msra.mxu0 %v6948_v31  ;;  %6569 = vmatprep.subr.bf16.mxu1 %v6568_v39  ;;  %v4396_v31 = vld [vmem:[%s7580_s24 + $0x162] sm:$0xff]  ;;  %v6980_v35 = vpack.c.bf16 %v4435_v29, %v4434_v28  ;;  %v765_v40 = vld [vmem:[%s7580_s24 + $0x32] sm:$0xff] }
  0x97   : > { %6953 = vmatprep.subr.bf16.mxu0 %v6952_v41  ;;  %5434 = vmatprep.mubr.f32.mxu1 %v4102_v46  ;;  %v4156_v46 = vld [vmem:[%s9007_s1 + $0x2d0] sm:$0xff]  ;;  %v4141_v36 = vld [vmem:[%s7580_s24 + $0xf8] sm:$0xff] }
  0x98   : > { %5998 = vmatprep.mubr.f32.mxu0 %v4374_v47  ;;  %5435 = vmatmul.mubr.f32.gmra.mrb[8].mxu1 %v4103_v48  ;;  %v4157_v47 = vld [vmem:[%s9007_s1 + $0x2d8] sm:$0xff]  ;;  %v4438_v48 = vld [vmem:[%s9007_s1 + $0x8d0] sm:$0xff] }
  0x99   : > { %6571 = vmatpush3.bf16.msra.mxu1 %v6568_v39  ;;  %5999 = vmatmul.mubr.f32.gmra.mrb[8].mxu0 %v4375_v50  ;;  %v4437_v39 = vld [vmem:[%s9007_s1 + $0x8c8] sm:$0xff]  ;;  %v6604_v53 = vpack.c.bf16 %v4157_v47, %v4156_v46  ;;  %v4421_v28 = vld [vmem:[%s7580_s24 + $0xf3] sm:$0xff] }
  0x9a   : > { %6955 = vmatpush3.bf16.msra.mxu0 %v6952_v41  ;;  %6573 = vmatprep.subr.bf16.mxu1 %v6572_v49  ;;  %v4398_v41 = vld [vmem:[%s7580_s24 + $0x172] sm:$0xff]  ;;  %v6984_v45 = vpack.c.bf16 %v4437_v39, %v4436_v38  ;;  %v767_v50 = vld [vmem:[%s7580_s24 + $0x42] sm:$0xff] }
  0x9b   : > { %6957 = vmatprep.subr.bf16.mxu0 %v6956_v51  ;;  %5469 = vmatprep.mubr.f32.mxu1 %v759_v56  ;;  %v4158_v56 = vld [vmem:[%s9007_s1 + $0x2e0] sm:$0xff]  ;;  %v4143_v46 = vld [vmem:[%s7580_s24 + $0x108] sm:$0xff] }
  0x9c   : > { %6033 = vmatprep.mubr.f32.mxu0 %v4392_v57  ;;  %v4159_v57 = vld [vmem:[%s9007_s1 + $0x2e8] sm:$0xff] }
  0x9d   : > { %6575 = vmatpush3.bf16.msra.mxu1 %v6572_v49  ;;  %v4439_v49 = vld [vmem:[%s9007_s1 + $0x8d8] sm:$0xff]  ;;  %v6608_v62 = vpack.c.bf16 %v4159_v57, %v4158_v56  ;;  %v4423_v38 = vld [vmem:[%s7580_s24 + $0x103] sm:$0xff] }
  0x9e   : > { %6959 = vmatpush3.bf16.msra.mxu0 %v6956_v51  ;;  %6577 = vmatprep.subr.bf16.mxu1 %v6576_v58  ;;  %v4400_v51 = vld [vmem:[%s7580_s24 + $0x182] sm:$0xff]  ;;  %v6988_v55 = vpack.c.bf16 %v4439_v49, %v4438_v48  ;;  %v4425_v48 = vld [vmem:[%s7580_s24 + $0x113] sm:$0xff] }
  0x9f   : > { %6961 = vmatprep.subr.bf16.mxu0 %v6960_v59  ;;  %v4145_v56 = vld [vmem:[%s7580_s24 + $0x118] sm:$0xff] }
  0xa1   : > { %6579 = vmatpush3.bf16.msra.mxu1 %v6576_v58  ;;  %v4440_v58 = vld [vmem:[%s9007_s1 + $0x8e0] sm:$0xff] }
  0xa2   : > { %6963 = vmatpush3.bf16.msra.mxu0 %v6960_v59  ;;  %6581 = vmatprep.subr.bf16.mxu1 %v6580_v0  ;;  %v4441_v59 = vld [vmem:[%s9007_s1 + $0x8e8] sm:$0xff] }
  0xa3   : > { %6965 = vmatprep.subr.bf16.mxu0 %v6964_v1  ;;  %v6992_v63 = vpack.c.bf16 %v4441_v59, %v4440_v58  ;;  %v4427_v58 = vld [vmem:[%s7580_s24 + $0x123] sm:$0xff] }
  0xa5   : > { %6583 = vmatpush3.bf16.msra.mxu1 %v6580_v0  ;;  %v4160_v0 = vld [vmem:[%s9007_s1 + $0x2f0] sm:$0xff] }
  0xa6   : > { %6967 = vmatpush3.bf16.msra.mxu0 %v6964_v1  ;;  %6585 = vmatprep.subr.bf16.mxu1 %v6584_v6  ;;  %v4161_v1 = vld [vmem:[%s9007_s1 + $0x2f8] sm:$0xff] }
  0xa7   : > { %6969 = vmatprep.subr.bf16.mxu0 %v6968_v7  ;;  %v6612_v4 = vpack.c.bf16 %v4161_v1, %v4160_v0  ;;  %v4162_v0 = vld [vmem:[%s7580_s24 + $0x138] sm:$0xff]  ;;  %v4444_v1 = vld [vmem:[%s7580_s24 + $0x143] sm:$0xff] }
  0xa8   : > { %5470 = vmatmul.mubr.f32.vlgmr.msra.gmra.mrb[0].mxu1 %v760_v12  ;;  %v4174_v12 = vld [vmem:[%s9007_s1 + $0x310] sm:$0xff] }
  0xa9   : > { %6587 = vmatpush3.bf16.msra.mxu1 %v6584_v6  ;;  %6034 = vmatmul.mubr.f32.vlgmr.msra.gmra.mrb[0].mxu0 %v4393_v13  ;;  %v4172_v6 = vld [vmem:[%s9007_s1 + $0x300] sm:$0xff]  ;;  %v4175_v13 = vld [vmem:[%s9007_s1 + $0x318] sm:$0xff] }
  0xaa   : > { %6971 = vmatpush3.bf16.msra.mxu0 %v6968_v7  ;;  %6589 = vmatprep.subr.bf16.mxu1 %v6588_v14  ;;  %v4173_v7 = vld [vmem:[%s9007_s1 + $0x308] sm:$0xff]  ;;  %v6620_v18 = vpack.c.bf16 %v4175_v13, %v4174_v12  ;;  %v4480_v12 = vld [vmem:[%s9007_s1 + $0x980] sm:$0xff] }
  0xab   : > { %6973 = vmatprep.subr.bf16.mxu0 %v6972_v15  ;;  %5472 = vmatprep.mubr.f32.mxu1 %v761_v20  ;;  %v6616_v10 = vpack.c.bf16 %v4173_v7, %v4172_v6  ;;  %v4176_v20 = vld [vmem:[%s9007_s1 + $0x320] sm:$0xff]  ;;  %v4468_v6 = vld [vmem:[%s9007_s1 + $0x970] sm:$0xff]  ;;  %v4469_v7 = vld [vmem:[%s9007_s1 + $0x978] sm:$0xff] }
  0xac   : > { %6036 = vmatprep.mubr.f32.mxu0 %v4394_v21  ;;  %5473 = vmatmul.mubr.f32.gmra.mrb[2].mxu1 %v762_v22  ;;  %v4177_v21 = vld [vmem:[%s9007_s1 + $0x328] sm:$0xff]  ;;  %v4458_v22 = vld [vmem:[%s9007_s1 + $0x920] sm:$0xff]  ;;  %v7028_v9 = vpack.c.bf16 %v4469_v7, %v4468_v6 }
  0xad   : > { %6591 = vmatpush3.bf16.msra.mxu1 %v6588_v14  ;;  %6037 = vmatmul.mubr.f32.gmra.mrb[2].mxu0 %v4395_v24  ;;  %v4456_v14 = vld [vmem:[%s9007_s1 + $0x910] sm:$0xff]  ;;  %v4138_v24 = vld [vmem:[%s7580_s24 + $0xe0] sm:$0xff]  ;;  %v6624_v27 = vpack.c.bf16 %v4177_v21, %v4176_v20  ;;  %v4481_v13 = vld [vmem:[%s9007_s1 + $0x988] sm:$0xff] }
  0xae   : > { %6975 = vmatpush3.bf16.msra.mxu0 %v6972_v15  ;;  %6593 = vmatprep.subr.bf16.mxu1 %v6592_v23  ;;  %v4457_v15 = vld [vmem:[%s9007_s1 + $0x918] sm:$0xff]  ;;  %v4163_v20 = vld [vmem:[%s7580_s24 + $0x140] sm:$0xff]  ;;  %v4445_v21 = vld [vmem:[%s7580_s24 + $0x14b] sm:$0xff] }
  0xaf   : > { %6977 = vmatprep.subr.bf16.mxu0 %v6976_v25  ;;  %5475 = vmatprep.mubr.f32.mxu1 %v763_v30  ;;  %v7004_v19 = vpack.c.bf16 %v4457_v15, %v4456_v14  ;;  %v4178_v30 = vld [vmem:[%s9007_s1 + $0x330] sm:$0xff]  ;;  %v7032_v15 = vpack.c.bf16 %v4481_v13, %v4480_v12 }
  0xb0   : > { %6039 = vmatprep.mubr.f32.mxu0 %v4396_v31  ;;  %5476 = vmatmul.mubr.f32.gmra.mrb[4].mxu1 %v764_v32  ;;  %v4179_v31 = vld [vmem:[%s9007_s1 + $0x338] sm:$0xff]  ;;  %v4460_v32 = vld [vmem:[%s9007_s1 + $0x930] sm:$0xff] }
  0xb1   : > { %6595 = vmatpush3.bf16.msra.mxu1 %v6592_v23  ;;  %6040 = vmatmul.mubr.f32.gmra.mrb[4].mxu0 %v4397_v34  ;;  %v4459_v23 = vld [vmem:[%s9007_s1 + $0x928] sm:$0xff]  ;;  %v4140_v34 = vld [vmem:[%s7580_s24 + $0xf0] sm:$0xff]  ;;  %v6628_v37 = vpack.c.bf16 %v4179_v31, %v4178_v30 }
  0xb2   : > { %6979 = vmatpush3.bf16.msra.mxu0 %v6976_v25  ;;  %6597 = vmatprep.subr.bf16.mxu1 %v6596_v33  ;;  %v4420_v25 = vld [vmem:[%s7580_s24 + $0xeb] sm:$0xff]  ;;  %v7008_v29 = vpack.c.bf16 %v4459_v23, %v4458_v22 }
  0xb3   : > { %6981 = vmatprep.subr.bf16.mxu0 %v6980_v35  ;;  %5478 = vmatprep.mubr.f32.mxu1 %v765_v40  ;;  %v4180_v40 = vld [vmem:[%s9007_s1 + $0x340] sm:$0xff]  ;;  %v4165_v30 = vld [vmem:[%s7580_s24 + $0x150] sm:$0xff] }
  0xb4   : > { %6042 = vmatprep.mubr.f32.mxu0 %v4398_v41  ;;  %5479 = vmatmul.mubr.f32.gmra.mrb[6].mxu1 %v766_v42  ;;  %v4181_v41 = vld [vmem:[%s9007_s1 + $0x348] sm:$0xff]  ;;  %v4462_v42 = vld [vmem:[%s9007_s1 + $0x940] sm:$0xff] }
  0xb5   : > { %6599 = vmatpush3.bf16.msra.mxu1 %v6596_v33  ;;  %6043 = vmatmul.mubr.f32.gmra.mrb[6].mxu0 %v4399_v44  ;;  %v4461_v33 = vld [vmem:[%s9007_s1 + $0x938] sm:$0xff]  ;;  %v4142_v44 = vld [vmem:[%s7580_s24 + $0x100] sm:$0xff]  ;;  %v6632_v47 = vpack.c.bf16 %v4181_v41, %v4180_v40 }
  0xb6   : > { %6983 = vmatpush3.bf16.msra.mxu0 %v6980_v35  ;;  %6601 = vmatprep.subr.bf16.mxu1 %v6600_v43  ;;  %v4422_v35 = vld [vmem:[%s7580_s24 + $0xfb] sm:$0xff]  ;;  %v7012_v39 = vpack.c.bf16 %v4461_v33, %v4460_v32 }
  0xb7   : > { %6985 = vmatprep.subr.bf16.mxu0 %v6984_v45  ;;  %5481 = vmatprep.mubr.f32.mxu1 %v767_v50  ;;  %v4182_v50 = vld [vmem:[%s9007_s1 + $0x350] sm:$0xff]  ;;  %v4447_v32 = vld [vmem:[%s7580_s24 + $0x15b] sm:$0xff] }
  0xb8   : > { %6045 = vmatprep.mubr.f32.mxu0 %v4400_v51  ;;  %5482 = vmatmul.mubr.f32.gmra.mrb[8].mxu1 %v768_v52  ;;  %v4183_v51 = vld [vmem:[%s9007_s1 + $0x358] sm:$0xff]  ;;  %v4464_v52 = vld [vmem:[%s9007_s1 + $0x950] sm:$0xff]  ;;  %v4167_v40 = vld [vmem:[%s7580_s24 + $0x160] sm:$0xff] }
  0xb9   : > { %6603 = vmatpush3.bf16.msra.mxu1 %v6600_v43  ;;  %6046 = vmatmul.mubr.f32.gmra.mrb[8].mxu0 %v4401_v54  ;;  %v4463_v43 = vld [vmem:[%s9007_s1 + $0x948] sm:$0xff]  ;;  %v4144_v54 = vld [vmem:[%s7580_s24 + $0x110] sm:$0xff]  ;;  %v6636_v57 = vpack.c.bf16 %v4183_v51, %v4182_v50 }
  0xba   : > { %6987 = vmatpush3.bf16.msra.mxu0 %v6984_v45  ;;  %6605 = vmatprep.subr.bf16.mxu1 %v6604_v53  ;;  %v4424_v45 = vld [vmem:[%s7580_s24 + $0x10b] sm:$0xff]  ;;  %v7016_v49 = vpack.c.bf16 %v4463_v43, %v4462_v42 }
  0xbb   : > { %6989 = vmatprep.subr.bf16.mxu0 %v6988_v55  ;;  %5516 = vmatprep.mubr.f32.mxu1 %v4136_v60  ;;  %v4184_v60 = vld [vmem:[%s9007_s1 + $0x360] sm:$0xff]  ;;  %v4449_v42 = vld [vmem:[%s7580_s24 + $0x16b] sm:$0xff] }
  0xbc   : > { %6080 = vmatprep.mubr.f32.mxu0 %v4418_v61  ;;  %v4185_v61 = vld [vmem:[%s9007_s1 + $0x368] sm:$0xff]  ;;  %v4169_v50 = vld [vmem:[%s7580_s24 + $0x170] sm:$0xff] }
  0xbd   : > { %6607 = vmatpush3.bf16.msra.mxu1 %v6604_v53  ;;  %v4465_v53 = vld [vmem:[%s9007_s1 + $0x958] sm:$0xff]  ;;  %v6640_v2 = vpack.c.bf16 %v4185_v61, %v4184_v60  ;;  %v4171_v60 = vld [vmem:[%s7580_s24 + $0x180] sm:$0xff] }
  0xbe   : > { %6991 = vmatpush3.bf16.msra.mxu0 %v6988_v55  ;;  %6609 = vmatprep.subr.bf16.mxu1 %v6608_v62  ;;  %v4426_v55 = vld [vmem:[%s7580_s24 + $0x11b] sm:$0xff]  ;;  %v7020_v59 = vpack.c.bf16 %v4465_v53, %v4464_v52 }
  0xbf   : > { %6993 = vmatprep.subr.bf16.mxu0 %v6992_v63  ;;  %v4451_v52 = vld [vmem:[%s7580_s24 + $0x17b] sm:$0xff] }
  0xc1   : > { %6611 = vmatpush3.bf16.msra.mxu1 %v6608_v62  ;;  %v4466_v62 = vld [vmem:[%s9007_s1 + $0x960] sm:$0xff] }
  0xc2   : > { %6995 = vmatpush3.bf16.msra.mxu0 %v6992_v63  ;;  %6613 = vmatprep.subr.bf16.mxu1 %v6612_v4  ;;  %v4467_v63 = vld [vmem:[%s9007_s1 + $0x968] sm:$0xff] }
  0xc3   : > { %6997 = vmatprep.subr.bf16.mxu0 %v6996_v5  ;;  %v7024_v3 = vpack.c.bf16 %v4467_v63, %v4466_v62  ;;  %v4453_v62 = vld [vmem:[%s7580_s24 + $0x18b] sm:$0xff] }
  0xc5   : > { %6615 = vmatpush3.bf16.msra.mxu1 %v6612_v4  ;;  %v4186_v4 = vld [vmem:[%s9007_s1 + $0x370] sm:$0xff] }
  0xc6   : > { %6999 = vmatpush3.bf16.msra.mxu0 %v6996_v5  ;;  %6617 = vmatprep.subr.bf16.mxu1 %v6616_v10  ;;  %v4187_v5 = vld [vmem:[%s9007_s1 + $0x378] sm:$0xff] }
  0xc7   : > { %7001 = vmatprep.subr.bf16.mxu0 %v7000_v11  ;;  %v6644_v8 = vpack.c.bf16 %v4187_v5, %v4186_v4  ;;  %v4188_v4 = vld [vmem:[%s7580_s24 + $0xd1] sm:$0xff]  ;;  %v4470_v5 = vld [vmem:[%s7580_s24 + $0xdc] sm:$0xff] }
  0xc8   : > { %5517 = vmatmul.mubr.f32.vlgmr.msra.gmra.mrb[0].mxu1 %v4137_v16  ;;  %v4200_v16 = vld [vmem:[%s9007_s1 + $0x390] sm:$0xff] }
  0xc9   : > { %6619 = vmatpush3.bf16.msra.mxu1 %v6616_v10  ;;  %6081 = vmatmul.mubr.f32.vlgmr.msra.gmra.mrb[0].mxu0 %v4419_v17  ;;  %v4198_v10 = vld [vmem:[%s9007_s1 + $0x380] sm:$0xff]  ;;  %v4201_v17 = vld [vmem:[%s9007_s1 + $0x398] sm:$0xff] }
  0xca   : > { %7003 = vmatpush3.bf16.msra.mxu0 %v7000_v11  ;;  %6621 = vmatprep.subr.bf16.mxu1 %v6620_v18  ;;  %v4199_v11 = vld [vmem:[%s9007_s1 + $0x388] sm:$0xff]  ;;  %v6652_v22 = vpack.c.bf16 %v4201_v17, %v4200_v16  ;;  %v4496_v16 = vld [vmem:[%s9007_s1 + $0xa00] sm:$0xff] }
  0xcb   : > { %7005 = vmatprep.subr.bf16.mxu0 %v7004_v19  ;;  %5519 = vmatprep.mubr.f32.mxu1 %v4138_v24  ;;  %v6648_v14 = vpack.c.bf16 %v4199_v11, %v4198_v10  ;;  %v4202_v24 = vld [vmem:[%s9007_s1 + $0x3a0] sm:$0xff]  ;;  %v4494_v10 = vld [vmem:[%s9007_s1 + $0x9f0] sm:$0xff]  ;;  %v4495_v11 = vld [vmem:[%s9007_s1 + $0x9f8] sm:$0xff] }
  0xcc   : > { %6083 = vmatprep.mubr.f32.mxu0 %v4420_v25  ;;  %5520 = vmatmul.mubr.f32.gmra.mrb[2].mxu1 %v4139_v26  ;;  %v4203_v25 = vld [vmem:[%s9007_s1 + $0x3a8] sm:$0xff]  ;;  %v4484_v26 = vld [vmem:[%s9007_s1 + $0x9a0] sm:$0xff]  ;;  %v7060_v13 = vpack.c.bf16 %v4495_v11, %v4494_v10 }
  0xcd   : > { %6623 = vmatpush3.bf16.msra.mxu1 %v6620_v18  ;;  %6084 = vmatmul.mubr.f32.gmra.mrb[2].mxu0 %v4421_v28  ;;  %v4482_v18 = vld [vmem:[%s9007_s1 + $0x990] sm:$0xff]  ;;  %v4164_v28 = vld [vmem:[%s7580_s24 + $0x148] sm:$0xff]  ;;  %v6656_v31 = vpack.c.bf16 %v4203_v25, %v4202_v24  ;;  %v4189_v24 = vld [vmem:[%s7580_s24 + $0xd9] sm:$0xff] }
  0xce   : > { %7007 = vmatpush3.bf16.msra.mxu0 %v7004_v19  ;;  %6625 = vmatprep.subr.bf16.mxu1 %v6624_v27  ;;  %v4483_v19 = vld [vmem:[%s9007_s1 + $0x998] sm:$0xff]  ;;  %v4497_v17 = vld [vmem:[%s9007_s1 + $0xa08] sm:$0xff] }
  0xcf   : > { %7009 = vmatprep.subr.bf16.mxu0 %v7008_v29  ;;  %5522 = vmatprep.mubr.f32.mxu1 %v4140_v34  ;;  %v7036_v23 = vpack.c.bf16 %v4483_v19, %v4482_v18  ;;  %v4204_v34 = vld [vmem:[%s9007_s1 + $0x3b0] sm:$0xff]  ;;  %v7064_v19 = vpack.c.bf16 %v4497_v17, %v4496_v16  ;;  %v4471_v25 = vld [vmem:[%s7580_s24 + $0xe4] sm:$0xff] }
  0xd0   : > { %6086 = vmatprep.mubr.f32.mxu0 %v4422_v35  ;;  %5523 = vmatmul.mubr.f32.gmra.mrb[4].mxu1 %v4141_v36  ;;  %v4205_v35 = vld [vmem:[%s9007_s1 + $0x3b8] sm:$0xff]  ;;  %v4486_v36 = vld [vmem:[%s9007_s1 + $0x9b0] sm:$0xff] }
  0xd1   : > { %6627 = vmatpush3.bf16.msra.mxu1 %v6624_v27  ;;  %6087 = vmatmul.mubr.f32.gmra.mrb[4].mxu0 %v4423_v38  ;;  %v4485_v27 = vld [vmem:[%s9007_s1 + $0x9a8] sm:$0xff]  ;;  %v4166_v38 = vld [vmem:[%s7580_s24 + $0x158] sm:$0xff]  ;;  %v6660_v41 = vpack.c.bf16 %v4205_v35, %v4204_v34 }
  0xd2   : > { %7011 = vmatpush3.bf16.msra.mxu0 %v7008_v29  ;;  %6629 = vmatprep.subr.bf16.mxu1 %v6628_v37  ;;  %v4446_v29 = vld [vmem:[%s7580_s24 + $0x153] sm:$0xff]  ;;  %v7040_v33 = vpack.c.bf16 %v4485_v27, %v4484_v26  ;;  %v4191_v34 = vld [vmem:[%s7580_s24 + $0xe9] sm:$0xff] }
  0xd3   : > { %7013 = vmatprep.subr.bf16.mxu0 %v7012_v39  ;;  %5525 = vmatprep.mubr.f32.mxu1 %v4142_v44  ;;  %v4206_v44 = vld [vmem:[%s9007_s1 + $0x3c0] sm:$0xff] }
  0xd4   : > { %6089 = vmatprep.mubr.f32.mxu0 %v4424_v45  ;;  %5526 = vmatmul.mubr.f32.gmra.mrb[6].mxu1 %v4143_v46  ;;  %v4207_v45 = vld [vmem:[%s9007_s1 + $0x3c8] sm:$0xff]  ;;  %v4488_v46 = vld [vmem:[%s9007_s1 + $0x9c0] sm:$0xff] }
  0xd5   : > { %6631 = vmatpush3.bf16.msra.mxu1 %v6628_v37  ;;  %6090 = vmatmul.mubr.f32.gmra.mrb[6].mxu0 %v4425_v48  ;;  %v4487_v37 = vld [vmem:[%s9007_s1 + $0x9b8] sm:$0xff]  ;;  %v4168_v48 = vld [vmem:[%s7580_s24 + $0x168] sm:$0xff]  ;;  %v6664_v51 = vpack.c.bf16 %v4207_v45, %v4206_v44 }
  0xd6   : > { %7015 = vmatpush3.bf16.msra.mxu0 %v7012_v39  ;;  %6633 = vmatprep.subr.bf16.mxu1 %v6632_v47  ;;  %v4448_v39 = vld [vmem:[%s7580_s24 + $0x163] sm:$0xff]  ;;  %v7044_v43 = vpack.c.bf16 %v4487_v37, %v4486_v36  ;;  %v4473_v36 = vld [vmem:[%s7580_s24 + $0xf4] sm:$0xff] }
  0xd7   : > { %7017 = vmatprep.subr.bf16.mxu0 %v7016_v49  ;;  %5528 = vmatprep.mubr.f32.mxu1 %v4144_v54  ;;  %v4208_v54 = vld [vmem:[%s9007_s1 + $0x3d0] sm:$0xff]  ;;  %v4193_v44 = vld [vmem:[%s7580_s24 + $0xf9] sm:$0xff] }
  0xd8   : > { %6092 = vmatprep.mubr.f32.mxu0 %v4426_v55  ;;  %5529 = vmatmul.mubr.f32.gmra.mrb[8].mxu1 %v4145_v56  ;;  %v4209_v55 = vld [vmem:[%s9007_s1 + $0x3d8] sm:$0xff]  ;;  %v4490_v56 = vld [vmem:[%s9007_s1 + $0x9d0] sm:$0xff] }
  0xd9   : > { %6635 = vmatpush3.bf16.msra.mxu1 %v6632_v47  ;;  %6093 = vmatmul.mubr.f32.gmra.mrb[8].mxu0 %v4427_v58  ;;  %v4489_v47 = vld [vmem:[%s9007_s1 + $0x9c8] sm:$0xff]  ;;  %v4170_v58 = vld [vmem:[%s7580_s24 + $0x178] sm:$0xff]  ;;  %v6668_v61 = vpack.c.bf16 %v4209_v55, %v4208_v54 }
  0xda   : > { %7019 = vmatpush3.bf16.msra.mxu0 %v7016_v49  ;;  %6637 = vmatprep.subr.bf16.mxu1 %v6636_v57  ;;  %v4450_v49 = vld [vmem:[%s7580_s24 + $0x173] sm:$0xff]  ;;  %v7048_v53 = vpack.c.bf16 %v4489_v47, %v4488_v46  ;;  %v4475_v46 = vld [vmem:[%s7580_s24 + $0x104] sm:$0xff] }
  0xdb   : > { %7021 = vmatprep.subr.bf16.mxu0 %v7020_v59  ;;  %5563 = vmatprep.mubr.f32.mxu1 %v4162_v0  ;;  %v4210_v0 = vld [vmem:[%s9007_s1 + $0x3e0] sm:$0xff]  ;;  %v4195_v54 = vld [vmem:[%s7580_s24 + $0x109] sm:$0xff] }
  0xdc   : > { %6127 = vmatprep.mubr.f32.mxu0 %v4444_v1  ;;  %v4211_v1 = vld [vmem:[%s9007_s1 + $0x3e8] sm:$0xff] }
  0xdd   : > { %6639 = vmatpush3.bf16.msra.mxu1 %v6636_v57  ;;  %v4491_v57 = vld [vmem:[%s9007_s1 + $0x9d8] sm:$0xff]  ;;  %v6672_v6 = vpack.c.bf16 %v4211_v1, %v4210_v0 }
  0xde   : > { %7023 = vmatpush3.bf16.msra.mxu0 %v7020_v59  ;;  %6641 = vmatprep.subr.bf16.mxu1 %v6640_v2  ;;  %v4452_v59 = vld [vmem:[%s7580_s24 + $0x183] sm:$0xff]  ;;  %v7052_v63 = vpack.c.bf16 %v4491_v57, %v4490_v56  ;;  %v4477_v56 = vld [vmem:[%s7580_s24 + $0x114] sm:$0xff] }
  0xdf   : > { %7025 = vmatprep.subr.bf16.mxu0 %v7024_v3  ;;  %v4197_v0 = vld [vmem:[%s7580_s24 + $0x119] sm:$0xff] }
  0xe1   : > { %6643 = vmatpush3.bf16.msra.mxu1 %v6640_v2  ;;  %v4492_v2 = vld [vmem:[%s9007_s1 + $0x9e0] sm:$0xff] }
  0xe2   : > { %7027 = vmatpush3.bf16.msra.mxu0 %v7024_v3  ;;  %6645 = vmatprep.subr.bf16.mxu1 %v6644_v8  ;;  %v4493_v3 = vld [vmem:[%s9007_s1 + $0x9e8] sm:$0xff] }
  0xe3   : > { %7029 = vmatprep.subr.bf16.mxu0 %v7028_v9  ;;  %v7056_v7 = vpack.c.bf16 %v4493_v3, %v4492_v2  ;;  %v4479_v2 = vld [vmem:[%s7580_s24 + $0x124] sm:$0xff] }
  0xe5   : > { %6647 = vmatpush3.bf16.msra.mxu1 %v6644_v8  ;;  %v4212_v8 = vld [vmem:[%s9007_s1 + $0x3f0] sm:$0xff] }
  0xe6   : > { %7031 = vmatpush3.bf16.msra.mxu0 %v7028_v9  ;;  %6649 = vmatprep.subr.bf16.mxu1 %v6648_v14  ;;  %v4213_v9 = vld [vmem:[%s9007_s1 + $0x3f8] sm:$0xff] }
  0xe7   : > { %7033 = vmatprep.subr.bf16.mxu0 %v7032_v15  ;;  %v6676_v12 = vpack.c.bf16 %v4213_v9, %v4212_v8  ;;  %v4214_v8 = vld [vmem:[%s7580_s24 + $0x139] sm:$0xff] }
  0xe8   : > { %5564 = vmatmul.mubr.f32.vlgmr.msra.gmra.mrb[0].mxu1 %v4163_v20  ;;  %v4226_v20 = vld [vmem:[%s9007_s1 + $0x410] sm:$0xff] }
  0xe9   : > { %6651 = vmatpush3.bf16.msra.mxu1 %v6648_v14  ;;  %6128 = vmatmul.mubr.f32.vlgmr.msra.gmra.mrb[0].mxu0 %v4445_v21  ;;  %v4224_v14 = vld [vmem:[%s9007_s1 + $0x400] sm:$0xff]  ;;  %v4227_v21 = vld [vmem:[%s9007_s1 + $0x418] sm:$0xff] }
  0xea   : > { %7035 = vmatpush3.bf16.msra.mxu0 %v7032_v15  ;;  %6653 = vmatprep.subr.bf16.mxu1 %v6652_v22  ;;  %v4225_v15 = vld [vmem:[%s9007_s1 + $0x408] sm:$0xff]  ;;  %v6684_v26 = vpack.c.bf16 %v4227_v21, %v4226_v20  ;;  %v3193_v9 = vld [vmem:[%s7580_s24 + $0x14] sm:$0xff]  ;;  %v4522_v20 = vld [vmem:[%s9007_s1 + $0xa80] sm:$0xff] }
  0xeb   : > { %7037 = vmatprep.subr.bf16.mxu0 %v7036_v23  ;;  %5566 = vmatprep.mubr.f32.mxu1 %v4164_v28  ;;  %v6680_v18 = vpack.c.bf16 %v4225_v15, %v4224_v14  ;;  %v4228_v28 = vld [vmem:[%s9007_s1 + $0x420] sm:$0xff]  ;;  %v4510_v14 = vld [vmem:[%s9007_s1 + $0xa70] sm:$0xff]  ;;  %v4511_v15 = vld [vmem:[%s9007_s1 + $0xa78] sm:$0xff] }
  0xec   : > { %6130 = vmatprep.mubr.f32.mxu0 %v4446_v29  ;;  %5567 = vmatmul.mubr.f32.gmra.mrb[2].mxu1 %v4165_v30  ;;  %v4229_v29 = vld [vmem:[%s9007_s1 + $0x428] sm:$0xff]  ;;  %v4500_v30 = vld [vmem:[%s9007_s1 + $0xa20] sm:$0xff]  ;;  %v7092_v17 = vpack.c.bf16 %v4511_v15, %v4510_v14 }
  0xed   : > { %6655 = vmatpush3.bf16.msra.mxu1 %v6652_v22  ;;  %6131 = vmatmul.mubr.f32.gmra.mrb[2].mxu0 %v4447_v32  ;;  %v4498_v22 = vld [vmem:[%s9007_s1 + $0xa10] sm:$0xff]  ;;  %v4190_v32 = vld [vmem:[%s7580_s24 + $0xe1] sm:$0xff]  ;;  %v6688_v35 = vpack.c.bf16 %v4229_v29, %v4228_v28 }
  0xee   : > { %7039 = vmatpush3.bf16.msra.mxu0 %v7036_v23  ;;  %6657 = vmatprep.subr.bf16.mxu1 %v6656_v31  ;;  %v4499_v23 = vld [vmem:[%s9007_s1 + $0xa18] sm:$0xff]  ;;  %v4523_v21 = vld [vmem:[%s9007_s1 + $0xa88] sm:$0xff] }
  0xef   : > { %7041 = vmatprep.subr.bf16.mxu0 %v7040_v33  ;;  %5569 = vmatprep.mubr.f32.mxu1 %v4166_v38  ;;  %v7068_v27 = vpack.c.bf16 %v4499_v23, %v4498_v22  ;;  %v4230_v38 = vld [vmem:[%s9007_s1 + $0x430] sm:$0xff]  ;;  %v7096_v23 = vpack.c.bf16 %v4523_v21, %v4522_v20  ;;  %v4215_v28 = vld [vmem:[%s7580_s24 + $0x141] sm:$0xff] }
  0xf0   : > { %6133 = vmatprep.mubr.f32.mxu0 %v4448_v39  ;;  %5570 = vmatmul.mubr.f32.gmra.mrb[4].mxu1 %v4167_v40  ;;  %v4231_v39 = vld [vmem:[%s9007_s1 + $0x438] sm:$0xff]  ;;  %v4502_v40 = vld [vmem:[%s9007_s1 + $0xa30] sm:$0xff] }
  0xf1   : > { %6659 = vmatpush3.bf16.msra.mxu1 %v6656_v31  ;;  %6134 = vmatmul.mubr.f32.gmra.mrb[4].mxu0 %v4449_v42  ;;  %v4501_v31 = vld [vmem:[%s9007_s1 + $0xa28] sm:$0xff]  ;;  %v4192_v42 = vld [vmem:[%s7580_s24 + $0xf1] sm:$0xff]  ;;  %v6692_v45 = vpack.c.bf16 %v4231_v39, %v4230_v38  ;;  %v3194_v29 = vld [vmem:[%s7580_s24 + $0x1c] sm:$0xff] }
  0xf2   : > { %7043 = vmatpush3.bf16.msra.mxu0 %v7040_v33  ;;  %6661 = vmatprep.subr.bf16.mxu1 %v6660_v41  ;;  %v4472_v33 = vld [vmem:[%s7580_s24 + $0xec] sm:$0xff]  ;;  %v7072_v37 = vpack.c.bf16 %v4501_v31, %v4500_v30 }
  0xf3   : > { %7045 = vmatprep.subr.bf16.mxu0 %v7044_v43  ;;  %5572 = vmatprep.mubr.f32.mxu1 %v4168_v48  ;;  %v4232_v48 = vld [vmem:[%s9007_s1 + $0x440] sm:$0xff]  ;;  %v4217_v38 = vld [vmem:[%s7580_s24 + $0x151] sm:$0xff] }
  0xf4   : > { %6136 = vmatprep.mubr.f32.mxu0 %v4450_v49  ;;  %5573 = vmatmul.mubr.f32.gmra.mrb[6].mxu1 %v4169_v50  ;;  %v4233_v49 = vld [vmem:[%s9007_s1 + $0x448] sm:$0xff]  ;;  %v4504_v50 = vld [vmem:[%s9007_s1 + $0xa40] sm:$0xff] }
  0xf5   : > { %6663 = vmatpush3.bf16.msra.mxu1 %v6660_v41  ;;  %6137 = vmatmul.mubr.f32.gmra.mrb[6].mxu0 %v4451_v52  ;;  %v4503_v41 = vld [vmem:[%s9007_s1 + $0xa38] sm:$0xff]  ;;  %v4194_v52 = vld [vmem:[%s7580_s24 + $0x101] sm:$0xff]  ;;  %v6696_v55 = vpack.c.bf16 %v4233_v49, %v4232_v48 }
  0xf6   : > { %7047 = vmatpush3.bf16.msra.mxu0 %v7044_v43  ;;  %6665 = vmatprep.subr.bf16.mxu1 %v6664_v51  ;;  %v4474_v43 = vld [vmem:[%s7580_s24 + $0xfc] sm:$0xff]  ;;  %v7076_v47 = vpack.c.bf16 %v4503_v41, %v4502_v40  ;;  %v3196_v40 = vld [vmem:[%s7580_s24 + $0x2c] sm:$0xff] }
  0xf7   : > { %7049 = vmatprep.subr.bf16.mxu0 %v7048_v53  ;;  %5575 = vmatprep.mubr.f32.mxu1 %v4170_v58  ;;  %v4234_v58 = vld [vmem:[%s9007_s1 + $0x450] sm:$0xff]  ;;  %v4219_v48 = vld [vmem:[%s7580_s24 + $0x161] sm:$0xff] }
  0xf8   : > { %6139 = vmatprep.mubr.f32.mxu0 %v4452_v59  ;;  %5576 = vmatmul.mubr.f32.gmra.mrb[8].mxu1 %v4171_v60  ;;  %v4235_v59 = vld [vmem:[%s9007_s1 + $0x458] sm:$0xff]  ;;  %v4506_v60 = vld [vmem:[%s9007_s1 + $0xa50] sm:$0xff] }
  0xf9   : > { %6667 = vmatpush3.bf16.msra.mxu1 %v6664_v51  ;;  %6140 = vmatmul.mubr.f32.gmra.mrb[8].mxu0 %v4453_v62  ;;  %v4505_v51 = vld [vmem:[%s9007_s1 + $0xa48] sm:$0xff]  ;;  %v4196_v62 = vld [vmem:[%s7580_s24 + $0x111] sm:$0xff]  ;;  %v6700_v1 = vpack.c.bf16 %v4235_v59, %v4234_v58 }
  0xfa   : > { %7051 = vmatpush3.bf16.msra.mxu0 %v7048_v53  ;;  %6669 = vmatprep.subr.bf16.mxu1 %v6668_v61  ;;  %v4476_v53 = vld [vmem:[%s7580_s24 + $0x10c] sm:$0xff]  ;;  %v7080_v57 = vpack.c.bf16 %v4505_v51, %v4504_v50  ;;  %v3198_v50 = vld [vmem:[%s7580_s24 + $0x3c] sm:$0xff] }
  0xfb   : > { %7053 = vmatprep.subr.bf16.mxu0 %v7052_v63  ;;  %5610 = vmatprep.mubr.f32.mxu1 %v4188_v4  ;;  %v4236_v4 = vld [vmem:[%s9007_s1 + $0x460] sm:$0xff]  ;;  %v4221_v58 = vld [vmem:[%s7580_s24 + $0x171] sm:$0xff] }
  0xfc   : > { %6174 = vmatprep.mubr.f32.mxu0 %v4470_v5  ;;  %v4237_v5 = vld [vmem:[%s9007_s1 + $0x468] sm:$0xff] }
  0xfd   : > { %6671 = vmatpush3.bf16.msra.mxu1 %v6668_v61  ;;  %v4507_v61 = vld [vmem:[%s9007_s1 + $0xa58] sm:$0xff]  ;;  %v6704_v10 = vpack.c.bf16 %v4237_v5, %v4236_v4  ;;  %v4223_v4 = vld [vmem:[%s7580_s24 + $0x181] sm:$0xff] }
  0xfe   : > { %7055 = vmatpush3.bf16.msra.mxu0 %v7052_v63  ;;  %6673 = vmatprep.subr.bf16.mxu1 %v6672_v6  ;;  %v4478_v63 = vld [vmem:[%s7580_s24 + $0x11c] sm:$0xff]  ;;  %v7084_v3 = vpack.c.bf16 %v4507_v61, %v4506_v60  ;;  %v3200_v60 = vld [vmem:[%s7580_s24 + $0x4c] sm:$0xff] }
  0xff   : > { %7057 = vmatprep.subr.bf16.mxu0 %v7056_v7 }
 0x101   : > { %6675 = vmatpush3.bf16.msra.mxu1 %v6672_v6  ;;  %v4508_v6 = vld [vmem:[%s9007_s1 + $0xa60] sm:$0xff] }
 0x102   : > { %7059 = vmatpush3.bf16.msra.mxu0 %v7056_v7  ;;  %6677 = vmatprep.subr.bf16.mxu1 %v6676_v12  ;;  %v4509_v7 = vld [vmem:[%s9007_s1 + $0xa68] sm:$0xff] }
 0x103   : > { %7061 = vmatprep.subr.bf16.mxu0 %v7060_v13  ;;  %v7088_v11 = vpack.c.bf16 %v4509_v7, %v4508_v6  ;;  %v3202_v6 = vld [vmem:[%s7580_s24 + $0x5c] sm:$0xff] }
 0x105   : > { %6679 = vmatpush3.bf16.msra.mxu1 %v6676_v12  ;;  %v4238_v12 = vld [vmem:[%s9007_s1 + $0x470] sm:$0xff] }
 0x106   : > { %7063 = vmatpush3.bf16.msra.mxu0 %v7060_v13  ;;  %6681 = vmatprep.subr.bf16.mxu1 %v6680_v18  ;;  %v4239_v13 = vld [vmem:[%s9007_s1 + $0x478] sm:$0xff] }
 0x107   : > { %7065 = vmatprep.subr.bf16.mxu0 %v7064_v19  ;;  %v6708_v16 = vpack.c.bf16 %v4239_v13, %v4238_v12  ;;  %v4240_v12 = vld [vmem:[%s7580_s24 + $0xd2] sm:$0xff]  ;;  %v4512_v13 = vld [vmem:[%s7580_s24 + $0x7c] sm:$0xff] }
 0x108   : > { %5611 = vmatmul.mubr.f32.vlgmr.msra.gmra.mrb[0].mxu1 %v4189_v24  ;;  %v4252_v24 = vld [vmem:[%s9007_s1 + $0x490] sm:$0xff] }
 0x109   : > { %6683 = vmatpush3.bf16.msra.mxu1 %v6680_v18  ;;  %6175 = vmatmul.mubr.f32.vlgmr.msra.gmra.mrb[0].mxu0 %v4471_v25  ;;  %v4250_v18 = vld [vmem:[%s9007_s1 + $0x480] sm:$0xff]  ;;  %v4253_v25 = vld [vmem:[%s9007_s1 + $0x498] sm:$0xff] }
 0x10a   : > { %7067 = vmatpush3.bf16.msra.mxu0 %v7064_v19  ;;  %6685 = vmatprep.subr.bf16.mxu1 %v6684_v26  ;;  %v4251_v19 = vld [vmem:[%s9007_s1 + $0x488] sm:$0xff]  ;;  %v6716_v30 = vpack.c.bf16 %v4253_v25, %v4252_v24  ;;  %v4538_v24 = vld [vmem:[%s9007_s1 + $0xb00] sm:$0xff] }
 0x10b   : > { %7069 = vmatprep.subr.bf16.mxu0 %v7068_v27  ;;  %5613 = vmatprep.mubr.f32.mxu1 %v4190_v32  ;;  %v6712_v22 = vpack.c.bf16 %v4251_v19, %v4250_v18  ;;  %v4254_v32 = vld [vmem:[%s9007_s1 + $0x4a0] sm:$0xff]  ;;  %v4536_v18 = vld [vmem:[%s9007_s1 + $0xaf0] sm:$0xff]  ;;  %v4537_v19 = vld [vmem:[%s9007_s1 + $0xaf8] sm:$0xff] }
 0x10c   : > { %6177 = vmatprep.mubr.f32.mxu0 %v4472_v33  ;;  %5614 = vmatmul.mubr.f32.gmra.mrb[2].mxu1 %v4191_v34  ;;  %v4255_v33 = vld [vmem:[%s9007_s1 + $0x4a8] sm:$0xff]  ;;  %v4526_v34 = vld [vmem:[%s9007_s1 + $0xaa0] sm:$0xff]  ;;  %v7124_v21 = vpack.c.bf16 %v4537_v19, %v4536_v18 }
 0x10d   : > { %6687 = vmatpush3.bf16.msra.mxu1 %v6684_v26  ;;  %6178 = vmatmul.mubr.f32.gmra.mrb[2].mxu0 %v4473_v36  ;;  %v4524_v26 = vld [vmem:[%s9007_s1 + $0xa90] sm:$0xff]  ;;  %v6720_v39 = vpack.c.bf16 %v4255_v33, %v4254_v32  ;;  %v4539_v25 = vld [vmem:[%s9007_s1 + $0xb08] sm:$0xff]  ;;  %v4241_v32 = vld [vmem:[%s7580_s24 + $0xda] sm:$0xff] }
 0x10e   : > { %7071 = vmatpush3.bf16.msra.mxu0 %v7068_v27  ;;  %6689 = vmatprep.subr.bf16.mxu1 %v6688_v35  ;;  %v4525_v27 = vld [vmem:[%s9007_s1 + $0xa98] sm:$0xff]  ;;  %v4216_v36 = vld [vmem:[%s7580_s24 + $0x149] sm:$0xff] }
 0x10f   : > { %7073 = vmatprep.subr.bf16.mxu0 %v7072_v37  ;;  %5616 = vmatprep.mubr.f32.mxu1 %v4192_v42  ;;  %v7100_v31 = vpack.c.bf16 %v4525_v27, %v4524_v26  ;;  %v4256_v42 = vld [vmem:[%s9007_s1 + $0x4b0] sm:$0xff]  ;;  %v7128_v27 = vpack.c.bf16 %v4539_v25, %v4538_v24  ;;  %v4513_v33 = vld [vmem:[%s7580_s24 + $0x84] sm:$0xff] }
 0x110   : > { %6180 = vmatprep.mubr.f32.mxu0 %v4474_v43  ;;  %5617 = vmatmul.mubr.f32.gmra.mrb[4].mxu1 %v4193_v44  ;;  %v4257_v43 = vld [vmem:[%s9007_s1 + $0x4b8] sm:$0xff]  ;;  %v4528_v44 = vld [vmem:[%s9007_s1 + $0xab0] sm:$0xff] }
 0x111   : > { %6691 = vmatpush3.bf16.msra.mxu1 %v6688_v35  ;;  %6181 = vmatmul.mubr.f32.gmra.mrb[4].mxu0 %v4475_v46  ;;  %v4527_v35 = vld [vmem:[%s9007_s1 + $0xaa8] sm:$0xff]  ;;  %v4218_v46 = vld [vmem:[%s7580_s24 + $0x159] sm:$0xff]  ;;  %v6724_v49 = vpack.c.bf16 %v4257_v43, %v4256_v42 }
 0x112   : > { %7075 = vmatpush3.bf16.msra.mxu0 %v7072_v37  ;;  %6693 = vmatprep.subr.bf16.mxu1 %v6692_v45  ;;  %v3195_v37 = vld [vmem:[%s7580_s24 + $0x24] sm:$0xff]  ;;  %v7104_v41 = vpack.c.bf16 %v4527_v35, %v4526_v34 }
 0x113   : > { %7077 = vmatprep.subr.bf16.mxu0 %v7076_v47  ;;  %5619 = vmatprep.mubr.f32.mxu1 %v4194_v52  ;;  %v4258_v52 = vld [vmem:[%s9007_s1 + $0x4c0] sm:$0xff]  ;;  %v4243_v42 = vld [vmem:[%s7580_s24 + $0xea] sm:$0xff] }
 0x114   : > { %6183 = vmatprep.mubr.f32.mxu0 %v4476_v53  ;;  %5620 = vmatmul.mubr.f32.gmra.mrb[6].mxu1 %v4195_v54  ;;  %v4259_v53 = vld [vmem:[%s9007_s1 + $0x4c8] sm:$0xff]  ;;  %v4530_v54 = vld [vmem:[%s9007_s1 + $0xac0] sm:$0xff] }
 0x115   : > { %6695 = vmatpush3.bf16.msra.mxu1 %v6692_v45  ;;  %6184 = vmatmul.mubr.f32.gmra.mrb[6].mxu0 %v4477_v56  ;;  %v4529_v45 = vld [vmem:[%s9007_s1 + $0xab8] sm:$0xff]  ;;  %v4220_v56 = vld [vmem:[%s7580_s24 + $0x169] sm:$0xff]  ;;  %v6728_v59 = vpack.c.bf16 %v4259_v53, %v4258_v52 }
 0x116   : > { %7079 = vmatpush3.bf16.msra.mxu0 %v7076_v47  ;;  %6697 = vmatprep.subr.bf16.mxu1 %v6696_v55  ;;  %v3197_v47 = vld [vmem:[%s7580_s24 + $0x34] sm:$0xff]  ;;  %v7108_v51 = vpack.c.bf16 %v4529_v45, %v4528_v44 }
 0x117   : > { %7081 = vmatprep.subr.bf16.mxu0 %v7080_v57  ;;  %5622 = vmatprep.mubr.f32.mxu1 %v4196_v62  ;;  %v4260_v62 = vld [vmem:[%s9007_s1 + $0x4d0] sm:$0xff]  ;;  %v4245_v52 = vld [vmem:[%s7580_s24 + $0xfa] sm:$0xff] }
 0x118   : > { %6186 = vmatprep.mubr.f32.mxu0 %v4478_v63  ;;  %5623 = vmatmul.mubr.f32.gmra.mrb[8].mxu1 %v4197_v0  ;;  %v4261_v63 = vld [vmem:[%s9007_s1 + $0x4d8] sm:$0xff]  ;;  %v4532_v0 = vld [vmem:[%s9007_s1 + $0xad0] sm:$0xff] }
 0x119   : > { %6699 = vmatpush3.bf16.msra.mxu1 %v6696_v55  ;;  %6187 = vmatmul.mubr.f32.gmra.mrb[8].mxu0 %v4479_v2  ;;  %v4531_v55 = vld [vmem:[%s9007_s1 + $0xac8] sm:$0xff]  ;;  %v4222_v2 = vld [vmem:[%s7580_s24 + $0x179] sm:$0xff]  ;;  %v6732_v5 = vpack.c.bf16 %v4261_v63, %v4260_v62 }
 0x11a   : > { %7083 = vmatpush3.bf16.msra.mxu0 %v7080_v57  ;;  %6701 = vmatprep.subr.bf16.mxu1 %v6700_v1  ;;  %v3199_v57 = vld [vmem:[%s7580_s24 + $0x44] sm:$0xff]  ;;  %v7112_v61 = vpack.c.bf16 %v4531_v55, %v4530_v54  ;;  %v4515_v44 = vld [vmem:[%s7580_s24 + $0x94] sm:$0xff] }
 0x11b   : > { %7085 = vmatprep.subr.bf16.mxu0 %v7084_v3  ;;  %5657 = vmatprep.mubr.f32.mxu1 %v4214_v8  ;;  %v4262_v8 = vld [vmem:[%s9007_s1 + $0x4e0] sm:$0xff]  ;;  %v4247_v62 = vld [vmem:[%s7580_s24 + $0x10a] sm:$0xff] }
 0x11c   : > { %6221 = vmatprep.mubr.f32.mxu0 %v3193_v9  ;;  %v4263_v9 = vld [vmem:[%s9007_s1 + $0x4e8] sm:$0xff] }
 0x11d   : > { %6703 = vmatpush3.bf16.msra.mxu1 %v6700_v1  ;;  %v4533_v1 = vld [vmem:[%s9007_s1 + $0xad8] sm:$0xff]  ;;  %v6736_v14 = vpack.c.bf16 %v4263_v9, %v4262_v8  ;;  %v4517_v54 = vld [vmem:[%s7580_s24 + $0xa4] sm:$0xff] }
 0x11e   : > { %7087 = vmatpush3.bf16.msra.mxu0 %v7084_v3  ;;  %6705 = vmatprep.subr.bf16.mxu1 %v6704_v10  ;;  %v3201_v3 = vld [vmem:[%s7580_s24 + $0x54] sm:$0xff]  ;;  %v7116_v7 = vpack.c.bf16 %v4533_v1, %v4532_v0 }
 0x11f   : > { %7089 = vmatprep.subr.bf16.mxu0 %v7088_v11  ;;  %v4519_v0 = vld [vmem:[%s7580_s24 + $0xb4] sm:$0xff] }
 0x120   : > { %v4249_v8 = vld [vmem:[%s7580_s24 + $0x11a] sm:$0xff] }
 0x121   : > { %6707 = vmatpush3.bf16.msra.mxu1 %v6704_v10  ;;  %v4534_v10 = vld [vmem:[%s9007_s1 + $0xae0] sm:$0xff] }
 0x122   : > { %7091 = vmatpush3.bf16.msra.mxu0 %v7088_v11  ;;  %6709 = vmatprep.subr.bf16.mxu1 %v6708_v16  ;;  %v4535_v11 = vld [vmem:[%s9007_s1 + $0xae8] sm:$0xff] }
 0x123   : > { %7093 = vmatprep.subr.bf16.mxu0 %v7092_v17  ;;  %v7120_v15 = vpack.c.bf16 %v4535_v11, %v4534_v10  ;;  %v4521_v10 = vld [vmem:[%s7580_s24 + $0xc4] sm:$0xff] }
 0x125   : > { %6711 = vmatpush3.bf16.msra.mxu1 %v6708_v16  ;;  %v4264_v16 = vld [vmem:[%s9007_s1 + $0x4f0] sm:$0xff] }
 0x126   : > { %7095 = vmatpush3.bf16.msra.mxu0 %v7092_v17  ;;  %6713 = vmatprep.subr.bf16.mxu1 %v6712_v22  ;;  %v4265_v17 = vld [vmem:[%s9007_s1 + $0x4f8] sm:$0xff] }
 0x127   : > { %7097 = vmatprep.subr.bf16.mxu0 %v7096_v23  ;;  %v6740_v20 = vpack.c.bf16 %v4265_v17, %v4264_v16  ;;  %v1673_v16 = vld [vmem:[%s7580_s24 + $0xa] sm:$0xff]  ;;  %v3497_v17 = vld [vmem:[%s7580_s24 + $0x15] sm:$0xff] }
 0x128   : > { %5658 = vmatmul.mubr.f32.vlgmr.msra.gmra.mrb[0].mxu1 %v4215_v28  ;;  %v4268_v28 = vld [vmem:[%s9007_s1 + $0x510] sm:$0xff] }
 0x129   : > { %6715 = vmatpush3.bf16.msra.mxu1 %v6712_v22  ;;  %6222 = vmatmul.mubr.f32.vlgmr.msra.gmra.mrb[0].mxu0 %v3194_v29  ;;  %v4266_v22 = vld [vmem:[%s9007_s1 + $0x500] sm:$0xff]  ;;  %v4269_v29 = vld [vmem:[%s9007_s1 + $0x518] sm:$0xff] }
 0x12a   : > { %7099 = vmatpush3.bf16.msra.mxu0 %v7096_v23  ;;  %6717 = vmatprep.subr.bf16.mxu1 %v6716_v30  ;;  %v4267_v23 = vld [vmem:[%s9007_s1 + $0x508] sm:$0xff]  ;;  %v6748_v34 = vpack.c.bf16 %v4269_v29, %v4268_v28  ;;  %v4564_v28 = vld [vmem:[%s9007_s1 + $0xb80] sm:$0xff] }
 0x12b   : > { %7101 = vmatprep.subr.bf16.mxu0 %v7100_v31  ;;  %5660 = vmatprep.mubr.f32.mxu1 %v4216_v36  ;;  %v6744_v26 = vpack.c.bf16 %v4267_v23, %v4266_v22  ;;  %v4270_v36 = vld [vmem:[%s9007_s1 + $0x520] sm:$0xff]  ;;  %v4552_v22 = vld [vmem:[%s9007_s1 + $0xb70] sm:$0xff]  ;;  %v4553_v23 = vld [vmem:[%s9007_s1 + $0xb78] sm:$0xff] }
 0x12c   : > { %6224 = vmatprep.mubr.f32.mxu0 %v3195_v37  ;;  %5661 = vmatmul.mubr.f32.gmra.mrb[2].mxu1 %v4217_v38  ;;  %v4271_v37 = vld [vmem:[%s9007_s1 + $0x528] sm:$0xff]  ;;  %v4542_v38 = vld [vmem:[%s9007_s1 + $0xb20] sm:$0xff]  ;;  %v7156_v25 = vpack.c.bf16 %v4553_v23, %v4552_v22 }
 0x12d   : > { %6719 = vmatpush3.bf16.msra.mxu1 %v6716_v30  ;;  %6225 = vmatmul.mubr.f32.gmra.mrb[2].mxu0 %v3196_v40  ;;  %v4540_v30 = vld [vmem:[%s9007_s1 + $0xb10] sm:$0xff]  ;;  %v4242_v40 = vld [vmem:[%s7580_s24 + $0xe2] sm:$0xff]  ;;  %v6752_v43 = vpack.c.bf16 %v4271_v37, %v4270_v36 }
 0x12e   : > { %7103 = vmatpush3.bf16.msra.mxu0 %v7100_v31  ;;  %6721 = vmatprep.subr.bf16.mxu1 %v6720_v39  ;;  %v4541_v31 = vld [vmem:[%s9007_s1 + $0xb18] sm:$0xff]  ;;  %v4565_v29 = vld [vmem:[%s9007_s1 + $0xb88] sm:$0xff] }
 0x12f   : > { %7105 = vmatprep.subr.bf16.mxu0 %v7104_v41  ;;  %5663 = vmatprep.mubr.f32.mxu1 %v4218_v46  ;;  %v7132_v35 = vpack.c.bf16 %v4541_v31, %v4540_v30  ;;  %v4272_v46 = vld [vmem:[%s9007_s1 + $0x530] sm:$0xff]  ;;  %v7160_v31 = vpack.c.bf16 %v4565_v29, %v4564_v28  ;;  %v3498_v37 = vld [vmem:[%s7580_s24 + $0x1d] sm:$0xff] }
 0x130   : > { %6227 = vmatprep.mubr.f32.mxu0 %v3197_v47  ;;  %5664 = vmatmul.mubr.f32.gmra.mrb[4].mxu1 %v4219_v48  ;;  %v4273_v47 = vld [vmem:[%s9007_s1 + $0x538] sm:$0xff]  ;;  %v4544_v48 = vld [vmem:[%s9007_s1 + $0xb30] sm:$0xff] }
 0x131   : > { %6723 = vmatpush3.bf16.msra.mxu1 %v6720_v39  ;;  %6228 = vmatmul.mubr.f32.gmra.mrb[4].mxu0 %v3198_v50  ;;  %v4543_v39 = vld [vmem:[%s9007_s1 + $0xb28] sm:$0xff]  ;;  %v4244_v50 = vld [vmem:[%s7580_s24 + $0xf2] sm:$0xff]  ;;  %v6756_v53 = vpack.c.bf16 %v4273_v47, %v4272_v46 }
 0x132   : > { %7107 = vmatpush3.bf16.msra.mxu0 %v7104_v41  ;;  %6725 = vmatprep.subr.bf16.mxu1 %v6724_v49  ;;  %v4514_v41 = vld [vmem:[%s7580_s24 + $0x8c] sm:$0xff]  ;;  %v7136_v45 = vpack.c.bf16 %v4543_v39, %v4542_v38  ;;  %v1676_v46 = vld [vmem:[%s7580_s24 + $0x22] sm:$0xff] }
 0x133   : > { %7109 = vmatprep.subr.bf16.mxu0 %v7108_v51  ;;  %5666 = vmatprep.mubr.f32.mxu1 %v4220_v56  ;;  %v4274_v56 = vld [vmem:[%s9007_s1 + $0x540] sm:$0xff]  ;;  %v1674_v36 = vld [vmem:[%s7580_s24 + $0x12] sm:$0xff] }
 0x134   : > { %6230 = vmatprep.mubr.f32.mxu0 %v3199_v57  ;;  %5667 = vmatmul.mubr.f32.gmra.mrb[6].mxu1 %v4221_v58  ;;  %v4275_v57 = vld [vmem:[%s9007_s1 + $0x548] sm:$0xff]  ;;  %v4546_v58 = vld [vmem:[%s9007_s1 + $0xb40] sm:$0xff] }
 0x135   : > { %6727 = vmatpush3.bf16.msra.mxu1 %v6724_v49  ;;  %6231 = vmatmul.mubr.f32.gmra.mrb[6].mxu0 %v3200_v60  ;;  %v4545_v49 = vld [vmem:[%s9007_s1 + $0xb38] sm:$0xff]  ;;  %v4246_v60 = vld [vmem:[%s7580_s24 + $0x102] sm:$0xff]  ;;  %v6760_v63 = vpack.c.bf16 %v4275_v57, %v4274_v56 }
 0x136   : > { %7111 = vmatpush3.bf16.msra.mxu0 %v7108_v51  ;;  %6729 = vmatprep.subr.bf16.mxu1 %v6728_v59  ;;  %v4516_v51 = vld [vmem:[%s7580_s24 + $0x9c] sm:$0xff]  ;;  %v7140_v55 = vpack.c.bf16 %v4545_v49, %v4544_v48  ;;  %v3500_v48 = vld [vmem:[%s7580_s24 + $0x2d] sm:$0xff] }
 0x137   : > { %7113 = vmatprep.subr.bf16.mxu0 %v7112_v61  ;;  %5669 = vmatprep.mubr.f32.mxu1 %v4222_v2  ;;  %v4276_v2 = vld [vmem:[%s9007_s1 + $0x550] sm:$0xff] }
 0x138   : > { %6233 = vmatprep.mubr.f32.mxu0 %v3201_v3  ;;  %5670 = vmatmul.mubr.f32.gmra.mrb[8].mxu1 %v4223_v4  ;;  %v4277_v3 = vld [vmem:[%s9007_s1 + $0x558] sm:$0xff]  ;;  %v4548_v4 = vld [vmem:[%s9007_s1 + $0xb50] sm:$0xff] }
 0x139   : > { %6731 = vmatpush3.bf16.msra.mxu1 %v6728_v59  ;;  %6234 = vmatmul.mubr.f32.gmra.mrb[8].mxu0 %v3202_v6  ;;  %v4547_v59 = vld [vmem:[%s9007_s1 + $0xb48] sm:$0xff]  ;;  %v4248_v6 = vld [vmem:[%s7580_s24 + $0x112] sm:$0xff]  ;;  %v6764_v9 = vpack.c.bf16 %v4277_v3, %v4276_v2 }
 0x13a   : > { %7115 = vmatpush3.bf16.msra.mxu0 %v7112_v61  ;;  %6733 = vmatprep.subr.bf16.mxu1 %v6732_v5  ;;  %v4518_v61 = vld [vmem:[%s7580_s24 + $0xac] sm:$0xff]  ;;  %v7144_v1 = vpack.c.bf16 %v4547_v59, %v4546_v58  ;;  %v3502_v58 = vld [vmem:[%s7580_s24 + $0x3d] sm:$0xff] }
 0x13b   : > { %7117 = vmatprep.subr.bf16.mxu0 %v7116_v7  ;;  %5704 = vmatprep.mubr.f32.mxu1 %v4240_v12  ;;  %v4278_v12 = vld [vmem:[%s9007_s1 + $0x560] sm:$0xff]  ;;  %v1678_v56 = vld [vmem:[%s7580_s24 + $0x32] sm:$0xff] }
 0x13c   : > { %6268 = vmatprep.mubr.f32.mxu0 %v4512_v13  ;;  %v4279_v13 = vld [vmem:[%s9007_s1 + $0x568] sm:$0xff] }
 0x13d   : > { %6735 = vmatpush3.bf16.msra.mxu1 %v6732_v5  ;;  %v4549_v5 = vld [vmem:[%s9007_s1 + $0xb58] sm:$0xff]  ;;  %v6768_v18 = vpack.c.bf16 %v4279_v13, %v4278_v12  ;;  %v1680_v2 = vld [vmem:[%s7580_s24 + $0x42] sm:$0xff] }
 0x13e   : > { %7119 = vmatpush3.bf16.msra.mxu0 %v7116_v7  ;;  %6737 = vmatprep.subr.bf16.mxu1 %v6736_v14  ;;  %v4520_v7 = vld [vmem:[%s7580_s24 + $0xbc] sm:$0xff]  ;;  %v7148_v11 = vpack.c.bf16 %v4549_v5, %v4548_v4  ;;  %v3504_v4 = vld [vmem:[%s7580_s24 + $0x4d] sm:$0xff] }
 0x13f   : > { %7121 = vmatprep.subr.bf16.mxu0 %v7120_v15  ;;  %v1682_v12 = vld [vmem:[%s7580_s24 + $0x52] sm:$0xff] }
 0x141   : > { %6739 = vmatpush3.bf16.msra.mxu1 %v6736_v14  ;;  %v4550_v14 = vld [vmem:[%s9007_s1 + $0xb60] sm:$0xff] }
 0x142   : > { %7123 = vmatpush3.bf16.msra.mxu0 %v7120_v15  ;;  %6741 = vmatprep.subr.bf16.mxu1 %v6740_v20  ;;  %v4551_v15 = vld [vmem:[%s9007_s1 + $0xb68] sm:$0xff] }
 0x143   : > { %7125 = vmatprep.subr.bf16.mxu0 %v7124_v21  ;;  %v7152_v19 = vpack.c.bf16 %v4551_v15, %v4550_v14  ;;  %v3506_v14 = vld [vmem:[%s7580_s24 + $0x5d] sm:$0xff] }
 0x145   : > { %6743 = vmatpush3.bf16.msra.mxu1 %v6740_v20  ;;  %v4280_v20 = vld [vmem:[%s9007_s1 + $0x570] sm:$0xff] }
 0x146   : > { %7127 = vmatpush3.bf16.msra.mxu0 %v7124_v21  ;;  %6745 = vmatprep.subr.bf16.mxu1 %v6744_v26  ;;  %v4281_v21 = vld [vmem:[%s9007_s1 + $0x578] sm:$0xff] }
 0x147   : > { %7129 = vmatprep.subr.bf16.mxu0 %v7128_v27  ;;  %v6772_v24 = vpack.c.bf16 %v4281_v21, %v4280_v20  ;;  %v4282_v20 = vld [vmem:[%s7580_s24 + $0x72] sm:$0xff]  ;;  %v4554_v21 = vld [vmem:[%s7580_s24 + $0x7d] sm:$0xff] }
 0x148   : > { %5705 = vmatmul.mubr.f32.vlgmr.msra.gmra.mrb[0].mxu1 %v4241_v32  ;;  %v4294_v32 = vld [vmem:[%s9007_s1 + $0x590] sm:$0xff] }
 0x149   : > { %6747 = vmatpush3.bf16.msra.mxu1 %v6744_v26  ;;  %6269 = vmatmul.mubr.f32.vlgmr.msra.gmra.mrb[0].mxu0 %v4513_v33  ;;  %v4292_v26 = vld [vmem:[%s9007_s1 + $0x580] sm:$0xff]  ;;  %v4295_v33 = vld [vmem:[%s9007_s1 + $0x598] sm:$0xff] }
 0x14a   : > { %7131 = vmatpush3.bf16.msra.mxu0 %v7128_v27  ;;  %6749 = vmatprep.subr.bf16.mxu1 %v6748_v34  ;;  %v4293_v27 = vld [vmem:[%s9007_s1 + $0x588] sm:$0xff]  ;;  %v6780_v38 = vpack.c.bf16 %v4295_v33, %v4294_v32  ;;  %v4582_v33 = vld [vmem:[%s9007_s1 + $0xc10] sm:$0xff] }
 0x14b   : > { %7133 = vmatprep.subr.bf16.mxu0 %v7132_v35  ;;  %5707 = vmatprep.mubr.f32.mxu1 %v4242_v40  ;;  %v6776_v30 = vpack.c.bf16 %v4293_v27, %v4292_v26  ;;  %v4296_v40 = vld [vmem:[%s9007_s1 + $0x5a0] sm:$0xff]  ;;  %v4578_v26 = vld [vmem:[%s9007_s1 + $0xbf0] sm:$0xff]  ;;  %v4579_v27 = vld [vmem:[%s9007_s1 + $0xbf8] sm:$0xff] }
 0x14c   : > { %6271 = vmatprep.mubr.f32.mxu0 %v4514_v41  ;;  %5708 = vmatmul.mubr.f32.gmra.mrb[2].mxu1 %v4243_v42  ;;  %v4297_v41 = vld [vmem:[%s9007_s1 + $0x5a8] sm:$0xff]  ;;  %v4568_v42 = vld [vmem:[%s9007_s1 + $0xba0] sm:$0xff]  ;;  %v7188_v29 = vpack.c.bf16 %v4579_v27, %v4578_v26 }
 0x14d   : > { %6751 = vmatpush3.bf16.msra.mxu1 %v6748_v34  ;;  %6272 = vmatmul.mubr.f32.gmra.mrb[2].mxu0 %v4515_v44  ;;  %v4566_v34 = vld [vmem:[%s9007_s1 + $0xb90] sm:$0xff]  ;;  %v1675_v44 = vld [vmem:[%s7580_s24 + $0x1a] sm:$0xff]  ;;  %v6784_v47 = vpack.c.bf16 %v4297_v41, %v4296_v40  ;;  %v4585_v41 = vld [vmem:[%s9007_s1 + $0xc28] sm:$0xff] }
 0x14e   : > { %7135 = vmatpush3.bf16.msra.mxu0 %v7132_v35  ;;  %6753 = vmatprep.subr.bf16.mxu1 %v6752_v43  ;;  %v4567_v35 = vld [vmem:[%s9007_s1 + $0xb98] sm:$0xff]  ;;  %v4584_v40 = vld [vmem:[%s9007_s1 + $0xc20] sm:$0xff] }
 0x14f   : > { %7137 = vmatprep.subr.bf16.mxu0 %v7136_v45  ;;  %5710 = vmatprep.mubr.f32.mxu1 %v4244_v50  ;;  %v7164_v39 = vpack.c.bf16 %v4567_v35, %v4566_v34  ;;  %v4298_v50 = vld [vmem:[%s9007_s1 + $0x5b0] sm:$0xff]  ;;  %v4583_v34 = vld [vmem:[%s9007_s1 + $0xc18] sm:$0xff] }
 0x150   : > { %6274 = vmatprep.mubr.f32.mxu0 %v4516_v51  ;;  %5711 = vmatmul.mubr.f32.gmra.mrb[4].mxu1 %v4245_v52  ;;  %v4299_v51 = vld [vmem:[%s9007_s1 + $0x5b8] sm:$0xff]  ;;  %v4570_v52 = vld [vmem:[%s9007_s1 + $0xbb0] sm:$0xff] }
 0x151   : > { %6755 = vmatpush3.bf16.msra.mxu1 %v6752_v43  ;;  %6275 = vmatmul.mubr.f32.gmra.mrb[4].mxu0 %v4517_v54  ;;  %v4569_v43 = vld [vmem:[%s9007_s1 + $0xba8] sm:$0xff]  ;;  %v6788_v57 = vpack.c.bf16 %v4299_v51, %v4298_v50  ;;  %v4283_v35 = vld [vmem:[%s7580_s24 + $0x7a] sm:$0xff] }
 0x152   : > { %7139 = vmatpush3.bf16.msra.mxu0 %v7136_v45  ;;  %6757 = vmatprep.subr.bf16.mxu1 %v6756_v53  ;;  %v3499_v45 = vld [vmem:[%s7580_s24 + $0x25] sm:$0xff]  ;;  %v7168_v49 = vpack.c.bf16 %v4569_v43, %v4568_v42  ;;  %v4557_v43 = vld [vmem:[%s7580_s24 + $0x95] sm:$0xff] }
 0x153   : > { %7141 = vmatprep.subr.bf16.mxu0 %v7140_v55  ;;  %5713 = vmatprep.mubr.f32.mxu1 %v4246_v60  ;;  %v1677_v54 = vld [vmem:[%s7580_s24 + $0x2a] sm:$0xff]  ;;  %v4300_v60 = vld [vmem:[%s9007_s1 + $0x5c0] sm:$0xff] }
 0x154   : > { %6277 = vmatprep.mubr.f32.mxu0 %v4518_v61  ;;  %5714 = vmatmul.mubr.f32.gmra.mrb[6].mxu1 %v4247_v62  ;;  %v4301_v61 = vld [vmem:[%s9007_s1 + $0x5c8] sm:$0xff]  ;;  %v4572_v62 = vld [vmem:[%s9007_s1 + $0xbc0] sm:$0xff] }
 0x155   : > { %6759 = vmatpush3.bf16.msra.mxu1 %v6756_v53  ;;  %6278 = vmatmul.mubr.f32.gmra.mrb[6].mxu0 %v4519_v0  ;;  %v4571_v53 = vld [vmem:[%s9007_s1 + $0xbb8] sm:$0xff]  ;;  %v6792_v3 = vpack.c.bf16 %v4301_v61, %v4300_v60  ;;  %v4285_v42 = vld [vmem:[%s7580_s24 + $0x8a] sm:$0xff]  ;;  %v4288_v51 = vld [vmem:[%s7580_s24 + $0xa2] sm:$0xff] }
 0x156   : > { %7143 = vmatpush3.bf16.msra.mxu0 %v7140_v55  ;;  %6761 = vmatprep.subr.bf16.mxu1 %v6760_v63  ;;  %v3501_v55 = vld [vmem:[%s7580_s24 + $0x35] sm:$0xff]  ;;  %v7172_v59 = vpack.c.bf16 %v4571_v53, %v4570_v52  ;;  %v4559_v50 = vld [vmem:[%s7580_s24 + $0xa5] sm:$0xff]  ;;  %v4560_v53 = vld [vmem:[%s7580_s24 + $0xad] sm:$0xff] }
 0x157   : > { %7145 = vmatprep.subr.bf16.mxu0 %v7144_v1  ;;  %5716 = vmatprep.mubr.f32.mxu1 %v4248_v6  ;;  %v1679_v0 = vld [vmem:[%s7580_s24 + $0x3a] sm:$0xff]  ;;  %v4302_v6 = vld [vmem:[%s9007_s1 + $0x5d0] sm:$0xff] }
 0x158   : > { %6280 = vmatprep.mubr.f32.mxu0 %v4520_v7  ;;  %5717 = vmatmul.mubr.f32.gmra.mrb[8].mxu1 %v4249_v8  ;;  %v4303_v7 = vld [vmem:[%s9007_s1 + $0x5d8] sm:$0xff]  ;;  %v4574_v8 = vld [vmem:[%s9007_s1 + $0xbd0] sm:$0xff] }
 0x159   : > { %6763 = vmatpush3.bf16.msra.mxu1 %v6760_v63  ;;  %6281 = vmatmul.mubr.f32.gmra.mrb[8].mxu0 %v4521_v10  ;;  %v4573_v63 = vld [vmem:[%s9007_s1 + $0xbc8] sm:$0xff]  ;;  %v6796_v13 = vpack.c.bf16 %v4303_v7, %v4302_v6  ;;  %v4590_v60 = vld [vmem:[%s9007_s1 + $0xc50] sm:$0xff]  ;;  %v4591_v61 = vld [vmem:[%s9007_s1 + $0xc58] sm:$0xff] }
 0x15a   : > { %7147 = vmatpush3.bf16.msra.mxu0 %v7144_v1  ;;  %6765 = vmatprep.subr.bf16.mxu1 %v6764_v9  ;;  %v3503_v1 = vld [vmem:[%s7580_s24 + $0x45] sm:$0xff]  ;;  %v7176_v5 = vpack.c.bf16 %v4573_v63, %v4572_v62  ;;  %v4562_v62 = vld [vmem:[%s7580_s24 + $0xbd] sm:$0xff]  ;;  %v4594_v7 = vld [vmem:[%s9007_s1 + $0xc70] sm:$0xff] }
 0x15b   : > { %7149 = vmatprep.subr.bf16.mxu0 %v7148_v11  ;;  %5751 = vmatprep.mubr.f32.mxu1 %v1673_v16  ;;  %v1681_v10 = vld [vmem:[%s7580_s24 + $0x4a] sm:$0xff]  ;;  %v4304_v16 = vld [vmem:[%s9007_s1 + $0x5e0] sm:$0xff] }
 0x15c   : > { %6315 = vmatprep.mubr.f32.mxu0 %v3497_v17  ;;  %v4305_v17 = vld [vmem:[%s9007_s1 + $0x5e8] sm:$0xff]  ;;  %v4291_v63 = vld [vmem:[%s7580_s24 + $0xba] sm:$0xff] }
 0x15d   : > { %6767 = vmatpush3.bf16.msra.mxu1 %v6764_v9  ;;  %v4575_v9 = vld [vmem:[%s9007_s1 + $0xbd8] sm:$0xff]  ;;  %v6800_v22 = vpack.c.bf16 %v4305_v17, %v4304_v16 }
 0x15e   : > { %7151 = vmatpush3.bf16.msra.mxu0 %v7148_v11  ;;  %6769 = vmatprep.subr.bf16.mxu1 %v6768_v18  ;;  %v3505_v11 = vld [vmem:[%s7580_s24 + $0x55] sm:$0xff]  ;;  %v7180_v15 = vpack.c.bf16 %v4575_v9, %v4574_v8  ;;  %v3806_v17 = vld [vmem:[%s7580_s24 + $0x3e] sm:$0xff] }
 0x15f   : > { %7153 = vmatprep.subr.bf16.mxu0 %v7152_v19  ;;  %v4595_v8 = vld [vmem:[%s9007_s1 + $0xc78] sm:$0xff] }
 0x160   : > { %v7220_v9 = vpack.c.bf16 %v4595_v8, %v4594_v7  ;;  %v3805_v16 = vld [vmem:[%s7580_s24 + $0x36] sm:$0xff] }
 0x161   : > { %6771 = vmatpush3.bf16.msra.mxu1 %v6768_v18  ;;  %v4576_v18 = vld [vmem:[%s9007_s1 + $0xbe0] sm:$0xff] }
 0x162   : > { %7155 = vmatpush3.bf16.msra.mxu0 %v7152_v19  ;;  %6773 = vmatprep.subr.bf16.mxu1 %v6772_v24  ;;  %v4577_v19 = vld [vmem:[%s9007_s1 + $0xbe8] sm:$0xff] }
 0x163   : > { %7157 = vmatprep.subr.bf16.mxu0 %v7156_v25  ;;  %v7184_v23 = vpack.c.bf16 %v4577_v19, %v4576_v18 }
 0x165   : > { %6775 = vmatpush3.bf16.msra.mxu1 %v6772_v24  ;;  %v4306_v24 = vld [vmem:[%s9007_s1 + $0x5f0] sm:$0xff] }
 0x166   : > { %7159 = vmatpush3.bf16.msra.mxu0 %v7156_v25  ;;  %6777 = vmatprep.subr.bf16.mxu1 %v6776_v30  ;;  %v4307_v25 = vld [vmem:[%s9007_s1 + $0x5f8] sm:$0xff] }
 0x167   : > { %7161 = vmatprep.subr.bf16.mxu0 %v7160_v31  ;;  %v6804_v28 = vpack.c.bf16 %v4307_v25, %v4306_v24 }
 0x168   : > { %5752 = vmatmul.mubr.f32.vlgmr.msra.gmra.mrb[0].mxu1 %v1674_v36  ;;  %v4555_v36 = vld [vmem:[%s7580_s24 + $0x85] sm:$0xff] }
 0x169   : > { %6779 = vmatpush3.bf16.msra.mxu1 %v6776_v30  ;;  %6316 = vmatmul.mubr.f32.vlgmr.msra.gmra.mrb[0].mxu0 %v3498_v37  ;;  %v4580_v30 = vld [vmem:[%s9007_s1 + $0xc00] sm:$0xff] }
 0x16a   : > { %7163 = vmatpush3.bf16.msra.mxu0 %v7160_v31  ;;  %6781 = vmatprep.subr.bf16.mxu1 %v6780_v38  ;;  %v4581_v31 = vld [vmem:[%s9007_s1 + $0xc08] sm:$0xff] }
 0x16b   : > { %7165 = vmatprep.subr.bf16.mxu0 %v7164_v39  ;;  %5754 = vmatprep.mubr.f32.mxu1 %v1675_v44  ;;  %v7192_v32 = vpack.c.bf16 %v4581_v31, %v4580_v30  ;;  %v4284_v37 = vld [vmem:[%s7580_s24 + $0x82] sm:$0xff]  ;;  %v4286_v44 = vld [vmem:[%s7580_s24 + $0x92] sm:$0xff] }
 0x16c   : > { %6318 = vmatprep.mubr.f32.mxu0 %v3499_v45  ;;  %5755 = vmatmul.mubr.f32.gmra.mrb[2].mxu1 %v1676_v46  ;;  %v7200_v45 = vpack.c.bf16 %v4585_v41, %v4584_v40  ;;  %v4558_v46 = vld [vmem:[%s7580_s24 + $0x9d] sm:$0xff] }
 0x16d   : > { %6783 = vmatpush3.bf16.msra.mxu1 %v6780_v38  ;;  %6319 = vmatmul.mubr.f32.gmra.mrb[2].mxu0 %v3500_v48  ;;  %v7196_v38 = vpack.c.bf16 %v4583_v34, %v4582_v33  ;;  %v4587_v48 = vld [vmem:[%s9007_s1 + $0xc38] sm:$0xff] }
 0x16e   : > { %7167 = vmatpush3.bf16.msra.mxu0 %v7164_v39  ;;  %6785 = vmatprep.subr.bf16.mxu1 %v6784_v47  ;;  %v4556_v39 = vld [vmem:[%s7580_s24 + $0x8d] sm:$0xff] }
 0x16f   : > { %7169 = vmatprep.subr.bf16.mxu0 %v7168_v49  ;;  %5757 = vmatprep.mubr.f32.mxu1 %v1677_v54  ;;  %v4588_v54 = vld [vmem:[%s9007_s1 + $0xc40] sm:$0xff] }
 0x170   : > { %6321 = vmatprep.mubr.f32.mxu0 %v3501_v55  ;;  %5758 = vmatmul.mubr.f32.gmra.mrb[4].mxu1 %v1678_v56  ;;  %v4589_v55 = vld [vmem:[%s9007_s1 + $0xc48] sm:$0xff] }
 0x171   : > { %6787 = vmatpush3.bf16.msra.mxu1 %v6784_v47  ;;  %6322 = vmatmul.mubr.f32.gmra.mrb[4].mxu0 %v3502_v58  ;;  %v4586_v47 = vld [vmem:[%s9007_s1 + $0xc30] sm:$0xff] }
 0x172   : > { %7171 = vmatpush3.bf16.msra.mxu0 %v7168_v49  ;;  %6789 = vmatprep.subr.bf16.mxu1 %v6788_v57  ;;  %v4287_v49 = vld [vmem:[%s7580_s24 + $0x9a] sm:$0xff]  ;;  %v7204_v52 = vpack.c.bf16 %v4587_v48, %v4586_v47  ;;  %v4289_v56 = vld [vmem:[%s7580_s24 + $0xaa] sm:$0xff]  ;;  %v4290_v58 = vld [vmem:[%s7580_s24 + $0xb2] sm:$0xff] }
 0x173   : > { %7173 = vmatprep.subr.bf16.mxu0 %v7172_v59  ;;  %5760 = vmatprep.mubr.f32.mxu1 %v1679_v0  ;;  %v4563_v0 = vld [vmem:[%s7580_s24 + $0xc5] sm:$0xff] }
 0x174   : > { %6324 = vmatprep.mubr.f32.mxu0 %v3503_v1  ;;  %5761 = vmatmul.mubr.f32.gmra.mrb[6].mxu1 %v1680_v2  ;;  %v7212_v1 = vpack.c.bf16 %v4591_v61, %v4590_v60  ;;  %v4592_v2 = vld [vmem:[%s9007_s1 + $0xc60] sm:$0xff] }
 0x175   : > { %6791 = vmatpush3.bf16.msra.mxu1 %v6788_v57  ;;  %6325 = vmatmul.mubr.f32.gmra.mrb[6].mxu0 %v3504_v4  ;;  %v4561_v57 = vld [vmem:[%s7580_s24 + $0xb5] sm:$0xff] }
 0x176   : > { %7175 = vmatpush3.bf16.msra.mxu0 %v7172_v59  ;;  %6793 = vmatprep.subr.bf16.mxu1 %v6792_v3  ;;  %v7208_v59 = vpack.c.bf16 %v4589_v55, %v4588_v54  ;;  %v3801_v4 = vld [vmem:[%s7580_s24 + $0x16] sm:$0xff] }
 0x177   : > { %7177 = vmatprep.subr.bf16.mxu0 %v7176_v5  ;;  %5763 = vmatprep.mubr.f32.mxu1 %v1681_v10  ;;  %v3808_v10 = vld [vmem:[%s7580_s24 + $0x4e] sm:$0xff] }
 0x178   : > { %6327 = vmatprep.mubr.f32.mxu0 %v3505_v11  ;;  %5764 = vmatmul.mubr.f32.gmra.mrb[8].mxu1 %v1682_v12  ;;  %v3802_v11 = vld [vmem:[%s7580_s24 + $0x1e] sm:$0xff]  ;;  %v3809_v12 = vld [vmem:[%s7580_s24 + $0x56] sm:$0xff] }
 0x179   : > { %6795 = vmatpush3.bf16.msra.mxu1 %v6792_v3  ;;  %6328 = vmatmul.mubr.f32.gmra.mrb[8].mxu0 %v3506_v14  ;;  %v4593_v3 = vld [vmem:[%s9007_s1 + $0xc68] sm:$0xff]  ;;  %v3810_v14 = vld [vmem:[%s7580_s24 + $0x5e] sm:$0xff] }
 0x17a   : > { %7179 = vmatpush3.bf16.msra.mxu0 %v7176_v5  ;;  %6797 = vmatprep.subr.bf16.mxu1 %v6796_v13  ;;  %v3807_v5 = vld [vmem:[%s7580_s24 + $0x46] sm:$0xff]  ;;  %v7216_v6 = vpack.c.bf16 %v4593_v3, %v4592_v2 }
 0x17b   : > { %7181 = vmatprep.subr.bf16.mxu0 %v7180_v15  ;;  %5798 = vmatprep.mubr.f32.mxu1 %v4282_v20 }
 0x17c   : > { %6362 = vmatprep.mubr.f32.mxu0 %v4554_v21 }
 0x17d   : > { %6799 = vmatpush3.bf16.msra.mxu1 %v6796_v13  ;;  %v3803_v13 = vld [vmem:[%s7580_s24 + $0x26] sm:$0xff] }
 0x17e   : > { %7183 = vmatpush3.bf16.msra.mxu0 %v7180_v15  ;;  %6801 = vmatprep.subr.bf16.mxu1 %v6800_v22  ;;  %v3804_v15 = vld [vmem:[%s7580_s24 + $0x2e] sm:$0xff]  ;;  %s7481_s24 = smul.u32 80, %s9011_s13 }
 0x17f   : > { %7185 = vmatprep.subr.bf16.mxu0 %v7184_v23 }
 0x180   : > { %s8991_s29 = scalar_lea.vmem %s9009_s3, %s7481_s24 }
 0x181   : > { %6803 = vmatpush3.bf16.msra.mxu1 %v6800_v22 }
 0x182   : > { %7187 = vmatpush3.bf16.msra.mxu0 %v7184_v23  ;;  %6805 = vmatprep.subr.bf16.mxu1 %v6804_v28 }
 0x183   : > { %7189 = vmatprep.subr.bf16.mxu0 %v7188_v29 }
 0x185   : > { %6807 = vmatpush3.bf16.msra.mxu1 %v6804_v28 }
 0x186   : > { %7191 = vmatpush3.bf16.msra.mxu0 %v7188_v29  ;;  %7224 = vmatprep.subr.bf16.mxu1 %v7192_v32 }
 0x187   : > { %7193 = vmatprep.subr.bf16.mxu0 %v7192_v32 }
 0x188   : > { %5799 = vmatmul.mubr.f32.vlgmr.msra.gmra.mrb[0].mxu1 %v4283_v35 }
 0x189   : > { %6363 = vmatmul.mubr.f32.vlgmr.msra.gmra.mrb[0].mxu0 %v4555_v36  ;;  %7232 = vmatpush3.bf16.msra.mxu1 %v7192_v32  ;;  %v4596_v36 = vld [vmem:[%s9008_s2] ss:$0 sm:$0xff] }
 0x18a   : > { %7195 = vmatpush3.bf16.msra.mxu0 %v7192_v32  ;;  %5801 = vmatprep.mubr.f32.mxu1 %v4284_v37 }
 0x18b   : > { %6365 = vmatprep.mubr.f32.mxu0 %v4556_v39  ;;  %7197 = vmatprep.subr.bf16.mxu0 %v7196_v38 }
 0x18c   : > { %5802 = vmatmul.mubr.f32.gmra.mrb[2].mxu1 %v4285_v42  ;;  %7225 = vmatprep.subr.bf16.mxu1 %v7196_v38 }
 0x18d   : > { %6366 = vmatmul.mubr.f32.gmra.mrb[2].mxu0 %v4557_v43  ;;  %7233 = vmatpush3.bf16.msra.mxu1 %v7196_v38 }
 0x18e   : > { %7199 = vmatpush3.bf16.msra.mxu0 %v7196_v38  ;;  %5804 = vmatprep.mubr.f32.mxu1 %v4286_v44 }
 0x18f   : > { %6368 = vmatprep.mubr.f32.mxu0 %v4558_v46  ;;  %7201 = vmatprep.subr.bf16.mxu0 %v7200_v45 }
 0x190   : > { %5805 = vmatmul.mubr.f32.gmra.mrb[4].mxu1 %v4287_v49  ;;  %7226 = vmatprep.subr.bf16.mxu1 %v7200_v45 }
 0x191   : > { %6369 = vmatmul.mubr.f32.gmra.mrb[4].mxu0 %v4559_v50  ;;  %7234 = vmatpush3.bf16.msra.mxu1 %v7200_v45 }
 0x192   : > { %7203 = vmatpush3.bf16.msra.mxu0 %v7200_v45  ;;  %5807 = vmatprep.mubr.f32.mxu1 %v4288_v51 }
 0x193   : > { %6371 = vmatprep.mubr.f32.mxu0 %v4560_v53  ;;  %7205 = vmatprep.subr.bf16.mxu0 %v7204_v52 }
 0x194   : > { %5808 = vmatmul.mubr.f32.gmra.mrb[6].mxu1 %v4289_v56  ;;  %7227 = vmatprep.subr.bf16.mxu1 %v7204_v52 }
 0x195   : > { %6372 = vmatmul.mubr.f32.gmra.mrb[6].mxu0 %v4561_v57  ;;  %7235 = vmatpush3.bf16.msra.mxu1 %v7204_v52 }
 0x196   : > { %7207 = vmatpush3.bf16.msra.mxu0 %v7204_v52  ;;  %5810 = vmatprep.mubr.f32.mxu1 %v4290_v58 }
 0x197   : > { %6374 = vmatprep.mubr.f32.mxu0 %v4562_v62  ;;  %7209 = vmatprep.subr.bf16.mxu0 %v7208_v59 }
 0x198   : > { %5811 = vmatmul.mubr.f32.gmra.mrb[8].mxu1 %v4291_v63  ;;  %7228 = vmatprep.subr.bf16.mxu1 %v7208_v59 }
 0x199   : > { %6375 = vmatmul.mubr.f32.gmra.mrb[8].mxu0 %v4563_v0  ;;  %7236 = vmatpush3.bf16.msra.mxu1 %v7208_v59 }
 0x19a   : > { %7211 = vmatpush3.bf16.msra.mxu0 %v7208_v59  ;;  %7229 = vmatprep.subr.bf16.mxu1 %v7212_v1 }
 0x19b   : > { %7213 = vmatprep.subr.bf16.mxu0 %v7212_v1  ;;  %6409 = vmatprep.mubr.f32.mxu0 %v3801_v4 }
 0x19c   : > { %6418 = vmatprep.mubr.f32.mxu1 %v3807_v5 }
 0x19d   : > { %7237 = vmatpush3.bf16.msra.mxu1 %v7212_v1 }
 0x19e   : > { %7215 = vmatpush3.bf16.msra.mxu0 %v7212_v1  ;;  %7230 = vmatprep.subr.bf16.mxu1 %v7216_v6 }
 0x19f   : > { %7217 = vmatprep.subr.bf16.mxu0 %v7216_v6 }
 0x1a1   : > { %7238 = vmatpush3.bf16.msra.mxu1 %v7216_v6 }
 0x1a2   : > { %7219 = vmatpush3.bf16.msra.mxu0 %v7216_v6  ;;  %7231 = vmatprep.subr.bf16.mxu1 %v7220_v9 }
 0x1a3   : > { %7221 = vmatprep.subr.bf16.mxu0 %v7220_v9 }
 0x1a5   : > { %7239 = vmatpush3.bf16.msra.mxu1 %v7220_v9 }
 0x1a6   : > { %7223 = vmatpush3.bf16.msra.mxu0 %v7220_v9 }
 0x1a8   : > { %6419 = vmatmul.mubr.f32.vlgmr.msra.gmra.mrb[10].mxu1 %v3808_v10 }
 0x1a9   : > { %6410 = vmatmul.mubr.f32.vlgmr.msra.gmra.mrb[0].mxu0 %v3802_v11  ;;  %6421 = vmatprep.mubr.f32.mxu1 %v3809_v12 }
 0x1aa   : > { %6412 = vmatprep.mubr.f32.mxu0 %v3803_v13 }
 0x1ac   : > { %6422 = vmatmul.mubr.f32.gmra.mrb[12].mxu1 %v3810_v14 }
 0x1ad   : > { %6413 = vmatmul.mubr.f32.gmra.mrb[2].mxu0 %v3804_v15 }
 0x1ae   : > { %6415 = vmatprep.mubr.f32.mxu0 %v3805_v16 }
 0x1b1   : > { %6416 = vmatmul.mubr.f32.gmra.mrb[4].mxu0 %v3806_v17 }
 0x25b   : > { %v5800_v18 = vpop.f32.mrb[0].mxu1 }
 0x25c   : > { %v1918_v19 = vpop.f32.mrb[1].mxu1 }
 0x25f   : > { %v5803_v20 = vpop.f32.mrb[2].mxu1 }
 0x260   : > { %v1928_v21 = vpop.f32.mrb[3].mxu1 }
 0x263   : > { %v5806_v22 = vpop.f32.mrb[4].mxu1 }
 0x264   : > { %v1938_v23 = vpop.f32.mrb[5].mxu1 }
 0x267   : > { %v5809_v24 = vpop.f32.mrb[6].mxu1 }
 0x268   : > { %v6373_v25 = vpop.f32.mrb[6].mxu0  ;;  %v1948_v26 = vpop.f32.mrb[7].mxu1 }
 0x269   : > { %v7246_v27 = vadd.f32 %v6373_v25, %v5809_v24  ;;  %v3772_v28 = vpop.f32.mrb[7].mxu0 }
 0x26a   : > { %v7248_v29 = vadd.f32 %v3772_v28, %v1948_v26 }
 0x26b   : > { %v5812_v30 = vpop.f32.mrb[8].mxu1 }
 0x26c   : > { %v6376_v31 = vpop.f32.mrb[8].mxu0  ;;  %v1958_v32 = vpop.f32.mrb[9].mxu1 }
 0x26d   : > { %v7250_v33 = vadd.f32 %v6376_v31, %v5812_v30  ;;  %v3782_v34 = vpop.f32.mrb[9].mxu0 }
 0x26e   : > { %v7252_v35 = vadd.f32 %v3782_v34, %v1958_v32 }
 0x27b   : > { %v6420_v37 = vpop.f32.mrb[10].mxu1 }
 0x27c   : > { %v6411_v38 = vpop.f32.mrb[0].mxu0  ;;  %v7247_v39 = vadd.f32 %v7246_v27, %v6420_v37  ;;  %v3924_v40 = vpop.f32.mrb[11].mxu1 }
 0x27d   : > { %v7240_v41 = vadd.f32 %v6411_v38, %v5800_v18  ;;  %v3894_v42 = vpop.f32.mrb[1].mxu0  ;;  %v7249_v43 = vadd.f32 %v7248_v29, %v3924_v40 }
 0x27e   : > { %v3967_v44 = vadd.f32 %v7247_v39, %v4596_v36  ;;  %v7241_v45 = vadd.f32 %v3894_v42, %v1918_v19 }
 0x27f   : > { %v3961_v46 = vadd.f32 %v7240_v41, %v4596_v36  ;;  %v3966_v47 = vadd.f32 %v7249_v43, %v4596_v36  ;;  %v6423_v48 = vpop.f32.mrb[12].mxu1 }
 0x280   : > { %v3977_v49 = vmax.f32 %v3967_v44, 0.0  ;;  %v3960_v50 = vadd.f32 %v7241_v45, %v4596_v36  ;;  %v6414_v51 = vpop.f32.mrb[2].mxu0  ;;  %v7251_v52 = vadd.f32 %v7250_v33, %v6423_v48  ;;  %v3934_v53 = vpop.f32.mrb[13].mxu1 }
 0x281   : > { %v3971_v54 = vmax.f32 %v3961_v46, 0.0  ;;  %v3976_v55 = vmax.f32 %v3966_v47, 0.0  ;;  %v7242_v56 = vadd.f32 %v6414_v51, %v5803_v20  ;;  %v3904_v57 = vpop.f32.mrb[3].mxu0  ;;  %v7253_v58 = vadd.f32 %v7252_v35, %v3934_v53 }
 0x282   : > { %3987 = vst [vmem:[%s8991_s29 + $0x38] sm:$0xff] %v3977_v49  ;;  %v3970_v59 = vmax.f32 %v3960_v50, 0.0  ;;  %v3969_v60 = vadd.f32 %v7251_v52, %v4596_v36  ;;  %v7243_v61 = vadd.f32 %v3904_v57, %v1928_v21 }
 0x283   : > { %3981 = vst [vmem:[%s8991_s29 + $0x8] sm:$0xff] %v3971_v54  ;;  %3986 = vst [vmem:[%s8991_s29 + $0x30] sm:$0xff] %v3976_v55  ;;  %v3963_v62 = vadd.f32 %v7242_v56, %v4596_v36  ;;  %v3968_v63 = vadd.f32 %v7253_v58, %v4596_v36 }
 0x284   : > { %3980 = vst [vmem:[%s8991_s29] sm:$0xff] %v3970_v59  ;;  %v3979_v0 = vmax.f32 %v3969_v60, 0.0  ;;  %v3962_v1 = vadd.f32 %v7243_v61, %v4596_v36  ;;  %v6417_v2 = vpop.f32.mrb[4].mxu0 }
 0x285   : > { %v3973_v3 = vmax.f32 %v3963_v62, 0.0  ;;  %v3978_v4 = vmax.f32 %v3968_v63, 0.0  ;;  %v7244_v5 = vadd.f32 %v6417_v2, %v5806_v22  ;;  %v3914_v6 = vpop.f32.mrb[5].mxu0 }
 0x286   : > { %3989 = vst [vmem:[%s8991_s29 + $0x48] sm:$0xff] %v3979_v0  ;;  %v3972_v7 = vmax.f32 %v3962_v1, 0.0  ;;  %v7245_v8 = vadd.f32 %v3914_v6, %v1938_v23 }
 0x287   : > { %3983 = vst [vmem:[%s8991_s29 + $0x18] sm:$0xff] %v3973_v3  ;;  %3988 = vst [vmem:[%s8991_s29 + $0x40] sm:$0xff] %v3978_v4  ;;  %v3965_v9 = vadd.f32 %v7244_v5, %v4596_v36 }
 0x288   : > { %3982 = vst [vmem:[%s8991_s29 + $0x10] sm:$0xff] %v3972_v7  ;;  %v3964_v10 = vadd.f32 %v7245_v8, %v4596_v36 }
 0x289   : > { %v3975_v11 = vmax.f32 %v3965_v9, 0.0 }
 0x28a   : > { %v3974_v12 = vmax.f32 %v3964_v10, 0.0 }
 0x28b   : > { %3985 = vst [vmem:[%s8991_s29 + $0x28] sm:$0xff] %v3975_v11 }
 0x28c   : > { %3984 = vst [vmem:[%s8991_s29 + $0x20] sm:$0xff] %v3974_v12 }
 0x28d PF: > { %s13_s12 = sadd.s32 1, %s7496_s12  }
 0x28e   : > { %p10_p4 = scmp.ge.s32.totalorder %s13_s12, 4  }
 0x290   :  { %12 = sbr.rel (!%p10_p4) target bundleno = 1 (0x1), region = 89 }

// kernel: hyper_analysis_forward.5
= control target key start
LH: loop header
LB: loop body
LE: loop exit
PB: predicated region body
PF: predicated region fallthrough
CT: control target
= control target key end

     0   :  { %s5412_s12 = smov 0   ;;  %s7120_s0 = inlined_call_operand.vmem [shape: f32[2,4,40,128], index: 0, kind: input, shape index: {}]   ;;  %s7121_s1 = inlined_call_operand.vmem [shape: f32[25,128,128], index: 1, kind: input, shape index: {}]   ;;  %s7122_s2 = inlined_call_operand.vmem [shape: f32[1,128], index: 2, kind: input, shape index: {}]   ;;  %s7123_s3 = inlined_call_operand.vmem [shape: f32[2,24,128], index: 3, kind: output, shape index: {}]  }
   0x1 LB: > { %s2810_s13 = sadd.s32 4294967295, %s5387_s12   ;;  %p2814_p0 = scmp.ge.s32.totalorder %s5387_s12, 1  ;;  %s5387_s12 = sphi %s5412_s12, %s13_s12  }
   0x2   : > { %p137_p1 = scmp.lt.s32.totalorder %s5387_s12, 3 }
   0x4   : > { %p138_p2 = pnand %p2814_p0, %p137_p1 }
   0x5   : > { %v2820_v0 = vld [vmem:[%s7121_s1 + $0x80] sm:$0xff] (!%p138_p2)  ;;  %v2821_v1 = vld [vmem:[%s7121_s1 + $0x88] sm:$0xff] (!%p138_p2)  ;;  %v5389_v3 = vmov (!%p138_p2), 0.0|0.0   ;;  %v2822_v6 = vld [vmem:[%s7121_s1 + $0x90] sm:$0xff] (!%p138_p2)  ;;  %vm5390_vm0 = vmmov (!%p138_p2), 0   ;;  %v5391_v11 = vmov (!%p138_p2), 0.0  }
   0x6   : > { %141 = sbr.rel (%p138_p2) target bundleno = 645 (0x285), region = 32  ;;  %v174_v2 = vld [vmem:[%s7121_s1] sm:$0xff] (!%p138_p2)  ;;  %4752 = vmatprep.subr.bf16.mxu0 (!%p138_p2), %v5389_v3  ;;  %4776 = vmatprep.subr.bf16.mxu1 (!%p138_p2), %v5389_v3  ;;  %v4753_v4 = vpack.c.bf16 (!%p138_p2), %v2821_v1, %v2820_v0  ;;  %v175_v5 = vld [vmem:[%s7121_s1 + $0x8] sm:$0xff] (!%p138_p2)  ;;  %v2823_v7 = vld [vmem:[%s7121_s1 + $0x98] sm:$0xff] (!%p138_p2)  ;;  %p161_p3 = scmp.lt.s32.totalorder (!%p138_p2), %s2810_s13, 1 }
   0x7   : > { %v4777_v8 = vpack.c.bf16 (!%p138_p2), %v175_v5, %v174_v2  ;;  %v176_v9 = vld [vmem:[%s7121_s1 + $0x10] sm:$0xff] (!%p138_p2)  ;;  %v177_v10 = vld [vmem:[%s7121_s1 + $0x18] sm:$0xff] (!%p138_p2)  ;;  %3800 = vmatprep.mubr.msk.f32.mxu1 (!%p138_p2), %vm5390_vm0, %v5391_v11  ;;  %3759 = vmatprep.mubr.msk.f32.mxu0 (!%p138_p2), %vm5390_vm0, %v5391_v11  ;;  %v4756_v12 = vpack.c.bf16 (!%p138_p2), %v2823_v7, %v2822_v6  ;;  %v2824_v14 = vld [vmem:[%s7121_s1 + $0xa0] sm:$0xff] (!%p138_p2) }
   0x8   : > { %4754 = vmatpush3.bf16.msra.mxu0 (!%p138_p2), %v4753_v4  ;;  %v4780_v13 = vpack.c.bf16 (!%p138_p2), %v177_v10, %v176_v9  ;;  %v2825_v15 = vld [vmem:[%s7121_s1 + $0xa8] sm:$0xff] (!%p138_p2)  ;;  %v178_v16 = vld [vmem:[%s7121_s1 + $0x20] sm:$0xff] (!%p138_p2)  ;;  %v2826_v20 = vld [vmem:[%s7121_s1 + $0xb0] sm:$0xff] (!%p138_p2) }
   0x9   : > { %4778 = vmatpush3.bf16.msra.mxu1 (!%p138_p2), %v4777_v8  ;;  %4755 = vmatprep.subr.bf16.mxu0 (!%p138_p2), %v5389_v3  ;;  %v179_v17 = vld [vmem:[%s7121_s1 + $0x28] sm:$0xff] (!%p138_p2)  ;;  %v4759_v18 = vpack.c.bf16 (!%p138_p2), %v2825_v15, %v2824_v14  ;;  %v2827_v21 = vld [vmem:[%s7121_s1 + $0xb8] sm:$0xff] (!%p138_p2)  ;;  %v180_v22 = vld [vmem:[%s7121_s1 + $0x30] sm:$0xff] (!%p138_p2) }
   0xa   : > { %4779 = vmatprep.subr.bf16.mxu1 (!%p138_p2), %v5389_v3  ;;  %v4783_v19 = vpack.c.bf16 (!%p138_p2), %v179_v17, %v178_v16  ;;  %v181_v23 = vld [vmem:[%s7121_s1 + $0x38] sm:$0xff] (!%p138_p2)  ;;  %v4762_v24 = vpack.c.bf16 (!%p138_p2), %v2827_v21, %v2826_v20  ;;  %v2828_v26 = vld [vmem:[%s7121_s1 + $0xc0] sm:$0xff] (!%p138_p2)  ;;  %v2829_v27 = vld [vmem:[%s7121_s1 + $0xc8] sm:$0xff] (!%p138_p2) }
   0xb   : > { %v4786_v25 = vpack.c.bf16 (!%p138_p2), %v181_v23, %v180_v22  ;;  %v182_v28 = vld [vmem:[%s7121_s1 + $0x40] sm:$0xff] (!%p138_p2)  ;;  %v183_v29 = vld [vmem:[%s7121_s1 + $0x48] sm:$0xff] (!%p138_p2)  ;;  %v4765_v30 = vpack.c.bf16 (!%p138_p2), %v2829_v27, %v2828_v26  ;;  %v2830_v32 = vld [vmem:[%s7121_s1 + $0xd0] sm:$0xff] (!%p138_p2) }
   0xc   : > { %4757 = vmatpush3.bf16.msra.mxu0 (!%p138_p2), %v4756_v12  ;;  %v4789_v31 = vpack.c.bf16 (!%p138_p2), %v183_v29, %v182_v28  ;;  %v2831_v33 = vld [vmem:[%s7121_s1 + $0xd8] sm:$0xff] (!%p138_p2)  ;;  %v184_v34 = vld [vmem:[%s7121_s1 + $0x50] sm:$0xff] (!%p138_p2)  ;;  %v2832_v38 = vld [vmem:[%s7121_s1 + $0xe0] sm:$0xff] (!%p138_p2) }
   0xd   : > { %4781 = vmatpush3.bf16.msra.mxu1 %v4780_v13  ;;  %4758 = vmatprep.subr.bf16.mxu0 %v5389_v3  ;;  %v185_v35 = vld [vmem:[%s7121_s1 + $0x58] sm:$0xff]  ;;  %v4768_v36 = vpack.c.bf16 %v2831_v33, %v2830_v32  ;;  %v2833_v39 = vld [vmem:[%s7121_s1 + $0xe8] sm:$0xff]  ;;  %s7125_s13 = smov (!%p161_p3, %s2810_s13), 1  ;;  %v186_v40 = vld [vmem:[%s7121_s1 + $0x60] sm:$0xff] }
   0xe   : > { %4782 = vmatprep.subr.bf16.mxu1 %v5389_v3  ;;  %v4792_v37 = vpack.c.bf16 %v185_v35, %v184_v34  ;;  %v187_v41 = vld [vmem:[%s7121_s1 + $0x68] sm:$0xff]  ;;  %v4771_v42 = vpack.c.bf16 %v2833_v39, %v2832_v38  ;;  %v2834_v44 = vld [vmem:[%s7121_s1 + $0xf0] sm:$0xff]  ;;  %v2835_v45 = vld [vmem:[%s7121_s1 + $0xf8] sm:$0xff]  ;;  %s5368_s24 = smul.u32 160, %s7125_s13 }
   0xf   : > { %v4795_v43 = vpack.c.bf16 %v187_v41, %v186_v40  ;;  %v188_v46 = vld [vmem:[%s7121_s1 + $0x70] sm:$0xff]  ;;  %v189_v47 = vld [vmem:[%s7121_s1 + $0x78] sm:$0xff]  ;;  %v4774_v48 = vpack.c.bf16 %v2835_v45, %v2834_v44  ;;  %v2836_v50 = vld [vmem:[%s7121_s1 + $0x100] sm:$0xff] }
  0x10   : > { %4760 = vmatpush3.bf16.msra.mxu0 %v4759_v18  ;;  %v4798_v49 = vpack.c.bf16 %v189_v47, %v188_v46  ;;  %s5545_s4 = scalar_lea.vmem %s7120_s0, %s5368_s24  ;;  %v2837_v51 = vld [vmem:[%s7121_s1 + $0x108] sm:$0xff]  ;;  %v2855_v52 = vld [vmem:[%s7121_s1 + $0x180] sm:$0xff]  ;;  %v2838_v58 = vld [vmem:[%s7121_s1 + $0x110] sm:$0xff] }
  0x11   : > { %4784 = vmatpush3.bf16.msra.mxu1 %v4783_v19  ;;  %4761 = vmatprep.subr.bf16.mxu0 %v5389_v3  ;;  %v2856_v53 = vld [vmem:[%s7121_s1 + $0x188] sm:$0xff]  ;;  %v4801_v55 = vpack.c.bf16 %v2837_v51, %v2836_v50  ;;  %v171_v56 = vld [vmem:[%s5545_s4] sm:$0xff]  ;;  %v2839_v59 = vld [vmem:[%s7121_s1 + $0x118] sm:$0xff] }
  0x12   : > { %4785 = vmatprep.subr.bf16.mxu1 %v5389_v3  ;;  %v2817_v54 = vld [vmem:[%s5545_s4 + $0x28] sm:$0xff]  ;;  %v4825_v57 = vpack.c.bf16 %v2856_v53, %v2855_v52  ;;  %v2857_v60 = vld [vmem:[%s7121_s1 + $0x190] sm:$0xff]  ;;  %v2858_v61 = vld [vmem:[%s7121_s1 + $0x198] sm:$0xff]  ;;  %v4804_v62 = vpack.c.bf16 %v2839_v59, %v2838_v58 }
  0x13   : > { %v2818_v63 = vld [vmem:[%s5545_s4 + $0x30] sm:$0xff]  ;;  %v4828_v0 = vpack.c.bf16 %v2858_v61, %v2857_v60  ;;  %v2840_v1 = vld [vmem:[%s7121_s1 + $0x120] sm:$0xff]  ;;  %v2841_v2 = vld [vmem:[%s7121_s1 + $0x128] sm:$0xff] }
  0x14   : > { %4763 = vmatpush3.bf16.msra.mxu0 %v4762_v24  ;;  %v172_v4 = vld [vmem:[%s5545_s4 + $0x8] sm:$0xff]  ;;  %v2859_v5 = vld [vmem:[%s7121_s1 + $0x1a0] sm:$0xff]  ;;  %v4807_v7 = vpack.c.bf16 %v2841_v2, %v2840_v1  ;;  %v2819_v8 = vld [vmem:[%s5545_s4 + $0x38] sm:$0xff] }
  0x15   : > { %4787 = vmatpush3.bf16.msra.mxu1 %v4786_v25  ;;  %4764 = vmatprep.subr.bf16.mxu0 %v5389_v3  ;;  %v2860_v6 = vld [vmem:[%s7121_s1 + $0x1a8] sm:$0xff]  ;;  %v2842_v10 = vld [vmem:[%s7121_s1 + $0x130] sm:$0xff]  ;;  %v2843_v12 = vld [vmem:[%s7121_s1 + $0x138] sm:$0xff] }
  0x16   : > { %4788 = vmatprep.subr.bf16.mxu1 %v5389_v3  ;;  %v4831_v9 = vpack.c.bf16 %v2860_v6, %v2859_v5  ;;  %v173_v13 = vld [vmem:[%s5545_s4 + $0x10] sm:$0xff]  ;;  %v2862_v15 = vld [vmem:[%s7121_s1 + $0x1b8] sm:$0xff]  ;;  %v4810_v16 = vpack.c.bf16 %v2843_v12, %v2842_v10  ;;  %v2844_v18 = vld [vmem:[%s7121_s1 + $0x140] sm:$0xff] }
  0x17   : > { %v2861_v14 = vld [vmem:[%s7121_s1 + $0x1b0] sm:$0xff]  ;;  %v2845_v19 = vld [vmem:[%s7121_s1 + $0x148] sm:$0xff]  ;;  %v2863_v20 = vld [vmem:[%s7121_s1 + $0x1c0] sm:$0xff] }
  0x18   : > { %4766 = vmatpush3.bf16.msra.mxu0 %v4765_v30  ;;  %v4834_v17 = vpack.c.bf16 %v2862_v15, %v2861_v14  ;;  %v2864_v21 = vld [vmem:[%s7121_s1 + $0x1c8] sm:$0xff]  ;;  %v4813_v22 = vpack.c.bf16 %v2845_v19, %v2844_v18  ;;  %v2846_v24 = vld [vmem:[%s7121_s1 + $0x150] sm:$0xff]  ;;  %v2847_v25 = vld [vmem:[%s7121_s1 + $0x158] sm:$0xff] }
  0x19   : > { %4790 = vmatpush3.bf16.msra.mxu1 %v4789_v31  ;;  %4767 = vmatprep.subr.bf16.mxu0 %v5389_v3  ;;  %v4837_v23 = vpack.c.bf16 %v2864_v21, %v2863_v20  ;;  %v2865_v26 = vld [vmem:[%s7121_s1 + $0x1d0] sm:$0xff]  ;;  %v2866_v27 = vld [vmem:[%s7121_s1 + $0x1d8] sm:$0xff]  ;;  %v4816_v28 = vpack.c.bf16 %v2847_v25, %v2846_v24  ;;  %v2848_v30 = vld [vmem:[%s7121_s1 + $0x160] sm:$0xff] }
  0x1a   : > { %4791 = vmatprep.subr.bf16.mxu1 %v5389_v3  ;;  %v4840_v29 = vpack.c.bf16 %v2866_v27, %v2865_v26  ;;  %v2849_v31 = vld [vmem:[%s7121_s1 + $0x168] sm:$0xff]  ;;  %v2867_v32 = vld [vmem:[%s7121_s1 + $0x1e0] sm:$0xff]  ;;  %v2869_v38 = vld [vmem:[%s7121_s1 + $0x1f0] sm:$0xff] }
  0x1b   : > { %v2868_v33 = vld [vmem:[%s7121_s1 + $0x1e8] sm:$0xff]  ;;  %v4819_v34 = vpack.c.bf16 %v2849_v31, %v2848_v30  ;;  %v2870_v39 = vld [vmem:[%s7121_s1 + $0x1f8] sm:$0xff]  ;;  %v2890_v44 = vld [vmem:[%s7121_s1 + $0x280] sm:$0xff] }
  0x1c   : > { %4769 = vmatpush3.bf16.msra.mxu0 %v4768_v36  ;;  %v4843_v35 = vpack.c.bf16 %v2868_v33, %v2867_v32  ;;  %v2850_v36 = vld [vmem:[%s7121_s1 + $0x170] sm:$0xff]  ;;  %v4846_v41 = vpack.c.bf16 %v2870_v39, %v2869_v38  ;;  %v2891_v45 = vld [vmem:[%s7121_s1 + $0x288] sm:$0xff]  ;;  %v2874_v51 = vld [vmem:[%s7121_s1 + $0x218] sm:$0xff] }
  0x1d   : > { %4793 = vmatpush3.bf16.msra.mxu1 %v4792_v37  ;;  %4770 = vmatprep.subr.bf16.mxu0 %v5389_v3  ;;  %v2851_v37 = vld [vmem:[%s7121_s1 + $0x178] sm:$0xff]  ;;  %v371_v46 = vld [vmem:[%s5545_s4 + $0x1] sm:$0xff]  ;;  %v2873_v50 = vld [vmem:[%s7121_s1 + $0x210] sm:$0xff] }
  0x1e   : > { %4794 = vmatprep.subr.bf16.mxu1 %v5389_v3  ;;  %v4822_v40 = vpack.c.bf16 %v2851_v37, %v2850_v36  ;;  %v2892_v52 = vld [vmem:[%s7121_s1 + $0x290] sm:$0xff]  ;;  %v2893_v53 = vld [vmem:[%s7121_s1 + $0x298] sm:$0xff]  ;;  %v2875_v58 = vld [vmem:[%s7121_s1 + $0x220] sm:$0xff] }
  0x1f   : > { %v2876_v59 = vld [vmem:[%s7121_s1 + $0x228] sm:$0xff]  ;;  %v2894_v60 = vld [vmem:[%s7121_s1 + $0x2a0] sm:$0xff]  ;;  %v2877_v2 = vld [vmem:[%s7121_s1 + $0x230] sm:$0xff] }
  0x20   : > { %4772 = vmatpush3.bf16.msra.mxu0 %v4771_v42  ;;  %v2871_v42 = vld [vmem:[%s7121_s1 + $0x200] sm:$0xff]  ;;  %v2895_v61 = vld [vmem:[%s7121_s1 + $0x2a8] sm:$0xff]  ;;  %v2896_v5 = vld [vmem:[%s7121_s1 + $0x2b0] sm:$0xff] }
  0x21   : > { %4796 = vmatpush3.bf16.msra.mxu1 %v4795_v43  ;;  %4773 = vmatprep.subr.bf16.mxu0 %v5389_v3  ;;  %v2872_v43 = vld [vmem:[%s7121_s1 + $0x208] sm:$0xff]  ;;  %v2854_v1 = vld [vmem:[%s5545_s4 + $0x39] sm:$0xff]  ;;  %v2900_v18 = vld [vmem:[%s7121_s1 + $0x2d0] sm:$0xff] }
  0x22   : > { %4797 = vmatprep.subr.bf16.mxu1 %v5389_v3  ;;  %v4849_v47 = vpack.c.bf16 %v2872_v43, %v2871_v42  ;;  %v2897_v6 = vld [vmem:[%s7121_s1 + $0x2b8] sm:$0xff]  ;;  %v2880_v10 = vld [vmem:[%s7121_s1 + $0x248] sm:$0xff]  ;;  %v2898_v12 = vld [vmem:[%s7121_s1 + $0x2c0] sm:$0xff] }
  0x23   : > { %v2901_v19 = vld [vmem:[%s7121_s1 + $0x2d8] sm:$0xff]  ;;  %v2902_v24 = vld [vmem:[%s7121_s1 + $0x2e0] sm:$0xff]  ;;  %v2903_v25 = vld [vmem:[%s7121_s1 + $0x2e8] sm:$0xff] }
  0x24   : > { %4775 = vmatpush3.bf16.msra.mxu0 %v4774_v48  ;;  %v2852_v48 = vld [vmem:[%s5545_s4 + $0x29] sm:$0xff]  ;;  %v4888_v21 = vpack.c.bf16 %v2901_v19, %v2900_v18  ;;  %v4891_v27 = vpack.c.bf16 %v2903_v25, %v2902_v24  ;;  %v2905_v31 = vld [vmem:[%s7121_s1 + $0x2f8] sm:$0xff]  ;;  %v2928_v36 = vld [vmem:[%s7121_s1 + $0x380] sm:$0xff] }
  0x25   : > { %4799 = vmatpush3.bf16.msra.mxu1 %v4798_v49  ;;  %4800 = vmatprep.subr.bf16.mxu0 %v5389_v3  ;;  %v4873_v49 = vpack.c.bf16 %v2891_v45, %v2890_v44  ;;  %v2904_v30 = vld [vmem:[%s7121_s1 + $0x2f0] sm:$0xff]  ;;  %v2929_v37 = vld [vmem:[%s7121_s1 + $0x388] sm:$0xff]  ;;  %v2912_v43 = vld [vmem:[%s7121_s1 + $0x318] sm:$0xff] }
  0x26   : > { %4824 = vmatprep.subr.bf16.mxu1 %v5389_v3  ;;  %v4894_v33 = vpack.c.bf16 %v2905_v31, %v2904_v30  ;;  %v577_v38 = vld [vmem:[%s5545_s4 + $0x2] sm:$0xff]  ;;  %v2911_v42 = vld [vmem:[%s7121_s1 + $0x310] sm:$0xff]  ;;  %v2931_v45 = vld [vmem:[%s7121_s1 + $0x398] sm:$0xff] }
  0x27   : > { %3760 = vmatmul.mubr.f32.vlgmr.msra.gmra.mrb[0].mxu0 %v2817_v54  ;;  %v372_v54 = vld [vmem:[%s5545_s4 + $0x9] sm:$0xff]  ;;  %v2906_v30 = vld [vmem:[%s5545_s4 + $0x78] sm:$0xff] }
  0x28   : > { %3801 = vmatmul.mubr.f32.vlgmr.msra.gmra.mrb[0].mxu1 %v171_v56  ;;  %4802 = vmatpush3.bf16.msra.mxu0 %v4801_v55  ;;  %v4852_v55 = vpack.c.bf16 %v2874_v51, %v2873_v50  ;;  %v4876_v56 = vpack.c.bf16 %v2893_v53, %v2892_v52  ;;  %v2930_v44 = vld [vmem:[%s7121_s1 + $0x390] sm:$0xff]  ;;  %v2913_v50 = vld [vmem:[%s7121_s1 + $0x320] sm:$0xff]  ;;  %v2914_v51 = vld [vmem:[%s7121_s1 + $0x328] sm:$0xff] }
  0x29   : > { %4826 = vmatpush3.bf16.msra.mxu1 %v4825_v57  ;;  %4803 = vmatprep.subr.bf16.mxu0 %v5389_v3  ;;  %v2853_v57 = vld [vmem:[%s5545_s4 + $0x31] sm:$0xff]  ;;  %v2932_v52 = vld [vmem:[%s7121_s1 + $0x3a0] sm:$0xff]  ;;  %v2933_v53 = vld [vmem:[%s7121_s1 + $0x3a8] sm:$0xff] }
  0x2a   : > { %4827 = vmatprep.subr.bf16.mxu1 %v5389_v3  ;;  %3762 = vmatprep.mubr.msk.f32.mxu0 %vm5390_vm0, %v5391_v11 }
  0x2b   : > { %3803 = vmatprep.mubr.msk.f32.mxu1 %vm5390_vm0, %v5391_v11  ;;  %3763 = vmatmul.mubr.f32.gmra.mrb[2].mxu0 %v2818_v63  ;;  %v4855_v63 = vpack.c.bf16 %v2876_v59, %v2875_v58  ;;  %v2915_v58 = vld [vmem:[%s7121_s1 + $0x330] sm:$0xff]  ;;  %v2916_v59 = vld [vmem:[%s7121_s1 + $0x338] sm:$0xff] }
  0x2c   : > { %4805 = vmatpush3.bf16.msra.mxu0 %v4804_v62  ;;  %3804 = vmatmul.mubr.f32.gmra.mrb[2].mxu1 %v172_v4  ;;  %v373_v62 = vld [vmem:[%s5545_s4 + $0x11] sm:$0xff] }
  0x2d   : > { %4829 = vmatpush3.bf16.msra.mxu1 %v4828_v0  ;;  %4806 = vmatprep.subr.bf16.mxu0 %v5389_v3  ;;  %v4879_v0 = vpack.c.bf16 %v2895_v61, %v2894_v60  ;;  %v2878_v4 = vld [vmem:[%s7121_s1 + $0x238] sm:$0xff]  ;;  %v2934_v60 = vld [vmem:[%s7121_s1 + $0x3b0] sm:$0xff] }
  0x2e   : > { %4830 = vmatprep.subr.bf16.mxu1 %v5389_v3  ;;  %3765 = vmatprep.mubr.msk.f32.mxu0 %vm5390_vm0, %v5391_v11  ;;  %v2935_v61 = vld [vmem:[%s7121_s1 + $0x3b8] sm:$0xff] }
  0x2f   : > { %3806 = vmatprep.mubr.msk.f32.mxu1 %vm5390_vm0, %v5391_v11  ;;  %3766 = vmatmul.mubr.f32.gmra.mrb[4].mxu0 %v2819_v8  ;;  %v4882_v8 = vpack.c.bf16 %v2897_v6, %v2896_v5 }
  0x30   : > { %4808 = vmatpush3.bf16.msra.mxu0 %v4807_v7  ;;  %3807 = vmatmul.mubr.f32.gmra.mrb[4].mxu1 %v173_v13  ;;  %v4858_v7 = vpack.c.bf16 %v2878_v4, %v2877_v2  ;;  %v2899_v13 = vld [vmem:[%s7121_s1 + $0x2c8] sm:$0xff]  ;;  %v2936_v2 = vld [vmem:[%s7121_s1 + $0x3c0] sm:$0xff] }
  0x31   : > { %4832 = vmatpush3.bf16.msra.mxu1 %v4831_v9  ;;  %4809 = vmatprep.subr.bf16.mxu0 %v5389_v3  ;;  %v2879_v9 = vld [vmem:[%s7121_s1 + $0x240] sm:$0xff]  ;;  %v4885_v15 = vpack.c.bf16 %v2899_v13, %v2898_v12  ;;  %v2937_v4 = vld [vmem:[%s7121_s1 + $0x3c8] sm:$0xff] }
  0x32   : > { %4833 = vmatprep.subr.bf16.mxu1 %v5389_v3  ;;  %3841 = vmatprep.mubr.msk.f32.mxu0 %vm5390_vm0, %v5391_v11  ;;  %v4861_v14 = vpack.c.bf16 %v2880_v10, %v2879_v9  ;;  %v4933_v6 = vpack.c.bf16 %v2937_v4, %v2936_v2  ;;  %v2938_v9 = vld [vmem:[%s7121_s1 + $0x3d0] sm:$0xff]  ;;  %v2939_v10 = vld [vmem:[%s7121_s1 + $0x3d8] sm:$0xff] }
  0x33   : > { %3882 = vmatprep.mubr.msk.f32.mxu1 %vm5390_vm0, %v5391_v11  ;;  %v4936_v13 = vpack.c.bf16 %v2939_v10, %v2938_v9 }
  0x34   : > { %4811 = vmatpush3.bf16.msra.mxu0 %v4810_v16  ;;  %v2881_v16 = vld [vmem:[%s7121_s1 + $0x250] sm:$0xff] }
  0x35   : > { %4835 = vmatpush3.bf16.msra.mxu1 %v4834_v17  ;;  %4812 = vmatprep.subr.bf16.mxu0 %v5389_v3  ;;  %v2882_v17 = vld [vmem:[%s7121_s1 + $0x258] sm:$0xff] }
  0x36   : > { %4836 = vmatprep.subr.bf16.mxu1 %v5389_v3  ;;  %v4864_v20 = vpack.c.bf16 %v2882_v17, %v2881_v16  ;;  %v2940_v16 = vld [vmem:[%s7121_s1 + $0x3e0] sm:$0xff]  ;;  %v2941_v17 = vld [vmem:[%s7121_s1 + $0x3e8] sm:$0xff] }
  0x37   : > { %v4939_v19 = vpack.c.bf16 %v2941_v17, %v2940_v16 }
  0x38   : > { %4814 = vmatpush3.bf16.msra.mxu0 %v4813_v22  ;;  %v2883_v22 = vld [vmem:[%s7121_s1 + $0x260] sm:$0xff] }
  0x39   : > { %4838 = vmatpush3.bf16.msra.mxu1 %v4837_v23  ;;  %4815 = vmatprep.subr.bf16.mxu0 %v5389_v3  ;;  %v2884_v23 = vld [vmem:[%s7121_s1 + $0x268] sm:$0xff] }
  0x3a   : > { %4839 = vmatprep.subr.bf16.mxu1 %v5389_v3  ;;  %v4867_v26 = vpack.c.bf16 %v2884_v23, %v2883_v22  ;;  %v2942_v22 = vld [vmem:[%s7121_s1 + $0x3f0] sm:$0xff]  ;;  %v2943_v23 = vld [vmem:[%s7121_s1 + $0x3f8] sm:$0xff] }
  0x3b   : > { %v4942_v25 = vpack.c.bf16 %v2943_v23, %v2942_v22  ;;  %v2944_v22 = vld [vmem:[%s5545_s4 + $0x79] sm:$0xff] }
  0x3c   : > { %4817 = vmatpush3.bf16.msra.mxu0 %v4816_v28  ;;  %v2885_v28 = vld [vmem:[%s7121_s1 + $0x270] sm:$0xff] }
  0x3d   : > { %4841 = vmatpush3.bf16.msra.mxu1 %v4840_v29  ;;  %4818 = vmatprep.subr.bf16.mxu0 %v5389_v3  ;;  %v2886_v29 = vld [vmem:[%s7121_s1 + $0x278] sm:$0xff] }
  0x3e   : > { %4842 = vmatprep.subr.bf16.mxu1 %v5389_v3  ;;  %v4870_v32 = vpack.c.bf16 %v2886_v29, %v2885_v28  ;;  %v2966_v28 = vld [vmem:[%s7121_s1 + $0x480] sm:$0xff]  ;;  %v2967_v29 = vld [vmem:[%s7121_s1 + $0x488] sm:$0xff] }
  0x40   : > { %4820 = vmatpush3.bf16.msra.mxu0 %v4819_v34  ;;  %v2909_v34 = vld [vmem:[%s7121_s1 + $0x300] sm:$0xff] }
  0x41   : > { %4844 = vmatpush3.bf16.msra.mxu1 %v4843_v35  ;;  %4821 = vmatprep.subr.bf16.mxu0 %v5389_v3  ;;  %v2910_v35 = vld [vmem:[%s7121_s1 + $0x308] sm:$0xff] }
  0x42   : > { %4845 = vmatprep.subr.bf16.mxu1 %v5389_v3  ;;  %v4897_v39 = vpack.c.bf16 %v2910_v35, %v2909_v34  ;;  %v2949_v34 = vld [vmem:[%s7121_s1 + $0x410] sm:$0xff]  ;;  %v2950_v35 = vld [vmem:[%s7121_s1 + $0x418] sm:$0xff] }
  0x44   : > { %4823 = vmatpush3.bf16.msra.mxu0 %v4822_v40  ;;  %v2887_v40 = vld [vmem:[%s5545_s4 + $0x50] sm:$0xff] }
  0x45   : > { %4847 = vmatpush3.bf16.msra.mxu1 %v4846_v41  ;;  %4848 = vmatprep.subr.bf16.mxu0 %v5389_v3  ;;  %v4921_v41 = vpack.c.bf16 %v2929_v37, %v2928_v36  ;;  %v2968_v36 = vld [vmem:[%s7121_s1 + $0x490] sm:$0xff]  ;;  %v2969_v37 = vld [vmem:[%s7121_s1 + $0x498] sm:$0xff] }
  0x46   : > { %4872 = vmatprep.subr.bf16.mxu1 %v5389_v3 }
  0x47   : > { %3842 = vmatmul.mubr.f32.vlgmr.msra.gmra.mrb[6].mxu0 %v371_v46  ;;  %v578_v46 = vld [vmem:[%s5545_s4 + $0xa] sm:$0xff] }
  0x48   : > { %3883 = vmatmul.mubr.f32.vlgmr.msra.gmra.mrb[6].mxu1 %v2852_v48  ;;  %4850 = vmatpush3.bf16.msra.mxu0 %v4849_v47  ;;  %v4900_v47 = vpack.c.bf16 %v2912_v43, %v2911_v42  ;;  %v4924_v48 = vpack.c.bf16 %v2931_v45, %v2930_v44  ;;  %v2951_v42 = vld [vmem:[%s7121_s1 + $0x420] sm:$0xff]  ;;  %v2952_v43 = vld [vmem:[%s7121_s1 + $0x428] sm:$0xff] }
  0x49   : > { %4874 = vmatpush3.bf16.msra.mxu1 %v4873_v49  ;;  %3844 = vmatprep.mubr.msk.f32.mxu0 %vm5390_vm0, %v5391_v11  ;;  %v2888_v49 = vld [vmem:[%s5545_s4 + $0x58] sm:$0xff]  ;;  %v2970_v44 = vld [vmem:[%s7121_s1 + $0x4a0] sm:$0xff]  ;;  %v2971_v45 = vld [vmem:[%s7121_s1 + $0x4a8] sm:$0xff] }
  0x4a   : > { %4851 = vmatprep.subr.bf16.mxu0 %v5389_v3  ;;  %4875 = vmatprep.subr.bf16.mxu1 %v5389_v3 }
  0x4b   : > { %3845 = vmatmul.mubr.f32.gmra.mrb[8].mxu0 %v372_v54  ;;  %3885 = vmatprep.mubr.msk.f32.mxu1 %vm5390_vm0, %v5391_v11  ;;  %v579_v54 = vld [vmem:[%s5545_s4 + $0x12] sm:$0xff] }
  0x4c   : > { %4853 = vmatpush3.bf16.msra.mxu0 %v4852_v55  ;;  %3886 = vmatmul.mubr.f32.gmra.mrb[8].mxu1 %v2853_v57  ;;  %v4903_v55 = vpack.c.bf16 %v2914_v51, %v2913_v50  ;;  %v2889_v57 = vld [vmem:[%s5545_s4 + $0x60] sm:$0xff]  ;;  %v2953_v50 = vld [vmem:[%s7121_s1 + $0x430] sm:$0xff]  ;;  %v2954_v51 = vld [vmem:[%s7121_s1 + $0x438] sm:$0xff] }
  0x4d   : > { %4877 = vmatpush3.bf16.msra.mxu1 %v4876_v56  ;;  %3847 = vmatprep.mubr.msk.f32.mxu0 %vm5390_vm0, %v5391_v11  ;;  %v4927_v56 = vpack.c.bf16 %v2933_v53, %v2932_v52  ;;  %v2972_v52 = vld [vmem:[%s7121_s1 + $0x4b0] sm:$0xff]  ;;  %v2973_v53 = vld [vmem:[%s7121_s1 + $0x4b8] sm:$0xff] }
  0x4e   : > { %4854 = vmatprep.subr.bf16.mxu0 %v5389_v3  ;;  %4878 = vmatprep.subr.bf16.mxu1 %v5389_v3 }
  0x4f   : > { %3848 = vmatmul.mubr.f32.gmra.mrb[10].mxu0 %v373_v62  ;;  %3888 = vmatprep.mubr.msk.f32.mxu1 %vm5390_vm0, %v5391_v11  ;;  %v4906_v62 = vpack.c.bf16 %v2916_v59, %v2915_v58  ;;  %v2974_v58 = vld [vmem:[%s7121_s1 + $0x4c0] sm:$0xff]  ;;  %v2975_v59 = vld [vmem:[%s7121_s1 + $0x4c8] sm:$0xff] }
  0x50   : > { %4856 = vmatpush3.bf16.msra.mxu0 %v4855_v63  ;;  %3889 = vmatmul.mubr.f32.gmra.mrb[10].mxu1 %v2854_v1  ;;  %v4930_v63 = vpack.c.bf16 %v2935_v61, %v2934_v60  ;;  %v2918_v1 = vld [vmem:[%s7121_s1 + $0x348] sm:$0xff]  ;;  %v4981_v61 = vpack.c.bf16 %v2975_v59, %v2974_v58 }
  0x51   : > { %4880 = vmatpush3.bf16.msra.mxu1 %v4879_v0  ;;  %4857 = vmatprep.subr.bf16.mxu0 %v5389_v3  ;;  %v2917_v0 = vld [vmem:[%s7121_s1 + $0x340] sm:$0xff] }
  0x52   : > { %4881 = vmatprep.subr.bf16.mxu1 %v5389_v3  ;;  %3923 = vmatprep.mubr.msk.f32.mxu0 %vm5390_vm0, %v5391_v11  ;;  %v4909_v5 = vpack.c.bf16 %v2918_v1, %v2917_v0  ;;  %v2976_v0 = vld [vmem:[%s7121_s1 + $0x4d0] sm:$0xff]  ;;  %v2977_v1 = vld [vmem:[%s7121_s1 + $0x4d8] sm:$0xff] }
  0x53   : > { %3964 = vmatprep.mubr.msk.f32.mxu1 %vm5390_vm0, %v5391_v11  ;;  %v4984_v4 = vpack.c.bf16 %v2977_v1, %v2976_v0 }
  0x54   : > { %4859 = vmatpush3.bf16.msra.mxu0 %v4858_v7  ;;  %v2919_v7 = vld [vmem:[%s7121_s1 + $0x350] sm:$0xff] }
  0x55   : > { %4883 = vmatpush3.bf16.msra.mxu1 %v4882_v8  ;;  %4860 = vmatprep.subr.bf16.mxu0 %v5389_v3  ;;  %v2920_v8 = vld [vmem:[%s7121_s1 + $0x358] sm:$0xff] }
  0x56   : > { %4884 = vmatprep.subr.bf16.mxu1 %v5389_v3  ;;  %v4912_v12 = vpack.c.bf16 %v2920_v8, %v2919_v7  ;;  %v2978_v7 = vld [vmem:[%s7121_s1 + $0x4e0] sm:$0xff]  ;;  %v2979_v8 = vld [vmem:[%s7121_s1 + $0x4e8] sm:$0xff] }
  0x57   : > { %v4987_v10 = vpack.c.bf16 %v2979_v8, %v2978_v7 }
  0x58   : > { %4862 = vmatpush3.bf16.msra.mxu0 %v4861_v14  ;;  %v2921_v14 = vld [vmem:[%s7121_s1 + $0x360] sm:$0xff] }
  0x59   : > { %4886 = vmatpush3.bf16.msra.mxu1 %v4885_v15  ;;  %4863 = vmatprep.subr.bf16.mxu0 %v5389_v3  ;;  %v2922_v15 = vld [vmem:[%s7121_s1 + $0x368] sm:$0xff] }
  0x5a   : > { %4887 = vmatprep.subr.bf16.mxu1 %v5389_v3  ;;  %v4915_v18 = vpack.c.bf16 %v2922_v15, %v2921_v14  ;;  %v2980_v14 = vld [vmem:[%s7121_s1 + $0x4f0] sm:$0xff]  ;;  %v2981_v15 = vld [vmem:[%s7121_s1 + $0x4f8] sm:$0xff] }
  0x5b   : > { %v4990_v17 = vpack.c.bf16 %v2981_v15, %v2980_v14  ;;  %v1197_v14 = vld [vmem:[%s5545_s4 + $0x6] sm:$0xff] }
  0x5c   : > { %4865 = vmatpush3.bf16.msra.mxu0 %v4864_v20  ;;  %v2923_v20 = vld [vmem:[%s7121_s1 + $0x370] sm:$0xff] }
  0x5d   : > { %4889 = vmatpush3.bf16.msra.mxu1 %v4888_v21  ;;  %4866 = vmatprep.subr.bf16.mxu0 %v5389_v3  ;;  %v2924_v21 = vld [vmem:[%s7121_s1 + $0x378] sm:$0xff] }
  0x5e   : > { %4890 = vmatprep.subr.bf16.mxu1 %v5389_v3  ;;  %v4918_v24 = vpack.c.bf16 %v2924_v21, %v2923_v20  ;;  %v3001_v20 = vld [vmem:[%s7121_s1 + $0x580] sm:$0xff]  ;;  %v3002_v21 = vld [vmem:[%s7121_s1 + $0x588] sm:$0xff] }
  0x60   : > { %4868 = vmatpush3.bf16.msra.mxu0 %v4867_v26  ;;  %v2947_v26 = vld [vmem:[%s7121_s1 + $0x400] sm:$0xff] }
  0x61   : > { %4892 = vmatpush3.bf16.msra.mxu1 %v4891_v27  ;;  %4869 = vmatprep.subr.bf16.mxu0 %v5389_v3  ;;  %v2948_v27 = vld [vmem:[%s7121_s1 + $0x408] sm:$0xff] }
  0x62   : > { %4893 = vmatprep.subr.bf16.mxu1 %v5389_v3  ;;  %v4945_v31 = vpack.c.bf16 %v2948_v27, %v2947_v26  ;;  %v2984_v26 = vld [vmem:[%s7121_s1 + $0x510] sm:$0xff]  ;;  %v2985_v27 = vld [vmem:[%s7121_s1 + $0x518] sm:$0xff] }
  0x64   : > { %4871 = vmatpush3.bf16.msra.mxu0 %v4870_v32  ;;  %v2925_v32 = vld [vmem:[%s5545_s4 + $0x51] sm:$0xff] }
  0x65   : > { %4895 = vmatpush3.bf16.msra.mxu1 %v4894_v33  ;;  %4896 = vmatprep.subr.bf16.mxu0 %v5389_v3  ;;  %v4969_v33 = vpack.c.bf16 %v2967_v29, %v2966_v28  ;;  %v3003_v28 = vld [vmem:[%s7121_s1 + $0x590] sm:$0xff]  ;;  %v3004_v29 = vld [vmem:[%s7121_s1 + $0x598] sm:$0xff] }
  0x66   : > { %4920 = vmatprep.subr.bf16.mxu1 %v5389_v3 }
  0x67   : > { %3924 = vmatmul.mubr.f32.vlgmr.msra.gmra.mrb[12].mxu0 %v577_v38  ;;  %v2907_v38 = vld [vmem:[%s5545_s4 + $0x80] sm:$0xff] }
  0x68   : > { %3965 = vmatmul.mubr.f32.vlgmr.msra.gmra.mrb[12].mxu1 %v2887_v40  ;;  %4898 = vmatpush3.bf16.msra.mxu0 %v4897_v39  ;;  %v4948_v39 = vpack.c.bf16 %v2950_v35, %v2949_v34  ;;  %v4972_v40 = vpack.c.bf16 %v2969_v37, %v2968_v36  ;;  %v2986_v34 = vld [vmem:[%s7121_s1 + $0x520] sm:$0xff]  ;;  %v2987_v35 = vld [vmem:[%s7121_s1 + $0x528] sm:$0xff] }
  0x69   : > { %4922 = vmatpush3.bf16.msra.mxu1 %v4921_v41  ;;  %3926 = vmatprep.mubr.msk.f32.mxu0 %vm5390_vm0, %v5391_v11  ;;  %v2926_v41 = vld [vmem:[%s5545_s4 + $0x59] sm:$0xff]  ;;  %v3006_v37 = vld [vmem:[%s7121_s1 + $0x5a8] sm:$0xff] }
  0x6a   : > { %4899 = vmatprep.subr.bf16.mxu0 %v5389_v3  ;;  %4923 = vmatprep.subr.bf16.mxu1 %v5389_v3  ;;  %v3005_v36 = vld [vmem:[%s7121_s1 + $0x5a0] sm:$0xff] }
  0x6b   : > { %3927 = vmatmul.mubr.f32.gmra.mrb[14].mxu0 %v578_v46  ;;  %3967 = vmatprep.mubr.msk.f32.mxu1 %vm5390_vm0, %v5391_v11  ;;  %v2908_v46 = vld [vmem:[%s5545_s4 + $0x88] sm:$0xff] }
  0x6c   : > { %4901 = vmatpush3.bf16.msra.mxu0 %v4900_v47  ;;  %3968 = vmatmul.mubr.f32.gmra.mrb[14].mxu1 %v2888_v49  ;;  %v4951_v47 = vpack.c.bf16 %v2952_v43, %v2951_v42  ;;  %v2927_v49 = vld [vmem:[%s5545_s4 + $0x61] sm:$0xff]  ;;  %v2988_v42 = vld [vmem:[%s7121_s1 + $0x530] sm:$0xff]  ;;  %v2989_v43 = vld [vmem:[%s7121_s1 + $0x538] sm:$0xff] }
  0x6d   : > { %4925 = vmatpush3.bf16.msra.mxu1 %v4924_v48  ;;  %3929 = vmatprep.mubr.msk.f32.mxu0 %vm5390_vm0, %v5391_v11  ;;  %v4975_v48 = vpack.c.bf16 %v2971_v45, %v2970_v44  ;;  %v3007_v44 = vld [vmem:[%s7121_s1 + $0x5b0] sm:$0xff]  ;;  %v3008_v45 = vld [vmem:[%s7121_s1 + $0x5b8] sm:$0xff] }
  0x6e   : > { %4902 = vmatprep.subr.bf16.mxu0 %v5389_v3  ;;  %4926 = vmatprep.subr.bf16.mxu1 %v5389_v3 }
  0x6f   : > { %3930 = vmatmul.mubr.f32.gmra.mrb[16].mxu0 %v579_v54  ;;  %3970 = vmatprep.mubr.msk.f32.mxu1 %vm5390_vm0, %v5391_v11  ;;  %v4954_v54 = vpack.c.bf16 %v2954_v51, %v2953_v50  ;;  %v3009_v50 = vld [vmem:[%s7121_s1 + $0x5c0] sm:$0xff]  ;;  %v3010_v51 = vld [vmem:[%s7121_s1 + $0x5c8] sm:$0xff] }
  0x70   : > { %4904 = vmatpush3.bf16.msra.mxu0 %v4903_v55  ;;  %3971 = vmatmul.mubr.f32.gmra.mrb[16].mxu1 %v2889_v57  ;;  %v4978_v55 = vpack.c.bf16 %v2973_v53, %v2972_v52  ;;  %v2956_v57 = vld [vmem:[%s7121_s1 + $0x448] sm:$0xff]  ;;  %v5029_v53 = vpack.c.bf16 %v3010_v51, %v3009_v50 }
  0x71   : > { %4928 = vmatpush3.bf16.msra.mxu1 %v4927_v56  ;;  %4905 = vmatprep.subr.bf16.mxu0 %v5389_v3  ;;  %v2955_v56 = vld [vmem:[%s7121_s1 + $0x440] sm:$0xff] }
  0x72   : > { %4929 = vmatprep.subr.bf16.mxu1 %v5389_v3  ;;  %4005 = vmatprep.mubr.msk.f32.mxu0 %vm5390_vm0, %v5391_v11  ;;  %v4957_v60 = vpack.c.bf16 %v2956_v57, %v2955_v56  ;;  %v3011_v56 = vld [vmem:[%s7121_s1 + $0x5d0] sm:$0xff]  ;;  %v3012_v57 = vld [vmem:[%s7121_s1 + $0x5d8] sm:$0xff] }
  0x73   : > { %4046 = vmatprep.mubr.msk.f32.mxu1 %vm5390_vm0, %v5391_v11  ;;  %v5032_v59 = vpack.c.bf16 %v3012_v57, %v3011_v56 }
  0x74   : > { %4907 = vmatpush3.bf16.msra.mxu0 %v4906_v62  ;;  %v2957_v62 = vld [vmem:[%s7121_s1 + $0x450] sm:$0xff] }
  0x75   : > { %4931 = vmatpush3.bf16.msra.mxu1 %v4930_v63  ;;  %4908 = vmatprep.subr.bf16.mxu0 %v5389_v3  ;;  %v2958_v63 = vld [vmem:[%s7121_s1 + $0x458] sm:$0xff] }
  0x76   : > { %4932 = vmatprep.subr.bf16.mxu1 %v5389_v3  ;;  %v4960_v2 = vpack.c.bf16 %v2958_v63, %v2957_v62  ;;  %v3013_v62 = vld [vmem:[%s7121_s1 + $0x5e0] sm:$0xff]  ;;  %v3014_v63 = vld [vmem:[%s7121_s1 + $0x5e8] sm:$0xff] }
  0x77   : > { %v5035_v1 = vpack.c.bf16 %v3014_v63, %v3013_v62 }
  0x78   : > { %4910 = vmatpush3.bf16.msra.mxu0 %v4909_v5  ;;  %v2959_v5 = vld [vmem:[%s7121_s1 + $0x460] sm:$0xff] }
  0x79   : > { %4934 = vmatpush3.bf16.msra.mxu1 %v4933_v6  ;;  %4911 = vmatprep.subr.bf16.mxu0 %v5389_v3  ;;  %v2960_v6 = vld [vmem:[%s7121_s1 + $0x468] sm:$0xff] }
  0x7a   : > { %4935 = vmatprep.subr.bf16.mxu1 %v5389_v3  ;;  %v4963_v9 = vpack.c.bf16 %v2960_v6, %v2959_v5  ;;  %v3015_v5 = vld [vmem:[%s7121_s1 + $0x5f0] sm:$0xff]  ;;  %v3016_v6 = vld [vmem:[%s7121_s1 + $0x5f8] sm:$0xff] }
  0x7b   : > { %v5038_v8 = vpack.c.bf16 %v3016_v6, %v3015_v5  ;;  %v1403_v5 = vld [vmem:[%s5545_s4 + $0x7] sm:$0xff] }
  0x7c   : > { %4913 = vmatpush3.bf16.msra.mxu0 %v4912_v12  ;;  %v2961_v12 = vld [vmem:[%s7121_s1 + $0x470] sm:$0xff] }
  0x7d   : > { %4937 = vmatpush3.bf16.msra.mxu1 %v4936_v13  ;;  %4914 = vmatprep.subr.bf16.mxu0 %v5389_v3  ;;  %v2962_v13 = vld [vmem:[%s7121_s1 + $0x478] sm:$0xff] }
  0x7e   : > { %4938 = vmatprep.subr.bf16.mxu1 %v5389_v3  ;;  %v4966_v16 = vpack.c.bf16 %v2962_v13, %v2961_v12  ;;  %v3036_v12 = vld [vmem:[%s7121_s1 + $0x680] sm:$0xff]  ;;  %v3037_v13 = vld [vmem:[%s7121_s1 + $0x688] sm:$0xff] }
  0x80   : > { %4916 = vmatpush3.bf16.msra.mxu0 %v4915_v18  ;;  %v2982_v18 = vld [vmem:[%s7121_s1 + $0x500] sm:$0xff] }
  0x81   : > { %4940 = vmatpush3.bf16.msra.mxu1 %v4939_v19  ;;  %4917 = vmatprep.subr.bf16.mxu0 %v5389_v3  ;;  %v2983_v19 = vld [vmem:[%s7121_s1 + $0x508] sm:$0xff] }
  0x82   : > { %4941 = vmatprep.subr.bf16.mxu1 %v5389_v3  ;;  %v4993_v23 = vpack.c.bf16 %v2983_v19, %v2982_v18  ;;  %v3019_v18 = vld [vmem:[%s7121_s1 + $0x610] sm:$0xff]  ;;  %v3020_v19 = vld [vmem:[%s7121_s1 + $0x618] sm:$0xff] }
  0x84   : > { %4919 = vmatpush3.bf16.msra.mxu0 %v4918_v24  ;;  %v2963_v24 = vld [vmem:[%s5545_s4 + $0x52] sm:$0xff] }
  0x85   : > { %4943 = vmatpush3.bf16.msra.mxu1 %v4942_v25  ;;  %4944 = vmatprep.subr.bf16.mxu0 %v5389_v3  ;;  %v5017_v25 = vpack.c.bf16 %v3002_v21, %v3001_v20  ;;  %v3038_v20 = vld [vmem:[%s7121_s1 + $0x690] sm:$0xff]  ;;  %v3039_v21 = vld [vmem:[%s7121_s1 + $0x698] sm:$0xff] }
  0x86   : > { %4968 = vmatprep.subr.bf16.mxu1 %v5389_v3 }
  0x87   : > { %4006 = vmatmul.mubr.f32.vlgmr.msra.gmra.mrb[18].mxu0 %v2906_v30  ;;  %v2945_v30 = vld [vmem:[%s5545_s4 + $0x81] sm:$0xff] }
  0x88   : > { %4047 = vmatmul.mubr.f32.vlgmr.msra.gmra.mrb[18].mxu1 %v2925_v32  ;;  %4946 = vmatpush3.bf16.msra.mxu0 %v4945_v31  ;;  %v4996_v31 = vpack.c.bf16 %v2985_v27, %v2984_v26  ;;  %v5020_v32 = vpack.c.bf16 %v3004_v29, %v3003_v28  ;;  %v3021_v26 = vld [vmem:[%s7121_s1 + $0x620] sm:$0xff]  ;;  %v3022_v27 = vld [vmem:[%s7121_s1 + $0x628] sm:$0xff] }
  0x89   : > { %4970 = vmatpush3.bf16.msra.mxu1 %v4969_v33  ;;  %4008 = vmatprep.mubr.msk.f32.mxu0 %vm5390_vm0, %v5391_v11  ;;  %v2964_v33 = vld [vmem:[%s5545_s4 + $0x5a] sm:$0xff]  ;;  %v3041_v29 = vld [vmem:[%s7121_s1 + $0x6a8] sm:$0xff] }
  0x8a   : > { %4947 = vmatprep.subr.bf16.mxu0 %v5389_v3  ;;  %4971 = vmatprep.subr.bf16.mxu1 %v5389_v3  ;;  %v3040_v28 = vld [vmem:[%s7121_s1 + $0x6a0] sm:$0xff] }
  0x8b   : > { %4009 = vmatmul.mubr.f32.gmra.mrb[20].mxu0 %v2907_v38  ;;  %4049 = vmatprep.mubr.msk.f32.mxu1 %vm5390_vm0, %v5391_v11  ;;  %v2946_v38 = vld [vmem:[%s5545_s4 + $0x89] sm:$0xff] }
  0x8c   : > { %4949 = vmatpush3.bf16.msra.mxu0 %v4948_v39  ;;  %4050 = vmatmul.mubr.f32.gmra.mrb[20].mxu1 %v2926_v41  ;;  %v4999_v39 = vpack.c.bf16 %v2987_v35, %v2986_v34  ;;  %v2965_v41 = vld [vmem:[%s5545_s4 + $0x62] sm:$0xff]  ;;  %v3023_v34 = vld [vmem:[%s7121_s1 + $0x630] sm:$0xff]  ;;  %v3024_v35 = vld [vmem:[%s7121_s1 + $0x638] sm:$0xff] }
  0x8d   : > { %4973 = vmatpush3.bf16.msra.mxu1 %v4972_v40  ;;  %4011 = vmatprep.mubr.msk.f32.mxu0 %vm5390_vm0, %v5391_v11  ;;  %v5023_v40 = vpack.c.bf16 %v3006_v37, %v3005_v36  ;;  %v3042_v36 = vld [vmem:[%s7121_s1 + $0x6b0] sm:$0xff]  ;;  %v3043_v37 = vld [vmem:[%s7121_s1 + $0x6b8] sm:$0xff] }
  0x8e   : > { %4950 = vmatprep.subr.bf16.mxu0 %v5389_v3  ;;  %4974 = vmatprep.subr.bf16.mxu1 %v5389_v3 }
  0x8f   : > { %4012 = vmatmul.mubr.f32.gmra.mrb[22].mxu0 %v2908_v46  ;;  %4052 = vmatprep.mubr.msk.f32.mxu1 %vm5390_vm0, %v5391_v11  ;;  %v5002_v46 = vpack.c.bf16 %v2989_v43, %v2988_v42  ;;  %v3044_v42 = vld [vmem:[%s7121_s1 + $0x6c0] sm:$0xff]  ;;  %v3045_v43 = vld [vmem:[%s7121_s1 + $0x6c8] sm:$0xff] }
  0x90   : > { %4952 = vmatpush3.bf16.msra.mxu0 %v4951_v47  ;;  %4053 = vmatmul.mubr.f32.gmra.mrb[22].mxu1 %v2927_v49  ;;  %v5026_v47 = vpack.c.bf16 %v3008_v45, %v3007_v44  ;;  %v2991_v49 = vld [vmem:[%s7121_s1 + $0x548] sm:$0xff]  ;;  %v5077_v45 = vpack.c.bf16 %v3045_v43, %v3044_v42 }
  0x91   : > { %4976 = vmatpush3.bf16.msra.mxu1 %v4975_v48  ;;  %4953 = vmatprep.subr.bf16.mxu0 %v5389_v3  ;;  %v2990_v48 = vld [vmem:[%s7121_s1 + $0x540] sm:$0xff] }
  0x92   : > { %4977 = vmatprep.subr.bf16.mxu1 %v5389_v3  ;;  %4087 = vmatprep.mubr.msk.f32.mxu0 %vm5390_vm0, %v5391_v11  ;;  %v5005_v52 = vpack.c.bf16 %v2991_v49, %v2990_v48  ;;  %v3046_v48 = vld [vmem:[%s7121_s1 + $0x6d0] sm:$0xff]  ;;  %v3047_v49 = vld [vmem:[%s7121_s1 + $0x6d8] sm:$0xff] }
  0x93   : > { %4128 = vmatprep.mubr.msk.f32.mxu1 %vm5390_vm0, %v5391_v11  ;;  %v5080_v51 = vpack.c.bf16 %v3047_v49, %v3046_v48  ;;  %v3084_v48 = vld [vmem:[%s7121_s1 + $0x7e8] sm:$0xff] }
  0x94   : > { %4955 = vmatpush3.bf16.msra.mxu0 %v4954_v54  ;;  %v2992_v54 = vld [vmem:[%s7121_s1 + $0x550] sm:$0xff] }
  0x95   : > { %4979 = vmatpush3.bf16.msra.mxu1 %v4978_v55  ;;  %4956 = vmatprep.subr.bf16.mxu0 %v5389_v3  ;;  %v2993_v55 = vld [vmem:[%s7121_s1 + $0x558] sm:$0xff] }
  0x96   : > { %4980 = vmatprep.subr.bf16.mxu1 %v5389_v3  ;;  %v5008_v58 = vpack.c.bf16 %v2993_v55, %v2992_v54  ;;  %v3048_v54 = vld [vmem:[%s7121_s1 + $0x6e0] sm:$0xff]  ;;  %v3049_v55 = vld [vmem:[%s7121_s1 + $0x6e8] sm:$0xff] }
  0x97   : > { %v5083_v57 = vpack.c.bf16 %v3049_v55, %v3048_v54  ;;  %v3066_v55 = vld [vmem:[%s7121_s1 + $0x770] sm:$0xff] }
  0x98   : > { %4958 = vmatpush3.bf16.msra.mxu0 %v4957_v60  ;;  %v2994_v60 = vld [vmem:[%s7121_s1 + $0x560] sm:$0xff] }
  0x99   : > { %4982 = vmatpush3.bf16.msra.mxu1 %v4981_v61  ;;  %4959 = vmatprep.subr.bf16.mxu0 %v5389_v3  ;;  %v2995_v61 = vld [vmem:[%s7121_s1 + $0x568] sm:$0xff] }
  0x9a   : > { %4983 = vmatprep.subr.bf16.mxu1 %v5389_v3  ;;  %v5011_v0 = vpack.c.bf16 %v2995_v61, %v2994_v60  ;;  %v3050_v60 = vld [vmem:[%s7121_s1 + $0x6f0] sm:$0xff]  ;;  %v3051_v61 = vld [vmem:[%s7121_s1 + $0x6f8] sm:$0xff] }
  0x9b   : > { %v5086_v63 = vpack.c.bf16 %v3051_v61, %v3050_v60 }
  0x9c   : > { %4961 = vmatpush3.bf16.msra.mxu0 %v4960_v2  ;;  %v2996_v2 = vld [vmem:[%s7121_s1 + $0x570] sm:$0xff] }
  0x9d   : > { %4985 = vmatpush3.bf16.msra.mxu1 %v4984_v4  ;;  %4962 = vmatprep.subr.bf16.mxu0 %v5389_v3  ;;  %v2997_v4 = vld [vmem:[%s7121_s1 + $0x578] sm:$0xff] }
  0x9e   : > { %4986 = vmatprep.subr.bf16.mxu1 %v5389_v3  ;;  %v5014_v7 = vpack.c.bf16 %v2997_v4, %v2996_v2  ;;  %v3071_v2 = vld [vmem:[%s7121_s1 + $0x780] sm:$0xff]  ;;  %v3072_v4 = vld [vmem:[%s7121_s1 + $0x788] sm:$0xff] }
  0xa0   : > { %4964 = vmatpush3.bf16.msra.mxu0 %v4963_v9  ;;  %v3017_v9 = vld [vmem:[%s7121_s1 + $0x600] sm:$0xff] }
  0xa1   : > { %4988 = vmatpush3.bf16.msra.mxu1 %v4987_v10  ;;  %4965 = vmatprep.subr.bf16.mxu0 %v5389_v3  ;;  %v3018_v10 = vld [vmem:[%s7121_s1 + $0x608] sm:$0xff] }
  0xa2   : > { %4989 = vmatprep.subr.bf16.mxu1 %v5389_v3  ;;  %v5041_v15 = vpack.c.bf16 %v3018_v10, %v3017_v9  ;;  %v3054_v9 = vld [vmem:[%s7121_s1 + $0x710] sm:$0xff]  ;;  %v3055_v10 = vld [vmem:[%s7121_s1 + $0x718] sm:$0xff] }
  0xa4   : > { %4967 = vmatpush3.bf16.msra.mxu0 %v4966_v16  ;;  %v2998_v16 = vld [vmem:[%s5545_s4 + $0x2e] sm:$0xff] }
  0xa5   : > { %4991 = vmatpush3.bf16.msra.mxu1 %v4990_v17  ;;  %4992 = vmatprep.subr.bf16.mxu0 %v5389_v3  ;;  %v5065_v17 = vpack.c.bf16 %v3037_v13, %v3036_v12  ;;  %v3073_v12 = vld [vmem:[%s7121_s1 + $0x790] sm:$0xff]  ;;  %v3074_v13 = vld [vmem:[%s7121_s1 + $0x798] sm:$0xff] }
  0xa6   : > { %5016 = vmatprep.subr.bf16.mxu1 %v5389_v3 }
  0xa7   : > { %4088 = vmatmul.mubr.f32.vlgmr.msra.gmra.mrb[24].mxu0 %v2944_v22  ;;  %v1198_v22 = vld [vmem:[%s5545_s4 + $0xe] sm:$0xff] }
  0xa8   : > { %4129 = vmatmul.mubr.f32.vlgmr.msra.gmra.mrb[24].mxu1 %v2963_v24  ;;  %4994 = vmatpush3.bf16.msra.mxu0 %v4993_v23  ;;  %v5044_v23 = vpack.c.bf16 %v3020_v19, %v3019_v18  ;;  %v5068_v24 = vpack.c.bf16 %v3039_v21, %v3038_v20  ;;  %v3056_v18 = vld [vmem:[%s7121_s1 + $0x720] sm:$0xff]  ;;  %v3057_v19 = vld [vmem:[%s7121_s1 + $0x728] sm:$0xff] }
  0xa9   : > { %5018 = vmatpush3.bf16.msra.mxu1 %v5017_v25  ;;  %4090 = vmatprep.mubr.msk.f32.mxu0 %vm5390_vm0, %v5391_v11  ;;  %v2999_v25 = vld [vmem:[%s5545_s4 + $0x36] sm:$0xff]  ;;  %v3075_v20 = vld [vmem:[%s7121_s1 + $0x7a0] sm:$0xff]  ;;  %v3076_v21 = vld [vmem:[%s7121_s1 + $0x7a8] sm:$0xff] }
  0xaa   : > { %4995 = vmatprep.subr.bf16.mxu0 %v5389_v3  ;;  %5019 = vmatprep.subr.bf16.mxu1 %v5389_v3 }
  0xab   : > { %4091 = vmatmul.mubr.f32.gmra.mrb[26].mxu0 %v2945_v30  ;;  %4131 = vmatprep.mubr.msk.f32.mxu1 %vm5390_vm0, %v5391_v11  ;;  %v1199_v30 = vld [vmem:[%s5545_s4 + $0x16] sm:$0xff] }
  0xac   : > { %4997 = vmatpush3.bf16.msra.mxu0 %v4996_v31  ;;  %4132 = vmatmul.mubr.f32.gmra.mrb[26].mxu1 %v2964_v33  ;;  %v5047_v31 = vpack.c.bf16 %v3022_v27, %v3021_v26  ;;  %v3000_v33 = vld [vmem:[%s5545_s4 + $0x3e] sm:$0xff]  ;;  %v3058_v26 = vld [vmem:[%s7121_s1 + $0x730] sm:$0xff] }
  0xad   : > { %5021 = vmatpush3.bf16.msra.mxu1 %v5020_v32  ;;  %4093 = vmatprep.mubr.msk.f32.mxu0 %vm5390_vm0, %v5391_v11  ;;  %v5071_v32 = vpack.c.bf16 %v3041_v29, %v3040_v28  ;;  %v3059_v27 = vld [vmem:[%s7121_s1 + $0x738] sm:$0xff]  ;;  %v3077_v28 = vld [vmem:[%s7121_s1 + $0x7b0] sm:$0xff] }
  0xae   : > { %4998 = vmatprep.subr.bf16.mxu0 %v5389_v3  ;;  %5022 = vmatprep.subr.bf16.mxu1 %v5389_v3  ;;  %v3078_v29 = vld [vmem:[%s7121_s1 + $0x7b8] sm:$0xff] }
  0xaf   : > { %4094 = vmatmul.mubr.f32.gmra.mrb[28].mxu0 %v2946_v38  ;;  %4134 = vmatprep.mubr.msk.f32.mxu1 %vm5390_vm0, %v5391_v11  ;;  %v5050_v38 = vpack.c.bf16 %v3024_v35, %v3023_v34  ;;  %v3079_v34 = vld [vmem:[%s7121_s1 + $0x7c0] sm:$0xff]  ;;  %v3080_v35 = vld [vmem:[%s7121_s1 + $0x7c8] sm:$0xff] }
  0xb0   : > { %5000 = vmatpush3.bf16.msra.mxu0 %v4999_v39  ;;  %4135 = vmatmul.mubr.f32.gmra.mrb[28].mxu1 %v2965_v41  ;;  %v5074_v39 = vpack.c.bf16 %v3043_v37, %v3042_v36  ;;  %v3026_v41 = vld [vmem:[%s7121_s1 + $0x648] sm:$0xff]  ;;  %v5125_v37 = vpack.c.bf16 %v3080_v35, %v3079_v34  ;;  %v3097_v34 = vld [vmem:[%s7121_s1 + $0x838] sm:$0xff]  ;;  %v3115_v35 = vld [vmem:[%s7121_s1 + $0x8b0] sm:$0xff] }
  0xb1   : > { %5024 = vmatpush3.bf16.msra.mxu1 %v5023_v40  ;;  %5001 = vmatprep.subr.bf16.mxu0 %v5389_v3  ;;  %v3025_v40 = vld [vmem:[%s7121_s1 + $0x640] sm:$0xff] }
  0xb2   : > { %5025 = vmatprep.subr.bf16.mxu1 %v5389_v3  ;;  %4169 = vmatprep.mubr.msk.f32.mxu0 %vm5390_vm0, %v5391_v11  ;;  %v5053_v44 = vpack.c.bf16 %v3026_v41, %v3025_v40  ;;  %v3081_v40 = vld [vmem:[%s7121_s1 + $0x7d0] sm:$0xff]  ;;  %v3082_v41 = vld [vmem:[%s7121_s1 + $0x7d8] sm:$0xff] }
  0xb3   : > { %4210 = vmatprep.mubr.msk.f32.mxu1 %vm5390_vm0, %v5391_v11  ;;  %v5128_v43 = vpack.c.bf16 %v3082_v41, %v3081_v40  ;;  %v3099_v40 = vld [vmem:[%s7121_s1 + $0x848] sm:$0xff]  ;;  %v3117_v41 = vld [vmem:[%s7121_s1 + $0x8c0] sm:$0xff] }
  0xb4   : > { %5003 = vmatpush3.bf16.msra.mxu0 %v5002_v46  ;;  %v3027_v46 = vld [vmem:[%s7121_s1 + $0x650] sm:$0xff] }
  0xb5   : > { %5027 = vmatpush3.bf16.msra.mxu1 %v5026_v47  ;;  %5004 = vmatprep.subr.bf16.mxu0 %v5389_v3  ;;  %v3028_v47 = vld [vmem:[%s7121_s1 + $0x658] sm:$0xff] }
  0xb6   : > { %5028 = vmatprep.subr.bf16.mxu1 %v5389_v3  ;;  %v5056_v50 = vpack.c.bf16 %v3028_v47, %v3027_v46  ;;  %v3083_v47 = vld [vmem:[%s7121_s1 + $0x7e0] sm:$0xff] }
  0xb7   : > { %v5131_v54 = vpack.c.bf16 %v3084_v48, %v3083_v47  ;;  %v3119_v47 = vld [vmem:[%s7121_s1 + $0x8d0] sm:$0xff]  ;;  %v3120_v48 = vld [vmem:[%s7121_s1 + $0x8d8] sm:$0xff] }
  0xb8   : > { %5006 = vmatpush3.bf16.msra.mxu0 %v5005_v52  ;;  %v3029_v52 = vld [vmem:[%s7121_s1 + $0x660] sm:$0xff] }
  0xb9   : > { %5030 = vmatpush3.bf16.msra.mxu1 %v5029_v53  ;;  %5007 = vmatprep.subr.bf16.mxu0 %v5389_v3  ;;  %v3030_v53 = vld [vmem:[%s7121_s1 + $0x668] sm:$0xff] }
  0xba   : > { %5031 = vmatprep.subr.bf16.mxu1 %v5389_v3  ;;  %v5059_v56 = vpack.c.bf16 %v3030_v53, %v3029_v52 }
  0xbc   : > { %5009 = vmatpush3.bf16.msra.mxu0 %v5008_v58  ;;  %v3031_v58 = vld [vmem:[%s7121_s1 + $0x670] sm:$0xff] }
  0xbd   : > { %5033 = vmatpush3.bf16.msra.mxu1 %v5032_v59  ;;  %5010 = vmatprep.subr.bf16.mxu0 %v5389_v3  ;;  %v3032_v59 = vld [vmem:[%s7121_s1 + $0x678] sm:$0xff] }
  0xbe   : > { %5034 = vmatprep.subr.bf16.mxu1 %v5389_v3  ;;  %v5062_v62 = vpack.c.bf16 %v3032_v59, %v3031_v58  ;;  %v3086_v58 = vld [vmem:[%s7121_s1 + $0x7f8] sm:$0xff] }
  0xc0   : > { %5012 = vmatpush3.bf16.msra.mxu0 %v5011_v0  ;;  %v3052_v0 = vld [vmem:[%s7121_s1 + $0x700] sm:$0xff] }
  0xc1   : > { %5036 = vmatpush3.bf16.msra.mxu1 %v5035_v1  ;;  %5013 = vmatprep.subr.bf16.mxu0 %v5389_v3  ;;  %v3053_v1 = vld [vmem:[%s7121_s1 + $0x708] sm:$0xff] }
  0xc2   : > { %5037 = vmatprep.subr.bf16.mxu1 %v5389_v3  ;;  %v5089_v6 = vpack.c.bf16 %v3053_v1, %v3052_v0 }
  0xc4   : > { %5015 = vmatpush3.bf16.msra.mxu0 %v5014_v7  ;;  %v3033_v7 = vld [vmem:[%s5545_s4 + $0x2f] sm:$0xff] }
  0xc5   : > { %5039 = vmatpush3.bf16.msra.mxu1 %v5038_v8  ;;  %5040 = vmatprep.subr.bf16.mxu0 %v5389_v3  ;;  %v5113_v8 = vpack.c.bf16 %v3072_v4, %v3071_v2  ;;  %v3090_v2 = vld [vmem:[%s7121_s1 + $0x800] sm:$0xff]  ;;  %v3091_v4 = vld [vmem:[%s7121_s1 + $0x808] sm:$0xff] }
  0xc6   : > { %5064 = vmatprep.subr.bf16.mxu1 %v5389_v3 }
  0xc7   : > { %4170 = vmatmul.mubr.f32.vlgmr.msra.gmra.mrb[30].mxu0 %v1197_v14  ;;  %v1404_v14 = vld [vmem:[%s5545_s4 + $0xf] sm:$0xff] }
  0xc8   : > { %4211 = vmatmul.mubr.f32.vlgmr.msra.gmra.mrb[30].mxu1 %v2998_v16  ;;  %5042 = vmatpush3.bf16.msra.mxu0 %v5041_v15  ;;  %v5092_v15 = vpack.c.bf16 %v3055_v10, %v3054_v9  ;;  %v5116_v16 = vpack.c.bf16 %v3074_v13, %v3073_v12  ;;  %v1609_v10 = vld [vmem:[%s5545_s4 + $0x8] sm:$0xff]  ;;  %v5137_v12 = vpack.c.bf16 %v3091_v4, %v3090_v2  ;;  %v3105_v2 = vld [vmem:[%s7121_s1 + $0x878] sm:$0xff]  ;;  %v3123_v4 = vld [vmem:[%s7121_s1 + $0x8f0] sm:$0xff] }
  0xc9   : > { %5066 = vmatpush3.bf16.msra.mxu1 %v5065_v17  ;;  %4172 = vmatprep.mubr.msk.f32.mxu0 %vm5390_vm0, %v5391_v11  ;;  %v3034_v17 = vld [vmem:[%s5545_s4 + $0x37] sm:$0xff] }
  0xca   : > { %5043 = vmatprep.subr.bf16.mxu0 %v5389_v3  ;;  %5067 = vmatprep.subr.bf16.mxu1 %v5389_v3 }
  0xcb   : > { %4173 = vmatmul.mubr.f32.gmra.mrb[32].mxu0 %v1198_v22  ;;  %4213 = vmatprep.mubr.msk.f32.mxu1 %vm5390_vm0, %v5391_v11  ;;  %v1405_v22 = vld [vmem:[%s5545_s4 + $0x17] sm:$0xff] }
  0xcc   : > { %5045 = vmatpush3.bf16.msra.mxu0 %v5044_v23  ;;  %4214 = vmatmul.mubr.f32.gmra.mrb[32].mxu1 %v2999_v25  ;;  %v5095_v23 = vpack.c.bf16 %v3057_v19, %v3056_v18  ;;  %v3035_v25 = vld [vmem:[%s5545_s4 + $0x3f] sm:$0xff]  ;;  %v3111_v19 = vld [vmem:[%s7121_s1 + $0x890] sm:$0xff] }
  0xcd   : > { %5069 = vmatpush3.bf16.msra.mxu1 %v5068_v24  ;;  %4175 = vmatprep.mubr.msk.f32.mxu0 %vm5390_vm0, %v5391_v11  ;;  %v5119_v24 = vpack.c.bf16 %v3076_v21, %v3075_v20  ;;  %v3093_v18 = vld [vmem:[%s7121_s1 + $0x818] sm:$0xff]  ;;  %v1610_v21 = vld [vmem:[%s5545_s4 + $0x10] sm:$0xff] }
  0xce   : > { %5046 = vmatprep.subr.bf16.mxu0 %v5389_v3  ;;  %5070 = vmatprep.subr.bf16.mxu1 %v5389_v3  ;;  %v3112_v20 = vld [vmem:[%s7121_s1 + $0x898] sm:$0xff] }
  0xcf   : > { %4176 = vmatmul.mubr.f32.gmra.mrb[34].mxu0 %v1199_v30  ;;  %4216 = vmatprep.mubr.msk.f32.mxu1 %vm5390_vm0, %v5391_v11  ;;  %v5098_v30 = vpack.c.bf16 %v3059_v27, %v3058_v26  ;;  %v3095_v26 = vld [vmem:[%s7121_s1 + $0x828] sm:$0xff]  ;;  %v3113_v27 = vld [vmem:[%s7121_s1 + $0x8a0] sm:$0xff] }
  0xd0   : > { %5048 = vmatpush3.bf16.msra.mxu0 %v5047_v31  ;;  %4217 = vmatmul.mubr.f32.gmra.mrb[34].mxu1 %v3000_v33  ;;  %v5122_v31 = vpack.c.bf16 %v3078_v29, %v3077_v28  ;;  %v3061_v33 = vld [vmem:[%s7121_s1 + $0x748] sm:$0xff]  ;;  %v1611_v29 = vld [vmem:[%s5545_s4 + $0x18] sm:$0xff] }
  0xd1   : > { %5072 = vmatpush3.bf16.msra.mxu1 %v5071_v32  ;;  %5049 = vmatprep.subr.bf16.mxu0 %v5389_v3  ;;  %v3060_v32 = vld [vmem:[%s7121_s1 + $0x740] sm:$0xff]  ;;  %v3114_v28 = vld [vmem:[%s7121_s1 + $0x8a8] sm:$0xff] }
  0xd2   : > { %5073 = vmatprep.subr.bf16.mxu1 %v5389_v3  ;;  %4251 = vmatprep.mubr.msk.f32.mxu0 %vm5390_vm0, %v5391_v11  ;;  %v5101_v36 = vpack.c.bf16 %v3061_v33, %v3060_v32  ;;  %v3070_v32 = vld [vmem:[%s5545_s4 + $0x66] sm:$0xff]  ;;  %v3096_v33 = vld [vmem:[%s7121_s1 + $0x830] sm:$0xff] }
  0xd3   : > { %4292 = vmatprep.mubr.msk.f32.mxu1 %vm5390_vm0, %v5391_v11 }
  0xd4   : > { %5051 = vmatpush3.bf16.msra.mxu0 %v5050_v38  ;;  %v3062_v38 = vld [vmem:[%s7121_s1 + $0x750] sm:$0xff] }
  0xd5   : > { %5075 = vmatpush3.bf16.msra.mxu1 %v5074_v39  ;;  %5052 = vmatprep.subr.bf16.mxu0 %v5389_v3  ;;  %v3063_v39 = vld [vmem:[%s7121_s1 + $0x758] sm:$0xff] }
  0xd6   : > { %5076 = vmatprep.subr.bf16.mxu1 %v5389_v3  ;;  %v5104_v42 = vpack.c.bf16 %v3063_v39, %v3062_v38  ;;  %v3098_v39 = vld [vmem:[%s7121_s1 + $0x840] sm:$0xff] }
  0xd8   : > { %5054 = vmatpush3.bf16.msra.mxu0 %v5053_v44  ;;  %v3064_v44 = vld [vmem:[%s7121_s1 + $0x760] sm:$0xff] }
  0xd9   : > { %5078 = vmatpush3.bf16.msra.mxu1 %v5077_v45  ;;  %5055 = vmatprep.subr.bf16.mxu0 %v5389_v3  ;;  %v3065_v45 = vld [vmem:[%s7121_s1 + $0x768] sm:$0xff] }
  0xda   : > { %5079 = vmatprep.subr.bf16.mxu1 %v5389_v3  ;;  %v5107_v53 = vpack.c.bf16 %v3065_v45, %v3064_v44  ;;  %v3100_v45 = vld [vmem:[%s7121_s1 + $0x850] sm:$0xff] }
  0xdc   : > { %5057 = vmatpush3.bf16.msra.mxu0 %v5056_v50 }
  0xdd   : > { %5081 = vmatpush3.bf16.msra.mxu1 %v5080_v51  ;;  %5058 = vmatprep.subr.bf16.mxu0 %v5389_v3 }
  0xde   : > { %5082 = vmatprep.subr.bf16.mxu1 %v5389_v3 }
  0xe0   : > { %5060 = vmatpush3.bf16.msra.mxu0 %v5059_v56  ;;  %v3067_v56 = vld [vmem:[%s7121_s1 + $0x778] sm:$0xff] }
  0xe1   : > { %5084 = vmatpush3.bf16.msra.mxu1 %v5083_v57  ;;  %5061 = vmatprep.subr.bf16.mxu0 %v5389_v3  ;;  %v3085_v57 = vld [vmem:[%s7121_s1 + $0x7f0] sm:$0xff] }
  0xe2   : > { %5085 = vmatprep.subr.bf16.mxu1 %v5389_v3  ;;  %v5134_v1 = vpack.c.bf16 %v3086_v58, %v3085_v57 }
  0xe4   : > { %5063 = vmatpush3.bf16.msra.mxu0 %v5062_v62  ;;  %v5110_v62 = vpack.c.bf16 %v3067_v56, %v3066_v55  ;;  %v3121_v55 = vld [vmem:[%s7121_s1 + $0x8e0] sm:$0xff]  ;;  %v3122_v56 = vld [vmem:[%s7121_s1 + $0x8e8] sm:$0xff] }
  0xe5   : > { %5087 = vmatpush3.bf16.msra.mxu1 %v5086_v63  ;;  %5088 = vmatprep.subr.bf16.mxu0 %v5389_v3 }
  0xe6   : > { %5112 = vmatprep.subr.bf16.mxu1 %v5389_v3 }
  0xe7   : > { %4252 = vmatmul.mubr.f32.vlgmr.msra.gmra.mrb[36].mxu0 %v1403_v5  ;;  %v3109_v5 = vld [vmem:[%s7121_s1 + $0x880] sm:$0xff] }
  0xe8   : > { %4293 = vmatmul.mubr.f32.vlgmr.msra.gmra.mrb[36].mxu1 %v3033_v7  ;;  %5090 = vmatpush3.bf16.msra.mxu0 %v5089_v6  ;;  %v3110_v6 = vld [vmem:[%s7121_s1 + $0x888] sm:$0xff] }
  0xe9   : > { %5114 = vmatpush3.bf16.msra.mxu1 %v5113_v8  ;;  %4254 = vmatprep.mubr.msk.f32.mxu0 %vm5390_vm0, %v5391_v11 }
  0xea   : > { %5091 = vmatprep.subr.bf16.mxu0 %v5389_v3  ;;  %5115 = vmatprep.subr.bf16.mxu1 %v5389_v3 }
  0xeb   : > { %4255 = vmatmul.mubr.f32.gmra.mrb[38].mxu0 %v1404_v14  ;;  %4295 = vmatprep.mubr.msk.f32.mxu1 %vm5390_vm0, %v5391_v11 }
  0xec   : > { %5093 = vmatpush3.bf16.msra.mxu0 %v5092_v15  ;;  %4296 = vmatmul.mubr.f32.gmra.mrb[38].mxu1 %v3034_v17  ;;  %v3068_v15 = vld [vmem:[%s5545_s4 + $0x56] sm:$0xff] }
  0xed   : > { %5117 = vmatpush3.bf16.msra.mxu1 %v5116_v16  ;;  %4257 = vmatprep.mubr.msk.f32.mxu0 %vm5390_vm0, %v5391_v11  ;;  %v5161_v16 = vpack.c.bf16 %v3110_v6, %v3109_v5  ;;  %v3092_v17 = vld [vmem:[%s7121_s1 + $0x810] sm:$0xff]  ;;  %v3124_v5 = vld [vmem:[%s7121_s1 + $0x8f8] sm:$0xff] }
  0xee   : > { %5094 = vmatprep.subr.bf16.mxu0 %v5389_v3  ;;  %5118 = vmatprep.subr.bf16.mxu1 %v5389_v3 }
  0xef   : > { %4258 = vmatmul.mubr.f32.gmra.mrb[40].mxu0 %v1405_v22  ;;  %4298 = vmatprep.mubr.msk.f32.mxu1 %vm5390_vm0, %v5391_v11  ;;  %v5140_v22 = vpack.c.bf16 %v3093_v18, %v3092_v17  ;;  %v3147_v17 = vld [vmem:[%s7121_s1 + $0x980] sm:$0xff]  ;;  %v3148_v18 = vld [vmem:[%s7121_s1 + $0x988] sm:$0xff] }
  0xf0   : > { %5096 = vmatpush3.bf16.msra.mxu0 %v5095_v23  ;;  %4299 = vmatmul.mubr.f32.gmra.mrb[40].mxu1 %v3035_v25  ;;  %v5164_v23 = vpack.c.bf16 %v3112_v20, %v3111_v19  ;;  %v3094_v25 = vld [vmem:[%s7121_s1 + $0x820] sm:$0xff] }
  0xf1   : > { %5120 = vmatpush3.bf16.msra.mxu1 %v5119_v24  ;;  %5097 = vmatprep.subr.bf16.mxu0 %v5389_v3  ;;  %v3069_v24 = vld [vmem:[%s5545_s4 + $0x5e] sm:$0xff] }
  0xf2   : > { %5121 = vmatprep.subr.bf16.mxu1 %v5389_v3  ;;  %4333 = vmatprep.mubr.msk.f32.mxu0 %vm5390_vm0, %v5391_v11 }
  0xf3   : > { %4374 = vmatprep.mubr.msk.f32.mxu1 %vm5390_vm0, %v5391_v11 }
  0xf4   : > { %5099 = vmatpush3.bf16.msra.mxu0 %v5098_v30  ;;  %v5143_v30 = vpack.c.bf16 %v3095_v26, %v3094_v25  ;;  %v3106_v26 = vld [vmem:[%s5545_s4 + $0x57] sm:$0xff] }
  0xf5   : > { %5123 = vmatpush3.bf16.msra.mxu1 %v5122_v31  ;;  %5100 = vmatprep.subr.bf16.mxu0 %v5389_v3  ;;  %v5167_v31 = vpack.c.bf16 %v3114_v28, %v3113_v27  ;;  %v5209_v27 = vpack.c.bf16 %v3148_v18, %v3147_v17  ;;  %v3130_v28 = vld [vmem:[%s7121_s1 + $0x910] sm:$0xff]  ;;  %v3162_v17 = vld [vmem:[%s7121_s1 + $0x9f8] sm:$0xff] }
  0xf6   : > { %5124 = vmatprep.subr.bf16.mxu1 %v5389_v3 }
  0xf8   : > { %5102 = vmatpush3.bf16.msra.mxu0 %v5101_v36  ;;  %v3116_v36 = vld [vmem:[%s7121_s1 + $0x8b8] sm:$0xff] }
  0xf9   : > { %5126 = vmatpush3.bf16.msra.mxu1 %v5125_v37  ;;  %5103 = vmatprep.subr.bf16.mxu0 %v5389_v3  ;;  %v5146_v37 = vpack.c.bf16 %v3097_v34, %v3096_v33  ;;  %v5170_v38 = vpack.c.bf16 %v3116_v36, %v3115_v35  ;;  %v3107_v34 = vld [vmem:[%s5545_s4 + $0x5f] sm:$0xff]  ;;  %v3133_v36 = vld [vmem:[%s7121_s1 + $0x928] sm:$0xff] }
  0xfa   : > { %v277_v46 = vpop.f32.mrb[0].mxu0  ;;  %5127 = vmatprep.subr.bf16.mxu1 %v5389_v3  ;;  %v3132_v35 = vld [vmem:[%s7121_s1 + $0x920] sm:$0xff] }
  0xfb   : > { %v357_v49 = vpop.f32.mrb[0].mxu1  ;;  %v3761_v50 = vpop.f32.mrb[1].mxu0 }
  0xfc   : > { %v6442_v51 = vadd.f32 %v357_v49, %v277_v46  ;;  %v3802_v52 = vpop.f32.mrb[1].mxu1  ;;  %5105 = vmatpush3.bf16.msra.mxu0 %v5104_v42  ;;  %v3118_v42 = vld [vmem:[%s7121_s1 + $0x8c8] sm:$0xff]  ;;  %v3101_v46 = vld [vmem:[%s7121_s1 + $0x858] sm:$0xff]  ;;  %v5176_v50 = vpack.c.bf16 %v3120_v48, %v3119_v47 }
  0xfd   : > { %5129 = vmatpush3.bf16.msra.mxu1 %v5128_v43  ;;  %5106 = vmatprep.subr.bf16.mxu0 %v5389_v3  ;;  %v5149_v43 = vpack.c.bf16 %v3099_v40, %v3098_v39  ;;  %v5173_v44 = vpack.c.bf16 %v3118_v42, %v3117_v41  ;;  %v5152_v49 = vpack.c.bf16 %v3101_v46, %v3100_v45  ;;  %v3102_v52 = vld [vmem:[%s7121_s1 + $0x860] sm:$0xff]  ;;  %v3089_v39 = vld [vmem:[%s5545_s4 + $0x8e] sm:$0xff]  ;;  %v3154_v46 = vld [vmem:[%s7121_s1 + $0x9b8] sm:$0xff] }
  0xfe   : > { %5130 = vmatprep.subr.bf16.mxu1 %v5389_v3  ;;  %v282_v59 = vpop.f32.mrb[2].mxu0  ;;  %v5191_v40 = vpack.c.bf16 %v3133_v36, %v3132_v35  ;;  %v3108_v42 = vld [vmem:[%s5545_s4 + $0x67] sm:$0xff]  ;;  %v3153_v45 = vld [vmem:[%s7121_s1 + $0x9b0] sm:$0xff]  ;;  %v3144_v36 = vld [vmem:[%s5545_s4 + $0x58] sm:$0xff] }
  0xff   : > { %v362_v60 = vpop.f32.mrb[2].mxu1  ;;  %v3764_v61 = vpop.f32.mrb[3].mxu0  ;;  %v5218_v48 = vpack.c.bf16 %v3154_v46, %v3153_v45  ;;  %v3167_v45 = vld [vmem:[%s7121_s1 + $0xa20] sm:$0xff]  ;;  %v3168_v46 = vld [vmem:[%s7121_s1 + $0xa28] sm:$0xff] }
 0x100   : > { %5108 = vmatpush3.bf16.msra.mxu0 %v5107_v53  ;;  %v6458_v63 = vadd.f32 %v362_v60, %v282_v59  ;;  %v3805_v0 = vpop.f32.mrb[3].mxu1  ;;  %v3103_v53 = vld [vmem:[%s7121_s1 + $0x868] sm:$0xff] }
 0x101   : > { %5132 = vmatpush3.bf16.msra.mxu1 %v5131_v54  ;;  %5109 = vmatprep.subr.bf16.mxu0 %v5389_v3  ;;  %v5155_v61 = vpack.c.bf16 %v3103_v53, %v3102_v52  ;;  %v5179_v0 = vpack.c.bf16 %v3122_v56, %v3121_v55  ;;  %v3155_v52 = vld [vmem:[%s7121_s1 + $0x9c0] sm:$0xff]  ;;  %v3156_v53 = vld [vmem:[%s7121_s1 + $0x9c8] sm:$0xff]  ;;  %v3138_v56 = vld [vmem:[%s7121_s1 + $0x950] sm:$0xff] }
 0x102   : > { %5133 = vmatprep.subr.bf16.mxu1 %v5389_v3  ;;  %v287_v7 = vpop.f32.mrb[4].mxu0  ;;  %v5221_v55 = vpack.c.bf16 %v3156_v53, %v3155_v52  ;;  %v3146_v53 = vld [vmem:[%s5545_s4 + $0x68] sm:$0xff] }
 0x103   : > { %v367_v8 = vpop.f32.mrb[4].mxu1  ;;  %v3767_v9 = vpop.f32.mrb[5].mxu0 }
 0x104   : > { %5111 = vmatpush3.bf16.msra.mxu0 %v5110_v62  ;;  %v6475_v13 = vadd.f32 %v367_v8, %v287_v7  ;;  %v3808_v14 = vpop.f32.mrb[5].mxu1 }
 0x105   : > { %5135 = vmatpush3.bf16.msra.mxu1 %v5134_v1  ;;  %5136 = vmatprep.subr.bf16.mxu0 %v5389_v3  ;;  %v3104_v1 = vld [vmem:[%s7121_s1 + $0x870] sm:$0xff]  ;;  %v5182_v14 = vpack.c.bf16 %v3124_v5, %v3123_v4  ;;  %v3160_v4 = vld [vmem:[%s7121_s1 + $0x9e8] sm:$0xff] }
 0x106   : > { %5160 = vmatprep.subr.bf16.mxu1 %v5389_v3 }
 0x107   : > { %4334 = vmatmul.mubr.f32.vlgmr.msra.gmra.mrb[42].mxu0 %v1609_v10  ;;  %v5158_v10 = vpack.c.bf16 %v3105_v2, %v3104_v1  ;;  %v3141_v1 = vld [vmem:[%s7121_s1 + $0x968] sm:$0xff] }
 0x108   : > { %4375 = vmatmul.mubr.f32.vlgmr.msra.gmra.mrb[42].mxu1 %v3068_v15  ;;  %5138 = vmatpush3.bf16.msra.mxu0 %v5137_v12  ;;  %v3128_v15 = vld [vmem:[%s7121_s1 + $0x900] sm:$0xff] }
 0x109   : > { %5162 = vmatpush3.bf16.msra.mxu1 %v5161_v16  ;;  %4336 = vmatprep.mubr.msk.f32.mxu0 %vm5390_vm0, %v5391_v11 }
 0x10a   : > { %5139 = vmatprep.subr.bf16.mxu0 %v5389_v3  ;;  %5163 = vmatprep.subr.bf16.mxu1 %v5389_v3 }
 0x10b   : > { %4337 = vmatmul.mubr.f32.gmra.mrb[44].mxu0 %v1610_v21  ;;  %4377 = vmatprep.mubr.msk.f32.mxu1 %vm5390_vm0, %v5391_v11 }
 0x10c   : > { %5141 = vmatpush3.bf16.msra.mxu0 %v5140_v22  ;;  %4378 = vmatmul.mubr.f32.gmra.mrb[44].mxu1 %v3069_v24  ;;  %v3087_v22 = vld [vmem:[%s5545_s4 + $0x7e] sm:$0xff] }
 0x10d   : > { %5165 = vmatpush3.bf16.msra.mxu1 %v5164_v23  ;;  %4339 = vmatprep.mubr.msk.f32.mxu0 %vm5390_vm0, %v5391_v11 }
 0x10e   : > { %5142 = vmatprep.subr.bf16.mxu0 %v5389_v3  ;;  %5166 = vmatprep.subr.bf16.mxu1 %v5389_v3 }
 0x10f   : > { %4340 = vmatmul.mubr.f32.gmra.mrb[46].mxu0 %v1611_v29  ;;  %4380 = vmatprep.mubr.msk.f32.mxu1 %vm5390_vm0, %v5391_v11  ;;  %v3149_v29 = vld [vmem:[%s7121_s1 + $0x990] sm:$0xff] }
 0x110   : > { %5144 = vmatpush3.bf16.msra.mxu0 %v5143_v30  ;;  %4381 = vmatmul.mubr.f32.gmra.mrb[46].mxu1 %v3070_v32  ;;  %v3150_v30 = vld [vmem:[%s7121_s1 + $0x998] sm:$0xff] }
 0x111   : > { %5168 = vmatpush3.bf16.msra.mxu1 %v5167_v31  ;;  %5145 = vmatprep.subr.bf16.mxu0 %v5389_v3  ;;  %v3088_v31 = vld [vmem:[%s5545_s4 + $0x86] sm:$0xff]  ;;  %v5212_v33 = vpack.c.bf16 %v3150_v30, %v3149_v29 }
 0x112   : > { %5169 = vmatprep.subr.bf16.mxu1 %v5389_v3  ;;  %4415 = vmatprep.mubr.msk.f32.mxu0 %vm5390_vm0, %v5391_v11 }
 0x113   : > { %4456 = vmatprep.mubr.msk.f32.mxu1 %vm5390_vm0, %v5391_v11 }
 0x114   : > { %5147 = vmatpush3.bf16.msra.mxu0 %v5146_v37  ;;  %v3151_v37 = vld [vmem:[%s7121_s1 + $0x9a0] sm:$0xff] }
 0x115   : > { %5171 = vmatpush3.bf16.msra.mxu1 %v5170_v38  ;;  %5148 = vmatprep.subr.bf16.mxu0 %v5389_v3  ;;  %v3152_v38 = vld [vmem:[%s7121_s1 + $0x9a8] sm:$0xff] }
 0x116   : > { %5172 = vmatprep.subr.bf16.mxu1 %v5389_v3  ;;  %v5215_v41 = vpack.c.bf16 %v3152_v38, %v3151_v37  ;;  %v3165_v38 = vld [vmem:[%s7121_s1 + $0xa10] sm:$0xff] }
 0x118   : > { %5150 = vmatpush3.bf16.msra.mxu0 %v5149_v43  ;;  %v3134_v43 = vld [vmem:[%s7121_s1 + $0x930] sm:$0xff] }
 0x119   : > { %5174 = vmatpush3.bf16.msra.mxu1 %v5173_v44  ;;  %5151 = vmatprep.subr.bf16.mxu0 %v5389_v3  ;;  %v3135_v44 = vld [vmem:[%s7121_s1 + $0x938] sm:$0xff] }
 0x11a   : > { %v457_v54 = vpop.f32.mrb[6].mxu0  ;;  %5175 = vmatprep.subr.bf16.mxu1 %v5389_v3  ;;  %v5194_v47 = vpack.c.bf16 %v3135_v44, %v3134_v43  ;;  %v3145_v44 = vld [vmem:[%s5545_s4 + $0x60] sm:$0xff] }
 0x11b   : > { %v471_v57 = vadd.f32 %v457_v54, %v6442_v51  ;;  %v560_v58 = vpop.f32.mrb[6].mxu1  ;;  %v3843_v59 = vpop.f32.mrb[7].mxu0 }
 0x11c   : > { %v3884_v60 = vpop.f32.mrb[7].mxu1  ;;  %5153 = vmatpush3.bf16.msra.mxu0 %v5152_v49  ;;  %v3136_v49 = vld [vmem:[%s7121_s1 + $0x940] sm:$0xff]  ;;  %v3158_v59 = vld [vmem:[%s7121_s1 + $0x9d8] sm:$0xff] }
 0x11d   : > { %v6579_v62 = vadd.f32 %v560_v58, %v471_v57  ;;  %5177 = vmatpush3.bf16.msra.mxu1 %v5176_v50  ;;  %5154 = vmatprep.subr.bf16.mxu0 %v5389_v3  ;;  %v3137_v50 = vld [vmem:[%s7121_s1 + $0x948] sm:$0xff]  ;;  %v3139_v57 = vld [vmem:[%s7121_s1 + $0x958] sm:$0xff]  ;;  %v3157_v58 = vld [vmem:[%s7121_s1 + $0x9d0] sm:$0xff] }
 0x11e   : > { %v462_v51 = vpop.f32.mrb[8].mxu0  ;;  %5178 = vmatprep.subr.bf16.mxu1 %v5389_v3  ;;  %v5197_v54 = vpack.c.bf16 %v3137_v50, %v3136_v49  ;;  %v5200_v60 = vpack.c.bf16 %v3139_v57, %v3138_v56  ;;  %v3127_v49 = vld [vmem:[%s5545_s4 + $0x8f] sm:$0xff]  ;;  %v5239_v50 = vpack.c.bf16 %v3168_v46, %v3167_v45  ;;  %v3189_v57 = vld [vmem:[%s7121_s1 + $0xab8] sm:$0xff] }
 0x11f   : > { %v472_v6 = vadd.f32 %v462_v51, %v6458_v63  ;;  %v565_v7 = vpop.f32.mrb[8].mxu1  ;;  %v3846_v8 = vpop.f32.mrb[9].mxu0  ;;  %v3129_v63 = vld [vmem:[%s7121_s1 + $0x908] sm:$0xff]  ;;  %v3159_v51 = vld [vmem:[%s7121_s1 + $0x9e0] sm:$0xff]  ;;  %v3188_v56 = vld [vmem:[%s7121_s1 + $0xab0] sm:$0xff] }
 0x120   : > { %5156 = vmatpush3.bf16.msra.mxu0 %v5155_v61  ;;  %v3887_v9 = vpop.f32.mrb[9].mxu1  ;;  %v5185_v23 = vpack.c.bf16 %v3129_v63, %v3128_v15  ;;  %v5224_v61 = vpack.c.bf16 %v3158_v59, %v3157_v58  ;;  %v3142_v15 = vld [vmem:[%s7121_s1 + $0x970] sm:$0xff]  ;;  %v3143_v63 = vld [vmem:[%s7121_s1 + $0x978] sm:$0xff]  ;;  %v5266_v59 = vpack.c.bf16 %v3189_v57, %v3188_v56  ;;  %v3202_v56 = vld [vmem:[%s7121_s1 + $0xb20] sm:$0xff] }
 0x121   : > { %v6596_v12 = vadd.f32 %v565_v7, %v472_v6  ;;  %5180 = vmatpush3.bf16.msra.mxu1 %v5179_v0  ;;  %5157 = vmatprep.subr.bf16.mxu0 %v5389_v3  ;;  %v3140_v0 = vld [vmem:[%s7121_s1 + $0x960] sm:$0xff]  ;;  %v3179_v46 = vld [vmem:[%s5545_s4 + $0x34] sm:$0xff]  ;;  %v3203_v57 = vld [vmem:[%s7121_s1 + $0xb28] sm:$0xff] }
 0x122   : > { %v467_v16 = vpop.f32.mrb[10].mxu0  ;;  %5181 = vmatprep.subr.bf16.mxu1 %v5389_v3  ;;  %v5203_v9 = vpack.c.bf16 %v3141_v1, %v3140_v0  ;;  %v3190_v0 = vld [vmem:[%s7121_s1 + $0xac0] sm:$0xff]  ;;  %v3191_v1 = vld [vmem:[%s7121_s1 + $0xac8] sm:$0xff] }
 0x123   : > { %v473_v19 = vadd.f32 %v467_v16, %v6475_v13  ;;  %v570_v20 = vpop.f32.mrb[10].mxu1  ;;  %v3849_v21 = vpop.f32.mrb[11].mxu0  ;;  %v3131_v13 = vld [vmem:[%s7121_s1 + $0x918] sm:$0xff]  ;;  %v3161_v16 = vld [vmem:[%s7121_s1 + $0x9f0] sm:$0xff] }
 0x124   : > { %5159 = vmatpush3.bf16.msra.mxu0 %v5158_v10  ;;  %v3890_v24 = vpop.f32.mrb[11].mxu1  ;;  %v5188_v32 = vpack.c.bf16 %v3131_v13, %v3130_v28  ;;  %v3182_v28 = vld [vmem:[%s7121_s1 + $0xa80] sm:$0xff]  ;;  %v3183_v13 = vld [vmem:[%s7121_s1 + $0xa88] sm:$0xff] }
 0x125   : > { %v6614_v25 = vadd.f32 %v570_v20, %v473_v19  ;;  %5183 = vmatpush3.bf16.msra.mxu1 %v5182_v14  ;;  %5184 = vmatprep.subr.bf16.mxu0 %v5389_v3  ;;  %v5227_v14 = vpack.c.bf16 %v3160_v4, %v3159_v51  ;;  %v5230_v24 = vpack.c.bf16 %v3162_v17, %v3161_v16  ;;  %v3173_v4 = vld [vmem:[%s7121_s1 + $0xa50] sm:$0xff]  ;;  %v3195_v16 = vld [vmem:[%s7121_s1 + $0xae8] sm:$0xff] }
 0x126   : > { %5208 = vmatprep.subr.bf16.mxu1 %v5389_v3  ;;  %v5257_v37 = vpack.c.bf16 %v3183_v13, %v3182_v28  ;;  %v5269_v51 = vpack.c.bf16 %v3191_v1, %v3190_v0  ;;  %v3197_v28 = vld [vmem:[%s7121_s1 + $0xaf8] sm:$0xff]  ;;  %v3181_v1 = vld [vmem:[%s5545_s4 + $0x44] sm:$0xff] }
 0x127   : > { %4416 = vmatmul.mubr.f32.vlgmr.msra.gmra.mrb[48].mxu0 %v3087_v22  ;;  %v5206_v22 = vpack.c.bf16 %v3143_v63, %v3142_v15  ;;  %v3176_v15 = vld [vmem:[%s7121_s1 + $0xa68] sm:$0xff] }
 0x128   : > { %4457 = vmatmul.mubr.f32.vlgmr.msra.gmra.mrb[48].mxu1 %v3106_v26  ;;  %5186 = vmatpush3.bf16.msra.mxu0 %v5185_v23  ;;  %v3163_v26 = vld [vmem:[%s7121_s1 + $0xa00] sm:$0xff] }
 0x129   : > { %5210 = vmatpush3.bf16.msra.mxu1 %v5209_v27  ;;  %4418 = vmatprep.mubr.msk.f32.mxu0 %vm5390_vm0, %v5391_v11 }
 0x12a   : > { %5187 = vmatprep.subr.bf16.mxu0 %v5389_v3  ;;  %5211 = vmatprep.subr.bf16.mxu1 %v5389_v3 }
 0x12b   : > { %4419 = vmatmul.mubr.f32.gmra.mrb[50].mxu0 %v3088_v31  ;;  %4459 = vmatprep.mubr.msk.f32.mxu1 %vm5390_vm0, %v5391_v11 }
 0x12c   : > { %5189 = vmatpush3.bf16.msra.mxu0 %v5188_v32  ;;  %4460 = vmatmul.mubr.f32.gmra.mrb[50].mxu1 %v3107_v34  ;;  %v3125_v32 = vld [vmem:[%s5545_s4 + $0x7f] sm:$0xff] }
 0x12d   : > { %5213 = vmatpush3.bf16.msra.mxu1 %v5212_v33  ;;  %4421 = vmatprep.mubr.msk.f32.mxu0 %vm5390_vm0, %v5391_v11 }
 0x12e   : > { %5190 = vmatprep.subr.bf16.mxu0 %v5389_v3  ;;  %5214 = vmatprep.subr.bf16.mxu1 %v5389_v3 }
 0x12f   : > { %4422 = vmatmul.mubr.f32.gmra.mrb[52].mxu0 %v3089_v39  ;;  %4462 = vmatprep.mubr.msk.f32.mxu1 %vm5390_vm0, %v5391_v11  ;;  %v3184_v39 = vld [vmem:[%s7121_s1 + $0xa90] sm:$0xff] }
 0x130   : > { %5192 = vmatpush3.bf16.msra.mxu0 %v5191_v40  ;;  %4463 = vmatmul.mubr.f32.gmra.mrb[52].mxu1 %v3108_v42  ;;  %v3185_v40 = vld [vmem:[%s7121_s1 + $0xa98] sm:$0xff] }
 0x131   : > { %5216 = vmatpush3.bf16.msra.mxu1 %v5215_v41  ;;  %5193 = vmatprep.subr.bf16.mxu0 %v5389_v3  ;;  %v3126_v41 = vld [vmem:[%s5545_s4 + $0x87] sm:$0xff]  ;;  %v5260_v43 = vpack.c.bf16 %v3185_v40, %v3184_v39 }
 0x132   : > { %5217 = vmatprep.subr.bf16.mxu1 %v5389_v3  ;;  %4497 = vmatprep.mubr.msk.f32.mxu0 %vm5390_vm0, %v5391_v11 }
 0x133   : > { %4538 = vmatprep.mubr.msk.f32.mxu1 %vm5390_vm0, %v5391_v11 }
 0x134   : > { %5195 = vmatpush3.bf16.msra.mxu0 %v5194_v47  ;;  %v3186_v47 = vld [vmem:[%s7121_s1 + $0xaa0] sm:$0xff] }
 0x135   : > { %5219 = vmatpush3.bf16.msra.mxu1 %v5218_v48  ;;  %5196 = vmatprep.subr.bf16.mxu0 %v5389_v3  ;;  %v3187_v48 = vld [vmem:[%s7121_s1 + $0xaa8] sm:$0xff] }
 0x136   : > { %5220 = vmatprep.subr.bf16.mxu1 %v5389_v3  ;;  %v5263_v52 = vpack.c.bf16 %v3187_v48, %v3186_v47  ;;  %v3200_v48 = vld [vmem:[%s7121_s1 + $0xb10] sm:$0xff] }
 0x138   : > { %5198 = vmatpush3.bf16.msra.mxu0 %v5197_v54  ;;  %v3169_v54 = vld [vmem:[%s7121_s1 + $0xa30] sm:$0xff] }
 0x139   : > { %5222 = vmatpush3.bf16.msra.mxu1 %v5221_v55  ;;  %5199 = vmatprep.subr.bf16.mxu0 %v5389_v3  ;;  %v3170_v55 = vld [vmem:[%s7121_s1 + $0xa38] sm:$0xff] }
 0x13a   : > { %v663_v2 = vpop.f32.mrb[12].mxu0  ;;  %5223 = vmatprep.subr.bf16.mxu1 %v5389_v3  ;;  %v5242_v58 = vpack.c.bf16 %v3170_v55, %v3169_v54  ;;  %v3180_v55 = vld [vmem:[%s5545_s4 + $0x3c] sm:$0xff] }
 0x13b   : > { %v677_v5 = vadd.f32 %v663_v2, %v6579_v62  ;;  %v767_v6 = vpop.f32.mrb[12].mxu1  ;;  %v3925_v7 = vpop.f32.mrb[13].mxu0 }
 0x13c   : > { %v3966_v8 = vpop.f32.mrb[13].mxu1  ;;  %5201 = vmatpush3.bf16.msra.mxu0 %v5200_v60  ;;  %v3171_v60 = vld [vmem:[%s7121_s1 + $0xa40] sm:$0xff]  ;;  %v3193_v7 = vld [vmem:[%s7121_s1 + $0xad8] sm:$0xff] }
 0x13d   : > { %v6718_v10 = vadd.f32 %v767_v6, %v677_v5  ;;  %5225 = vmatpush3.bf16.msra.mxu1 %v5224_v61  ;;  %5202 = vmatprep.subr.bf16.mxu0 %v5389_v3  ;;  %v3172_v61 = vld [vmem:[%s7121_s1 + $0xa48] sm:$0xff]  ;;  %v3174_v5 = vld [vmem:[%s7121_s1 + $0xa58] sm:$0xff]  ;;  %v3192_v6 = vld [vmem:[%s7121_s1 + $0xad0] sm:$0xff] }
 0x13e   : > { %v668_v62 = vpop.f32.mrb[14].mxu0  ;;  %5226 = vmatprep.subr.bf16.mxu1 %v5389_v3  ;;  %v5245_v2 = vpack.c.bf16 %v3172_v61, %v3171_v60  ;;  %v5248_v8 = vpack.c.bf16 %v3174_v5, %v3173_v4  ;;  %v2229_v60 = vld [vmem:[%s5545_s4 + $0x1c] sm:$0xff]  ;;  %v5287_v61 = vpack.c.bf16 %v3203_v57, %v3202_v56  ;;  %v3223_v4 = vld [vmem:[%s7121_s1 + $0xbb0] sm:$0xff] }
 0x13f   : > { %v678_v18 = vadd.f32 %v668_v62, %v6596_v12  ;;  %v772_v19 = vpop.f32.mrb[14].mxu1  ;;  %v3928_v20 = vpop.f32.mrb[15].mxu0  ;;  %v3164_v12 = vld [vmem:[%s7121_s1 + $0xa08] sm:$0xff]  ;;  %v3194_v62 = vld [vmem:[%s7121_s1 + $0xae0] sm:$0xff]  ;;  %v3224_v5 = vld [vmem:[%s7121_s1 + $0xbb8] sm:$0xff] }
 0x140   : > { %5204 = vmatpush3.bf16.msra.mxu0 %v5203_v9  ;;  %v3969_v21 = vpop.f32.mrb[15].mxu1  ;;  %v5233_v33 = vpack.c.bf16 %v3164_v12, %v3163_v26  ;;  %v5272_v9 = vpack.c.bf16 %v3193_v7, %v3192_v6  ;;  %v3177_v26 = vld [vmem:[%s7121_s1 + $0xa70] sm:$0xff]  ;;  %v3178_v12 = vld [vmem:[%s7121_s1 + $0xa78] sm:$0xff]  ;;  %v5314_v7 = vpack.c.bf16 %v3224_v5, %v3223_v4 }
 0x141   : > { %v6735_v23 = vadd.f32 %v772_v19, %v678_v18  ;;  %5228 = vmatpush3.bf16.msra.mxu1 %v5227_v14  ;;  %5205 = vmatprep.subr.bf16.mxu0 %v5389_v3  ;;  %v3175_v14 = vld [vmem:[%s7121_s1 + $0xa60] sm:$0xff]  ;;  %v3235_v56 = vld [vmem:[%s7121_s1 + $0xc10] sm:$0xff]  ;;  %v3240_v4 = vld [vmem:[%s7121_s1 + $0xc38] sm:$0xff] }
 0x142   : > { %v673_v27 = vpop.f32.mrb[16].mxu0  ;;  %5229 = vmatprep.subr.bf16.mxu1 %v5389_v3  ;;  %v5251_v21 = vpack.c.bf16 %v3176_v15, %v3175_v14  ;;  %v3225_v14 = vld [vmem:[%s7121_s1 + $0xbc0] sm:$0xff]  ;;  %v3226_v15 = vld [vmem:[%s7121_s1 + $0xbc8] sm:$0xff]  ;;  %v2434_v57 = vld [vmem:[%s5545_s4 + $0x15] sm:$0xff] }
 0x143   : > { %v679_v29 = vadd.f32 %v673_v27, %v6614_v25  ;;  %v777_v30 = vpop.f32.mrb[16].mxu1  ;;  %v3931_v31 = vpop.f32.mrb[17].mxu0  ;;  %v3166_v25 = vld [vmem:[%s7121_s1 + $0xa18] sm:$0xff]  ;;  %v3196_v27 = vld [vmem:[%s7121_s1 + $0xaf0] sm:$0xff] }
 0x144   : > { %5207 = vmatpush3.bf16.msra.mxu0 %v5206_v22  ;;  %v3972_v34 = vpop.f32.mrb[17].mxu1  ;;  %v5236_v42 = vpack.c.bf16 %v3166_v25, %v3165_v38  ;;  %v3217_v38 = vld [vmem:[%s7121_s1 + $0xb80] sm:$0xff]  ;;  %v3218_v25 = vld [vmem:[%s7121_s1 + $0xb88] sm:$0xff] }
 0x145   : > { %v6753_v35 = vadd.f32 %v777_v30, %v679_v29  ;;  %5231 = vmatpush3.bf16.msra.mxu1 %v5230_v24  ;;  %5232 = vmatprep.subr.bf16.mxu0 %v5389_v3  ;;  %v5275_v24 = vpack.c.bf16 %v3195_v16, %v3194_v62  ;;  %v5278_v34 = vpack.c.bf16 %v3197_v28, %v3196_v27  ;;  %v3208_v16 = vld [vmem:[%s7121_s1 + $0xb50] sm:$0xff]  ;;  %v3230_v27 = vld [vmem:[%s7121_s1 + $0xbe8] sm:$0xff] }
 0x146   : > { %5256 = vmatprep.subr.bf16.mxu1 %v5389_v3  ;;  %v5305_v47 = vpack.c.bf16 %v3218_v25, %v3217_v38  ;;  %v5317_v62 = vpack.c.bf16 %v3226_v15, %v3225_v14  ;;  %v3232_v38 = vld [vmem:[%s7121_s1 + $0xbf8] sm:$0xff] }
 0x147   : > { %4498 = vmatmul.mubr.f32.vlgmr.msra.gmra.mrb[54].mxu0 %v3125_v32  ;;  %v5254_v32 = vpack.c.bf16 %v3178_v12, %v3177_v26  ;;  %v3211_v26 = vld [vmem:[%s7121_s1 + $0xb68] sm:$0xff]  ;;  %v3244_v14 = vld [vmem:[%s7121_s1 + $0xc58] sm:$0xff] }
 0x148   : > { %4539 = vmatmul.mubr.f32.vlgmr.msra.gmra.mrb[54].mxu1 %v3144_v36  ;;  %5234 = vmatpush3.bf16.msra.mxu0 %v5233_v33  ;;  %v3198_v36 = vld [vmem:[%s7121_s1 + $0xb00] sm:$0xff] }
 0x149   : > { %5258 = vmatpush3.bf16.msra.mxu1 %v5257_v37  ;;  %4500 = vmatprep.mubr.msk.f32.mxu0 %vm5390_vm0, %v5391_v11 }
 0x14a   : > { %5235 = vmatprep.subr.bf16.mxu0 %v5389_v3  ;;  %5259 = vmatprep.subr.bf16.mxu1 %v5389_v3 }
 0x14b   : > { %4501 = vmatmul.mubr.f32.gmra.mrb[56].mxu0 %v3126_v41  ;;  %4541 = vmatprep.mubr.msk.f32.mxu1 %vm5390_vm0, %v5391_v11 }
 0x14c   : > { %5237 = vmatpush3.bf16.msra.mxu0 %v5236_v42  ;;  %4542 = vmatmul.mubr.f32.gmra.mrb[56].mxu1 %v3145_v44  ;;  %v2227_v42 = vld [vmem:[%s5545_s4 + $0xc] sm:$0xff] }
 0x14d   : > { %5261 = vmatpush3.bf16.msra.mxu1 %v5260_v43  ;;  %4503 = vmatprep.mubr.msk.f32.mxu0 %vm5390_vm0, %v5391_v11 }
 0x14e   : > { %5238 = vmatprep.subr.bf16.mxu0 %v5389_v3  ;;  %5262 = vmatprep.subr.bf16.mxu1 %v5389_v3 }
 0x14f   : > { %4504 = vmatmul.mubr.f32.gmra.mrb[58].mxu0 %v3127_v49  ;;  %4544 = vmatprep.mubr.msk.f32.mxu1 %vm5390_vm0, %v5391_v11  ;;  %v3219_v49 = vld [vmem:[%s7121_s1 + $0xb90] sm:$0xff] }
 0x150   : > { %5240 = vmatpush3.bf16.msra.mxu0 %v5239_v50  ;;  %4545 = vmatmul.mubr.f32.gmra.mrb[58].mxu1 %v3146_v53  ;;  %v3220_v50 = vld [vmem:[%s7121_s1 + $0xb98] sm:$0xff] }
 0x151   : > { %5264 = vmatpush3.bf16.msra.mxu1 %v5263_v52  ;;  %5241 = vmatprep.subr.bf16.mxu0 %v5389_v3  ;;  %v2228_v52 = vld [vmem:[%s5545_s4 + $0x14] sm:$0xff]  ;;  %v5308_v54 = vpack.c.bf16 %v3220_v50, %v3219_v49 }
 0x152   : > { %5265 = vmatprep.subr.bf16.mxu1 %v5389_v3  ;;  %4579 = vmatprep.mubr.msk.f32.mxu0 %vm5390_vm0, %v5391_v11  ;;  %v2433_v50 = vld [vmem:[%s5545_s4 + $0xd] sm:$0xff] }
 0x153   : > { %4620 = vmatprep.mubr.msk.f32.mxu1 %vm5390_vm0, %v5391_v11 }
 0x154   : > { %5243 = vmatpush3.bf16.msra.mxu0 %v5242_v58  ;;  %v3221_v58 = vld [vmem:[%s7121_s1 + $0xba0] sm:$0xff] }
 0x155   : > { %5267 = vmatpush3.bf16.msra.mxu1 %v5266_v59  ;;  %5244 = vmatprep.subr.bf16.mxu0 %v5389_v3  ;;  %v3222_v59 = vld [vmem:[%s7121_s1 + $0xba8] sm:$0xff] }
 0x156   : > { %5268 = vmatprep.subr.bf16.mxu1 %v5389_v3  ;;  %v5311_v0 = vpack.c.bf16 %v3222_v59, %v3221_v58  ;;  %v3215_v59 = vld [vmem:[%s5545_s4 + $0x3d] sm:$0xff] }
 0x158   : > { %5246 = vmatpush3.bf16.msra.mxu0 %v5245_v2  ;;  %v3204_v2 = vld [vmem:[%s7121_s1 + $0xb30] sm:$0xff] }
 0x159   : > { %5270 = vmatpush3.bf16.msra.mxu1 %v5269_v51  ;;  %5247 = vmatprep.subr.bf16.mxu0 %v5389_v3  ;;  %v3205_v51 = vld [vmem:[%s7121_s1 + $0xb38] sm:$0xff] }
 0x15a   : > { %v871_v63 = vpop.f32.mrb[18].mxu0  ;;  %5271 = vmatprep.subr.bf16.mxu1 %v5389_v3  ;;  %v5290_v6 = vpack.c.bf16 %v3205_v51, %v3204_v2  ;;  %v3216_v2 = vld [vmem:[%s5545_s4 + $0x45] sm:$0xff]  ;;  %v3239_v51 = vld [vmem:[%s7121_s1 + $0xc30] sm:$0xff] }
 0x15b   : > { %v885_v17 = vadd.f32 %v871_v63, %v6718_v10  ;;  %v974_v18 = vpop.f32.mrb[18].mxu1  ;;  %v4007_v19 = vpop.f32.mrb[19].mxu0  ;;  %v5338_v5 = vpack.c.bf16 %v3240_v4, %v3239_v51 }
 0x15c   : > { %v4048_v20 = vpop.f32.mrb[19].mxu1  ;;  %5249 = vmatpush3.bf16.msra.mxu0 %v5248_v8  ;;  %v3206_v8 = vld [vmem:[%s7121_s1 + $0xb40] sm:$0xff]  ;;  %v3228_v19 = vld [vmem:[%s7121_s1 + $0xbd8] sm:$0xff] }
 0x15d   : > { %v6857_v22 = vadd.f32 %v974_v18, %v885_v17  ;;  %5273 = vmatpush3.bf16.msra.mxu1 %v5272_v9  ;;  %5250 = vmatprep.subr.bf16.mxu0 %v5389_v3  ;;  %v3207_v9 = vld [vmem:[%s7121_s1 + $0xb48] sm:$0xff]  ;;  %v3209_v17 = vld [vmem:[%s7121_s1 + $0xb58] sm:$0xff]  ;;  %v3227_v18 = vld [vmem:[%s7121_s1 + $0xbd0] sm:$0xff] }
 0x15e   : > { %v876_v10 = vpop.f32.mrb[20].mxu0  ;;  %5274 = vmatprep.subr.bf16.mxu1 %v5389_v3  ;;  %v5293_v63 = vpack.c.bf16 %v3207_v9, %v3206_v8  ;;  %v5296_v20 = vpack.c.bf16 %v3209_v17, %v3208_v16  ;;  %v3243_v9 = vld [vmem:[%s7121_s1 + $0xc50] sm:$0xff] }
 0x15f   : > { %v886_v13 = vadd.f32 %v876_v10, %v6735_v23  ;;  %v979_v29 = vpop.f32.mrb[20].mxu1  ;;  %v4010_v30 = vpop.f32.mrb[21].mxu0  ;;  %v3199_v23 = vld [vmem:[%s7121_s1 + $0xb08] sm:$0xff]  ;;  %v3229_v10 = vld [vmem:[%s7121_s1 + $0xbe0] sm:$0xff]  ;;  %v5344_v15 = vpack.c.bf16 %v3244_v14, %v3243_v9 }
 0x160   : > { %5252 = vmatpush3.bf16.msra.mxu0 %v5251_v21  ;;  %v4051_v31 = vpop.f32.mrb[21].mxu1  ;;  %v5281_v43 = vpack.c.bf16 %v3199_v23, %v3198_v36  ;;  %v5320_v21 = vpack.c.bf16 %v3228_v19, %v3227_v18  ;;  %v3212_v36 = vld [vmem:[%s7121_s1 + $0xb70] sm:$0xff]  ;;  %v3213_v23 = vld [vmem:[%s7121_s1 + $0xb78] sm:$0xff] }
 0x161   : > { %v6874_v33 = vadd.f32 %v979_v29, %v886_v13  ;;  %5276 = vmatpush3.bf16.msra.mxu1 %v5275_v24  ;;  %5253 = vmatprep.subr.bf16.mxu0 %v5389_v3  ;;  %v3210_v24 = vld [vmem:[%s7121_s1 + $0xb60] sm:$0xff] }
 0x162   : > { %v881_v37 = vpop.f32.mrb[22].mxu0  ;;  %5277 = vmatprep.subr.bf16.mxu1 %v5389_v3  ;;  %v5299_v31 = vpack.c.bf16 %v3211_v26, %v3210_v24  ;;  %v3247_v26 = vld [vmem:[%s7121_s1 + $0xc70] sm:$0xff] }
 0x163   : > { %v887_v39 = vadd.f32 %v881_v37, %v6753_v35  ;;  %v984_v40 = vpop.f32.mrb[22].mxu1  ;;  %v4013_v41 = vpop.f32.mrb[23].mxu0  ;;  %v3201_v35 = vld [vmem:[%s7121_s1 + $0xb18] sm:$0xff]  ;;  %v3231_v37 = vld [vmem:[%s7121_s1 + $0xbf0] sm:$0xff] }
 0x164   : > { %5255 = vmatpush3.bf16.msra.mxu0 %v5254_v32  ;;  %v4054_v44 = vpop.f32.mrb[23].mxu1  ;;  %v5284_v53 = vpack.c.bf16 %v3201_v35, %v3200_v48 }
 0x165   : > { %v6892_v45 = vadd.f32 %v984_v40, %v887_v39  ;;  %5279 = vmatpush3.bf16.msra.mxu1 %v5278_v34  ;;  %5280 = vmatprep.subr.bf16.mxu0 %v5389_v3  ;;  %v5323_v34 = vpack.c.bf16 %v3230_v27, %v3229_v10  ;;  %v5326_v44 = vpack.c.bf16 %v3232_v38, %v3231_v37 }
 0x166   : > { %5304 = vmatprep.subr.bf16.mxu1 %v5389_v3 }
 0x167   : > { %4580 = vmatmul.mubr.f32.vlgmr.msra.gmra.mrb[60].mxu0 %v2227_v42  ;;  %v5302_v42 = vpack.c.bf16 %v3213_v23, %v3212_v36 }
 0x168   : > { %4621 = vmatmul.mubr.f32.vlgmr.msra.gmra.mrb[60].mxu1 %v3179_v46  ;;  %5282 = vmatpush3.bf16.msra.mxu0 %v5281_v43  ;;  %v3233_v46 = vld [vmem:[%s7121_s1 + $0xc00] sm:$0xff] }
 0x169   : > { %5306 = vmatpush3.bf16.msra.mxu1 %v5305_v47  ;;  %4582 = vmatprep.mubr.msk.f32.mxu0 %vm5390_vm0, %v5391_v11 }
 0x16a   : > { %5283 = vmatprep.subr.bf16.mxu0 %v5389_v3  ;;  %5307 = vmatprep.subr.bf16.mxu1 %v5389_v3 }
 0x16b   : > { %4583 = vmatmul.mubr.f32.gmra.mrb[62].mxu0 %v2228_v52  ;;  %4623 = vmatprep.mubr.msk.f32.mxu1 %vm5390_vm0, %v5391_v11 }
 0x16c   : > { %5285 = vmatpush3.bf16.msra.mxu0 %v5284_v53  ;;  %4624 = vmatmul.mubr.f32.gmra.mrb[62].mxu1 %v3180_v55  ;;  %v3214_v55 = vld [vmem:[%s5545_s4 + $0x35] sm:$0xff] }
 0x16d   : > { %5309 = vmatpush3.bf16.msra.mxu1 %v5308_v54  ;;  %4585 = vmatprep.mubr.msk.f32.mxu0 %vm5390_vm0, %v5391_v11 }
 0x16e   : > { %5286 = vmatprep.subr.bf16.mxu0 %v5389_v3  ;;  %5310 = vmatprep.subr.bf16.mxu1 %v5389_v3 }
 0x16f   : > { %4586 = vmatmul.mubr.f32.gmra.mrb[64].mxu0 %v2229_v60  ;;  %4626 = vmatprep.mubr.msk.f32.mxu1 %vm5390_vm0, %v5391_v11  ;;  %v3237_v60 = vld [vmem:[%s7121_s1 + $0xc20] sm:$0xff] }
 0x170   : > { %5288 = vmatpush3.bf16.msra.mxu0 %v5287_v61  ;;  %4627 = vmatmul.mubr.f32.gmra.mrb[64].mxu1 %v3181_v1  ;;  %v3238_v61 = vld [vmem:[%s7121_s1 + $0xc28] sm:$0xff] }
 0x171   : > { %5312 = vmatpush3.bf16.msra.mxu1 %v5311_v0  ;;  %5289 = vmatprep.subr.bf16.mxu0 %v5389_v3  ;;  %v2435_v0 = vld [vmem:[%s5545_s4 + $0x1d] sm:$0xff]  ;;  %v5335_v1 = vpack.c.bf16 %v3238_v61, %v3237_v60 }
 0x172   : > { %5313 = vmatprep.subr.bf16.mxu1 %v5389_v3  ;;  %4661 = vmatprep.mubr.msk.f32.mxu0 %vm5390_vm0, %v5391_v11 }
 0x173   : > { %4702 = vmatprep.mubr.msk.f32.mxu1 %vm5390_vm0, %v5391_v11 }
 0x174   : > { %5291 = vmatpush3.bf16.msra.mxu0 %v5290_v6  ;;  %v3241_v6 = vld [vmem:[%s7121_s1 + $0xc40] sm:$0xff] }
 0x175   : > { %5315 = vmatpush3.bf16.msra.mxu1 %v5314_v7  ;;  %5292 = vmatprep.subr.bf16.mxu0 %v5389_v3  ;;  %v3242_v7 = vld [vmem:[%s7121_s1 + $0xc48] sm:$0xff] }
 0x176   : > { %5316 = vmatprep.subr.bf16.mxu1 %v5389_v3  ;;  %v5341_v8 = vpack.c.bf16 %v3242_v7, %v3241_v6 }
 0x178   : > { %5294 = vmatpush3.bf16.msra.mxu0 %v5293_v63  ;;  %v3245_v63 = vld [vmem:[%s7121_s1 + $0xc60] sm:$0xff] }
 0x179   : > { %5318 = vmatpush3.bf16.msra.mxu1 %v5317_v62  ;;  %5295 = vmatprep.subr.bf16.mxu0 %v5389_v3  ;;  %v3246_v62 = vld [vmem:[%s7121_s1 + $0xc68] sm:$0xff] }
 0x17a   : > { %v1077_v12 = vpop.f32.mrb[24].mxu0  ;;  %5319 = vmatprep.subr.bf16.mxu1 %v5389_v3 }
 0x17b   : > { %v1091_v28 = vadd.f32 %v1077_v12, %v6857_v22  ;;  %v1180_v13 = vpop.f32.mrb[24].mxu1  ;;  %v4089_v29 = vpop.f32.mrb[25].mxu0  ;;  %v3248_v12 = vld [vmem:[%s7121_s1 + $0xc78] sm:$0xff] }
 0x17c   : > { %v4130_v30 = vpop.f32.mrb[25].mxu1  ;;  %5297 = vmatpush3.bf16.msra.mxu0 %v5296_v20 }
 0x17d   : > { %v6996_v32 = vadd.f32 %v1180_v13, %v1091_v28  ;;  %5321 = vmatpush3.bf16.msra.mxu1 %v5320_v21  ;;  %5298 = vmatprep.subr.bf16.mxu0 %v5389_v3  ;;  %v5347_v21 = vpack.c.bf16 %v3246_v62, %v3245_v63  ;;  %v5350_v30 = vpack.c.bf16 %v3248_v12, %v3247_v26 }
 0x17e   : > { %v1082_v22 = vpop.f32.mrb[26].mxu0  ;;  %5322 = vmatprep.subr.bf16.mxu1 %v5389_v3 }
 0x17f   : > { %v1092_v25 = vadd.f32 %v1082_v22, %v6874_v33  ;;  %v1185_v39 = vpop.f32.mrb[26].mxu1  ;;  %v4092_v40 = vpop.f32.mrb[27].mxu0  ;;  %v3234_v33 = vld [vmem:[%s7121_s1 + $0xc08] sm:$0xff] }
 0x180   : > { %5300 = vmatpush3.bf16.msra.mxu0 %v5299_v31  ;;  %v4133_v41 = vpop.f32.mrb[27].mxu1  ;;  %v5329_v52 = vpack.c.bf16 %v3234_v33, %v3233_v46  ;;  %v2639_v22 = vld [vmem:[%s5545_s4 + $0xe] sm:$0xff] }
 0x181   : > { %v7013_v43 = vadd.f32 %v1185_v39, %v1092_v25  ;;  %5324 = vmatpush3.bf16.msra.mxu1 %v5323_v34  ;;  %5301 = vmatprep.subr.bf16.mxu0 %v5389_v3  ;;  %v2640_v25 = vld [vmem:[%s5545_s4 + $0x16] sm:$0xff]  ;;  %v2641_v39 = vld [vmem:[%s5545_s4 + $0x1e] sm:$0xff]  ;;  %s5369_s4 = smul.u32 24, %s7125_s13 }
 0x182   : > { %v1087_v47 = vpop.f32.mrb[28].mxu0  ;;  %5325 = vmatprep.subr.bf16.mxu1 %v5389_v3 }
 0x183   : > { %v1093_v48 = vadd.f32 %v1087_v47, %v6892_v45  ;;  %v1190_v35 = vpop.f32.mrb[28].mxu1  ;;  %v4095_v49 = vpop.f32.mrb[29].mxu0  ;;  %v3236_v45 = vld [vmem:[%s7121_s1 + $0xc18] sm:$0xff]  ;;  %s170_s27 = scalar_lea.vmem %s7123_s3, %s5369_s4 }
 0x184   : > { %5303 = vmatpush3.bf16.msra.mxu0 %v5302_v42  ;;  %v4136_v53 = vpop.f32.mrb[29].mxu1  ;;  %v5332_v58 = vpack.c.bf16 %v3236_v45, %v3235_v56 }
 0x185   : > { %v7025_v54 = vadd.f32 %v1190_v35, %v1093_v48  ;;  %5327 = vmatpush3.bf16.msra.mxu1 %v5326_v44  ;;  %5328 = vmatprep.subr.bf16.mxu0 %v5389_v3 }
 0x186   : > { %5352 = vmatprep.subr.bf16.mxu1 %v5389_v3 }
 0x187   : > { %4662 = vmatmul.mubr.f32.vlgmr.msra.gmra.mrb[66].mxu0 %v2433_v50 }
 0x188   : > { %4703 = vmatmul.mubr.f32.vlgmr.msra.gmra.mrb[66].mxu1 %v3214_v55  ;;  %5330 = vmatpush3.bf16.msra.mxu0 %v5329_v52 }
 0x189   : > { %5360 = vmatpush3.bf16.msra.mxu1 %v5329_v52  ;;  %4664 = vmatprep.mubr.msk.f32.mxu0 %vm5390_vm0, %v5391_v11 }
 0x18a   : > { %5331 = vmatprep.subr.bf16.mxu0 %v5389_v3  ;;  %5353 = vmatprep.subr.bf16.mxu1 %v5389_v3 }
 0x18b   : > { %4665 = vmatmul.mubr.f32.gmra.mrb[68].mxu0 %v2434_v57  ;;  %4705 = vmatprep.mubr.msk.f32.mxu1 %vm5390_vm0, %v5391_v11 }
 0x18c   : > { %5333 = vmatpush3.bf16.msra.mxu0 %v5332_v58  ;;  %4706 = vmatmul.mubr.f32.gmra.mrb[68].mxu1 %v3215_v59 }
 0x18d   : > { %5361 = vmatpush3.bf16.msra.mxu1 %v5332_v58  ;;  %4667 = vmatprep.mubr.msk.f32.mxu0 %vm5390_vm0, %v5391_v11 }
 0x18e   : > { %5334 = vmatprep.subr.bf16.mxu0 %v5389_v3  ;;  %5354 = vmatprep.subr.bf16.mxu1 %v5389_v3 }
 0x18f   : > { %4668 = vmatmul.mubr.f32.gmra.mrb[70].mxu0 %v2435_v0  ;;  %4708 = vmatprep.mubr.msk.f32.mxu1 %vm5390_vm0, %v5391_v11 }
 0x190   : > { %5336 = vmatpush3.bf16.msra.mxu0 %v5335_v1  ;;  %4709 = vmatmul.mubr.f32.gmra.mrb[70].mxu1 %v3216_v2 }
 0x191   : > { %5362 = vmatpush3.bf16.msra.mxu1 %v5335_v1  ;;  %5337 = vmatprep.subr.bf16.mxu0 %v5389_v3 }
 0x192   : > { %5355 = vmatprep.subr.bf16.mxu1 %v5389_v3  ;;  %4743 = vmatprep.mubr.msk.f32.mxu0 %vm5390_vm0, %v5391_v11 }
 0x193   : > { %4746 = vmatprep.mubr.msk.f32.mxu1 %vm5390_vm0, %v5391_v11 }
 0x194   : > { %5339 = vmatpush3.bf16.msra.mxu0 %v5338_v5 }
 0x195   : > { %5363 = vmatpush3.bf16.msra.mxu1 %v5338_v5  ;;  %5340 = vmatprep.subr.bf16.mxu0 %v5389_v3 }
 0x196   : > { %5356 = vmatprep.subr.bf16.mxu1 %v5389_v3 }
 0x198   : > { %5342 = vmatpush3.bf16.msra.mxu0 %v5341_v8 }
 0x199   : > { %5364 = vmatpush3.bf16.msra.mxu1 %v5341_v8  ;;  %5343 = vmatprep.subr.bf16.mxu0 %v5389_v3 }
 0x19a   : > { %v1283_v16 = vpop.f32.mrb[30].mxu0  ;;  %5357 = vmatprep.subr.bf16.mxu1 %v5389_v3 }
 0x19b   : > { %v1297_v17 = vadd.f32 %v1283_v16, %v6996_v32  ;;  %v1386_v18 = vpop.f32.mrb[30].mxu1  ;;  %v4171_v19 = vpop.f32.mrb[31].mxu0 }
 0x19c   : > { %v4212_v20 = vpop.f32.mrb[31].mxu1  ;;  %5345 = vmatpush3.bf16.msra.mxu0 %v5344_v15 }
 0x19d   : > { %v1400_v24 = vadd.f32 %v1386_v18, %v1297_v17  ;;  %5365 = vmatpush3.bf16.msra.mxu1 %v5344_v15  ;;  %5346 = vmatprep.subr.bf16.mxu0 %v5389_v3 }
 0x19e   : > { %v1288_v10 = vpop.f32.mrb[32].mxu0  ;;  %5358 = vmatprep.subr.bf16.mxu1 %v5389_v3 }
 0x19f   : > { %v1298_v27 = vadd.f32 %v1288_v10, %v7013_v43  ;;  %v1391_v28 = vpop.f32.mrb[32].mxu1  ;;  %v4174_v13 = vpop.f32.mrb[33].mxu0 }
 0x1a0   : > { %5348 = vmatpush3.bf16.msra.mxu0 %v5347_v21  ;;  %v4215_v29 = vpop.f32.mrb[33].mxu1 }
 0x1a1   : > { %v1401_v31 = vadd.f32 %v1391_v28, %v1298_v27  ;;  %5366 = vmatpush3.bf16.msra.mxu1 %v5347_v21  ;;  %5349 = vmatprep.subr.bf16.mxu0 %v5389_v3 }
 0x1a2   : > { %v1293_v32 = vpop.f32.mrb[34].mxu0  ;;  %5359 = vmatprep.subr.bf16.mxu1 %v5389_v3 }
 0x1a3   : > { %v1299_v34 = vadd.f32 %v1293_v32, %v7025_v54  ;;  %v1396_v36 = vpop.f32.mrb[34].mxu1  ;;  %v4177_v23 = vpop.f32.mrb[35].mxu0 }
 0x1a4   : > { %5351 = vmatpush3.bf16.msra.mxu0 %v5350_v30  ;;  %v4218_v37 = vpop.f32.mrb[35].mxu1 }
 0x1a5   : > { %v1402_v38 = vadd.f32 %v1396_v36, %v1299_v34  ;;  %5367 = vmatpush3.bf16.msra.mxu1 %v5350_v30 }
 0x1a7   : > { %4744 = vmatmul.mubr.f32.vlgmr.msra.gmra.mrb[72].mxu0 %v2639_v22 }
 0x1a8   : > { %4747 = vmatmul.mubr.f32.vlgmr.msra.gmra.mrb[72].mxu1 %v2640_v25 }
 0x1a9   : > { %4749 = vmatprep.mubr.msk.f32.mxu1 %vm5390_vm0, %v5391_v11 }
 0x1ac   : > { %4750 = vmatmul.mubr.f32.gmra.mrb[74].mxu1 %v2641_v39 }
 0x1ba   : > { %v1489_v40 = vpop.f32.mrb[36].mxu0 }
 0x1bb   : > { %v1503_v41 = vadd.f32 %v1489_v40, %v1400_v24  ;;  %v1592_v3 = vpop.f32.mrb[36].mxu1  ;;  %v4253_v42 = vpop.f32.mrb[37].mxu0 }
 0x1bc   : > { %v4294_v43 = vpop.f32.mrb[37].mxu1 }
 0x1bd   : > { %v1606_v44 = vadd.f32 %v1592_v3, %v1503_v41 }
 0x1be   : > { %v1494_v46 = vpop.f32.mrb[38].mxu0 }
 0x1bf   : > { %v1504_v33 = vadd.f32 %v1494_v46, %v1401_v31  ;;  %v1597_v47 = vpop.f32.mrb[38].mxu1  ;;  %v4256_v48 = vpop.f32.mrb[39].mxu0 }
 0x1c0   : > { %v4297_v35 = vpop.f32.mrb[39].mxu1 }
 0x1c1   : > { %v1607_v49 = vadd.f32 %v1597_v47, %v1504_v33 }
 0x1c2   : > { %v1499_v50 = vpop.f32.mrb[40].mxu0 }
 0x1c3   : > { %v1505_v52 = vadd.f32 %v1499_v50, %v1402_v38  ;;  %v1602_v53 = vpop.f32.mrb[40].mxu1  ;;  %v4259_v54 = vpop.f32.mrb[41].mxu0 }
 0x1c4   : > { %v4300_v55 = vpop.f32.mrb[41].mxu1 }
 0x1c5   : > { %v1608_v11 = vadd.f32 %v1602_v53, %v1505_v52 }
 0x1da   : > { %v1695_v56 = vpop.f32.mrb[42].mxu0 }
 0x1db   : > { %v1709_v45 = vadd.f32 %v1695_v56, %v1606_v44  ;;  %v1798_v57 = vpop.f32.mrb[42].mxu1  ;;  %v4335_v58 = vpop.f32.mrb[43].mxu0 }
 0x1dc   : > { %v4376_v59 = vpop.f32.mrb[43].mxu1 }
 0x1dd   : > { %v1812_v60 = vadd.f32 %v1798_v57, %v1709_v45 }
 0x1de   : > { %v1700_v61 = vpop.f32.mrb[44].mxu0 }
 0x1df   : > { %v1710_v0 = vadd.f32 %v1700_v61, %v1607_v49  ;;  %v1803_v1 = vpop.f32.mrb[44].mxu1  ;;  %v4338_v2 = vpop.f32.mrb[45].mxu0 }
 0x1e0   : > { %v4379_v51 = vpop.f32.mrb[45].mxu1 }
 0x1e1   : > { %v1813_v4 = vadd.f32 %v1803_v1, %v1710_v0 }
 0x1e2   : > { %v1705_v5 = vpop.f32.mrb[46].mxu0 }
 0x1e3   : > { %v1711_v6 = vadd.f32 %v1705_v5, %v1608_v11  ;;  %v1808_v7 = vpop.f32.mrb[46].mxu1  ;;  %v4341_v8 = vpop.f32.mrb[47].mxu0 }
 0x1e4   : > { %v4382_v9 = vpop.f32.mrb[47].mxu1 }
 0x1e5   : > { %v1814_v14 = vadd.f32 %v1808_v7, %v1711_v6 }
 0x1fa   : > { %v1901_v15 = vpop.f32.mrb[48].mxu0 }
 0x1fb   : > { %v1915_v63 = vadd.f32 %v1901_v15, %v1812_v60  ;;  %v2004_v62 = vpop.f32.mrb[48].mxu1  ;;  %v4417_v16 = vpop.f32.mrb[49].mxu0 }
 0x1fc   : > { %v4458_v17 = vpop.f32.mrb[49].mxu1 }
 0x1fd   : > { %v2018_v18 = vadd.f32 %v2004_v62, %v1915_v63 }
 0x1fe   : > { %v1906_v19 = vpop.f32.mrb[50].mxu0 }
 0x1ff   : > { %v1916_v20 = vadd.f32 %v1906_v19, %v1813_v4  ;;  %v2009_v21 = vpop.f32.mrb[50].mxu1  ;;  %v4420_v24 = vpop.f32.mrb[51].mxu0 }
 0x200   : > { %v4461_v26 = vpop.f32.mrb[51].mxu1  ;;  %v3249_v24 = vld [vmem:[%s7122_s2] ss:$0 sm:$0xff] }
 0x201   : > { %v2019_v12 = vadd.f32 %v2009_v21, %v1916_v20 }
 0x202   : > { %v1911_v10 = vpop.f32.mrb[52].mxu0 }
 0x203   : > { %v1917_v27 = vadd.f32 %v1911_v10, %v1814_v14  ;;  %v2014_v28 = vpop.f32.mrb[52].mxu1  ;;  %v4423_v13 = vpop.f32.mrb[53].mxu0 }
 0x204   : > { %v4464_v29 = vpop.f32.mrb[53].mxu1 }
 0x205   : > { %v2020_v30 = vadd.f32 %v2014_v28, %v1917_v27 }
 0x21a   : > { %v2107_v31 = vpop.f32.mrb[54].mxu0 }
 0x21b   : > { %v2121_v32 = vadd.f32 %v2107_v31, %v2018_v18  ;;  %v2210_v34 = vpop.f32.mrb[54].mxu1  ;;  %v4499_v36 = vpop.f32.mrb[55].mxu0 }
 0x21c   : > { %v4540_v23 = vpop.f32.mrb[55].mxu1 }
 0x21d   : > { %v2224_v22 = vadd.f32 %v2210_v34, %v2121_v32 }
 0x21e   : > { %v2112_v37 = vpop.f32.mrb[56].mxu0 }
 0x21f   : > { %v2122_v38 = vadd.f32 %v2112_v37, %v2019_v12  ;;  %v2215_v25 = vpop.f32.mrb[56].mxu1  ;;  %v4502_v39 = vpop.f32.mrb[57].mxu0 }
 0x220   : > { %v4543_v40 = vpop.f32.mrb[57].mxu1 }
 0x221   : > { %v2225_v41 = vadd.f32 %v2215_v25, %v2122_v38 }
 0x222   : > { %v2117_v3 = vpop.f32.mrb[58].mxu0 }
 0x223   : > { %v2123_v42 = vadd.f32 %v2117_v3, %v2020_v30  ;;  %v2220_v43 = vpop.f32.mrb[58].mxu1  ;;  %v4505_v44 = vpop.f32.mrb[59].mxu0 }
 0x224   : > { %v4546_v46 = vpop.f32.mrb[59].mxu1 }
 0x225   : > { %v2226_v33 = vadd.f32 %v2220_v43, %v2123_v42 }
 0x23a   : > { %v2313_v47 = vpop.f32.mrb[60].mxu0 }
 0x23b   : > { %v2327_v48 = vadd.f32 %v2313_v47, %v2224_v22  ;;  %v2416_v35 = vpop.f32.mrb[60].mxu1  ;;  %v4581_v49 = vpop.f32.mrb[61].mxu0 }
 0x23c   : > { %v4622_v50 = vpop.f32.mrb[61].mxu1 }
 0x23d   : > { %v2430_v52 = vadd.f32 %v2416_v35, %v2327_v48 }
 0x23e   : > { %v2318_v53 = vpop.f32.mrb[62].mxu0 }
 0x23f   : > { %v2328_v54 = vadd.f32 %v2318_v53, %v2225_v41  ;;  %v2421_v55 = vpop.f32.mrb[62].mxu1  ;;  %v4584_v11 = vpop.f32.mrb[63].mxu0 }
 0x240   : > { %v4625_v56 = vpop.f32.mrb[63].mxu1 }
 0x241   : > { %v2431_v45 = vadd.f32 %v2421_v55, %v2328_v54 }
 0x242   : > { %v2323_v57 = vpop.f32.mrb[64].mxu0 }
 0x243   : > { %v2329_v58 = vadd.f32 %v2323_v57, %v2226_v33  ;;  %v2426_v59 = vpop.f32.mrb[64].mxu1  ;;  %v4587_v60 = vpop.f32.mrb[65].mxu0 }
 0x244   : > { %v4628_v61 = vpop.f32.mrb[65].mxu1 }
 0x245   : > { %v2432_v0 = vadd.f32 %v2426_v59, %v2329_v58 }
 0x25a   : > { %v2519_v1 = vpop.f32.mrb[66].mxu0 }
 0x25b   : > { %v2533_v2 = vadd.f32 %v2519_v1, %v2430_v52  ;;  %v2622_v51 = vpop.f32.mrb[66].mxu1  ;;  %v4663_v4 = vpop.f32.mrb[67].mxu0 }
 0x25c   : > { %v4704_v5 = vpop.f32.mrb[67].mxu1 }
 0x25d   : > { %v2636_v6 = vadd.f32 %v2622_v51, %v2533_v2 }
 0x25e   : > { %v2524_v7 = vpop.f32.mrb[68].mxu0 }
 0x25f   : > { %v2534_v8 = vadd.f32 %v2524_v7, %v2431_v45  ;;  %v2627_v9 = vpop.f32.mrb[68].mxu1  ;;  %v4666_v14 = vpop.f32.mrb[69].mxu0 }
 0x260   : > { %v4707_v15 = vpop.f32.mrb[69].mxu1 }
 0x261   : > { %v2637_v63 = vadd.f32 %v2627_v9, %v2534_v8 }
 0x262   : > { %v2529_v62 = vpop.f32.mrb[70].mxu0 }
 0x263   : > { %v2535_v16 = vadd.f32 %v2529_v62, %v2432_v0  ;;  %v2632_v17 = vpop.f32.mrb[70].mxu1  ;;  %v4669_v18 = vpop.f32.mrb[71].mxu0 }
 0x264   : > { %v4710_v19 = vpop.f32.mrb[71].mxu1 }
 0x265   : > { %v2638_v20 = vadd.f32 %v2632_v17, %v2535_v16 }
 0x27a   : > { %v2725_v21 = vpop.f32.mrb[72].mxu0 }
 0x27b   : > { %v2739_v26 = vadd.f32 %v2725_v21, %v2636_v6  ;;  %v2730_v12 = vpop.f32.mrb[72].mxu1  ;;  %v4745_v10 = vpop.f32.mrb[73].mxu0 }
 0x27c   : > { %v2740_v27 = vadd.f32 %v2730_v12, %v2637_v63  ;;  %v4748_v28 = vpop.f32.mrb[73].mxu1 }
 0x27d   : > { %v2749_v13 = vadd.f32 %v3249_v24, %v2739_v26 }
 0x27e   : > { %v2750_v29 = vadd.f32 %v3249_v24, %v2740_v27 }
 0x27f   : > { %2752 = vst [vmem:[%s170_s27] sm:$0xff] %v2749_v13  ;;  %v2735_v30 = vpop.f32.mrb[74].mxu1 }
 0x280   : > { %2753 = vst [vmem:[%s170_s27 + $0x8] sm:$0xff] %v2750_v29  ;;  %v2741_v31 = vadd.f32 %v2735_v30, %v2638_v20  ;;  %v4751_v32 = vpop.f32.mrb[75].mxu1 }
 0x282   : > { %v2751_v34 = vadd.f32 %v3249_v24, %v2741_v31 }
 0x284   : > { %2754 = vst [vmem:[%s170_s27 + $0x10] sm:$0xff] %v2751_v34 }
 0x285 PF: > { %s13_s12 = sadd.s32 1, %s5387_s12  }
 0x286   : > { %p10_p4 = scmp.ge.s32.totalorder %s13_s12, 4  }
 0x288   :  { %12 = sbr.rel (!%p10_p4) target bundleno = 1 (0x1), region = 89 }

</bundles_post_ra>
